<compile_context>
chip_gen: v7x
topology: tpu7x:2x2x1
jax: 0.10.0
libtpu: 0.0.40
codegen_flags: <defaults>
</compile_context>

<pallas_src>
import jax
import jax.numpy as jnp
from jax.experimental import pallas as pl
from jax.experimental.pallas import tpu as pltpu


# For output parity d (0/1), which effective tap t (0/1) each of the 3 conv taps k hits:
#   parity 0: k=0 -> t=0,  k=1,2 -> t=1      parity 1: k=0,1 -> t=0,  k=2 -> t=1
_TAP_MAP = ((0, 1, 1), (0, 0, 1))


def _upsample_conv_kernel(x_ref, w_ref, b_ref, o_ref):
    # x_ref: (1, 1, TH+2, Wp+2, C)   halo'd, zero-padded input row tile (compute dtype)
    # w_ref: (2, 2, 4, C, C)         pre-summed effective weights [di, dj, rh*2+rw, Cin, Cout]
    # b_ref: (1, C)                  bias (f32)
    # o_ref: (1, 2, 2, TH*Wp, C)     parity planes for this row tile
    C = b_ref.shape[1]
    th = x_ref.shape[2] - 2
    wp = x_ref.shape[3] - 2
    m = th * wp

    xt = x_ref[0, 0]                                          # (TH+2, Wp+2, C)

    # Only 3 column-shifted slabs are relayout-built (not 9 patches); the 9 shifted
    # patches are sublane-aligned row slices of these (Wp is a multiple of 8).
    slabs = [xt[:, cs:cs + wp, :].reshape((th + 2) * wp, C) for cs in range(3)]

    # Bias folded into the accumulator init; broadcast hoisted out of the parity loops.
    bias = jnp.broadcast_to(b_ref[0].astype(jnp.float32), (m, C))

    for di in range(2):
        for dj in range(2):
            acc = bias
            for rh in range(2):
                for rw in range(2):
                    rs = di + rh
                    patch = slabs[dj + rw][rs * wp:rs * wp + m, :]
                    # Chain of dot + add: f32 accumulation (MRB in-place accumulate on v7x).
                    acc = acc + jnp.dot(patch, w_ref[di, dj, rh * 2 + rw],
                                        preferred_element_type=jnp.float32)
            o_ref[0, di, dj] = acc.astype(o_ref.dtype)


def _effective_weights(weight_oihw, compute_dtype):
    """(O, I, 3, 3) OIHW -> (2, 2, 4, Cin, Cout) parity-packed 2x2 effective kernels.

    The 3x3 taps are pre-summed in float32 (regardless of incoming dtype) and only then
    cast to the MXU compute dtype.
    """
    C = weight_oihw.shape[0]
    w_hwio = jnp.transpose(weight_oihw.astype(jnp.float32), (2, 3, 1, 0))  # (3, 3, Cin, Cout)
    blocks = []
    for di in range(2):
        for dj in range(2):
            for rh in range(2):
                for rw in range(2):
                    acc = jnp.zeros((C, C), jnp.float32)
                    for kh in range(3):
                        for kw in range(3):
                            if _TAP_MAP[di][kh] == rh and _TAP_MAP[dj][kw] == rw:
                                acc = acc + w_hwio[kh, kw]
                    blocks.append(acc)
    return jnp.stack(blocks).reshape(2, 2, 4, C, C).astype(compute_dtype)


def _round_up(x, m):
    return (x + m - 1) // m * m


def _vmem_capacity_bytes():
    try:
        return int(pltpu.get_tpu_info().vmem_capacity_bytes)
    except Exception:
        return 64 << 20            # conservative fallback (v7x physical VMEM per TC)


def _tile_footprint_bytes(th, wp, C, in_item, out_item):
    """Approximate VMEM footprint of one grid step (pipeline buffers + in-kernel values)."""
    m = th * wp
    x_blk = (th + 2) * (wp + 2) * C * in_item      # one input buffer
    o_blk = 4 * m * C * out_item                   # one output buffer (4 parity planes)
    w_tot = 16 * C * C * in_item                   # effective weights, single-buffered
    slabs = 3 * (th + 2) * wp * C * in_item        # in-kernel column slabs
    acc = 2 * m * C * 4                            # f32 accumulator + matmul partial
    return 2 * x_blk + 2 * o_blk + w_tot + C * 4 + slabs + acc


def _pick_tile_rows(H, wp, C, in_item, out_item, budget):
    th = max(1, min(H, pl.cdiv(512, wp)))          # target matmul M = th*wp ~ 512
    while th > 1 and _tile_footprint_bytes(th, wp, C, in_item, out_item) > budget:
        th = max(1, th // 2)
    return th


def _upsample_conv_xla(x_nchw, weight_oihw, bias, factor):
    """Reference / fallback path: nearest upsample + SAME conv via XLA."""
    x_up = jnp.repeat(jnp.repeat(x_nchw, factor, axis=2), factor, axis=3)
    out = jax.lax.conv_general_dilated(
        x_up, weight_oihw, window_strides=(1, 1), padding="SAME",
        dimension_numbers=("NCHW", "OIHW", "NCHW"),
        precision=jax.lax.Precision.HIGHEST)
    return out + bias[None, :, None, None]


def upsample_block_2d(x_nchw, weight_oihw, bias, *, factor=2, compute_dtype=jnp.bfloat16):
    """x_nchw: (B, C, H, W) -> (B, C, H*2, W*2), matching UpSampleBlock2D.forward."""
    B, C, H, W = x_nchw.shape
    O, I, K, K2 = weight_oihw.shape
    assert O == C and I == C and K == K2

    out_dtype = x_nchw.dtype
    in_item = jnp.dtype(compute_dtype).itemsize
    out_item = jnp.dtype(out_dtype).itemsize

    cap = _vmem_capacity_bytes()
    budget = cap // 2

    # The parity decomposition is specialized to the module defaults (kernel=3, factor=2).
    # C % 128 != 0 would run at C/128 lane efficiency with masked partial stores, so those
    # configs (and shapes too large to fit even a 1-row tile) use the XLA path instead.
    # TODO(synk): lane-packed small-C Pallas path (pack parity/spatial into lanes).
    use_pallas = (factor == 2 and K == 3 and C % 128 == 0
                  and _tile_footprint_bytes(1, _round_up(W, 8), C, in_item, out_item) <= budget)
    if not use_pallas:
        return _upsample_conv_xla(x_nchw, weight_oihw, bias, factor)

    H2, W2 = H * factor, W * factor

    # Tiling: pad W to a multiple of 8 (sublane-aligned patch slices), pick TH so the matmul
    # M = TH*Wp is ~512 rows (bounded by VMEM), and pad H up to a multiple of TH.
    Wp = _round_up(W, 8)
    TH = _pick_tile_rows(H, Wp, C, in_item, out_item, budget)
    Hp = _round_up(H, TH)
    n_h = Hp // TH
    M = TH * Wp

    est = _tile_footprint_bytes(TH, Wp, C, in_item, out_item)
    vmem_limit = max(32 << 20, min(int(est * 1.5), 100 << 20, int(cap * 0.85)))

    # Original-resolution glue: NCHW -> NHWC, cast to the MXU compute dtype, 1-pixel zero pad
    # (+ alignment padding), then materialize halo'd row tiles so the kernel's input block is
    # bounded at TH+2 rows (never the whole frame).
    x = jnp.transpose(x_nchw, (0, 2, 3, 1)).astype(compute_dtype)         # (B, H, W, C)
    xp = jnp.pad(x, ((0, 0), (1, 1 + Hp - H), (1, 1 + Wp - W), (0, 0)))   # (B, Hp+2, Wp+2, C)
    x_tiles = jnp.stack([xp[:, h * TH:h * TH + TH + 2] for h in range(n_h)], axis=1)
    # x_tiles: (B, n_h, TH+2, Wp+2, C)

    w_eff = _effective_weights(weight_oihw, compute_dtype)                # (2, 2, 4, C, C)
    b2d = bias.reshape(1, C).astype(jnp.float32)

    cost = pl.CostEstimate(
        flops=2 * 16 * B * Hp * Wp * C * C,        # 4 parities * 4 taps * M*C*C MACs * 2
        transcendentals=0,
        bytes_accessed=int(x_tiles.size * in_item + w_eff.size * in_item
                           + b2d.size * 4 + B * 4 * Hp * Wp * C * out_item))

    def _call(const_pipeline_mode):
        extra = {} if const_pipeline_mode is None else {"pipeline_mode": const_pipeline_mode}
        return pl.pallas_call(
            _upsample_conv_kernel,
            out_shape=jax.ShapeDtypeStruct((B, 2, 2, Hp * Wp, C), out_dtype),
            grid_spec=pltpu.PrefetchScalarGridSpec(
                num_scalar_prefetch=0,
                grid=(B, n_h),
                in_specs=[
                    pl.BlockSpec((1, 1, TH + 2, Wp + 2, C), lambda b, h: (b, h, 0, 0, 0)),
                    pl.BlockSpec((2, 2, 4, C, C), lambda b, h: (0, 0, 0, 0, 0), **extra),
                    pl.BlockSpec((1, C), lambda b, h: (0, 0), **extra),
                ],
                out_specs=pl.BlockSpec((1, 2, 2, M, C), lambda b, h: (b, 0, 0, h, 0)),
            ),
            compiler_params=pltpu.CompilerParams(
                dimension_semantics=("parallel", "parallel"),
                vmem_limit_bytes=vmem_limit),
            cost_estimate=cost,
        )(x_tiles, w_eff, b2d)

    try:
        # Constant-index operands (weights, bias) are single-buffered.
        y = _call(pl.Buffered(1))
    except Exception:
        y = _call(None)            # fall back to default double buffering

    # Interleave parity planes back to NCHW: y[b,di,dj,r*Wp+s,c] == out[b,c,2r+di,2s+dj].
    # (This is one extra HBM pass over the 2Hx2WxC output; a consumer that accepts the
    # parity-plane / NHWC layout could skip it.)
    y = y.reshape(B, 2, 2, Hp, Wp, C)[:, :, :, :H, :W, :]
    out = jnp.transpose(y, (0, 5, 3, 1, 4, 2)).reshape(B, C, H2, W2)
    return out


if __name__ == "__main__":
    key = jax.random.PRNGKey(0)
    kx, kw, kb = jax.random.split(key, 3)

    # C=128 so the lane-full Pallas path is exercised (still a small problem overall).
    B, C, H, W = 2, 128, 16, 16
    K = 3
    factor = 2

    x = jax.random.normal(kx, (B, C, H, W), jnp.float32)
    fan_in = C * K * K
    bound = 1.0 / (fan_in ** 0.5)
    weight = jax.random.uniform(kw, (C, C, K, K), jnp.float32, -bound, bound)   # OIHW
    bias = jax.random.uniform(kb, (C,), jnp.float32, -bound, bound)

    ref = _upsample_conv_xla(x, weight, bias, factor)

    # Exact-arithmetic check of the parity decomposition (f32 operands).
    out_f32 = jax.block_until_ready(
        upsample_block_2d(x, weight, bias, factor=factor, compute_dtype=jnp.float32))
    assert out_f32.shape == (B, C, H * factor, W * factor)
    err_f32 = float(jnp.max(jnp.abs(out_f32 - ref)))
    assert err_f32 < 5e-3, f"f32 path max err {err_f32}"

    # Fast path: bf16 MXU operands, f32 accumulation.
    out_bf16 = jax.block_until_ready(upsample_block_2d(x, weight, bias, factor=factor))
    err_bf16 = float(jnp.max(jnp.abs(out_bf16 - ref)))
    assert err_bf16 < 5e-2, f"bf16 path max err {err_bf16}"

    # Small-C configuration exercises the XLA fallback (keeps module semantics).
    xs = jax.random.normal(kx, (2, 4, 16, 16), jnp.float32)
    ws = jax.random.uniform(kw, (4, 4, K, K), jnp.float32, -0.3, 0.3)
    bs = jax.random.uniform(kb, (4,), jnp.float32, -0.3, 0.3)
    out_s = jax.block_until_ready(upsample_block_2d(xs, ws, bs, factor=factor))
    assert out_s.shape == (2, 4, 32, 32)

    print("KERNEL_OK")
</pallas_src>

<mosaic_0001>
module attributes {stable_mosaic.version = 11 : i64} {
  func.func @_upsample_conv_kernel(%arg0: i32, %arg1: i32, %arg2: memref<1x1x18x18x128xf32, #tpu.memory_space<vmem>>, %arg3: memref<2x2x4x128x128xf32, #tpu.memory_space<vmem>>, %arg4: memref<1x128xf32, #tpu.memory_space<vmem>>, %arg5: memref<1x2x2x256x128xf32, #tpu.memory_space<vmem>>) attributes {dimension_semantics = [#tpu.dimension_semantics<parallel>, #tpu.dimension_semantics<parallel>], iteration_bounds = array<i64: 2, 1>, scalar_prefetch = 0 : i64, scratch_operands = 0 : i64, tpu.core_type = #tpu.core_type<tc>, window_params = [{transform_indices = @transform_0, window_bounds = array<i64: 1, 1, 18, 18, 128>}, {pipeline_mode = #tpu.pipeline_mode<synchronous>, transform_indices = @transform_1, window_bounds = array<i64: 2, 2, 4, 128, 128>}, {pipeline_mode = #tpu.pipeline_mode<synchronous>, transform_indices = @transform_2, window_bounds = array<i64: 1, 128>}, {transform_indices = @transform_3, window_bounds = array<i64: 1, 2, 2, 256, 128>}]} {
    %c0 = arith.constant 0 : index
    %c0_0 = arith.constant 0 : index
    %c0_1 = arith.constant 0 : index
    %c0_2 = arith.constant 0 : index
    %c0_3 = arith.constant 0 : index
    %0 = vector.load %arg2[%c0, %c0_0, %c0_1, %c0_2, %c0_3] : memref<1x1x18x18x128xf32, #tpu.memory_space<vmem>>, vector<1x1x18x18x128xf32>
    %1 = vector.shape_cast %0 : vector<1x1x18x18x128xf32> to vector<18x18x128xf32>
    %2 = vector.extract_strided_slice %1 {offsets = [0, 0, 0], sizes = [18, 16, 128], strides = [1, 1, 1]} : vector<18x18x128xf32> to vector<18x16x128xf32>
    %3 = vector.shape_cast %2 : vector<18x16x128xf32> to vector<288x128xf32>
    %4 = vector.extract_strided_slice %1 {offsets = [0, 1, 0], sizes = [18, 16, 128], strides = [1, 1, 1]} : vector<18x18x128xf32> to vector<18x16x128xf32>
    %5 = vector.shape_cast %4 : vector<18x16x128xf32> to vector<288x128xf32>
    %6 = vector.extract_strided_slice %1 {offsets = [0, 2, 0], sizes = [18, 16, 128], strides = [1, 1, 1]} : vector<18x18x128xf32> to vector<18x16x128xf32>
    %7 = vector.shape_cast %6 : vector<18x16x128xf32> to vector<288x128xf32>
    %c0_4 = arith.constant 0 : index
    %c0_5 = arith.constant 0 : index
    %8 = vector.load %arg4[%c0_4, %c0_5] : memref<1x128xf32, #tpu.memory_space<vmem>>, vector<1x128xf32>
    %9 = vector.shape_cast %8 : vector<1x128xf32> to vector<128xf32>
    %10 = vector.shape_cast %9 : vector<128xf32> to vector<1x128xf32>
    %11 = vector.broadcast %10 : vector<1x128xf32> to vector<256x128xf32>
    %12 = vector.extract_strided_slice %3 {offsets = [0, 0], sizes = [256, 128], strides = [1, 1]} : vector<288x128xf32> to vector<256x128xf32>
    %c0_6 = arith.constant 0 : index
    %c0_7 = arith.constant 0 : index
    %c0_8 = arith.constant 0 : index
    %c0_9 = arith.constant 0 : index
    %c0_10 = arith.constant 0 : index
    %13 = vector.load %arg3[%c0_6, %c0_7, %c0_8, %c0_9, %c0_10] : memref<2x2x4x128x128xf32, #tpu.memory_space<vmem>>, vector<1x1x1x128x128xf32>
    %14 = vector.shape_cast %13 : vector<1x1x1x128x128xf32> to vector<128x128xf32>
    %cst = arith.constant dense<0.000000e+00> : vector<256x128xf32>
    %15 = tpu.matmul %12, %14, %cst {dimension_numbers = #tpu.dot_dimension_numbers<[1], [0], [0], [1], [0, 0, 1, 1], [], []>} : vector<256x128xf32>, vector<128x128xf32>, vector<256x128xf32> -> vector<256x128xf32>
    %16 = arith.addf %11, %15 : vector<256x128xf32>
    %17 = vector.extract_strided_slice %5 {offsets = [0, 0], sizes = [256, 128], strides = [1, 1]} : vector<288x128xf32> to vector<256x128xf32>
    %c0_11 = arith.constant 0 : index
    %c0_12 = arith.constant 0 : index
    %c1 = arith.constant 1 : index
    %c0_13 = arith.constant 0 : index
    %c0_14 = arith.constant 0 : index
    %18 = vector.load %arg3[%c0_11, %c0_12, %c1, %c0_13, %c0_14] : memref<2x2x4x128x128xf32, #tpu.memory_space<vmem>>, vector<1x1x1x128x128xf32>
    %19 = vector.shape_cast %18 : vector<1x1x1x128x128xf32> to vector<128x128xf32>
    %cst_15 = arith.constant dense<0.000000e+00> : vector<256x128xf32>
    %20 = tpu.matmul %17, %19, %cst_15 {dimension_numbers = #tpu.dot_dimension_numbers<[1], [0], [0], [1], [0, 0, 1, 1], [], []>} : vector<256x128xf32>, vector<128x128xf32>, vector<256x128xf32> -> vector<256x128xf32>
    %21 = arith.addf %16, %20 : vector<256x128xf32>
    %22 = vector.extract_strided_slice %3 {offsets = [16, 0], sizes = [256, 128], strides = [1, 1]} : vector<288x128xf32> to vector<256x128xf32>
    %c0_16 = arith.constant 0 : index
    %c0_17 = arith.constant 0 : index
    %c2 = arith.constant 2 : index
    %c0_18 = arith.constant 0 : index
    %c0_19 = arith.constant 0 : index
    %23 = vector.load %arg3[%c0_16, %c0_17, %c2, %c0_18, %c0_19] : memref<2x2x4x128x128xf32, #tpu.memory_space<vmem>>, vector<1x1x1x128x128xf32>
    %24 = vector.shape_cast %23 : vector<1x1x1x128x128xf32> to vector<128x128xf32>
    %cst_20 = arith.constant dense<0.000000e+00> : vector<256x128xf32>
    %25 = tpu.matmul %22, %24, %cst_20 {dimension_numbers = #tpu.dot_dimension_numbers<[1], [0], [0], [1], [0, 0, 1, 1], [], []>} : vector<256x128xf32>, vector<128x128xf32>, vector<256x128xf32> -> vector<256x128xf32>
    %26 = arith.addf %21, %25 : vector<256x128xf32>
    %27 = vector.extract_strided_slice %5 {offsets = [16, 0], sizes = [256, 128], strides = [1, 1]} : vector<288x128xf32> to vector<256x128xf32>
    %c0_21 = arith.constant 0 : index
    %c0_22 = arith.constant 0 : index
    %c3 = arith.constant 3 : index
    %c0_23 = arith.constant 0 : index
    %c0_24 = arith.constant 0 : index
    %28 = vector.load %arg3[%c0_21, %c0_22, %c3, %c0_23, %c0_24] : memref<2x2x4x128x128xf32, #tpu.memory_space<vmem>>, vector<1x1x1x128x128xf32>
    %29 = vector.shape_cast %28 : vector<1x1x1x128x128xf32> to vector<128x128xf32>
    %cst_25 = arith.constant dense<0.000000e+00> : vector<256x128xf32>
    %30 = tpu.matmul %27, %29, %cst_25 {dimension_numbers = #tpu.dot_dimension_numbers<[1], [0], [0], [1], [0, 0, 1, 1], [], []>} : vector<256x128xf32>, vector<128x128xf32>, vector<256x128xf32> -> vector<256x128xf32>
    %31 = arith.addf %26, %30 : vector<256x128xf32>
    %c0_26 = arith.constant 0 : index
    %c0_27 = arith.constant 0 : index
    %c0_28 = arith.constant 0 : index
    %c0_29 = arith.constant 0 : index
    %c0_30 = arith.constant 0 : index
    %32 = vector.load %arg5[%c0_26, %c0_27, %c0_28, %c0_29, %c0_30] : memref<1x2x2x256x128xf32, #tpu.memory_space<vmem>>, vector<1x1x1x256x128xf32>
    %33 = vector.shape_cast %32 : vector<1x1x1x256x128xf32> to vector<256x128xf32>
    %34 = vector.shape_cast %31 : vector<256x128xf32> to vector<1x1x1x256x128xf32>
    tpu.vector_store %arg5[%c0_26, %c0_27, %c0_28, %c0_29, %c0_30], %34 {strides = array<i32>} : memref<1x2x2x256x128xf32, #tpu.memory_space<vmem>>, vector<1x1x1x256x128xf32>,
    %35 = vector.extract_strided_slice %5 {offsets = [0, 0], sizes = [256, 128], strides = [1, 1]} : vector<288x128xf32> to vector<256x128xf32>
    %c0_31 = arith.constant 0 : index
    %c1_32 = arith.constant 1 : index
    %c0_33 = arith.constant 0 : index
    %c0_34 = arith.constant 0 : index
    %c0_35 = arith.constant 0 : index
    %36 = vector.load %arg3[%c0_31, %c1_32, %c0_33, %c0_34, %c0_35] : memref<2x2x4x128x128xf32, #tpu.memory_space<vmem>>, vector<1x1x1x128x128xf32>
    %37 = vector.shape_cast %36 : vector<1x1x1x128x128xf32> to vector<128x128xf32>
    %cst_36 = arith.constant dense<0.000000e+00> : vector<256x128xf32>
    %38 = tpu.matmul %35, %37, %cst_36 {dimension_numbers = #tpu.dot_dimension_numbers<[1], [0], [0], [1], [0, 0, 1, 1], [], []>} : vector<256x128xf32>, vector<128x128xf32>, vector<256x128xf32> -> vector<256x128xf32>
    %39 = arith.addf %11, %38 : vector<256x128xf32>
    %40 = vector.extract_strided_slice %7 {offsets = [0, 0], sizes = [256, 128], strides = [1, 1]} : vector<288x128xf32> to vector<256x128xf32>
    %c0_37 = arith.constant 0 : index
    %c1_38 = arith.constant 1 : index
    %c1_39 = arith.constant 1 : index
    %c0_40 = arith.constant 0 : index
    %c0_41 = arith.constant 0 : index
    %41 = vector.load %arg3[%c0_37, %c1_38, %c1_39, %c0_40, %c0_41] : memref<2x2x4x128x128xf32, #tpu.memory_space<vmem>>, vector<1x1x1x128x128xf32>
    %42 = vector.shape_cast %41 : vector<1x1x1x128x128xf32> to vector<128x128xf32>
    %cst_42 = arith.constant dense<0.000000e+00> : vector<256x128xf32>
    %43 = tpu.matmul %40, %42, %cst_42 {dimension_numbers = #tpu.dot_dimension_numbers<[1], [0], [0], [1], [0, 0, 1, 1], [], []>} : vector<256x128xf32>, vector<128x128xf32>, vector<256x128xf32> -> vector<256x128xf32>
    %44 = arith.addf %39, %43 : vector<256x128xf32>
    %45 = vector.extract_strided_slice %5 {offsets = [16, 0], sizes = [256, 128], strides = [1, 1]} : vector<288x128xf32> to vector<256x128xf32>
    %c0_43 = arith.constant 0 : index
    %c1_44 = arith.constant 1 : index
    %c2_45 = arith.constant 2 : index
    %c0_46 = arith.constant 0 : index
    %c0_47 = arith.constant 0 : index
    %46 = vector.load %arg3[%c0_43, %c1_44, %c2_45, %c0_46, %c0_47] : memref<2x2x4x128x128xf32, #tpu.memory_space<vmem>>, vector<1x1x1x128x128xf32>
    %47 = vector.shape_cast %46 : vector<1x1x1x128x128xf32> to vector<128x128xf32>
    %cst_48 = arith.constant dense<0.000000e+00> : vector<256x128xf32>
    %48 = tpu.matmul %45, %47, %cst_48 {dimension_numbers = #tpu.dot_dimension_numbers<[1], [0], [0], [1], [0, 0, 1, 1], [], []>} : vector<256x128xf32>, vector<128x128xf32>, vector<256x128xf32> -> vector<256x128xf32>
    %49 = arith.addf %44, %48 : vector<256x128xf32>
    %50 = vector.extract_strided_slice %7 {offsets = [16, 0], sizes = [256, 128], strides = [1, 1]} : vector<288x128xf32> to vector<256x128xf32>
    %c0_49 = arith.constant 0 : index
    %c1_50 = arith.constant 1 : index
    %c3_51 = arith.constant 3 : index
    %c0_52 = arith.constant 0 : index
    %c0_53 = arith.constant 0 : index
    %51 = vector.load %arg3[%c0_49, %c1_50, %c3_51, %c0_52, %c0_53] : memref<2x2x4x128x128xf32, #tpu.memory_space<vmem>>, vector<1x1x1x128x128xf32>
    %52 = vector.shape_cast %51 : vector<1x1x1x128x128xf32> to vector<128x128xf32>
    %cst_54 = arith.constant dense<0.000000e+00> : vector<256x128xf32>
    %53 = tpu.matmul %50, %52, %cst_54 {dimension_numbers = #tpu.dot_dimension_numbers<[1], [0], [0], [1], [0, 0, 1, 1], [], []>} : vector<256x128xf32>, vector<128x128xf32>, vector<256x128xf32> -> vector<256x128xf32>
    %54 = arith.addf %49, %53 : vector<256x128xf32>
    %c0_55 = arith.constant 0 : index
    %c0_56 = arith.constant 0 : index
    %c1_57 = arith.constant 1 : index
    %c0_58 = arith.constant 0 : index
    %c0_59 = arith.constant 0 : index
    %55 = vector.load %arg5[%c0_55, %c0_56, %c1_57, %c0_58, %c0_59] : memref<1x2x2x256x128xf32, #tpu.memory_space<vmem>>, vector<1x1x1x256x128xf32>
    %56 = vector.shape_cast %55 : vector<1x1x1x256x128xf32> to vector<256x128xf32>
    %57 = vector.shape_cast %54 : vector<256x128xf32> to vector<1x1x1x256x128xf32>
    tpu.vector_store %arg5[%c0_55, %c0_56, %c1_57, %c0_58, %c0_59], %57 {strides = array<i32>} : memref<1x2x2x256x128xf32, #tpu.memory_space<vmem>>, vector<1x1x1x256x128xf32>,
    %58 = vector.extract_strided_slice %3 {offsets = [16, 0], sizes = [256, 128], strides = [1, 1]} : vector<288x128xf32> to vector<256x128xf32>
    %c1_60 = arith.constant 1 : index
    %c0_61 = arith.constant 0 : index
    %c0_62 = arith.constant 0 : index
    %c0_63 = arith.constant 0 : index
    %c0_64 = arith.constant 0 : index
    %59 = vector.load %arg3[%c1_60, %c0_61, %c0_62, %c0_63, %c0_64] : memref<2x2x4x128x128xf32, #tpu.memory_space<vmem>>, vector<1x1x1x128x128xf32>
    %60 = vector.shape_cast %59 : vector<1x1x1x128x128xf32> to vector<128x128xf32>
    %cst_65 = arith.constant dense<0.000000e+00> : vector<256x128xf32>
    %61 = tpu.matmul %58, %60, %cst_65 {dimension_numbers = #tpu.dot_dimension_numbers<[1], [0], [0], [1], [0, 0, 1, 1], [], []>} : vector<256x128xf32>, vector<128x128xf32>, vector<256x128xf32> -> vector<256x128xf32>
    %62 = arith.addf %11, %61 : vector<256x128xf32>
    %63 = vector.extract_strided_slice %5 {offsets = [16, 0], sizes = [256, 128], strides = [1, 1]} : vector<288x128xf32> to vector<256x128xf32>
    %c1_66 = arith.constant 1 : index
    %c0_67 = arith.constant 0 : index
    %c1_68 = arith.constant 1 : index
    %c0_69 = arith.constant 0 : index
    %c0_70 = arith.constant 0 : index
    %64 = vector.load %arg3[%c1_66, %c0_67, %c1_68, %c0_69, %c0_70] : memref<2x2x4x128x128xf32, #tpu.memory_space<vmem>>, vector<1x1x1x128x128xf32>
    %65 = vector.shape_cast %64 : vector<1x1x1x128x128xf32> to vector<128x128xf32>
    %cst_71 = arith.constant dense<0.000000e+00> : vector<256x128xf32>
    %66 = tpu.matmul %63, %65, %cst_71 {dimension_numbers = #tpu.dot_dimension_numbers<[1], [0], [0], [1], [0, 0, 1, 1], [], []>} : vector<256x128xf32>, vector<128x128xf32>, vector<256x128xf32> -> vector<256x128xf32>
    %67 = arith.addf %62, %66 : vector<256x128xf32>
    %68 = vector.extract_strided_slice %3 {offsets = [32, 0], sizes = [256, 128], strides = [1, 1]} : vector<288x128xf32> to vector<256x128xf32>
    %c1_72 = arith.constant 1 : index
    %c0_73 = arith.constant 0 : index
    %c2_74 = arith.constant 2 : index
    %c0_75 = arith.constant 0 : index
    %c0_76 = arith.constant 0 : index
    %69 = vector.load %arg3[%c1_72, %c0_73, %c2_74, %c0_75, %c0_76] : memref<2x2x4x128x128xf32, #tpu.memory_space<vmem>>, vector<1x1x1x128x128xf32>
    %70 = vector.shape_cast %69 : vector<1x1x1x128x128xf32> to vector<128x128xf32>
    %cst_77 = arith.constant dense<0.000000e+00> : vector<256x128xf32>
    %71 = tpu.matmul %68, %70, %cst_77 {dimension_numbers = #tpu.dot_dimension_numbers<[1], [0], [0], [1], [0, 0, 1, 1], [], []>} : vector<256x128xf32>, vector<128x128xf32>, vector<256x128xf32> -> vector<256x128xf32>
    %72 = arith.addf %67, %71 : vector<256x128xf32>
    %73 = vector.extract_strided_slice %5 {offsets = [32, 0], sizes = [256, 128], strides = [1, 1]} : vector<288x128xf32> to vector<256x128xf32>
    %c1_78 = arith.constant 1 : index
    %c0_79 = arith.constant 0 : index
    %c3_80 = arith.constant 3 : index
    %c0_81 = arith.constant 0 : index
    %c0_82 = arith.constant 0 : index
    %74 = vector.load %arg3[%c1_78, %c0_79, %c3_80, %c0_81, %c0_82] : memref<2x2x4x128x128xf32, #tpu.memory_space<vmem>>, vector<1x1x1x128x128xf32>
    %75 = vector.shape_cast %74 : vector<1x1x1x128x128xf32> to vector<128x128xf32>
    %cst_83 = arith.constant dense<0.000000e+00> : vector<256x128xf32>
    %76 = tpu.matmul %73, %75, %cst_83 {dimension_numbers = #tpu.dot_dimension_numbers<[1], [0], [0], [1], [0, 0, 1, 1], [], []>} : vector<256x128xf32>, vector<128x128xf32>, vector<256x128xf32> -> vector<256x128xf32>
    %77 = arith.addf %72, %76 : vector<256x128xf32>
    %c0_84 = arith.constant 0 : index
    %c1_85 = arith.constant 1 : index
    %c0_86 = arith.constant 0 : index
    %c0_87 = arith.constant 0 : index
    %c0_88 = arith.constant 0 : index
    %78 = vector.load %arg5[%c0_84, %c1_85, %c0_86, %c0_87, %c0_88] : memref<1x2x2x256x128xf32, #tpu.memory_space<vmem>>, vector<1x1x1x256x128xf32>
    %79 = vector.shape_cast %78 : vector<1x1x1x256x128xf32> to vector<256x128xf32>
    %80 = vector.shape_cast %77 : vector<256x128xf32> to vector<1x1x1x256x128xf32>
    tpu.vector_store %arg5[%c0_84, %c1_85, %c0_86, %c0_87, %c0_88], %80 {strides = array<i32>} : memref<1x2x2x256x128xf32, #tpu.memory_space<vmem>>, vector<1x1x1x256x128xf32>,
    %81 = vector.extract_strided_slice %5 {offsets = [16, 0], sizes = [256, 128], strides = [1, 1]} : vector<288x128xf32> to vector<256x128xf32>
    %c1_89 = arith.constant 1 : index
    %c1_90 = arith.constant 1 : index
    %c0_91 = arith.constant 0 : index
    %c0_92 = arith.constant 0 : index
    %c0_93 = arith.constant 0 : index
    %82 = vector.load %arg3[%c1_89, %c1_90, %c0_91, %c0_92, %c0_93] : memref<2x2x4x128x128xf32, #tpu.memory_space<vmem>>, vector<1x1x1x128x128xf32>
    %83 = vector.shape_cast %82 : vector<1x1x1x128x128xf32> to vector<128x128xf32>
    %cst_94 = arith.constant dense<0.000000e+00> : vector<256x128xf32>
    %84 = tpu.matmul %81, %83, %cst_94 {dimension_numbers = #tpu.dot_dimension_numbers<[1], [0], [0], [1], [0, 0, 1, 1], [], []>} : vector<256x128xf32>, vector<128x128xf32>, vector<256x128xf32> -> vector<256x128xf32>
    %85 = arith.addf %11, %84 : vector<256x128xf32>
    %86 = vector.extract_strided_slice %7 {offsets = [16, 0], sizes = [256, 128], strides = [1, 1]} : vector<288x128xf32> to vector<256x128xf32>
    %c1_95 = arith.constant 1 : index
    %c1_96 = arith.constant 1 : index
    %c1_97 = arith.constant 1 : index
    %c0_98 = arith.constant 0 : index
    %c0_99 = arith.constant 0 : index
    %87 = vector.load %arg3[%c1_95, %c1_96, %c1_97, %c0_98, %c0_99] : memref<2x2x4x128x128xf32, #tpu.memory_space<vmem>>, vector<1x1x1x128x128xf32>
    %88 = vector.shape_cast %87 : vector<1x1x1x128x128xf32> to vector<128x128xf32>
    %cst_100 = arith.constant dense<0.000000e+00> : vector<256x128xf32>
    %89 = tpu.matmul %86, %88, %cst_100 {dimension_numbers = #tpu.dot_dimension_numbers<[1], [0], [0], [1], [0, 0, 1, 1], [], []>} : vector<256x128xf32>, vector<128x128xf32>, vector<256x128xf32> -> vector<256x128xf32>
    %90 = arith.addf %85, %89 : vector<256x128xf32>
    %91 = vector.extract_strided_slice %5 {offsets = [32, 0], sizes = [256, 128], strides = [1, 1]} : vector<288x128xf32> to vector<256x128xf32>
    %c1_101 = arith.constant 1 : index
    %c1_102 = arith.constant 1 : index
    %c2_103 = arith.constant 2 : index
    %c0_104 = arith.constant 0 : index
    %c0_105 = arith.constant 0 : index
    %92 = vector.load %arg3[%c1_101, %c1_102, %c2_103, %c0_104, %c0_105] : memref<2x2x4x128x128xf32, #tpu.memory_space<vmem>>, vector<1x1x1x128x128xf32>
    %93 = vector.shape_cast %92 : vector<1x1x1x128x128xf32> to vector<128x128xf32>
    %cst_106 = arith.constant dense<0.000000e+00> : vector<256x128xf32>
    %94 = tpu.matmul %91, %93, %cst_106 {dimension_numbers = #tpu.dot_dimension_numbers<[1], [0], [0], [1], [0, 0, 1, 1], [], []>} : vector<256x128xf32>, vector<128x128xf32>, vector<256x128xf32> -> vector<256x128xf32>
    %95 = arith.addf %90, %94 : vector<256x128xf32>
    %96 = vector.extract_strided_slice %7 {offsets = [32, 0], sizes = [256, 128], strides = [1, 1]} : vector<288x128xf32> to vector<256x128xf32>
    %c1_107 = arith.constant 1 : index
    %c1_108 = arith.constant 1 : index
    %c3_109 = arith.constant 3 : index
    %c0_110 = arith.constant 0 : index
    %c0_111 = arith.constant 0 : index
    %97 = vector.load %arg3[%c1_107, %c1_108, %c3_109, %c0_110, %c0_111] : memref<2x2x4x128x128xf32, #tpu.memory_space<vmem>>, vector<1x1x1x128x128xf32>
    %98 = vector.shape_cast %97 : vector<1x1x1x128x128xf32> to vector<128x128xf32>
    %cst_112 = arith.constant dense<0.000000e+00> : vector<256x128xf32>
    %99 = tpu.matmul %96, %98, %cst_112 {dimension_numbers = #tpu.dot_dimension_numbers<[1], [0], [0], [1], [0, 0, 1, 1], [], []>} : vector<256x128xf32>, vector<128x128xf32>, vector<256x128xf32> -> vector<256x128xf32>
    %100 = arith.addf %95, %99 : vector<256x128xf32>
    %c0_113 = arith.constant 0 : index
    %c1_114 = arith.constant 1 : index
    %c1_115 = arith.constant 1 : index
    %c0_116 = arith.constant 0 : index
    %c0_117 = arith.constant 0 : index
    %101 = vector.load %arg5[%c0_113, %c1_114, %c1_115, %c0_116, %c0_117] : memref<1x2x2x256x128xf32, #tpu.memory_space<vmem>>, vector<1x1x1x256x128xf32>
    %102 = vector.shape_cast %101 : vector<1x1x1x256x128xf32> to vector<256x128xf32>
    %103 = vector.shape_cast %100 : vector<256x128xf32> to vector<1x1x1x256x128xf32>
    tpu.vector_store %arg5[%c0_113, %c1_114, %c1_115, %c0_116, %c0_117], %103 {strides = array<i32>} : memref<1x2x2x256x128xf32, #tpu.memory_space<vmem>>, vector<1x1x1x256x128xf32>,
    return
  }
  func.func @transform_0(%arg0: i32, %arg1: i32) -> (i32, i32, i32, i32, i32) {
    %c0_i32 = arith.constant 0 : i32
    %c0_i32_0 = arith.constant 0 : i32
    %c0_i32_1 = arith.constant 0 : i32
    %c0_i32_2 = arith.constant 0 : i32
    return %arg0, %arg1, %c0_i32, %c0_i32_0, %c0_i32_1 : i32, i32, i32, i32, i32
  }
  func.func @transform_1(%arg0: i32, %arg1: i32) -> (i32, i32, i32, i32, i32) {
    %c0_i32 = arith.constant 0 : i32
    %c0_i32_0 = arith.constant 0 : i32
    %c0_i32_1 = arith.constant 0 : i32
    %c0_i32_2 = arith.constant 0 : i32
    %c0_i32_3 = arith.constant 0 : i32
    %c0_i32_4 = arith.constant 0 : i32
    return %c0_i32, %c0_i32_0, %c0_i32_1, %c0_i32_2, %c0_i32_3 : i32, i32, i32, i32, i32
  }
  func.func @transform_2(%arg0: i32, %arg1: i32) -> (i32, i32) {
    %c0_i32 = arith.constant 0 : i32
    %c0_i32_0 = arith.constant 0 : i32
    %c0_i32_1 = arith.constant 0 : i32
    return %c0_i32, %c0_i32_0 : i32, i32
  }
  func.func @transform_3(%arg0: i32, %arg1: i32) -> (i32, i32, i32, i32, i32) {
    %c0_i32 = arith.constant 0 : i32
    %c0_i32_0 = arith.constant 0 : i32
    %c0_i32_1 = arith.constant 0 : i32
    %c0_i32_2 = arith.constant 0 : i32
    return %arg0, %c0_i32, %c0_i32_0, %arg1, %c0_i32_1 : i32, i32, i32, i32, i32
  }
}

module attributes {stable_mosaic.version = 11 : i64} {
  func.func @_upsample_conv_kernel(%arg0: i32, %arg1: i32, %arg2: memref<1x1x18x18x128xf32, #tpu.memory_space<vmem>>, %arg3: memref<2x2x4x128x128xf32, #tpu.memory_space<vmem>>, %arg4: memref<1x128xf32, #tpu.memory_space<vmem>>, %arg5: memref<1x2x2x256x128xf32, #tpu.memory_space<vmem>>) attributes {dimension_semantics = [#tpu.dimension_semantics<parallel>, #tpu.dimension_semantics<parallel>], iteration_bounds = array<i64: 2, 1>, scalar_prefetch = 0 : i64, scratch_operands = 0 : i64, tpu.core_type = #tpu.core_type<tc>, window_params = [{transform_indices = @transform_0, window_bounds = array<i64: 1, 1, 18, 18, 128>}, {pipeline_mode = #tpu.pipeline_mode<synchronous>, transform_indices = @transform_1, window_bounds = array<i64: 2, 2, 4, 128, 128>}, {pipeline_mode = #tpu.pipeline_mode<synchronous>, transform_indices = @transform_2, window_bounds = array<i64: 1, 128>}, {transform_indices = @transform_3, window_bounds = array<i64: 1, 2, 2, 256, 128>}]} {
    %c0 = arith.constant 0 : index
    %c0_0 = arith.constant 0 : index
    %c0_1 = arith.constant 0 : index
    %c0_2 = arith.constant 0 : index
    %c0_3 = arith.constant 0 : index
    %0 = vector.load %arg2[%c0, %c0_0, %c0_1, %c0_2, %c0_3] : memref<1x1x18x18x128xf32, #tpu.memory_space<vmem>>, vector<1x1x18x18x128xf32>
    %1 = vector.shape_cast %0 : vector<1x1x18x18x128xf32> to vector<18x18x128xf32>
    %2 = vector.extract_strided_slice %1 {offsets = [0, 0, 0], sizes = [18, 16, 128], strides = [1, 1, 1]} : vector<18x18x128xf32> to vector<18x16x128xf32>
    %3 = vector.shape_cast %2 : vector<18x16x128xf32> to vector<288x128xf32>
    %4 = vector.extract_strided_slice %1 {offsets = [0, 1, 0], sizes = [18, 16, 128], strides = [1, 1, 1]} : vector<18x18x128xf32> to vector<18x16x128xf32>
    %5 = vector.shape_cast %4 : vector<18x16x128xf32> to vector<288x128xf32>
    %6 = vector.extract_strided_slice %1 {offsets = [0, 2, 0], sizes = [18, 16, 128], strides = [1, 1, 1]} : vector<18x18x128xf32> to vector<18x16x128xf32>
    %7 = vector.shape_cast %6 : vector<18x16x128xf32> to vector<288x128xf32>
    %c0_4 = arith.constant 0 : index
    %c0_5 = arith.constant 0 : index
    %8 = vector.load %arg4[%c0_4, %c0_5] : memref<1x128xf32, #tpu.memory_space<vmem>>, vector<1x128xf32>
    %9 = vector.shape_cast %8 : vector<1x128xf32> to vector<128xf32>
    %10 = vector.shape_cast %9 : vector<128xf32> to vector<1x128xf32>
    %11 = vector.broadcast %10 : vector<1x128xf32> to vector<256x128xf32>
    %12 = vector.extract_strided_slice %3 {offsets = [0, 0], sizes = [256, 128], strides = [1, 1]} : vector<288x128xf32> to vector<256x128xf32>
    %c0_6 = arith.constant 0 : index
    %c0_7 = arith.constant 0 : index
    %c0_8 = arith.constant 0 : index
    %c0_9 = arith.constant 0 : index
    %c0_10 = arith.constant 0 : index
    %13 = vector.load %arg3[%c0_6, %c0_7, %c0_8, %c0_9, %c0_10] : memref<2x2x4x128x128xf32, #tpu.memory_space<vmem>>, vector<1x1x1x128x128xf32>
    %14 = vector.shape_cast %13 : vector<1x1x1x128x128xf32> to vector<128x128xf32>
    %cst = arith.constant dense<0.000000e+00> : vector<256x128xf32>
    %15 = tpu.matmul %12, %14, %cst {dimension_numbers = #tpu.dot_dimension_numbers<[1], [0], [0], [1], [0, 0, 1, 1], [], []>} : vector<256x128xf32>, vector<128x128xf32>, vector<256x128xf32> -> vector<256x128xf32>
    %16 = arith.addf %11, %15 : vector<256x128xf32>
    %17 = vector.extract_strided_slice %5 {offsets = [0, 0], sizes = [256, 128], strides = [1, 1]} : vector<288x128xf32> to vector<256x128xf32>
    %c0_11 = arith.constant 0 : index
    %c0_12 = arith.constant 0 : index
    %c1 = arith.constant 1 : index
    %c0_13 = arith.constant 0 : index
    %c0_14 = arith.constant 0 : index
    %18 = vector.load %arg3[%c0_11, %c0_12, %c1, %c0_13, %c0_14] : memref<2x2x4x128x128xf32, #tpu.memory_space<vmem>>, vector<1x1x1x128x128xf32>
    %19 = vector.shape_cast %18 : vector<1x1x1x128x128xf32> to vector<128x128xf32>
    %cst_15 = arith.constant dense<0.000000e+00> : vector<256x128xf32>
    %20 = tpu.matmul %17, %19, %cst_15 {dimension_numbers = #tpu.dot_dimension_numbers<[1], [0], [0], [1], [0, 0, 1, 1], [], []>} : vector<256x128xf32>, vector<128x128xf32>, vector<256x128xf32> -> vector<256x128xf32>
    %21 = arith.addf %16, %20 : vector<256x128xf32>
    %22 = vector.extract_strided_slice %3 {offsets = [16, 0], sizes = [256, 128], strides = [1, 1]} : vector<288x128xf32> to vector<256x128xf32>
    %c0_16 = arith.constant 0 : index
    %c0_17 = arith.constant 0 : index
    %c2 = arith.constant 2 : index
    %c0_18 = arith.constant 0 : index
    %c0_19 = arith.constant 0 : index
    %23 = vector.load %arg3[%c0_16, %c0_17, %c2, %c0_18, %c0_19] : memref<2x2x4x128x128xf32, #tpu.memory_space<vmem>>, vector<1x1x1x128x128xf32>
    %24 = vector.shape_cast %23 : vector<1x1x1x128x128xf32> to vector<128x128xf32>
    %cst_20 = arith.constant dense<0.000000e+00> : vector<256x128xf32>
    %25 = tpu.matmul %22, %24, %cst_20 {dimension_numbers = #tpu.dot_dimension_numbers<[1], [0], [0], [1], [0, 0, 1, 1], [], []>} : vector<256x128xf32>, vector<128x128xf32>, vector<256x128xf32> -> vector<256x128xf32>
    %26 = arith.addf %21, %25 : vector<256x128xf32>
    %27 = vector.extract_strided_slice %5 {offsets = [16, 0], sizes = [256, 128], strides = [1, 1]} : vector<288x128xf32> to vector<256x128xf32>
    %c0_21 = arith.constant 0 : index
    %c0_22 = arith.constant 0 : index
    %c3 = arith.constant 3 : index
    %c0_23 = arith.constant 0 : index
    %c0_24 = arith.constant 0 : index
    %28 = vector.load %arg3[%c0_21, %c0_22, %c3, %c0_23, %c0_24] : memref<2x2x4x128x128xf32, #tpu.memory_space<vmem>>, vector<1x1x1x128x128xf32>
    %29 = vector.shape_cast %28 : vector<1x1x1x128x128xf32> to vector<128x128xf32>
    %cst_25 = arith.constant dense<0.000000e+00> : vector<256x128xf32>
    %30 = tpu.matmul %27, %29, %cst_25 {dimension_numbers = #tpu.dot_dimension_numbers<[1], [0], [0], [1], [0, 0, 1, 1], [], []>} : vector<256x128xf32>, vector<128x128xf32>, vector<256x128xf32> -> vector<256x128xf32>
    %31 = arith.addf %26, %30 : vector<256x128xf32>
    %c0_26 = arith.constant 0 : index
    %c0_27 = arith.constant 0 : index
    %c0_28 = arith.constant 0 : index
    %c0_29 = arith.constant 0 : index
    %c0_30 = arith.constant 0 : index
    %32 = vector.load %arg5[%c0_26, %c0_27, %c0_28, %c0_29, %c0_30] : memref<1x2x2x256x128xf32, #tpu.memory_space<vmem>>, vector<1x1x1x256x128xf32>
    %33 = vector.shape_cast %32 : vector<1x1x1x256x128xf32> to vector<256x128xf32>
    %34 = vector.shape_cast %31 : vector<256x128xf32> to vector<1x1x1x256x128xf32>
    tpu.vector_store %arg5[%c0_26, %c0_27, %c0_28, %c0_29, %c0_30], %34 {strides = array<i32>} : memref<1x2x2x256x128xf32, #tpu.memory_space<vmem>>, vector<1x1x1x256x128xf32>,
    %35 = vector.extract_strided_slice %5 {offsets = [0, 0], sizes = [256, 128], strides = [1, 1]} : vector<288x128xf32> to vector<256x128xf32>
    %c0_31 = arith.constant 0 : index
    %c1_32 = arith.constant 1 : index
    %c0_33 = arith.constant 0 : index
    %c0_34 = arith.constant 0 : index
    %c0_35 = arith.constant 0 : index
    %36 = vector.load %arg3[%c0_31, %c1_32, %c0_33, %c0_34, %c0_35] : memref<2x2x4x128x128xf32, #tpu.memory_space<vmem>>, vector<1x1x1x128x128xf32>
    %37 = vector.shape_cast %36 : vector<1x1x1x128x128xf32> to vector<128x128xf32>
    %cst_36 = arith.constant dense<0.000000e+00> : vector<256x128xf32>
    %38 = tpu.matmul %35, %37, %cst_36 {dimension_numbers = #tpu.dot_dimension_numbers<[1], [0], [0], [1], [0, 0, 1, 1], [], []>} : vector<256x128xf32>, vector<128x128xf32>, vector<256x128xf32> -> vector<256x128xf32>
    %39 = arith.addf %11, %38 : vector<256x128xf32>
    %40 = vector.extract_strided_slice %7 {offsets = [0, 0], sizes = [256, 128], strides = [1, 1]} : vector<288x128xf32> to vector<256x128xf32>
    %c0_37 = arith.constant 0 : index
    %c1_38 = arith.constant 1 : index
    %c1_39 = arith.constant 1 : index
    %c0_40 = arith.constant 0 : index
    %c0_41 = arith.constant 0 : index
    %41 = vector.load %arg3[%c0_37, %c1_38, %c1_39, %c0_40, %c0_41] : memref<2x2x4x128x128xf32, #tpu.memory_space<vmem>>, vector<1x1x1x128x128xf32>
    %42 = vector.shape_cast %41 : vector<1x1x1x128x128xf32> to vector<128x128xf32>
    %cst_42 = arith.constant dense<0.000000e+00> : vector<256x128xf32>
    %43 = tpu.matmul %40, %42, %cst_42 {dimension_numbers = #tpu.dot_dimension_numbers<[1], [0], [0], [1], [0, 0, 1, 1], [], []>} : vector<256x128xf32>, vector<128x128xf32>, vector<256x128xf32> -> vector<256x128xf32>
    %44 = arith.addf %39, %43 : vector<256x128xf32>
    %45 = vector.extract_strided_slice %5 {offsets = [16, 0], sizes = [256, 128], strides = [1, 1]} : vector<288x128xf32> to vector<256x128xf32>
    %c0_43 = arith.constant 0 : index
    %c1_44 = arith.constant 1 : index
    %c2_45 = arith.constant 2 : index
    %c0_46 = arith.constant 0 : index
    %c0_47 = arith.constant 0 : index
    %46 = vector.load %arg3[%c0_43, %c1_44, %c2_45, %c0_46, %c0_47] : memref<2x2x4x128x128xf32, #tpu.memory_space<vmem>>, vector<1x1x1x128x128xf32>
    %47 = vector.shape_cast %46 : vector<1x1x1x128x128xf32> to vector<128x128xf32>
    %cst_48 = arith.constant dense<0.000000e+00> : vector<256x128xf32>
    %48 = tpu.matmul %45, %47, %cst_48 {dimension_numbers = #tpu.dot_dimension_numbers<[1], [0], [0], [1], [0, 0, 1, 1], [], []>} : vector<256x128xf32>, vector<128x128xf32>, vector<256x128xf32> -> vector<256x128xf32>
    %49 = arith.addf %44, %48 : vector<256x128xf32>
    %50 = vector.extract_strided_slice %7 {offsets = [16, 0], sizes = [256, 128], strides = [1, 1]} : vector<288x128xf32> to vector<256x128xf32>
    %c0_49 = arith.constant 0 : index
    %c1_50 = arith.constant 1 : index
    %c3_51 = arith.constant 3 : index
    %c0_52 = arith.constant 0 : index
    %c0_53 = arith.constant 0 : index
    %51 = vector.load %arg3[%c0_49, %c1_50, %c3_51, %c0_52, %c0_53] : memref<2x2x4x128x128xf32, #tpu.memory_space<vmem>>, vector<1x1x1x128x128xf32>
    %52 = vector.shape_cast %51 : vector<1x1x1x128x128xf32> to vector<128x128xf32>
    %cst_54 = arith.constant dense<0.000000e+00> : vector<256x128xf32>
    %53 = tpu.matmul %50, %52, %cst_54 {dimension_numbers = #tpu.dot_dimension_numbers<[1], [0], [0], [1], [0, 0, 1, 1], [], []>} : vector<256x128xf32>, vector<128x128xf32>, vector<256x128xf32> -> vector<256x128xf32>
    %54 = arith.addf %49, %53 : vector<256x128xf32>
    %c0_55 = arith.constant 0 : index
    %c0_56 = arith.constant 0 : index
    %c1_57 = arith.constant 1 : index
    %c0_58 = arith.constant 0 : index
    %c0_59 = arith.constant 0 : index
    %55 = vector.load %arg5[%c0_55, %c0_56, %c1_57, %c0_58, %c0_59] : memref<1x2x2x256x128xf32, #tpu.memory_space<vmem>>, vector<1x1x1x256x128xf32>
    %56 = vector.shape_cast %55 : vector<1x1x1x256x128xf32> to vector<256x128xf32>
    %57 = vector.shape_cast %54 : vector<256x128xf32> to vector<1x1x1x256x128xf32>
    tpu.vector_store %arg5[%c0_55, %c0_56, %c1_57, %c0_58, %c0_59], %57 {strides = array<i32>} : memref<1x2x2x256x128xf32, #tpu.memory_space<vmem>>, vector<1x1x1x256x128xf32>,
    %58 = vector.extract_strided_slice %3 {offsets = [16, 0], sizes = [256, 128], strides = [1, 1]} : vector<288x128xf32> to vector<256x128xf32>
    %c1_60 = arith.constant 1 : index
    %c0_61 = arith.constant 0 : index
    %c0_62 = arith.constant 0 : index
    %c0_63 = arith.constant 0 : index
    %c0_64 = arith.constant 0 : index
    %59 = vector.load %arg3[%c1_60, %c0_61, %c0_62, %c0_63, %c0_64] : memref<2x2x4x128x128xf32, #tpu.memory_space<vmem>>, vector<1x1x1x128x128xf32>
    %60 = vector.shape_cast %59 : vector<1x1x1x128x128xf32> to vector<128x128xf32>
    %cst_65 = arith.constant dense<0.000000e+00> : vector<256x128xf32>
    %61 = tpu.matmul %58, %60, %cst_65 {dimension_numbers = #tpu.dot_dimension_numbers<[1], [0], [0], [1], [0, 0, 1, 1], [], []>} : vector<256x128xf32>, vector<128x128xf32>, vector<256x128xf32> -> vector<256x128xf32>
    %62 = arith.addf %11, %61 : vector<256x128xf32>
    %63 = vector.extract_strided_slice %5 {offsets = [16, 0], sizes = [256, 128], strides = [1, 1]} : vector<288x128xf32> to vector<256x128xf32>
    %c1_66 = arith.constant 1 : index
    %c0_67 = arith.constant 0 : index
    %c1_68 = arith.constant 1 : index
    %c0_69 = arith.constant 0 : index
    %c0_70 = arith.constant 0 : index
    %64 = vector.load %arg3[%c1_66, %c0_67, %c1_68, %c0_69, %c0_70] : memref<2x2x4x128x128xf32, #tpu.memory_space<vmem>>, vector<1x1x1x128x128xf32>
    %65 = vector.shape_cast %64 : vector<1x1x1x128x128xf32> to vector<128x128xf32>
    %cst_71 = arith.constant dense<0.000000e+00> : vector<256x128xf32>
    %66 = tpu.matmul %63, %65, %cst_71 {dimension_numbers = #tpu.dot_dimension_numbers<[1], [0], [0], [1], [0, 0, 1, 1], [], []>} : vector<256x128xf32>, vector<128x128xf32>, vector<256x128xf32> -> vector<256x128xf32>
    %67 = arith.addf %62, %66 : vector<256x128xf32>
    %68 = vector.extract_strided_slice %3 {offsets = [32, 0], sizes = [256, 128], strides = [1, 1]} : vector<288x128xf32> to vector<256x128xf32>
    %c1_72 = arith.constant 1 : index
    %c0_73 = arith.constant 0 : index
    %c2_74 = arith.constant 2 : index
    %c0_75 = arith.constant 0 : index
    %c0_76 = arith.constant 0 : index
    %69 = vector.load %arg3[%c1_72, %c0_73, %c2_74, %c0_75, %c0_76] : memref<2x2x4x128x128xf32, #tpu.memory_space<vmem>>, vector<1x1x1x128x128xf32>
    %70 = vector.shape_cast %69 : vector<1x1x1x128x128xf32> to vector<128x128xf32>
    %cst_77 = arith.constant dense<0.000000e+00> : vector<256x128xf32>
    %71 = tpu.matmul %68, %70, %cst_77 {dimension_numbers = #tpu.dot_dimension_numbers<[1], [0], [0], [1], [0, 0, 1, 1], [], []>} : vector<256x128xf32>, vector<128x128xf32>, vector<256x128xf32> -> vector<256x128xf32>
    %72 = arith.addf %67, %71 : vector<256x128xf32>
    %73 = vector.extract_strided_slice %5 {offsets = [32, 0], sizes = [256, 128], strides = [1, 1]} : vector<288x128xf32> to vector<256x128xf32>
    %c1_78 = arith.constant 1 : index
    %c0_79 = arith.constant 0 : index
    %c3_80 = arith.constant 3 : index
    %c0_81 = arith.constant 0 : index
    %c0_82 = arith.constant 0 : index
    %74 = vector.load %arg3[%c1_78, %c0_79, %c3_80, %c0_81, %c0_82] : memref<2x2x4x128x128xf32, #tpu.memory_space<vmem>>, vector<1x1x1x128x128xf32>
    %75 = vector.shape_cast %74 : vector<1x1x1x128x128xf32> to vector<128x128xf32>
    %cst_83 = arith.constant dense<0.000000e+00> : vector<256x128xf32>
    %76 = tpu.matmul %73, %75, %cst_83 {dimension_numbers = #tpu.dot_dimension_numbers<[1], [0], [0], [1], [0, 0, 1, 1], [], []>} : vector<256x128xf32>, vector<128x128xf32>, vector<256x128xf32> -> vector<256x128xf32>
    %77 = arith.addf %72, %76 : vector<256x128xf32>
    %c0_84 = arith.constant 0 : index
    %c1_85 = arith.constant 1 : index
    %c0_86 = arith.constant 0 : index
    %c0_87 = arith.constant 0 : index
    %c0_88 = arith.constant 0 : index
    %78 = vector.load %arg5[%c0_84, %c1_85, %c0_86, %c0_87, %c0_88] : memref<1x2x2x256x128xf32, #tpu.memory_space<vmem>>, vector<1x1x1x256x128xf32>
    %79 = vector.shape_cast %78 : vector<1x1x1x256x128xf32> to vector<256x128xf32>
    %80 = vector.shape_cast %77 : vector<256x128xf32> to vector<1x1x1x256x128xf32>
    tpu.vector_store %arg5[%c0_84, %c1_85, %c0_86, %c0_87, %c0_88], %80 {strides = array<i32>} : memref<1x2x2x256x128xf32, #tpu.memory_space<vmem>>, vector<1x1x1x256x128xf32>,
    %81 = vector.extract_strided_slice %5 {offsets = [16, 0], sizes = [256, 128], strides = [1, 1]} : vector<288x128xf32> to vector<256x128xf32>
    %c1_89 = arith.constant 1 : index
    %c1_90 = arith.constant 1 : index
    %c0_91 = arith.constant 0 : index
    %c0_92 = arith.constant 0 : index
    %c0_93 = arith.constant 0 : index
    %82 = vector.load %arg3[%c1_89, %c1_90, %c0_91, %c0_92, %c0_93] : memref<2x2x4x128x128xf32, #tpu.memory_space<vmem>>, vector<1x1x1x128x128xf32>
    %83 = vector.shape_cast %82 : vector<1x1x1x128x128xf32> to vector<128x128xf32>
    %cst_94 = arith.constant dense<0.000000e+00> : vector<256x128xf32>
    %84 = tpu.matmul %81, %83, %cst_94 {dimension_numbers = #tpu.dot_dimension_numbers<[1], [0], [0], [1], [0, 0, 1, 1], [], []>} : vector<256x128xf32>, vector<128x128xf32>, vector<256x128xf32> -> vector<256x128xf32>
    %85 = arith.addf %11, %84 : vector<256x128xf32>
    %86 = vector.extract_strided_slice %7 {offsets = [16, 0], sizes = [256, 128], strides = [1, 1]} : vector<288x128xf32> to vector<256x128xf32>
    %c1_95 = arith.constant 1 : index
    %c1_96 = arith.constant 1 : index
    %c1_97 = arith.constant 1 : index
    %c0_98 = arith.constant 0 : index
    %c0_99 = arith.constant 0 : index
    %87 = vector.load %arg3[%c1_95, %c1_96, %c1_97, %c0_98, %c0_99] : memref<2x2x4x128x128xf32, #tpu.memory_space<vmem>>, vector<1x1x1x128x128xf32>
    %88 = vector.shape_cast %87 : vector<1x1x1x128x128xf32> to vector<128x128xf32>
    %cst_100 = arith.constant dense<0.000000e+00> : vector<256x128xf32>
    %89 = tpu.matmul %86, %88, %cst_100 {dimension_numbers = #tpu.dot_dimension_numbers<[1], [0], [0], [1], [0, 0, 1, 1], [], []>} : vector<256x128xf32>, vector<128x128xf32>, vector<256x128xf32> -> vector<256x128xf32>
    %90 = arith.addf %85, %89 : vector<256x128xf32>
    %91 = vector.extract_strided_slice %5 {offsets = [32, 0], sizes = [256, 128], strides = [1, 1]} : vector<288x128xf32> to vector<256x128xf32>
    %c1_101 = arith.constant 1 : index
    %c1_102 = arith.constant 1 : index
    %c2_103 = arith.constant 2 : index
    %c0_104 = arith.constant 0 : index
    %c0_105 = arith.constant 0 : index
    %92 = vector.load %arg3[%c1_101, %c1_102, %c2_103, %c0_104, %c0_105] : memref<2x2x4x128x128xf32, #tpu.memory_space<vmem>>, vector<1x1x1x128x128xf32>
    %93 = vector.shape_cast %92 : vector<1x1x1x128x128xf32> to vector<128x128xf32>
    %cst_106 = arith.constant dense<0.000000e+00> : vector<256x128xf32>
    %94 = tpu.matmul %91, %93, %cst_106 {dimension_numbers = #tpu.dot_dimension_numbers<[1], [0], [0], [1], [0, 0, 1, 1], [], []>} : vector<256x128xf32>, vector<128x128xf32>, vector<256x128xf32> -> vector<256x128xf32>
    %95 = arith.addf %90, %94 : vector<256x128xf32>
    %96 = vector.extract_strided_slice %7 {offsets = [32, 0], sizes = [256, 128], strides = [1, 1]} : vector<288x128xf32> to vector<256x128xf32>
    %c1_107 = arith.constant 1 : index
    %c1_108 = arith.constant 1 : index
    %c3_109 = arith.constant 3 : index
    %c0_110 = arith.constant 0 : index
    %c0_111 = arith.constant 0 : index
    %97 = vector.load %arg3[%c1_107, %c1_108, %c3_109, %c0_110, %c0_111] : memref<2x2x4x128x128xf32, #tpu.memory_space<vmem>>, vector<1x1x1x128x128xf32>
    %98 = vector.shape_cast %97 : vector<1x1x1x128x128xf32> to vector<128x128xf32>
    %cst_112 = arith.constant dense<0.000000e+00> : vector<256x128xf32>
    %99 = tpu.matmul %96, %98, %cst_112 {dimension_numbers = #tpu.dot_dimension_numbers<[1], [0], [0], [1], [0, 0, 1, 1], [], []>} : vector<256x128xf32>, vector<128x128xf32>, vector<256x128xf32> -> vector<256x128xf32>
    %100 = arith.addf %95, %99 : vector<256x128xf32>
    %c0_113 = arith.constant 0 : index
    %c1_114 = arith.constant 1 : index
    %c1_115 = arith.constant 1 : index
    %c0_116 = arith.constant 0 : index
    %c0_117 = arith.constant 0 : index
    %101 = vector.load %arg5[%c0_113, %c1_114, %c1_115, %c0_116, %c0_117] : memref<1x2x2x256x128xf32, #tpu.memory_space<vmem>>, vector<1x1x1x256x128xf32>
    %102 = vector.shape_cast %101 : vector<1x1x1x256x128xf32> to vector<256x128xf32>
    %103 = vector.shape_cast %100 : vector<256x128xf32> to vector<1x1x1x256x128xf32>
    tpu.vector_store %arg5[%c0_113, %c1_114, %c1_115, %c0_116, %c0_117], %103 {strides = array<i32>} : memref<1x2x2x256x128xf32, #tpu.memory_space<vmem>>, vector<1x1x1x256x128xf32>,
    return
  }
  func.func @transform_0(%arg0: i32, %arg1: i32) -> (i32, i32, i32, i32, i32) {
    %c0_i32 = arith.constant 0 : i32
    %c0_i32_0 = arith.constant 0 : i32
    %c0_i32_1 = arith.constant 0 : i32
    %c0_i32_2 = arith.constant 0 : i32
    return %arg0, %arg1, %c0_i32, %c0_i32_0, %c0_i32_1 : i32, i32, i32, i32, i32
  }
  func.func @transform_1(%arg0: i32, %arg1: i32) -> (i32, i32, i32, i32, i32) {
    %c0_i32 = arith.constant 0 : i32
    %c0_i32_0 = arith.constant 0 : i32
    %c0_i32_1 = arith.constant 0 : i32
    %c0_i32_2 = arith.constant 0 : i32
    %c0_i32_3 = arith.constant 0 : i32
    %c0_i32_4 = arith.constant 0 : i32
    return %c0_i32, %c0_i32_0, %c0_i32_1, %c0_i32_2, %c0_i32_3 : i32, i32, i32, i32, i32
  }
  func.func @transform_2(%arg0: i32, %arg1: i32) -> (i32, i32) {
    %c0_i32 = arith.constant 0 : i32
    %c0_i32_0 = arith.constant 0 : i32
    %c0_i32_1 = arith.constant 0 : i32
    return %c0_i32, %c0_i32_0 : i32, i32
  }
  func.func @transform_3(%arg0: i32, %arg1: i32) -> (i32, i32, i32, i32, i32) {
    %c0_i32 = arith.constant 0 : i32
    %c0_i32_0 = arith.constant 0 : i32
    %c0_i32_1 = arith.constant 0 : i32
    %c0_i32_2 = arith.constant 0 : i32
    return %arg0, %c0_i32, %c0_i32_0, %arg1, %c0_i32_1 : i32, i32, i32, i32, i32
  }
}

</mosaic_0001>

<bundles_post_ra>
// kernel: tpu_custom_call.1
= control target key start
LH: loop header
LB: loop body
LE: loop exit
PB: predicated region body
PF: predicated region fallthrough
CT: control target
= control target key end

     0   :  { %8 = vsyncpa [#allocation3], 0  ;;  %s10161_s0 = inlined_call_operand.vmem [shape: f32[2,1,18,18,128], index: 0, kind: input, shape index: {}]   ;;  %s10162_s1 = inlined_call_operand.hbm [shape: f32[2,2,4,128,128], index: 1, kind: input, shape index: {}]   ;;  %s10163_s2 = inlined_call_operand.vmem [shape: f32[1,128], index: 2, kind: input, shape index: {}]   ;;  %s10164_s3 = inlined_call_operand.hbm [shape: f32[2,2,2,256,128], index: 3, kind: output, shape index: {}]  }
   0x1   :  { %9 = vsyncpa [#allocation4], 0 }
   0x2   :  { %11 = vsyncpa [#allocation4 + $0x1], 0  ;;  %s8632_s12 = smov 0   ;;  %s8634_s13 = smov 0  }
   0x3   :  { %s8636_s14 = smov 0   ;;  %s8638_s15 = smov 0  }
   0x4   :  { %s8640_s16 = smov 0   ;;  %s8642_s17 = smov 0  }
   0x5 LB: > { %s5206_s18 = sadd.s32 4294967295, %s8604_s17   ;;  %s5207_s19 = sadd.s32 4294967294, %s8604_s17   ;;  %s8604_s17 = sphi %s8642_s17, %s17_s17   ;;  %s8600_s16 = sphi %s8640_s16, %s10556_s16   ;;  %s8596_s15 = sphi %s8638_s15, %s10555_s15   ;;  %s8592_s14 = sphi %s8636_s14, %s10554_s14   ;;  %s8588_s13 = sphi %s8634_s13, %s10553_s13   ;;  %s8584_s12 = sphi %s8632_s12, %s10552_s12  }
   0x6   : > { %s29_s20 = sadd.s32 1, %s8600_s16  ;;  %s108_s21 = sadd.s32 1, %s8592_s14 }
   0x7   : > { %p31_p0 = scmp.ge.s32.totalorder %s29_s20, 2  ;;  %p118_p1 = scmp.ne.s32.totalorder %s8592_s14, %s8588_s13 }
   0x8   : > { %p119_p2 = scmp.eq.s32.totalorder %s5206_s18, 1  ;;  %p124_p3 = scmp.ne.s32.totalorder %s8588_s13, %s8584_s12 }
   0x9   : > { %s10558_s20 = smov (%p31_p0, %s29_s20), 0  ;;  %p125_p5 = scmp.eq.s32.totalorder %s5207_s19, 1 }
   0xa   : > { %p8672_p4 = por %p119_p2, %p118_p1  ;;  %s103_s23 = ssub.s32 %s8600_s16, %s10558_s20 }
   0xb   : > { %p5208_p6 = scmp.ge.s32.totalorder %s8604_s17, 1  ;;  %p106_p7 = scmp.eq.s32.totalorder %s103_s23, 0 }
   0xc   : > { %s10318_s22 = scalar_select %p8672_p4, 1, 0 }
   0xd   : > { %p8679_p8 = por %p125_p5, %p124_p3  ;;  %p132_p9 = scmp.lt.s32.totalorder %s8604_s17, 3 }
   0xe   : > { %s8685_s25 = scalar_select %p106_p7, %s8592_s14, %s108_s21  }
   0xf   : > { %s10319_s24 = scalar_select %p8679_p8, 1, 0 }
  0x10   : > { %p8687_p10 = pnand %p5208_p6, %p132_p9  ;;  %p8691_p11 = scmp.eq.s32.totalorder %s5206_s18, 0 }
  0x11   : > { %s8606_s28 = smov [#allocation2]   ;;  %s8494_s6 = scalar_lea.hbm %s10162_s1, 32768 }
  0x12   : > { %s10320_s26 = scalar_select %p8687_p10, 1, 0 }
  0x13   : > { %s10321_s27 = scalar_select %p8691_p11, 1, 0 }
  0x14   : > { %p8397_p12 = pneg %p8687_p10  ;;  %s144_s29 = sshll.u32 %s8606_s28, 4  ;;  %s145_s29 = int_to_ptr.vmem [resolvable:$true] %s144_s29 }
  0x15   : > { %p8495_p0 = scmp.ne.s32.totalorder %s10162_s1, %s8494_s6  ;;  %p8501_p5 = scmp.lt.u32.totalorder %s8494_s6, %s10162_s1 }
  0x16   : > { %p8699_p13 = pnand %p8691_p11, %p8397_p12 }
  0x18   : > { %p8496_p1 = pneg %p8699_p13 }
  0x1a   : > { %p8497_p2 = pnand %p8496_p1, %p8495_p0 }
  0x1c   : > { %p8498_p3 = pneg %p8497_p2 }
  0x1e   : > { %p8503_p6 = pnand %p8501_p5, %p8498_p3 }
  0x20   : > { %8506 = shalt.err (!%p8503_p6)
}
  0x21   : > { %s8507_s11 = scalar_lea.vmem %s145_s29, 32768  ;;  %p8515_p8 = scmp.lt.s32.totalorder %s145_s29, %s145_s29 }
  0x22   : > { %p8508_p7 = scmp.ne.s32.totalorder %s145_s29, %s8507_s11  ;;  %p8516_p4 = scmp.lt.s32.totalorder %s8507_s11, %s8507_s11 }
  0x24   : > { %p8510_p9 = pnand %p8508_p7, %p8496_p1  ;;  %p8517_p11 = por %p8516_p4, %p8515_p8 }
  0x26   : > { %p8511_p12 = pneg %p8510_p9 }
  0x28   : > { %p8518_p10 = pnand %p8517_p11, %p8511_p12 }
  0x2a   : > { %8521 = shalt.err (!%p8518_p10)
}
  0x2b   : > { %s8607_s18 = smov 128   ;;  %s8608_s19 = smov 8  }
  0x2c   : > { %8400 = dma.hbm_to_vmem [thread:$0]  (!%p8699_p13), %s10162_s1, 32768, %s145_s29, [#allocation3], %s8607_s18, %s8607_s18, %s8608_s19  }
  0x2d   : > { %p10323_p0 = scmp.ne.s32.totalorder %s10320_s26, 0 }
  0x2f   : > { %175 = sbr.rel (%p10323_p0) target bundleno = 831 (0x33f), region = 32 }
  0x36   : > { %p10324_p2 = scmp.ne.s32.totalorder %s10321_s27, 0 }
  0x38   : > { %8575 = dma.done.wait (%p10324_p2), [#allocation3], 32768  }
  0x39   : > { %8577 = vsyncadd (%p10324_p2), [#allocation3], 4294934528  ;;  %p203_p4 = scmp.lt.s32.totalorder %s8596_s15, 1  ;;  %v582_v0 = vld [vmem:[#allocation2] sm:$0xff]  ;;  %v583_v1 = vld [vmem:[#allocation2 + $0x8] sm:$0xff]  ;;  %vm321_vm0 = vcmask 1046528  }
  0x3a   : > { %v1710_v2 = vld [vmem:[#allocation2 + $0x200] sm:$0xff]  ;;  %v7366_v3 = vpack.c.bf16 %v583_v1, %v582_v0  ;;  %v1711_v4 = vld [vmem:[#allocation2 + $0x208] sm:$0xff]  ;;  %v584_v5 = vld [vmem:[#allocation2 + $0x10] sm:$0xff]  ;;  %vm448_vm1 = vcmask 1045504   ;;  %s200_s4 = sand.u32 1, %s8588_s13   ;;  %s5317_s9 = sshll.u32 %s8596_s15, 14 }
  0x3b   : > { %s8727_s28 = scalar_select %p203_p4, %s8596_s15, 1  ;;  %v585_v6 = vld [vmem:[#allocation2 + $0x18] sm:$0xff]  ;;  %v7494_v7 = vpack.c.bf16 %v1711_v4, %v1710_v2  ;;  %v1712_v9 = vld [vmem:[#allocation2 + $0x210] sm:$0xff]  ;;  %v586_v11 = vld [vmem:[#allocation2 + $0x20] sm:$0xff] }
  0x3c   : > { %v7370_v8 = vpack.c.bf16 %v585_v6, %v584_v5  ;;  %v1713_v10 = vld [vmem:[#allocation2 + $0x218] sm:$0xff]  ;;  %7367 = vmatprep.subr.bf16.mxu0 %v7366_v3  ;;  %v587_v13 = vld [vmem:[#allocation2 + $0x28] sm:$0xff]  ;;  %v1714_v14 = vld [vmem:[#allocation2 + $0x220] sm:$0xff]  ;;  %s9721_s5 = sshll.u32 %s200_s4, 10  ;;  %s10105_s21 = scalar_lea.hbm %s10164_s3, %s5317_s9 }
  0x3d   : > { %v7498_v12 = vpack.c.bf16 %v1713_v10, %v1712_v9  ;;  %v1715_v15 = vld [vmem:[#allocation2 + $0x228] sm:$0xff]  ;;  %s8390_s26 = smul.u32 432, %s8727_s28  ;;  %7495 = vmatprep.subr.bf16.mxu1 %v7494_v7  ;;  %7369 = vmatpush3.bf16.msra.mxu0 %v7366_v3  ;;  %v7374_v16 = vpack.c.bf16 %v587_v13, %v586_v11  ;;  %v588_v18 = vld [vmem:[#allocation2 + $0x30] sm:$0xff]  ;;  %v589_v19 = vld [vmem:[#allocation2 + $0x38] sm:$0xff]  ;;  %s9738_s8 = scalar_lea.vmem [#allocation5], %s9721_s5 }
  0x3e   : > { %7497 = vmatpush3.bf16.msra.mxu1 %v7494_v7  ;;  %7371 = vmatprep.subr.bf16.mxu0 %v7370_v8  ;;  %v7502_v17 = vpack.c.bf16 %v1715_v15, %v1714_v14  ;;  %v1716_v20 = vld [vmem:[#allocation2 + $0x230] sm:$0xff]  ;;  %v1717_v21 = vld [vmem:[#allocation2 + $0x238] sm:$0xff]  ;;  %v7378_v22 = vpack.c.bf16 %v589_v19, %v588_v18  ;;  %v590_v24 = vld [vmem:[#allocation2 + $0x40] sm:$0xff]  ;;  %s5112_s10 = sshll.u32 %s9738_s8, 4  ;;  %s10115_s23 = scalar_lea.sflag [#allocation4], %s200_s4  ;;  %s10107_s10 = int_to_ptr.vmem [resolvable:$true] %s5112_s10 }
  0x3f   : > { %7499 = vmatprep.subr.bf16.mxu1 %v7498_v12  ;;  %s8733_s30 = scalar_lea.vmem %s10161_s0, %s8390_s26  ;;  %v7506_v23 = vpack.c.bf16 %v1717_v21, %v1716_v20  ;;  %v591_v25 = vld [vmem:[#allocation2 + $0x48] sm:$0xff]  ;;  %v1718_v27 = vld [vmem:[#allocation2 + $0x240] sm:$0xff]  ;;  %v592_v36 = vld [vmem:[#allocation2 + $0x50] sm:$0xff]  ;;  %s8522_s28 = scalar_lea.vmem %s10107_s10, 16384 }
  0x40   : > { %v213_v26 = vld [vmem:[%s8733_s30] sm:$0xff]  ;;  %v1719_v28 = vld [vmem:[#allocation2 + $0x248] sm:$0xff]  ;;  %v7382_v34 = vpack.c.bf16 %v591_v25, %v590_v24  ;;  %v593_v37 = vld [vmem:[#allocation2 + $0x58] sm:$0xff]  ;;  %p8523_p8 = scmp.ne.s32.totalorder %s10107_s10, %s8522_s28  ;;  %p10550_p10 = scmp.ne.s32.totalorder %s10318_s22, 0 }
  0x41   : > { %7373 = vmatpush3.bf16.msra.mxu0 %v7370_v8  ;;  %v322_v29 = vrot.slane %v213_v26, 1  ;;  %v449_v30 = vrot.slane %v213_v26, 2  ;;  %6118 = vmatprep.mubr.f32.mxu0 %v213_v26  ;;  %v8737_v31 = vld [vmem:[%s8733_s30 + $0x8] sm:$0xff]  ;;  %v7510_v35 = vpack.c.bf16 %v1719_v28, %v1718_v27  ;;  %v215_v39 = vld [vmem:[%s8733_s30 + $0x10] sm:$0x3]  ;;  %v1721_v41 = vld [vmem:[#allocation2 + $0x258] sm:$0xff]  ;;  %v7386_v44 = vpack.c.bf16 %v593_v37, %v592_v36 }
  0x42   : > { %7501 = vmatpush3.bf16.msra.mxu1 %v7498_v12  ;;  %7375 = vmatprep.subr.bf16.mxu0 %v7374_v16  ;;  %v323_v32 = vrot.slane %v8737_v31, 1  ;;  %v450_v33 = vrot.slane %v8737_v31, 2  ;;  %v1720_v40 = vld [vmem:[#allocation2 + $0x250] sm:$0xff]  ;;  %v452_v42 = vrot.slane %v215_v39, 2  ;;  %v594_v46 = vld [vmem:[#allocation2 + $0x60] sm:$0xff]  ;;  %v595_v47 = vld [vmem:[#allocation2 + $0x68] sm:$0xff]  ;;  %p8524_p11 = pnand %p8523_p8, %p10550_p10 }
  0x43   : > { %7503 = vmatprep.subr.bf16.mxu1 %v7502_v17  ;;  %v7514_v45 = vpack.c.bf16 %v1721_v41, %v1720_v40  ;;  %v1722_v48 = vld [vmem:[#allocation2 + $0x260] sm:$0xff]  ;;  %v1723_v49 = vld [vmem:[#allocation2 + $0x268] sm:$0xff]  ;;  %v7390_v51 = vpack.c.bf16 %v595_v47, %v594_v46  ;;  %v596_v53 = vld [vmem:[#allocation2 + $0x70] sm:$0xff]  ;;  %v325_v2 = vrot.slane %v215_v39, 1  ;;  %s8609_s26 = smov [#allocation5]  }
  0x44   : > { %v8744_v38 = vsel %vm321_vm0, %v322_v29, %v323_v32  ;;  %v8749_v43 = vsel %vm448_vm1, %v449_v30, %v450_v33  ;;  %v8752_v50 = vsel %vm448_vm1, %v450_v33, %v452_v42  ;;  %v7518_v52 = vpack.c.bf16 %v1723_v49, %v1722_v48  ;;  %v597_v54 = vld [vmem:[#allocation2 + $0x78] sm:$0xff]  ;;  %v1724_v55 = vld [vmem:[#allocation2 + $0x270] sm:$0xff]  ;;  %v856_v59 = vld [vmem:[#allocation2 + $0x80] sm:$0xff]  ;;  %p8525_p13 = pneg %p8524_p11  ;;  %s8526_s27 = sshll.u32 %s8609_s26, 4  ;;  %s8527_s27 = int_to_ptr.vmem [resolvable:$false] %s8526_s27 }
  0x45   : > { %7377 = vmatpush3.bf16.msra.mxu0 %v7374_v16  ;;  %6438 = vmatprep.mubr.f32.mxu1 %v8744_v38  ;;  %v1725_v56 = vld [vmem:[#allocation2 + $0x278] sm:$0xff]  ;;  %v7394_v57 = vpack.c.bf16 %v597_v54, %v596_v53  ;;  %v857_v60 = vld [vmem:[#allocation2 + $0x88] sm:$0xff]  ;;  %v1984_v61 = vld [vmem:[#allocation2 + $0x280] sm:$0xff]  ;;  %v8774_v13 = vsel %vm321_vm0, %v323_v32, %v325_v2  ;;  %s8528_s29 = scalar_lea.vmem %s8527_s27, 32768  ;;  %p8529_p1 = scmp.lt.s32.totalorder %s10107_s10, %s8527_s27 }
  0x46   : > { %7505 = vmatpush3.bf16.msra.mxu1 %v7502_v17  ;;  %7379 = vmatprep.subr.bf16.mxu0 %v7378_v22  ;;  %v7522_v58 = vpack.c.bf16 %v1725_v56, %v1724_v55  ;;  %v1985_v62 = vld [vmem:[#allocation2 + $0x288] sm:$0xff]  ;;  %v8755_v63 = vld [vmem:[%s8733_s30 + $0x18] sm:$0xff]  ;;  %v8758_v0 = vld [vmem:[%s8733_s30 + $0x20] sm:$0xff]  ;;  %v7398_v1 = vpack.c.bf16 %v857_v60, %v856_v59  ;;  %p8530_p3 = scmp.lt.s32.totalorder %s8528_s29, %s8522_s28 }
  0x47   : > { %7507 = vmatprep.subr.bf16.mxu1 %v7506_v23  ;;  %10325 = vst [vmem:[#allocation8_spill] sm:$0xff] %v8755_v63  ;;  %10326 = vst [vmem:[#allocation9_spill] sm:$0xff] %v8758_v0  ;;  %v7526_v3 = vpack.c.bf16 %v1985_v62, %v1984_v61  ;;  %v8761_v4 = vld [vmem:[%s8733_s30 + $0x28] sm:$0x3]  ;;  %v8764_v5 = vld [vmem:[%s8733_s30 + $0x30] sm:$0xff]  ;;  %v327_v6 = vrot.slane %v8755_v63, 1 }
  0x48   : > { %v328_v7 = vrot.slane %v8758_v0, 1  ;;  %v8769_v8 = vld [vmem:[%s8733_s30 + $0x38] sm:$0xff]  ;;  %v858_v9 = vld [vmem:[#allocation2 + $0x90] sm:$0xff]  ;;  %v330_v14 = vrot.slane %v8761_v4, 1  ;;  %v332_v15 = vrot.slane %v8764_v5, 1  ;;  %v8783_v19 = vld [vmem:[%s8733_s30 + $0x48] sm:$0xff]  ;;  %p8531_p5 = por %p8530_p3, %p8529_p1 }
  0x49   : > { %7381 = vmatpush3.bf16.msra.mxu0 %v7378_v22  ;;  %v859_v10 = vld [vmem:[#allocation2 + $0x98] sm:$0xff]  ;;  %v1986_v11 = vld [vmem:[#allocation2 + $0x290] sm:$0xff]  ;;  %v333_v16 = vrot.slane %v8769_v8, 1  ;;  %v8780_v18 = vld [vmem:[%s8733_s30 + $0x40] sm:$0x3]  ;;  %v337_v30 = vrot.slane %v8783_v19, 1 }
  0x4a   : > { %7509 = vmatpush3.bf16.msra.mxu1 %v7506_v23  ;;  %7383 = vmatprep.subr.bf16.mxu0 %v7382_v34  ;;  %v1987_v12 = vld [vmem:[#allocation2 + $0x298] sm:$0xff]  ;;  %v7402_v17 = vpack.c.bf16 %v859_v10, %v858_v9  ;;  %v8787_v20 = vsel %vm321_vm0, %v327_v6, %v328_v7  ;;  %v8790_v22 = vld [vmem:[%s8733_s30 + $0x50] sm:$0xff]  ;;  %v860_v23 = vld [vmem:[#allocation2 + $0xa0] sm:$0xff]  ;;  %v8795_v27 = vsel %vm321_vm0, %v328_v7, %v330_v14  ;;  %v335_v28 = vrot.slane %v8780_v18, 1  ;;  %p8532_p6 = pnand %p8531_p5, %p8525_p13 }
  0x4b   : > { %7511 = vmatprep.subr.bf16.mxu1 %v7510_v35  ;;  %v7530_v21 = vpack.c.bf16 %v1987_v12, %v1986_v11  ;;  %v861_v24 = vld [vmem:[#allocation2 + $0xa8] sm:$0xff]  ;;  %v1988_v25 = vld [vmem:[#allocation2 + $0x2a0] sm:$0xff]  ;;  %v8800_v29 = vsel %vm321_vm0, %v332_v15, %v333_v16  ;;  %v8805_v32 = vld [vmem:[%s8733_s30 + $0x58] sm:$0x3] }
  0x4c   : > { %v1989_v26 = vld [vmem:[#allocation2 + $0x2a8] sm:$0xff]  ;;  %v8808_v33 = vld [vmem:[%s8733_s30 + $0x60] sm:$0xff]  ;;  %v862_v37 = vld [vmem:[#allocation2 + $0xb0] sm:$0xff]  ;;  %v8818_v42 = vsel %vm321_vm0, %v333_v16, %v335_v28 }
  0x4d   : > { %7385 = vmatpush3.bf16.msra.mxu0 %v7382_v34  ;;  %v7406_v34 = vpack.c.bf16 %v861_v24, %v860_v23  ;;  %v7534_v36 = vpack.c.bf16 %v1989_v26, %v1988_v25  ;;  %v863_v39 = vld [vmem:[#allocation2 + $0xb8] sm:$0xff]  ;;  %v1990_v40 = vld [vmem:[#allocation2 + $0x2b0] sm:$0xff]  ;;  %v342_v46 = vrot.slane %v8808_v33, 1  ;;  %v864_v54 = vld [vmem:[#allocation2 + $0xc0] sm:$0xff] }
  0x4e   : > { %7513 = vmatpush3.bf16.msra.mxu1 %v7510_v35  ;;  %7387 = vmatprep.subr.bf16.mxu0 %v7386_v44  ;;  %v8812_v35 = vld [vmem:[%s8733_s30 + $0x68] sm:$0xff]  ;;  %v1991_v41 = vld [vmem:[#allocation2 + $0x2b8] sm:$0xff]  ;;  %v8827_v48 = vld [vmem:[%s8733_s30 + $0x70] sm:$0x3] }
  0x4f   : > { %7515 = vmatprep.subr.bf16.mxu1 %v7514_v45  ;;  %v343_v47 = vrot.slane %v8812_v35, 1  ;;  %v8830_v49 = vld [vmem:[%s8733_s30 + $0x78] sm:$0xff]  ;;  %v7538_v53 = vpack.c.bf16 %v1991_v41, %v1990_v40  ;;  %v865_v55 = vld [vmem:[#allocation2 + $0xc8] sm:$0xff]  ;;  %v1992_v56 = vld [vmem:[#allocation2 + $0x2c0] sm:$0xff]  ;;  %v345_v59 = vrot.slane %v8827_v48, 1 }
  0x50   : > { %v347_v61 = vrot.slane %v8830_v49, 1  ;;  %v8852_v2 = vld [vmem:[%s8733_s30 + $0x90] sm:$0xff]  ;;  %v8856_v6 = vld [vmem:[%s8733_s30 + $0x98] sm:$0xff]  ;;  %v8871_v23 = vld [vmem:[%s8733_s30 + $0xa0] sm:$0x3] }
  0x51   : > { %7389 = vmatpush3.bf16.msra.mxu0 %v7386_v44  ;;  %v340_v44 = vrot.slane %v8805_v32, 1  ;;  %v8844_v60 = vsel %vm321_vm0, %v342_v46, %v343_v47  ;;  %v866_v9 = vld [vmem:[#allocation2 + $0xd0] sm:$0xff]  ;;  %v867_v10 = vld [vmem:[#allocation2 + $0xd8] sm:$0xff]  ;;  %v8862_v14 = vsel %vm321_vm0, %v343_v47, %v345_v59  ;;  %v8874_v24 = vld [vmem:[%s8733_s30 + $0xa8] sm:$0xff] }
  0x52   : > { %7517 = vmatpush3.bf16.msra.mxu1 %v7514_v45  ;;  %7391 = vmatprep.subr.bf16.mxu0 %v7390_v51  ;;  %v1994_v11 = vld [vmem:[#allocation2 + $0x2d0] sm:$0xff]  ;;  %v1995_v12 = vld [vmem:[#allocation2 + $0x2d8] sm:$0xff]  ;;  %v7418_v25 = vpack.c.bf16 %v867_v10, %v866_v9  ;;  %v357_v41 = vrot.slane %v8874_v24, 1  ;;  %v8896_v47 = vld [vmem:[%s8733_s30 + $0xc0] sm:$0xff] }
  0x53   : > { %7519 = vmatprep.subr.bf16.mxu1 %v7518_v52  ;;  %v8878_v26 = vld [vmem:[%s8733_s30 + $0xb0] sm:$0xff]  ;;  %v7546_v28 = vpack.c.bf16 %v1995_v12, %v1994_v11  ;;  %v8893_v46 = vld [vmem:[%s8733_s30 + $0xb8] sm:$0x3] }
  0x54   : > { %v1999_v59 = vld [vmem:[#allocation2 + $0x2f8] sm:$0xff]  ;;  %v8915_v10 = vld [vmem:[%s8733_s30 + $0xd0] sm:$0x3] }
  0x55   : > { %7393 = vmatpush3.bf16.msra.mxu0 %v7390_v51  ;;  %v7410_v51 = vpack.c.bf16 %v863_v39, %v862_v37  ;;  %v355_v39 = vrot.slane %v8871_v23, 1  ;;  %v8918_v11 = vld [vmem:[%s8733_s30 + $0xd8] sm:$0xff] }
  0x56   : > { %7521 = vmatpush3.bf16.msra.mxu1 %v7518_v52  ;;  %7395 = vmatprep.subr.bf16.mxu0 %v7394_v57  ;;  %v8834_v52 = vld [vmem:[%s8733_s30 + $0x80] sm:$0xff] }
  0x57   : > { %7523 = vmatprep.subr.bf16.mxu1 %v7522_v58  ;;  %v348_v62 = vrot.slane %v8834_v52, 1 }
  0x59   : > { %7397 = vmatpush3.bf16.msra.mxu0 %v7394_v57  ;;  %v1993_v57 = vld [vmem:[#allocation2 + $0x2c8] sm:$0xff]  ;;  %v8866_v16 = vsel %vm321_vm0, %v347_v61, %v348_v62 }
  0x5a   : > { %7525 = vmatpush3.bf16.msra.mxu1 %v7522_v58  ;;  %7399 = vmatprep.subr.bf16.mxu0 %v7398_v1  ;;  %v7542_v7 = vpack.c.bf16 %v1993_v57, %v1992_v56  ;;  %v871_v56 = vld [vmem:[#allocation2 + $0xf8] sm:$0xff]  ;;  %v1998_v57 = vld [vmem:[#allocation2 + $0x2f0] sm:$0xff] }
  0x5b   : > { %7527 = vmatprep.subr.bf16.mxu1 %v7526_v3 }
  0x5c   : > { %6119 = vmatmul.mubr.f32.vlgmr.msra.gmra.mrb[0].mxu0 %v8737_v31  ;;  %v338_v31 = vrot.slane %v8790_v22, 1 }
  0x5d   : > { %6439 = vmatmul.mubr.f32.vlgmr.msra.gmra.mrb[0].mxu1 %v8774_v13  ;;  %7401 = vmatpush3.bf16.msra.mxu0 %v7398_v1  ;;  %v8849_v1 = vld [vmem:[%s8733_s30 + $0x88] sm:$0x3] }
  0x5e   : > { %7529 = vmatpush3.bf16.msra.mxu1 %v7526_v3  ;;  %6121 = vmatprep.mubr.f32.mxu0 %v8755_v63  ;;  %v8822_v45 = vsel %vm321_vm0, %v337_v30, %v338_v31  ;;  %v8840_v58 = vsel %vm321_vm0, %v338_v31, %v340_v44  ;;  %v7414_v3 = vpack.c.bf16 %v865_v55, %v864_v54  ;;  %v350_v15 = vrot.slane %v8849_v1, 1  ;;  %v868_v30 = vld [vmem:[#allocation2 + $0xe0] sm:$0xff]  ;;  %v869_v31 = vld [vmem:[#allocation2 + $0xe8] sm:$0xff]  ;;  %v870_v55 = vld [vmem:[#allocation2 + $0xf0] sm:$0xff] }
  0x5f   : > { %6441 = vmatprep.mubr.f32.mxu1 %v8787_v20  ;;  %7403 = vmatprep.subr.bf16.mxu0 %v7402_v17  ;;  %v358_v44 = vrot.slane %v8878_v26, 1  ;;  %v7426_v12 = vpack.c.bf16 %v871_v56, %v870_v55  ;;  %v8937_v55 = vld [vmem:[%s8733_s30 + $0xe8] sm:$0x3] }
  0x60   : > { %6122 = vmatmul.mubr.f32.gmra.mrb[2].mxu0 %v8758_v0  ;;  %7531 = vmatprep.subr.bf16.mxu1 %v7530_v21  ;;  %v8884_v37 = vsel %vm321_vm0, %v348_v62, %v350_v15  ;;  %v360_v62 = vrot.slane %v8893_v46, 1  ;;  %v8922_v15 = vld [vmem:[%s8733_s30 + $0xe0] sm:$0xff]  ;;  %10330 = vst [vmem:[#allocation13_spill] sm:$0xff] %v8937_v55 }
  0x61   : > { %6442 = vmatmul.mubr.f32.gmra.mrb[2].mxu1 %v8795_v27  ;;  %6124 = vmatprep.mubr.f32.mxu0 %v8764_v5 }
  0x62   : > { %6444 = vmatprep.mubr.f32.mxu1 %v8800_v29  ;;  %7405 = vmatpush3.bf16.msra.mxu0 %v7402_v17  ;;  %v352_v17 = vrot.slane %v8852_v2, 1 }
  0x63   : > { %7533 = vmatpush3.bf16.msra.mxu1 %v7530_v21  ;;  %7407 = vmatprep.subr.bf16.mxu0 %v7406_v34  ;;  %v353_v21 = vrot.slane %v8856_v6, 1 }
  0x64   : > { %6125 = vmatmul.mubr.f32.gmra.mrb[4].mxu0 %v8769_v8  ;;  %7535 = vmatprep.subr.bf16.mxu1 %v7534_v36 }
  0x65   : > { %6445 = vmatmul.mubr.f32.gmra.mrb[4].mxu1 %v8818_v42  ;;  %6127 = vmatprep.mubr.f32.mxu0 %v8783_v19  ;;  %v8888_v40 = vsel %vm321_vm0, %v352_v17, %v353_v21  ;;  %v8906_v61 = vsel %vm321_vm0, %v353_v21, %v355_v39  ;;  %v7554_v17 = vpack.c.bf16 %v1999_v59, %v1998_v57  ;;  %v1130_v21 = vld [vmem:[#allocation2 + $0x100] sm:$0xff]  ;;  %v367_v39 = vrot.slane %v8918_v11, 1  ;;  %v8946_v57 = vld [vmem:[%s8733_s30 + $0xf8] sm:$0xff] }
  0x66   : > { %6447 = vmatprep.mubr.f32.mxu1 %v8822_v45  ;;  %7409 = vmatpush3.bf16.msra.mxu0 %v7406_v34  ;;  %v1996_v34 = vld [vmem:[#allocation2 + $0x2e0] sm:$0xff]  ;;  %10332 = vst [vmem:[#allocation15_spill] sm:$0xff] %v8946_v57  ;;  %v370_v59 = vrot.slane %v8937_v55, 1 }
  0x67   : > { %7537 = vmatpush3.bf16.msra.mxu1 %v7534_v36  ;;  %7411 = vmatprep.subr.bf16.mxu0 %v7410_v51  ;;  %v1997_v36 = vld [vmem:[#allocation2 + $0x2e8] sm:$0xff] }
  0x68   : > { %6128 = vmatmul.mubr.f32.gmra.mrb[6].mxu0 %v8790_v22  ;;  %7539 = vmatprep.subr.bf16.mxu1 %v7538_v53  ;;  %v7550_v54 = vpack.c.bf16 %v1997_v36, %v1996_v34  ;;  %v365_v34 = vrot.slane %v8915_v10, 1 }
  0x69   : > { %6448 = vmatmul.mubr.f32.gmra.mrb[6].mxu1 %v8840_v58  ;;  %6130 = vmatprep.mubr.f32.mxu0 %v8808_v33 }
  0x6a   : > { %6450 = vmatprep.mubr.f32.mxu1 %v8844_v60  ;;  %7413 = vmatpush3.bf16.msra.mxu0 %v7410_v51  ;;  %v7422_v51 = vpack.c.bf16 %v869_v31, %v868_v30  ;;  %v2258_v30 = vld [vmem:[#allocation2 + $0x300] sm:$0xff]  ;;  %v2259_v31 = vld [vmem:[#allocation2 + $0x308] sm:$0xff] }
  0x6b   : > { %7541 = vmatpush3.bf16.msra.mxu1 %v7538_v53  ;;  %7415 = vmatprep.subr.bf16.mxu0 %v7414_v3  ;;  %v8900_v53 = vld [vmem:[%s8733_s30 + $0xc8] sm:$0xff] }
  0x6c   : > { %6131 = vmatmul.mubr.f32.gmra.mrb[8].mxu0 %v8812_v35  ;;  %7543 = vmatprep.subr.bf16.mxu1 %v7542_v7  ;;  %v363_v9 = vrot.slane %v8900_v53, 1 }
  0x6d   : > { %6451 = vmatmul.mubr.f32.gmra.mrb[8].mxu1 %v8862_v14  ;;  %6133 = vmatprep.mubr.f32.mxu0 %v8830_v49 }
  0x6e   : > { %6453 = vmatprep.mubr.f32.mxu1 %v8866_v16  ;;  %7417 = vmatpush3.bf16.msra.mxu0 %v7414_v3  ;;  %v8910_v3 = vsel %vm321_vm0, %v357_v41, %v358_v44  ;;  %v368_v41 = vrot.slane %v8922_v15, 1 }
  0x6f   : > { %7545 = vmatpush3.bf16.msra.mxu1 %v7542_v7  ;;  %7419 = vmatprep.subr.bf16.mxu0 %v7418_v25  ;;  %10327 = vst [vmem:[#allocation10_spill] sm:$0xff] %v8910_v3  ;;  %v362_v7 = vrot.slane %v8896_v47, 1 }
  0x70   : > { %6134 = vmatmul.mubr.f32.gmra.mrb[10].mxu0 %v8834_v52  ;;  %7547 = vmatprep.subr.bf16.mxu1 %v7546_v28 }
  0x71   : > { %6454 = vmatmul.mubr.f32.gmra.mrb[10].mxu1 %v8884_v37  ;;  %6136 = vmatprep.mubr.f32.mxu0 %v8852_v2  ;;  %v8932_v36 = vsel %vm321_vm0, %v362_v7, %v363_v9 }
  0x72   : > { %6456 = vmatprep.mubr.f32.mxu1 %v8888_v40  ;;  %7421 = vmatpush3.bf16.msra.mxu0 %v7418_v25  ;;  %v1131_v25 = vld [vmem:[#allocation2 + $0x108] sm:$0xff]  ;;  %10329 = vst [vmem:[#allocation12_spill] sm:$0xff] %v8932_v36 }
  0x73   : > { %7549 = vmatpush3.bf16.msra.mxu1 %v7546_v28  ;;  %7423 = vmatprep.subr.bf16.mxu0 %v7422_v51  ;;  %v8928_v28 = vsel %vm321_vm0, %v358_v44, %v360_v62  ;;  %v8939_v56 = vpack.c.bf16 %v1131_v25, %v1130_v21  ;;  %v8943_v44 = vld [vmem:[%s8733_s30 + $0xf0] sm:$0xff]  ;;  %v8958_v62 = vsel %vm321_vm0, %v367_v39, %v368_v41  ;;  %v373_v21 = vrot.slane %v8946_v57, 1  ;;  %v8963_v25 = vld [vmem:[%s8733_s30 + $0x100] sm:$0x3] }
  0x74   : > { %6137 = vmatmul.mubr.f32.gmra.mrb[12].mxu0 %v8856_v6  ;;  %7551 = vmatprep.subr.bf16.mxu1 %v7550_v54  ;;  %10328 = vst [vmem:[#allocation11_spill] sm:$0xff] %v8928_v28  ;;  %10331 = vst [vmem:[#allocation14_spill] sm:$0xff] %v8943_v44  ;;  %v372_v7 = vrot.slane %v8943_v44, 1 }
  0x75   : > { %6457 = vmatmul.mubr.f32.gmra.mrb[12].mxu1 %v8906_v61  ;;  %6139 = vmatprep.mubr.f32.mxu0 %v8874_v24  ;;  %10334 = vst [vmem:[#allocation17_spill] sm:$0xff] %v8958_v62  ;;  %10335 = vst [vmem:[#allocation18_spill] sm:$0xff] %v8963_v25 }
  0x76   : > { %6459 = vmatprep.mubr.f32.mxu1 %v8910_v3  ;;  %7425 = vmatpush3.bf16.msra.mxu0 %v7422_v51  ;;  %v8948_v51 = vpack.c.bf16 %v2259_v31, %v2258_v30  ;;  %v375_v30 = vrot.slane %v8963_v25, 1  ;;  %v8982_v31 = vsel %vm321_vm0, %v372_v7, %v373_v21 }
  0x77   : > { %7553 = vmatpush3.bf16.msra.mxu1 %v7550_v54  ;;  %7427 = vmatprep.subr.bf16.mxu0 %v7426_v12  ;;  %v8954_v54 = vsel %vm321_vm0, %v363_v9, %v365_v34  ;;  %v8968_v9 = vld [vmem:[%s8733_s30 + $0x108] sm:$0xff]  ;;  %10339 = vst [vmem:[#allocation22_spill] sm:$0xff] %v8982_v31 }
  0x78   : > { %6140 = vmatmul.mubr.f32.gmra.mrb[14].mxu0 %v8878_v26  ;;  %7555 = vmatprep.subr.bf16.mxu1 %v7554_v17  ;;  %10333 = vst [vmem:[#allocation16_spill] sm:$0xff] %v8954_v54  ;;  %10336 = vst [vmem:[#allocation19_spill] sm:$0xff] %v8968_v9  ;;  %v377_v34 = vrot.slane %v8968_v9, 1 }
  0x79   : > { %6460 = vmatmul.mubr.f32.gmra.mrb[14].mxu1 %v8928_v28  ;;  %6142 = vmatprep.mubr.f32.mxu0 %v8896_v47  ;;  %v9053_v28 = vld [vmem:[%s8733_s30 + $0x160] sm:$0x3] }
  0x7a   : > { %6462 = vmatprep.mubr.f32.mxu1 %v8932_v36  ;;  %7429 = vmatpush3.bf16.msra.mxu0 %v7426_v12  ;;  %v8971_v12 = vld [vmem:[%s8733_s30 + $0x110] sm:$0xff] }
  0x7b   : > { %7557 = vmatpush3.bf16.msra.mxu1 %v7554_v17  ;;  %7431 = vmatprep.subr.bf16.mxu0 %v8939_v56  ;;  %10337 = vst [vmem:[#allocation20_spill] sm:$0xff] %v8971_v12  ;;  %v8978_v17 = vsel %vm321_vm0, %v368_v41, %v370_v59  ;;  %v378_v39 = vrot.slane %v8971_v12, 1  ;;  %v8994_v41 = vld [vmem:[%s8733_s30 + $0x128] sm:$0xff]  ;;  %v9000_v59 = vsel %vm321_vm0, %v373_v21, %v375_v30  ;;  %v9016_v21 = vld [vmem:[%s8733_s30 + $0x140] sm:$0xff] }
  0x7c   : > { %6143 = vmatmul.mubr.f32.gmra.mrb[16].mxu0 %v8900_v53  ;;  %7559 = vmatprep.subr.bf16.mxu1 %v8948_v51  ;;  %10338 = vst [vmem:[#allocation21_spill] sm:$0xff] %v8978_v17  ;;  %10342 = vst [vmem:[#allocation25_spill] sm:$0xff] %v8994_v41  ;;  %v383_v36 = vrot.slane %v8994_v41, 1 }
  0x7d   : > { %6463 = vmatmul.mubr.f32.gmra.mrb[16].mxu1 %v8954_v54  ;;  %6145 = vmatprep.mubr.f32.mxu0 %v8918_v11  ;;  %v8987_v54 = vld [vmem:[%s8733_s30 + $0x118] sm:$0x3]  ;;  %10343 = vst [vmem:[#allocation26_spill] sm:$0xff] %v9000_v59  ;;  %v9004_v25 = vsel %vm321_vm0, %v377_v34, %v378_v39  ;;  %10346 = vst [vmem:[#allocation29_spill] sm:$0xff] %v9016_v21 }
  0x7e   : > { %6465 = vmatprep.mubr.f32.mxu1 %v8958_v62  ;;  %10340 = vst [vmem:[#allocation23_spill] sm:$0xff] %v8987_v54  ;;  %v8991_v62 = vld [vmem:[%s8733_s30 + $0x120] sm:$0xff]  ;;  %v380_v7 = vrot.slane %v8987_v54, 1  ;;  %10344 = vst [vmem:[#allocation27_spill] sm:$0xff] %v9004_v25 }
  0x7f   : > { %10341 = vst [vmem:[#allocation24_spill] sm:$0xff] %v8991_v62  ;;  %v382_v55 = vrot.slane %v8991_v62, 1 }
  0x80   : > { %6146 = vmatmul.mubr.f32.gmra.mrb[18].mxu0 %v8922_v15  ;;  %v9022_v30 = vsel %vm321_vm0, %v378_v39, %v380_v7  ;;  %v9038_v39 = vld [vmem:[%s8733_s30 + $0x158] sm:$0xff] }
  0x81   : > { %6466 = vmatmul.mubr.f32.gmra.mrb[18].mxu1 %v8978_v17  ;;  %6148 = vmatprep.mubr.f32.mxu0 %v8943_v44  ;;  %v9009_v17 = vld [vmem:[%s8733_s30 + $0x130] sm:$0x3]  ;;  %10347 = vst [vmem:[#allocation30_spill] sm:$0xff] %v9022_v30  ;;  %v9026_v54 = vsel %vm321_vm0, %v382_v55, %v383_v36  ;;  %v388_v44 = vrot.slane %v9016_v21, 1  ;;  %10351 = vst [vmem:[#allocation34_spill] sm:$0xff] %v9038_v39 }
  0x82   : > { %6468 = vmatprep.mubr.f32.mxu1 %v8982_v31  ;;  %10345 = vst [vmem:[#allocation28_spill] sm:$0xff] %v9009_v17  ;;  %v9013_v31 = vld [vmem:[%s8733_s30 + $0x138] sm:$0xff]  ;;  %v385_v34 = vrot.slane %v9009_v17, 1  ;;  %10348 = vst [vmem:[#allocation31_spill] sm:$0xff] %v9026_v54 }
  0x84   : > { %6149 = vmatmul.mubr.f32.gmra.mrb[20].mxu0 %v8946_v57  ;;  %v387_v57 = vrot.slane %v9013_v31, 1  ;;  %v9044_v55 = vsel %vm321_vm0, %v383_v36, %v385_v34 }
  0x85   : > { %6469 = vmatmul.mubr.f32.gmra.mrb[20].mxu1 %v9000_v59  ;;  %6151 = vmatprep.mubr.f32.mxu0 %v8968_v9  ;;  %v9031_v59 = vld [vmem:[%s8733_s30 + $0x148] sm:$0x3]  ;;  %v393_v9 = vrot.slane %v9038_v39, 1 }
  0x86   : > { %6471 = vmatprep.mubr.f32.mxu1 %v9004_v25  ;;  %10349 = vst [vmem:[#allocation32_spill] sm:$0xff] %v9031_v59  ;;  %v9035_v25 = vld [vmem:[%s8733_s30 + $0x150] sm:$0xff]  ;;  %v390_v7 = vrot.slane %v9031_v59, 1  ;;  %v9048_v17 = vsel %vm321_vm0, %v387_v57, %v388_v44  ;;  %v395_v57 = vrot.slane %v9053_v28, 1 }
  0x87   : > { %10350 = vst [vmem:[#allocation33_spill] sm:$0xff] %v9035_v25 }
  0x88   : > { %6152 = vmatmul.mubr.f32.gmra.mrb[22].mxu0 %v8971_v12  ;;  %v392_v12 = vrot.slane %v9035_v25, 1  ;;  %v9066_v36 = vsel %vm321_vm0, %v388_v44, %v390_v7  ;;  %v9082_v44 = vsel %vm321_vm0, %v393_v9, %v395_v57  ;;  %v455_v57 = vrot.slane %v8758_v0, 2 }
  0x89   : > { %6472 = vmatmul.mubr.f32.gmra.mrb[22].mxu1 %v9022_v30  ;;  %6154 = vmatprep.mubr.f32.mxu0 %v8991_v62  ;;  %v9057_v30 = vld [vmem:[%s8733_s30 + $0x168] sm:$0xff]  ;;  %10354 = vst [vmem:[#allocation37_spill] sm:$0xff] %v9066_v36  ;;  %v9075_v62 = vld [vmem:[%s8733_s30 + $0x178] sm:$0x3]  ;;  %10357 = vst [vmem:[#allocation40_spill] sm:$0xff] %v9082_v44 }
  0x8a   : > { %6474 = vmatprep.mubr.f32.mxu1 %v9026_v54  ;;  %10352 = vst [vmem:[#allocation35_spill] sm:$0xff] %v9057_v30  ;;  %v9060_v54 = vld [vmem:[%s8733_s30 + $0x170] sm:$0xff]  ;;  %v9070_v34 = vsel %vm321_vm0, %v392_v12, %v393_v9  ;;  %v397_v59 = vrot.slane %v9057_v30, 1  ;;  %10356 = vst [vmem:[#allocation39_spill] sm:$0xff] %v9075_v62  ;;  %v400_v12 = vrot.slane %v9075_v62, 1  ;;  %v454_v9 = vrot.slane %v8755_v63, 2 }
  0x8b   : > { %10353 = vst [vmem:[#allocation36_spill] sm:$0xff] %v9060_v54  ;;  %10355 = vst [vmem:[#allocation38_spill] sm:$0xff] %v9070_v34  ;;  %v1132_v62 = vld [vmem:[#allocation2 + $0x110] sm:$0xff] }
  0x8c   : > { %6155 = vmatmul.mubr.f32.gmra.mrb[24].mxu0 %v8994_v41  ;;  %v398_v41 = vrot.slane %v9060_v54, 1  ;;  %v9106_v0 = vsel %vm448_vm1, %v454_v9, %v455_v57  ;;  %v2265_v9 = vld [vmem:[#allocation2 + $0x338] sm:$0xff] }
  0x8d   : > { %6475 = vmatmul.mubr.f32.gmra.mrb[24].mxu1 %v9044_v55  ;;  %6157 = vmatprep.mubr.f32.mxu0 %v9013_v31  ;;  %10360 = vst [vmem:[#allocation43_spill] sm:$0xff] %v9106_v0 }
  0x8e   : > { %6477 = vmatprep.mubr.f32.mxu1 %v9048_v17  ;;  %v9086_v7 = vsel %vm321_vm0, %v397_v59, %v398_v41  ;;  %v1133_v59 = vld [vmem:[#allocation2 + $0x118] sm:$0xff] }
  0x8f   : > { %10358 = vst [vmem:[#allocation41_spill] sm:$0xff] %v9086_v7 }
  0x90   : > { %6158 = vmatmul.mubr.f32.gmra.mrb[26].mxu0 %v9016_v21 }
  0x91   : > { %6478 = vmatmul.mubr.f32.gmra.mrb[26].mxu1 %v9066_v36  ;;  %6160 = vmatprep.mubr.f32.mxu0 %v9035_v25  ;;  %v9093_v36 = vsel %vm321_vm0, %v398_v41, %v400_v12  ;;  %v459_v41 = vrot.slane %v8764_v5, 2  ;;  %v460_v12 = vrot.slane %v8769_v8, 2 }
  0x92   : > { %6480 = vmatprep.mubr.f32.mxu1 %v9070_v34  ;;  %10359 = vst [vmem:[#allocation42_spill] sm:$0xff] %v9093_v36  ;;  %v2261_v34 = vld [vmem:[#allocation2 + $0x318] sm:$0xff] }
  0x94   : > { %6161 = vmatmul.mubr.f32.gmra.mrb[28].mxu0 %v9038_v39 }
  0x95   : > { %6481 = vmatmul.mubr.f32.gmra.mrb[28].mxu1 %v9082_v44  ;;  %6163 = vmatprep.mubr.f32.mxu0 %v9057_v30  ;;  %v2260_v44 = vld [vmem:[#allocation2 + $0x310] sm:$0xff]  ;;  %v1135_v30 = vld [vmem:[#allocation2 + $0x128] sm:$0xff] }
  0x96   : > { %6483 = vmatprep.mubr.f32.mxu1 %v9086_v7  ;;  %v457_v7 = vrot.slane %v8761_v4, 2  ;;  %v7562_v63 = vpack.c.bf16 %v2261_v34, %v2260_v44  ;;  %v1136_v44 = vld [vmem:[#allocation2 + $0x130] sm:$0xff] }
  0x98   : > { %6164 = vmatmul.mubr.f32.gmra.mrb[30].mxu0 %v9060_v54  ;;  %v7434_v54 = vpack.c.bf16 %v1133_v59, %v1132_v62  ;;  %v9113_v4 = vsel %vm448_vm1, %v455_v57, %v457_v7  ;;  %v9118_v62 = vsel %vm448_vm1, %v459_v41, %v460_v12  ;;  %v1137_v7 = vld [vmem:[#allocation2 + $0x138] sm:$0xff]  ;;  %v469_v59 = vrot.slane %v8808_v33, 2 }
  0x99   : > { %6484 = vmatmul.mubr.f32.gmra.mrb[30].mxu1 %v9093_v36  ;;  %6198 = vmatprep.mubr.f32.mxu0 %v8744_v38  ;;  %v1134_v36 = vld [vmem:[#allocation2 + $0x120] sm:$0xff]  ;;  %10361 = vst [vmem:[#allocation44_spill] sm:$0xff] %v9113_v4  ;;  %10362 = vst [vmem:[#allocation45_spill] sm:$0xff] %v9118_v62  ;;  %v470_v41 = vrot.slane %v8812_v35, 2 }
  0x9a   : > { %6518 = vmatprep.mubr.f32.mxu1 %v8749_v43  ;;  %v2262_v38 = vld [vmem:[#allocation2 + $0x320] sm:$0xff]  ;;  %v2263_v43 = vld [vmem:[#allocation2 + $0x328] sm:$0xff]  ;;  %v7438_v34 = vpack.c.bf16 %v1135_v30, %v1134_v36  ;;  %v467_v30 = vrot.slane %v8805_v32, 2 }
  0x9b   : > { %v2267_v32 = vld [vmem:[#allocation2 + $0x348] sm:$0xff] }
  0x9c   : > { %6199 = vmatmul.mubr.f32.vlgmr.msra.gmra.mrb[0].mxu0 %v8774_v13  ;;  %v462_v13 = vrot.slane %v8780_v18, 2  ;;  %v2264_v18 = vld [vmem:[#allocation2 + $0x330] sm:$0xff] }
  0x9d   : > { %6519 = vmatmul.mubr.f32.vlgmr.msra.gmra.mrb[0].mxu1 %v8752_v50  ;;  %7433 = vmatpush3.bf16.msra.mxu0 %v8939_v56  ;;  %v464_v50 = vrot.slane %v8783_v19, 2  ;;  %v465_v56 = vrot.slane %v8790_v22, 2 }
  0x9e   : > { %7561 = vmatpush3.bf16.msra.mxu1 %v8948_v51  ;;  %6201 = vmatprep.mubr.f32.mxu0 %v8787_v20  ;;  %v7566_v51 = vpack.c.bf16 %v2263_v43, %v2262_v38  ;;  %v9127_v57 = vsel %vm448_vm1, %v460_v12, %v462_v13  ;;  %v7442_v38 = vpack.c.bf16 %v1137_v7, %v1136_v44  ;;  %v1139_v12 = vld [vmem:[#allocation2 + $0x148] sm:$0xff]  ;;  %v472_v13 = vrot.slane %v8827_v48, 2  ;;  %v2268_v48 = vld [vmem:[#allocation2 + $0x350] sm:$0xff] }
  0x9f   : > { %6521 = vmatprep.mubr.f32.mxu1 %v9106_v0  ;;  %7435 = vmatprep.subr.bf16.mxu0 %v7434_v54  ;;  %10363 = vst [vmem:[#allocation46_spill] sm:$0xff] %v9127_v57  ;;  %v9131_v36 = vsel %vm448_vm1, %v464_v50, %v465_v56  ;;  %v7570_v43 = vpack.c.bf16 %v2265_v9, %v2264_v18  ;;  %v474_v44 = vrot.slane %v8830_v49, 2  ;;  %v475_v7 = vrot.slane %v8834_v52, 2 }
  0xa0   : > { %6202 = vmatmul.mubr.f32.gmra.mrb[2].mxu0 %v8795_v27  ;;  %7563 = vmatprep.subr.bf16.mxu1 %v7562_v63  ;;  %10364 = vst [vmem:[#allocation47_spill] sm:$0xff] %v9131_v36  ;;  %v9144_v50 = vsel %vm448_vm1, %v469_v59, %v470_v41  ;;  %v479_v59 = vrot.slane %v8852_v2, 2  ;;  %v515_v0 = vrot.slane %v9016_v21, 2  ;;  %v520_v21 = vrot.slane %v9038_v39, 2 }
  0xa1   : > { %6522 = vmatmul.mubr.f32.gmra.mrb[2].mxu1 %v9113_v4  ;;  %6204 = vmatprep.mubr.f32.mxu0 %v8800_v29  ;;  %10366 = vst [vmem:[#allocation49_spill] sm:$0xff] %v9144_v50  ;;  %v10396_v4 = vld [vmem:[#allocation26_spill] sm:$0xff] }
  0xa2   : > { %6524 = vmatprep.mubr.f32.mxu1 %v9118_v62  ;;  %7437 = vmatpush3.bf16.msra.mxu0 %v7434_v54  ;;  %v1138_v62 = vld [vmem:[#allocation2 + $0x140] sm:$0xff]  ;;  %v9140_v54 = vsel %vm448_vm1, %v465_v56, %v467_v30  ;;  %v1141_v56 = vld [vmem:[#allocation2 + $0x158] sm:$0xff]  ;;  %v477_v30 = vrot.slane %v8849_v1, 2 }
  0xa3   : > { %7565 = vmatpush3.bf16.msra.mxu1 %v7562_v63  ;;  %7439 = vmatprep.subr.bf16.mxu0 %v7438_v34  ;;  %v2266_v63 = vld [vmem:[#allocation2 + $0x340] sm:$0xff]  ;;  %10365 = vst [vmem:[#allocation48_spill] sm:$0xff] %v9140_v54  ;;  %v7446_v18 = vpack.c.bf16 %v1139_v12, %v1138_v62  ;;  %v9157_v62 = vsel %vm448_vm1, %v474_v44, %v475_v7  ;;  %v480_v12 = vrot.slane %v8856_v6, 2  ;;  %v484_v44 = vrot.slane %v8874_v24, 2 }
  0xa4   : > { %6205 = vmatmul.mubr.f32.gmra.mrb[4].mxu0 %v8818_v42  ;;  %7567 = vmatprep.subr.bf16.mxu1 %v7566_v51  ;;  %v7574_v9 = vpack.c.bf16 %v2267_v32, %v2266_v63  ;;  %10368 = vst [vmem:[#allocation51_spill] sm:$0xff] %v9157_v62  ;;  %v2270_v1 = vld [vmem:[#allocation2 + $0x360] sm:$0xff] }
  0xa5   : > { %6525 = vmatmul.mubr.f32.gmra.mrb[4].mxu1 %v9127_v57  ;;  %6207 = vmatprep.mubr.f32.mxu0 %v8822_v45 }
  0xa6   : > { %6527 = vmatprep.mubr.f32.mxu1 %v9131_v36  ;;  %7441 = vmatpush3.bf16.msra.mxu0 %v7438_v34  ;;  %v1140_v36 = vld [vmem:[#allocation2 + $0x150] sm:$0xff]  ;;  %v2269_v34 = vld [vmem:[#allocation2 + $0x358] sm:$0xff] }
  0xa7   : > { %7569 = vmatpush3.bf16.msra.mxu1 %v7566_v51  ;;  %7443 = vmatprep.subr.bf16.mxu0 %v7442_v38  ;;  %v9153_v51 = vsel %vm448_vm1, %v470_v41, %v472_v13  ;;  %v7450_v63 = vpack.c.bf16 %v1141_v56, %v1140_v36  ;;  %v7578_v32 = vpack.c.bf16 %v2269_v34, %v2268_v48  ;;  %v1143_v41 = vld [vmem:[#allocation2 + $0x168] sm:$0xff]  ;;  %v485_v56 = vrot.slane %v8878_v26, 2 }
  0xa8   : > { %6208 = vmatmul.mubr.f32.gmra.mrb[6].mxu0 %v8840_v58  ;;  %7571 = vmatprep.subr.bf16.mxu1 %v7570_v43  ;;  %10367 = vst [vmem:[#allocation50_spill] sm:$0xff] %v9153_v51  ;;  %v9166_v13 = vsel %vm448_vm1, %v475_v7, %v477_v30  ;;  %v9170_v36 = vsel %vm448_vm1, %v479_v59, %v480_v12  ;;  %v1145_v7 = vld [vmem:[#allocation2 + $0x178] sm:$0xff]  ;;  %v489_v59 = vrot.slane %v8896_v47, 2 }
  0xa9   : > { %6528 = vmatmul.mubr.f32.gmra.mrb[6].mxu1 %v9140_v54  ;;  %6210 = vmatprep.mubr.f32.mxu0 %v8844_v60  ;;  %10369 = vst [vmem:[#allocation52_spill] sm:$0xff] %v9166_v13  ;;  %10370 = vst [vmem:[#allocation53_spill] sm:$0xff] %v9170_v36  ;;  %v10395_v54 = vld [vmem:[#allocation25_spill] sm:$0xff] }
  0xaa   : > { %6530 = vmatprep.mubr.f32.mxu1 %v9144_v50  ;;  %7445 = vmatpush3.bf16.msra.mxu0 %v7442_v38  ;;  %v1142_v50 = vld [vmem:[#allocation2 + $0x160] sm:$0xff]  ;;  %v2271_v38 = vld [vmem:[#allocation2 + $0x368] sm:$0xff]  ;;  %v510_v57 = vrot.slane %v10395_v54, 2  ;;  %v10401_v54 = vld [vmem:[#allocation30_spill] sm:$0xff] }
  0xab   : > { %7573 = vmatpush3.bf16.msra.mxu1 %v7570_v43  ;;  %7447 = vmatprep.subr.bf16.mxu0 %v7446_v18  ;;  %v482_v43 = vrot.slane %v8871_v23, 2  ;;  %v7454_v48 = vpack.c.bf16 %v1143_v41, %v1142_v50  ;;  %v7582_v34 = vpack.c.bf16 %v2271_v38, %v2270_v1  ;;  %v2272_v23 = vld [vmem:[#allocation2 + $0x370] sm:$0xff]  ;;  %v9183_v50 = vsel %vm448_vm1, %v484_v44, %v485_v56 }
  0xac   : > { %6211 = vmatmul.mubr.f32.gmra.mrb[8].mxu0 %v8862_v14  ;;  %7575 = vmatprep.subr.bf16.mxu1 %v7574_v9  ;;  %10372 = vst [vmem:[#allocation55_spill] sm:$0xff] %v9183_v50  ;;  %v490_v41 = vrot.slane %v8900_v53, 2  ;;  %v494_v44 = vrot.slane %v8918_v11, 2 }
  0xad   : > { %6531 = vmatmul.mubr.f32.gmra.mrb[8].mxu1 %v9153_v51  ;;  %6213 = vmatprep.mubr.f32.mxu0 %v8866_v16  ;;  %v9179_v30 = vsel %vm448_vm1, %v480_v12, %v482_v43  ;;  %v1405_v12 = vld [vmem:[#allocation2 + $0x188] sm:$0xff] }
  0xae   : > { %6533 = vmatprep.mubr.f32.mxu1 %v9157_v62  ;;  %7449 = vmatpush3.bf16.msra.mxu0 %v7446_v18  ;;  %v1144_v62 = vld [vmem:[#allocation2 + $0x170] sm:$0xff]  ;;  %v2273_v18 = vld [vmem:[#allocation2 + $0x378] sm:$0xff]  ;;  %10371 = vst [vmem:[#allocation54_spill] sm:$0xff] %v9179_v30 }
  0xaf   : > { %7577 = vmatpush3.bf16.msra.mxu1 %v7574_v9  ;;  %7451 = vmatprep.subr.bf16.mxu0 %v7450_v63  ;;  %v487_v9 = vrot.slane %v8893_v46, 2  ;;  %v7458_v1 = vpack.c.bf16 %v1145_v7, %v1144_v62  ;;  %v7586_v38 = vpack.c.bf16 %v2273_v18, %v2272_v23  ;;  %v2532_v46 = vld [vmem:[#allocation2 + $0x380] sm:$0xff]  ;;  %v9196_v62 = vsel %vm448_vm1, %v489_v59, %v490_v41  ;;  %v10375_v18 = vld [vmem:[#allocation11_spill] sm:$0xff] }
  0xb0   : > { %6214 = vmatmul.mubr.f32.gmra.mrb[10].mxu0 %v8884_v37  ;;  %7579 = vmatprep.subr.bf16.mxu1 %v7578_v32  ;;  %10374 = vst [vmem:[#allocation57_spill] sm:$0xff] %v9196_v62  ;;  %v495_v7 = vrot.slane %v8922_v15, 2 }
  0xb1   : > { %6534 = vmatmul.mubr.f32.gmra.mrb[10].mxu1 %v9166_v13  ;;  %6216 = vmatprep.mubr.f32.mxu0 %v8888_v40  ;;  %v9192_v43 = vsel %vm448_vm1, %v485_v56, %v487_v9  ;;  %v10389_v13 = vld [vmem:[#allocation21_spill] sm:$0xff] }
  0xb2   : > { %6536 = vmatprep.mubr.f32.mxu1 %v9170_v36  ;;  %7453 = vmatpush3.bf16.msra.mxu0 %v7450_v63  ;;  %v1404_v36 = vld [vmem:[#allocation2 + $0x180] sm:$0xff]  ;;  %v2533_v63 = vld [vmem:[#allocation2 + $0x388] sm:$0xff]  ;;  %10373 = vst [vmem:[#allocation56_spill] sm:$0xff] %v9192_v43 }
  0xb3   : > { %7581 = vmatpush3.bf16.msra.mxu1 %v7578_v32  ;;  %7455 = vmatprep.subr.bf16.mxu0 %v7454_v48  ;;  %v492_v32 = vrot.slane %v8915_v10, 2  ;;  %v9200_v23 = vpack.c.bf16 %v1405_v12, %v1404_v36  ;;  %v10376_v10 = vld [vmem:[#allocation12_spill] sm:$0xff]  ;;  %v9213_v36 = vsel %vm448_vm1, %v494_v44, %v495_v7  ;;  %v10381_v12 = vld [vmem:[#allocation15_spill] sm:$0xff] }
  0xb4   : > { %6217 = vmatmul.mubr.f32.gmra.mrb[12].mxu0 %v8906_v61  ;;  %7583 = vmatprep.subr.bf16.mxu1 %v7582_v34  ;;  %10379 = vst [vmem:[#allocation12_spill] sm:$0xff] %v9213_v36 }
  0xb5   : > { %6537 = vmatmul.mubr.f32.gmra.mrb[12].mxu1 %v9179_v30  ;;  %6219 = vmatprep.mubr.f32.mxu0 %v8910_v3  ;;  %v9209_v56 = vsel %vm448_vm1, %v490_v41, %v492_v32  ;;  %v10383_v41 = vld [vmem:[#allocation17_spill] sm:$0xff]  ;;  %v10385_v32 = vld [vmem:[#allocation18_spill] sm:$0xff] }
  0xb6   : > { %6539 = vmatprep.mubr.f32.mxu1 %v9183_v50  ;;  %7457 = vmatpush3.bf16.msra.mxu0 %v7454_v48  ;;  %v9203_v50 = vpack.c.bf16 %v2533_v63, %v2532_v46  ;;  %10377 = vst [vmem:[#allocation11_spill] sm:$0xff] %v9209_v56  ;;  %v10378_v48 = vld [vmem:[#allocation13_spill] sm:$0xff]  ;;  %v500_v46 = vrot.slane %v10381_v12, 2  ;;  %v10382_v63 = vld [vmem:[#allocation16_spill] sm:$0xff]  ;;  %v502_v44 = vrot.slane %v10385_v32, 2 }
  0xb7   : > { %7585 = vmatpush3.bf16.msra.mxu1 %v7582_v34  ;;  %7459 = vmatprep.subr.bf16.mxu0 %v7458_v1  ;;  %v497_v9 = vrot.slane %v10378_v48, 2  ;;  %v10380_v34 = vld [vmem:[#allocation14_spill] sm:$0xff] }
  0xb8   : > { %6220 = vmatmul.mubr.f32.gmra.mrb[14].mxu0 %v10375_v18  ;;  %7587 = vmatprep.subr.bf16.mxu1 %v7586_v38  ;;  %v499_v59 = vrot.slane %v10380_v34, 2 }
  0xb9   : > { %6540 = vmatmul.mubr.f32.gmra.mrb[14].mxu1 %v9192_v43  ;;  %6222 = vmatprep.mubr.f32.mxu0 %v10376_v10  ;;  %v10388_v43 = vld [vmem:[#allocation20_spill] sm:$0xff] }
  0xba   : > { %6542 = vmatprep.mubr.f32.mxu1 %v9196_v62  ;;  %7461 = vmatpush3.bf16.msra.mxu0 %v7458_v1  ;;  %v9224_v1 = vsel %vm448_vm1, %v495_v7, %v497_v9  ;;  %v9228_v48 = vsel %vm448_vm1, %v499_v59, %v500_v46  ;;  %v505_v30 = vrot.slane %v10388_v43, 2  ;;  %v9237_v7 = vsel %vm448_vm1, %v500_v46, %v502_v44  ;;  %v10392_v9 = vld [vmem:[#allocation23_spill] sm:$0xff]  ;;  %v10399_v44 = vld [vmem:[#allocation28_spill] sm:$0xff] }
  0xbb   : > { %7589 = vmatpush3.bf16.msra.mxu1 %v7586_v38  ;;  %7463 = vmatprep.subr.bf16.mxu0 %v9200_v23  ;;  %10384 = vst [vmem:[#allocation13_spill] sm:$0xff] %v9224_v1  ;;  %10386 = vst [vmem:[#allocation14_spill] sm:$0xff] %v9228_v48  ;;  %v10387_v38 = vld [vmem:[#allocation19_spill] sm:$0xff]  ;;  %v507_v32 = vrot.slane %v10392_v9, 2  ;;  %v512_v9 = vrot.slane %v10399_v44, 2 }
  0xbc   : > { %6223 = vmatmul.mubr.f32.gmra.mrb[16].mxu0 %v10382_v63  ;;  %7591 = vmatprep.subr.bf16.mxu1 %v9203_v50  ;;  %v504_v62 = vrot.slane %v10387_v38, 2  ;;  %10391 = vst [vmem:[#allocation15_spill] sm:$0xff] %v9237_v7 }
  0xbd   : > { %6543 = vmatmul.mubr.f32.gmra.mrb[16].mxu1 %v9209_v56  ;;  %6225 = vmatprep.mubr.f32.mxu0 %v10383_v41  ;;  %v10390_v56 = vld [vmem:[#allocation22_spill] sm:$0xff]  ;;  %v9250_v46 = vsel %vm448_vm1, %v505_v30, %v507_v32  ;;  %v10404_v32 = vld [vmem:[#allocation32_spill] sm:$0xff] }
  0xbe   : > { %6545 = vmatprep.mubr.f32.mxu1 %v9213_v36  ;;  %v9241_v59 = vsel %vm448_vm1, %v504_v62, %v505_v30  ;;  %v10394_v36 = vld [vmem:[#allocation24_spill] sm:$0xff]  ;;  %10398 = vst [vmem:[#allocation17_spill] sm:$0xff] %v9250_v46  ;;  %v9263_v30 = vsel %vm448_vm1, %v510_v57, %v512_v9  ;;  %v517_v44 = vrot.slane %v10404_v32, 2  ;;  %v522_v9 = vrot.slane %v9053_v28, 2  ;;  %v10408_v32 = vld [vmem:[#allocation35_spill] sm:$0xff] }
  0xbf   : > { %10393 = vst [vmem:[#allocation16_spill] sm:$0xff] %v9241_v59  ;;  %v509_v51 = vrot.slane %v10394_v36, 2  ;;  %10403 = vst [vmem:[#allocation19_spill] sm:$0xff] %v9263_v30 }
  0xc0   : > { %6226 = vmatmul.mubr.f32.gmra.mrb[18].mxu0 %v10389_v13 }
  0xc1   : > { %6546 = vmatmul.mubr.f32.gmra.mrb[18].mxu1 %v9224_v1  ;;  %6228 = vmatprep.mubr.f32.mxu0 %v10390_v56  ;;  %v10397_v1 = vld [vmem:[#allocation27_spill] sm:$0xff]  ;;  %v9254_v62 = vsel %vm448_vm1, %v509_v51, %v510_v57  ;;  %v9276_v57 = vsel %vm448_vm1, %v515_v0, %v517_v44 }
  0xc2   : > { %6548 = vmatprep.mubr.f32.mxu1 %v9228_v48  ;;  %10400 = vst [vmem:[#allocation18_spill] sm:$0xff] %v9254_v62  ;;  %v514_v48 = vrot.slane %v9013_v31, 2  ;;  %10406 = vst [vmem:[#allocation21_spill] sm:$0xff] %v9276_v57  ;;  %v10413_v44 = vld [vmem:[#allocation39_spill] sm:$0xff] }
  0xc3   : > { %v527_v28 = vrot.slane %v10413_v44, 2  ;;  %v10419_v44 = vld [vmem:[#allocation8_spill] sm:$0xff] }
  0xc4   : > { %6229 = vmatmul.mubr.f32.gmra.mrb[20].mxu0 %v10396_v4  ;;  %v9267_v51 = vsel %vm448_vm1, %v514_v48, %v515_v0  ;;  %v9289_v0 = vsel %vm448_vm1, %v520_v21, %v522_v9  ;;  %v1407_v9 = vld [vmem:[#allocation2 + $0x198] sm:$0xff] }
  0xc5   : > { %6549 = vmatmul.mubr.f32.gmra.mrb[20].mxu1 %v9237_v7  ;;  %6231 = vmatprep.mubr.f32.mxu0 %v10397_v1  ;;  %v10402_v7 = vld [vmem:[#allocation31_spill] sm:$0xff]  ;;  %10405 = vst [vmem:[#allocation20_spill] sm:$0xff] %v9267_v51  ;;  %10412 = vst [vmem:[#allocation23_spill] sm:$0xff] %v9289_v0 }
  0xc6   : > { %6551 = vmatprep.mubr.f32.mxu1 %v9241_v59  ;;  %v519_v59 = vrot.slane %v9035_v25, 2  ;;  %v10410_v25 = vld [vmem:[#allocation37_spill] sm:$0xff] }
  0xc8   : > { %6232 = vmatmul.mubr.f32.gmra.mrb[22].mxu0 %v10401_v54  ;;  %v9280_v48 = vsel %vm448_vm1, %v519_v59, %v520_v21  ;;  %v1406_v21 = vld [vmem:[#allocation2 + $0x190] sm:$0xff] }
  0xc9   : > { %6552 = vmatmul.mubr.f32.gmra.mrb[22].mxu1 %v9250_v46  ;;  %6234 = vmatprep.mubr.f32.mxu0 %v10402_v7  ;;  %10407 = vst [vmem:[#allocation22_spill] sm:$0xff] %v9280_v48  ;;  %v10409_v46 = vld [vmem:[#allocation36_spill] sm:$0xff] }
  0xca   : > { %6554 = vmatprep.mubr.f32.mxu1 %v9254_v62  ;;  %v524_v62 = vrot.slane %v10408_v32, 2  ;;  %v525_v39 = vrot.slane %v10409_v46, 2  ;;  %v10416_v46 = vld [vmem:[#allocation41_spill] sm:$0xff]  ;;  %v2535_v32 = vld [vmem:[#allocation2 + $0x398] sm:$0xff] }
  0xcc   : > { %6235 = vmatmul.mubr.f32.gmra.mrb[24].mxu0 %v9044_v55  ;;  %v9293_v59 = vsel %vm448_vm1, %v524_v62, %v525_v39  ;;  %v2534_v62 = vld [vmem:[#allocation2 + $0x390] sm:$0xff] }
  0xcd   : > { %6555 = vmatmul.mubr.f32.gmra.mrb[24].mxu1 %v9263_v30  ;;  %6237 = vmatprep.mubr.f32.mxu0 %v9048_v17  ;;  %v10411_v30 = vld [vmem:[#allocation38_spill] sm:$0xff]  ;;  %10414 = vst [vmem:[#allocation24_spill] sm:$0xff] %v9293_v59 }
  0xce   : > { %6557 = vmatprep.mubr.f32.mxu1 %v9267_v51  ;;  %v10415_v51 = vld [vmem:[#allocation40_spill] sm:$0xff] }
  0xd0   : > { %6238 = vmatmul.mubr.f32.gmra.mrb[26].mxu0 %v10410_v25 }
  0xd1   : > { %6558 = vmatmul.mubr.f32.gmra.mrb[26].mxu1 %v9276_v57  ;;  %6240 = vmatprep.mubr.f32.mxu0 %v10411_v30  ;;  %v9300_v57 = vsel %vm448_vm1, %v525_v39, %v527_v28  ;;  %v1409_v30 = vld [vmem:[#allocation2 + $0x1a8] sm:$0xff]  ;;  %v2536_v39 = vld [vmem:[#allocation2 + $0x3a0] sm:$0xff] }
  0xd2   : > { %6560 = vmatprep.mubr.f32.mxu1 %v9280_v48  ;;  %10417 = vst [vmem:[#allocation26_spill] sm:$0xff] %v9300_v57  ;;  %v10418_v48 = vld [vmem:[#allocation42_spill] sm:$0xff]  ;;  %v2537_v28 = vld [vmem:[#allocation2 + $0x3a8] sm:$0xff] }
  0xd4   : > { %6241 = vmatmul.mubr.f32.gmra.mrb[28].mxu0 %v10415_v51  ;;  %v10420_v51 = vld [vmem:[#allocation9_spill] sm:$0xff] }
  0xd5   : > { %6561 = vmatmul.mubr.f32.gmra.mrb[28].mxu1 %v9289_v0  ;;  %6243 = vmatprep.mubr.f32.mxu0 %v10416_v46  ;;  %v7466_v0 = vpack.c.bf16 %v1407_v9, %v1406_v21  ;;  %v7594_v46 = vpack.c.bf16 %v2535_v32, %v2534_v62  ;;  %v1410_v32 = vld [vmem:[#allocation2 + $0x1b0] sm:$0xff]  ;;  %v1411_v21 = vld [vmem:[#allocation2 + $0x1b8] sm:$0xff] }
  0xd6   : > { %6563 = vmatprep.mubr.f32.mxu1 %v9293_v59  ;;  %v1408_v59 = vld [vmem:[#allocation2 + $0x1a0] sm:$0xff]  ;;  %v2539_v9 = vld [vmem:[#allocation2 + $0x3b8] sm:$0xff] }
  0xd7   : > { %v1415_v62 = vld [vmem:[#allocation2 + $0x1d8] sm:$0xff] }
  0xd8   : > { %6244 = vmatmul.mubr.f32.gmra.mrb[30].mxu0 %v10418_v48 }
  0xd9   : > { %6564 = vmatmul.mubr.f32.gmra.mrb[30].mxu1 %v9300_v57  ;;  %6278 = vmatprep.mubr.f32.mxu0 %v10419_v44  ;;  %v7470_v44 = vpack.c.bf16 %v1409_v30, %v1408_v59  ;;  %v1413_v30 = vld [vmem:[#allocation2 + $0x1c8] sm:$0xff]  ;;  %v2540_v59 = vld [vmem:[#allocation2 + $0x3c0] sm:$0xff] }
  0xda   : > { %6598 = vmatprep.mubr.f32.mxu1 %v8787_v20 }
  0xdc   : > { %6279 = vmatmul.mubr.f32.vlgmr.msra.gmra.mrb[0].mxu0 %v10420_v51  ;;  %v7598_v51 = vpack.c.bf16 %v2537_v28, %v2536_v39  ;;  %v2542_v39 = vld [vmem:[#allocation2 + $0x3d0] sm:$0xff] }
  0xdd   : > { %6599 = vmatmul.mubr.f32.vlgmr.msra.gmra.mrb[0].mxu1 %v8795_v27  ;;  %7465 = vmatpush3.bf16.msra.mxu0 %v9200_v23  ;;  %v2538_v23 = vld [vmem:[#allocation2 + $0x3b0] sm:$0xff] }
  0xde   : > { %7593 = vmatpush3.bf16.msra.mxu1 %v9203_v50  ;;  %6281 = vmatprep.mubr.f32.mxu0 %v8764_v5  ;;  %v7474_v5 = vpack.c.bf16 %v1411_v21, %v1410_v32  ;;  %v1412_v50 = vld [vmem:[#allocation2 + $0x1c0] sm:$0xff] }
  0xdf   : > { %6601 = vmatprep.mubr.f32.mxu1 %v8800_v29  ;;  %7467 = vmatprep.subr.bf16.mxu0 %v7466_v0  ;;  %v2544_v32 = vld [vmem:[#allocation2 + $0x3e0] sm:$0xff] }
  0xe0   : > { %6282 = vmatmul.mubr.f32.gmra.mrb[2].mxu0 %v8769_v8  ;;  %7595 = vmatprep.subr.bf16.mxu1 %v7594_v46  ;;  %v7602_v8 = vpack.c.bf16 %v2539_v9, %v2538_v23  ;;  %v1418_v23 = vld [vmem:[#allocation2 + $0x1f0] sm:$0xff]  ;;  %v1419_v9 = vld [vmem:[#allocation2 + $0x1f8] sm:$0xff] }
  0xe1   : > { %6602 = vmatmul.mubr.f32.gmra.mrb[2].mxu1 %v8818_v42  ;;  %6284 = vmatprep.mubr.f32.mxu0 %v8783_v19  ;;  %v2541_v19 = vld [vmem:[#allocation2 + $0x3c8] sm:$0xff] }
  0xe2   : > { %6604 = vmatprep.mubr.f32.mxu1 %v8822_v45  ;;  %7469 = vmatpush3.bf16.msra.mxu0 %v7466_v0  ;;  %v1414_v0 = vld [vmem:[#allocation2 + $0x1d0] sm:$0xff] }
  0xe3   : > { %7597 = vmatpush3.bf16.msra.mxu1 %v7594_v46  ;;  %7471 = vmatprep.subr.bf16.mxu0 %v7470_v44  ;;  %v7478_v46 = vpack.c.bf16 %v1413_v30, %v1412_v50  ;;  %v7482_v28 = vpack.c.bf16 %v1415_v62, %v1414_v0  ;;  %v2839_v50 = vld [vmem:[#allocation2 + $0x400] sm:$0xff]  ;;  %v2840_v30 = vld [vmem:[#allocation2 + $0x408] sm:$0xff] }
  0xe4   : > { %6285 = vmatmul.mubr.f32.gmra.mrb[4].mxu0 %v8790_v22  ;;  %7599 = vmatprep.subr.bf16.mxu1 %v7598_v51  ;;  %v7606_v22 = vpack.c.bf16 %v2541_v19, %v2540_v59  ;;  %v3968_v59 = vld [vmem:[#allocation2 + $0x600] sm:$0xff]  ;;  %v7622_v19 = vpack.c.bf16 %v2840_v30, %v2839_v50  ;;  %v10428_v0 = vld [vmem:[#allocation41_spill] sm:$0xff] }
  0xe5   : > { %6605 = vmatmul.mubr.f32.gmra.mrb[4].mxu1 %v8840_v58  ;;  %6287 = vmatprep.mubr.f32.mxu0 %v8808_v33  ;;  %v2543_v33 = vld [vmem:[#allocation2 + $0x3d8] sm:$0xff] }
  0xe6   : > { %6607 = vmatprep.mubr.f32.mxu1 %v8844_v60  ;;  %7473 = vmatpush3.bf16.msra.mxu0 %v7470_v44  ;;  %v1416_v44 = vld [vmem:[#allocation2 + $0x1e0] sm:$0xff] }
  0xe7   : > { %7601 = vmatpush3.bf16.msra.mxu1 %v7598_v51  ;;  %7475 = vmatprep.subr.bf16.mxu0 %v7474_v5  ;;  %v1417_v51 = vld [vmem:[#allocation2 + $0x1e8] sm:$0xff] }
  0xe8   : > { %6288 = vmatmul.mubr.f32.gmra.mrb[6].mxu0 %v8812_v35  ;;  %7603 = vmatprep.subr.bf16.mxu1 %v7602_v8  ;;  %v7610_v35 = vpack.c.bf16 %v2543_v33, %v2542_v39  ;;  %v7486_v21 = vpack.c.bf16 %v1417_v51, %v1416_v44  ;;  %v10429_v33 = vld [vmem:[#allocation36_spill] sm:$0xff]  ;;  %v2842_v44 = vld [vmem:[#allocation2 + $0x418] sm:$0xff]  ;;  %v3970_v51 = vld [vmem:[#allocation2 + $0x610] sm:$0xff] }
  0xe9   : > { %6608 = vmatmul.mubr.f32.gmra.mrb[6].mxu1 %v8862_v14  ;;  %6290 = vmatprep.mubr.f32.mxu0 %v8830_v49  ;;  %v2545_v49 = vld [vmem:[#allocation2 + $0x3e8] sm:$0xff] }
  0xea   : > { %6610 = vmatprep.mubr.f32.mxu1 %v8866_v16  ;;  %7477 = vmatpush3.bf16.msra.mxu0 %v7474_v5  ;;  %v2546_v5 = vld [vmem:[#allocation2 + $0x3f0] sm:$0xff] }
  0xeb   : > { %7605 = vmatpush3.bf16.msra.mxu1 %v7602_v8  ;;  %7479 = vmatprep.subr.bf16.mxu0 %v7478_v46  ;;  %v7490_v8 = vpack.c.bf16 %v1419_v9, %v1418_v23  ;;  %v2843_v23 = vld [vmem:[#allocation2 + $0x420] sm:$0xff]  ;;  %v2844_v9 = vld [vmem:[#allocation2 + $0x428] sm:$0xff] }
  0xec   : > { %6291 = vmatmul.mubr.f32.gmra.mrb[8].mxu0 %v8834_v52  ;;  %7607 = vmatprep.subr.bf16.mxu1 %v7606_v22  ;;  %v7614_v52 = vpack.c.bf16 %v2545_v49, %v2544_v32  ;;  %v3971_v32 = vld [vmem:[#allocation2 + $0x618] sm:$0xff]  ;;  %v7630_v50 = vpack.c.bf16 %v2844_v9, %v2843_v23  ;;  %v3978_v23 = vld [vmem:[#allocation2 + $0x650] sm:$0xff] }
  0xed   : > { %6611 = vmatmul.mubr.f32.gmra.mrb[8].mxu1 %v8884_v37  ;;  %6293 = vmatprep.mubr.f32.mxu0 %v8852_v2  ;;  %v2547_v2 = vld [vmem:[#allocation2 + $0x3f8] sm:$0xff] }
  0xee   : > { %6613 = vmatprep.mubr.f32.mxu1 %v8888_v40  ;;  %7481 = vmatpush3.bf16.msra.mxu0 %v7478_v46  ;;  %v10426_v46 = vld [vmem:[#allocation40_spill] sm:$0xff]  ;;  %v10430_v49 = vld [vmem:[#allocation43_spill] sm:$0xff] }
  0xef   : > { %7609 = vmatpush3.bf16.msra.mxu1 %v7606_v22  ;;  %7483 = vmatprep.subr.bf16.mxu0 %v7482_v28  ;;  %v10427_v22 = vld [vmem:[#allocation35_spill] sm:$0xff] }
  0xf0   : > { %6294 = vmatmul.mubr.f32.gmra.mrb[10].mxu0 %v8856_v6  ;;  %7611 = vmatprep.subr.bf16.mxu1 %v7610_v35  ;;  %v7618_v6 = vpack.c.bf16 %v2547_v2, %v2546_v5  ;;  %v10431_v5 = vld [vmem:[#allocation44_spill] sm:$0xff]  ;;  %v3979_v9 = vld [vmem:[#allocation2 + $0x658] sm:$0xff] }
  0xf1   : > { %6614 = vmatmul.mubr.f32.gmra.mrb[10].mxu1 %v8906_v61  ;;  %6296 = vmatprep.mubr.f32.mxu0 %v8874_v24  ;;  %v3969_v24 = vld [vmem:[#allocation2 + $0x608] sm:$0xff]  ;;  %v3972_v2 = vld [vmem:[#allocation2 + $0x620] sm:$0xff] }
  0xf2   : > { %6616 = vmatprep.mubr.f32.mxu1 %v8910_v3  ;;  %7485 = vmatpush3.bf16.msra.mxu0 %v7482_v28 }
  0xf3   : > { %7613 = vmatpush3.bf16.msra.mxu1 %v7610_v35  ;;  %7487 = vmatprep.subr.bf16.mxu0 %v7486_v21  ;;  %v2841_v35 = vld [vmem:[#allocation2 + $0x410] sm:$0xff] }
  0xf4   : > { %6297 = vmatmul.mubr.f32.gmra.mrb[12].mxu0 %v8878_v26  ;;  %7615 = vmatprep.subr.bf16.mxu1 %v7614_v52  ;;  %v7750_v26 = vpack.c.bf16 %v3969_v24, %v3968_v59  ;;  %v2845_v59 = vld [vmem:[#allocation2 + $0x430] sm:$0xff]  ;;  %v2846_v24 = vld [vmem:[#allocation2 + $0x438] sm:$0xff] }
  0xf5   : > { %6617 = vmatmul.mubr.f32.gmra.mrb[12].mxu1 %v10375_v18  ;;  %6299 = vmatprep.mubr.f32.mxu0 %v8896_v47  ;;  %v10421_v47 = vld [vmem:[#allocation25_spill] sm:$0xff] }
  0xf6   : > { %6619 = vmatprep.mubr.f32.mxu1 %v10376_v10  ;;  %7489 = vmatpush3.bf16.msra.mxu0 %v7486_v21  ;;  %v7626_v21 = vpack.c.bf16 %v2842_v44, %v2841_v35  ;;  %v10436_v35 = vld [vmem:[#allocation49_spill] sm:$0xff] }
  0xf7   : > { %7617 = vmatpush3.bf16.msra.mxu1 %v7614_v52  ;;  %7491 = vmatprep.subr.bf16.mxu0 %v7490_v8  ;;  %v7754_v52 = vpack.c.bf16 %v3971_v32, %v3970_v51  ;;  %v2849_v32 = vld [vmem:[#allocation2 + $0x450] sm:$0xff] }
  0xf8   : > { %6300 = vmatmul.mubr.f32.gmra.mrb[14].mxu0 %v8900_v53  ;;  %7619 = vmatprep.subr.bf16.mxu1 %v7618_v6  ;;  %v10422_v53 = vld [vmem:[#allocation29_spill] sm:$0xff] }
  0xf9   : > { %6620 = vmatmul.mubr.f32.gmra.mrb[14].mxu1 %v10382_v63  ;;  %6302 = vmatprep.mubr.f32.mxu0 %v8918_v11  ;;  %v9358_v11 = vld [vmem:[%s8733_s30 + $0x180] sm:$0xff] }
  0xfa   : > { %6622 = vmatprep.mubr.f32.mxu1 %v10383_v41  ;;  %7493 = vmatpush3.bf16.msra.mxu0 %v7490_v8  ;;  %v3973_v8 = vld [vmem:[#allocation2 + $0x628] sm:$0xff] }
  0xfb   : > { %7621 = vmatpush3.bf16.msra.mxu1 %v7618_v6  ;;  %7623 = vmatprep.subr.bf16.mxu0 %v7622_v19  ;;  %v10432_v6 = vld [vmem:[#allocation45_spill] sm:$0xff]  ;;  %v7758_v30 = vpack.c.bf16 %v3973_v8, %v3972_v2  ;;  %v10438_v2 = vld [vmem:[#allocation51_spill] sm:$0xff] }
  0xfc   : > { %6303 = vmatmul.mubr.f32.gmra.mrb[16].mxu0 %v8922_v15  ;;  %7751 = vmatprep.subr.bf16.mxu1 %v7750_v26  ;;  %v9361_v15 = vld [vmem:[%s8733_s30 + $0x188] sm:$0xff] }
  0xfd   : > { %6623 = vmatmul.mubr.f32.gmra.mrb[16].mxu1 %v10389_v13  ;;  %6305 = vmatprep.mubr.f32.mxu0 %v10380_v34  ;;  %v402_v34 = vrot.slane %v9358_v11, 1 }
  0xfe   : > { %6625 = vmatprep.mubr.f32.mxu1 %v10390_v56 }
 0x100   : > { %6306 = vmatmul.mubr.f32.gmra.mrb[18].mxu0 %v10381_v12  ;;  %v403_v12 = vrot.slane %v9361_v15, 1 }
 0x101   : > { %6626 = vmatmul.mubr.f32.gmra.mrb[18].mxu1 %v10396_v4  ;;  %6308 = vmatprep.mubr.f32.mxu0 %v10387_v38  ;;  %v9369_v38 = vld [vmem:[%s8733_s30 + $0x190] sm:$0x3] }
 0x102   : > { %6628 = vmatprep.mubr.f32.mxu1 %v10397_v1  ;;  %v405_v62 = vrot.slane %v9369_v38, 1  ;;  %v9377_v39 = vsel %vm321_vm0, %v402_v34, %v403_v12 }
 0x104   : > { %6309 = vmatmul.mubr.f32.gmra.mrb[20].mxu0 %v10388_v43  ;;  %v10423_v43 = vld [vmem:[#allocation33_spill] sm:$0xff]  ;;  %v9384_v28 = vsel %vm321_vm0, %v403_v12, %v405_v62  ;;  %v2847_v12 = vld [vmem:[#allocation2 + $0x440] sm:$0xff] }
 0x105   : > { %6629 = vmatmul.mubr.f32.gmra.mrb[20].mxu1 %v10401_v54  ;;  %6311 = vmatprep.mubr.f32.mxu0 %v10394_v36  ;;  %v10424_v36 = vld [vmem:[#allocation38_spill] sm:$0xff]  ;;  %v3976_v62 = vld [vmem:[#allocation2 + $0x640] sm:$0xff] }
 0x106   : > { %6631 = vmatprep.mubr.f32.mxu1 %v10402_v7 }
 0x108   : > { %6312 = vmatmul.mubr.f32.gmra.mrb[22].mxu0 %v10421_v47  ;;  %v10433_v47 = vld [vmem:[#allocation46_spill] sm:$0xff] }
 0x109   : > { %6632 = vmatmul.mubr.f32.gmra.mrb[22].mxu1 %v9044_v55  ;;  %6314 = vmatprep.mubr.f32.mxu0 %v9013_v31  ;;  %v10425_v31 = vld [vmem:[#allocation34_spill] sm:$0xff] }
 0x10a   : > { %6634 = vmatprep.mubr.f32.mxu1 %v9048_v17 }
 0x10c   : > { %6315 = vmatmul.mubr.f32.gmra.mrb[24].mxu0 %v10422_v53  ;;  %v3975_v53 = vld [vmem:[#allocation2 + $0x638] sm:$0xff] }
 0x10d   : > { %6635 = vmatmul.mubr.f32.gmra.mrb[24].mxu1 %v10410_v25  ;;  %6317 = vmatprep.mubr.f32.mxu0 %v10423_v43  ;;  %v10434_v43 = vld [vmem:[#allocation47_spill] sm:$0xff] }
 0x10e   : > { %6637 = vmatprep.mubr.f32.mxu1 %v10424_v36 }
 0x110   : > { %6318 = vmatmul.mubr.f32.gmra.mrb[26].mxu0 %v10425_v31  ;;  %v2848_v31 = vld [vmem:[#allocation2 + $0x448] sm:$0xff] }
 0x111   : > { %6638 = vmatmul.mubr.f32.gmra.mrb[26].mxu1 %v10426_v46  ;;  %6320 = vmatprep.mubr.f32.mxu0 %v10427_v22  ;;  %v10435_v22 = vld [vmem:[#allocation48_spill] sm:$0xff]  ;;  %v7638_v44 = vpack.c.bf16 %v2848_v31, %v2847_v12  ;;  %v10440_v12 = vld [vmem:[#allocation53_spill] sm:$0xff]  ;;  %v2853_v31 = vld [vmem:[#allocation2 + $0x470] sm:$0xff] }
 0x112   : > { %6640 = vmatprep.mubr.f32.mxu1 %v10428_v0 }
 0x114   : > { %6321 = vmatmul.mubr.f32.gmra.mrb[28].mxu0 %v10429_v33  ;;  %v3977_v33 = vld [vmem:[#allocation2 + $0x648] sm:$0xff] }
 0x115   : > { %6641 = vmatmul.mubr.f32.gmra.mrb[28].mxu1 %v10418_v48  ;;  %6323 = vmatprep.mubr.f32.mxu0 %v9358_v11  ;;  %v7766_v51 = vpack.c.bf16 %v3977_v33, %v3976_v62  ;;  %v2854_v62 = vld [vmem:[#allocation2 + $0x478] sm:$0xff]  ;;  %v10441_v33 = vld [vmem:[#allocation54_spill] sm:$0xff] }
 0x116   : > { %6643 = vmatprep.mubr.f32.mxu1 %v9377_v39 }
 0x118   : > { %6324 = vmatmul.mubr.f32.gmra.mrb[30].mxu0 %v9361_v15 }
 0x119   : > { %6644 = vmatmul.mubr.f32.gmra.mrb[30].mxu1 %v9384_v28  ;;  %6358 = vmatprep.mubr.f32.mxu0 %v8787_v20 }
 0x11a   : > { %6678 = vmatprep.mubr.f32.mxu1 %v10430_v49 }
 0x11c   : > { %6359 = vmatmul.mubr.f32.vlgmr.msra.gmra.mrb[0].mxu0 %v8795_v27 }
 0x11d   : > { %6679 = vmatmul.mubr.f32.vlgmr.msra.gmra.mrb[0].mxu1 %v10431_v5  ;;  %7625 = vmatpush3.bf16.msra.mxu0 %v7622_v19  ;;  %v3974_v19 = vld [vmem:[#allocation2 + $0x630] sm:$0xff] }
 0x11e   : > { %7753 = vmatpush3.bf16.msra.mxu1 %v7750_v26  ;;  %6361 = vmatprep.mubr.f32.mxu0 %v8800_v29  ;;  %v7634_v26 = vpack.c.bf16 %v2846_v24, %v2845_v59  ;;  %v7762_v34 = vpack.c.bf16 %v3975_v53, %v3974_v19  ;;  %v2852_v59 = vld [vmem:[#allocation2 + $0x468] sm:$0xff]  ;;  %v10439_v24 = vld [vmem:[#allocation52_spill] sm:$0xff] }
 0x11f   : > { %6681 = vmatprep.mubr.f32.mxu1 %v10432_v6  ;;  %7627 = vmatprep.subr.bf16.mxu0 %v7626_v21  ;;  %v3980_v19 = vld [vmem:[#allocation2 + $0x660] sm:$0xff]  ;;  %v3981_v53 = vld [vmem:[#allocation2 + $0x668] sm:$0xff] }
 0x120   : > { %6362 = vmatmul.mubr.f32.gmra.mrb[2].mxu0 %v8818_v42  ;;  %7755 = vmatprep.subr.bf16.mxu1 %v7754_v52 }
 0x121   : > { %6682 = vmatmul.mubr.f32.gmra.mrb[2].mxu1 %v10433_v47  ;;  %6364 = vmatprep.mubr.f32.mxu0 %v8822_v45 }
 0x122   : > { %6684 = vmatprep.mubr.f32.mxu1 %v10434_v43  ;;  %7629 = vmatpush3.bf16.msra.mxu0 %v7626_v21  ;;  %v2850_v21 = vld [vmem:[#allocation2 + $0x458] sm:$0xff] }
 0x123   : > { %7757 = vmatpush3.bf16.msra.mxu1 %v7754_v52  ;;  %7631 = vmatprep.subr.bf16.mxu0 %v7630_v50  ;;  %v10437_v52 = vld [vmem:[#allocation50_spill] sm:$0xff]  ;;  %v7642_v8 = vpack.c.bf16 %v2850_v21, %v2849_v32  ;;  %v3983_v21 = vld [vmem:[#allocation2 + $0x678] sm:$0xff] }
 0x124   : > { %6365 = vmatmul.mubr.f32.gmra.mrb[4].mxu0 %v8840_v58  ;;  %7759 = vmatprep.subr.bf16.mxu1 %v7758_v30  ;;  %v3982_v32 = vld [vmem:[#allocation2 + $0x670] sm:$0xff] }
 0x125   : > { %6685 = vmatmul.mubr.f32.gmra.mrb[4].mxu1 %v10435_v22  ;;  %6367 = vmatprep.mubr.f32.mxu0 %v8844_v60 }
 0x126   : > { %6687 = vmatprep.mubr.f32.mxu1 %v10436_v35  ;;  %7633 = vmatpush3.bf16.msra.mxu0 %v7630_v50  ;;  %v7770_v50 = vpack.c.bf16 %v3979_v9, %v3978_v23  ;;  %v10442_v23 = vld [vmem:[#allocation55_spill] sm:$0xff]  ;;  %v3113_v9 = vld [vmem:[#allocation2 + $0x480] sm:$0xff] }
 0x127   : > { %7761 = vmatpush3.bf16.msra.mxu1 %v7758_v30  ;;  %7635 = vmatprep.subr.bf16.mxu0 %v7634_v26  ;;  %v2851_v30 = vld [vmem:[#allocation2 + $0x460] sm:$0xff] }
 0x128   : > { %6368 = vmatmul.mubr.f32.gmra.mrb[6].mxu0 %v8862_v14  ;;  %7763 = vmatprep.subr.bf16.mxu1 %v7762_v34 }
 0x129   : > { %6688 = vmatmul.mubr.f32.gmra.mrb[6].mxu1 %v10437_v52  ;;  %6370 = vmatprep.mubr.f32.mxu0 %v8866_v16 }
 0x12a   : > { %6690 = vmatprep.mubr.f32.mxu1 %v10438_v2  ;;  %7637 = vmatpush3.bf16.msra.mxu0 %v7634_v26  ;;  %v7646_v26 = vpack.c.bf16 %v2852_v59, %v2851_v30  ;;  %v3114_v30 = vld [vmem:[#allocation2 + $0x488] sm:$0xff]  ;;  %v10443_v59 = vld [vmem:[#allocation56_spill] sm:$0xff] }
 0x12b   : > { %7765 = vmatpush3.bf16.msra.mxu1 %v7762_v34  ;;  %7639 = vmatprep.subr.bf16.mxu0 %v7638_v44  ;;  %v7774_v34 = vpack.c.bf16 %v3981_v53, %v3980_v19  ;;  %v4242_v19 = vld [vmem:[#allocation2 + $0x680] sm:$0xff]  ;;  %v4243_v53 = vld [vmem:[#allocation2 + $0x688] sm:$0xff] }
 0x12c   : > { %6371 = vmatmul.mubr.f32.gmra.mrb[8].mxu0 %v8884_v37  ;;  %7767 = vmatprep.subr.bf16.mxu1 %v7766_v51 }
 0x12d   : > { %6691 = vmatmul.mubr.f32.gmra.mrb[8].mxu1 %v10439_v24  ;;  %6373 = vmatprep.mubr.f32.mxu0 %v8888_v40 }
 0x12e   : > { %6693 = vmatprep.mubr.f32.mxu1 %v10440_v12  ;;  %7641 = vmatpush3.bf16.msra.mxu0 %v7638_v44  ;;  %v7650_v44 = vpack.c.bf16 %v2854_v62, %v2853_v31  ;;  %v10445_v31 = vld [vmem:[#allocation11_spill] sm:$0xff]  ;;  %v10446_v62 = vld [vmem:[#allocation12_spill] sm:$0xff] }
 0x12f   : > { %7769 = vmatpush3.bf16.msra.mxu1 %v7766_v51  ;;  %7643 = vmatprep.subr.bf16.mxu0 %v7642_v8  ;;  %v7778_v51 = vpack.c.bf16 %v3983_v21, %v3982_v32  ;;  %v10449_v32 = vld [vmem:[#allocation15_spill] sm:$0xff]  ;;  %v10450_v21 = vld [vmem:[#allocation16_spill] sm:$0xff] }
 0x130   : > { %6374 = vmatmul.mubr.f32.gmra.mrb[10].mxu0 %v8906_v61  ;;  %7771 = vmatprep.subr.bf16.mxu1 %v7770_v50 }
 0x131   : > { %6694 = vmatmul.mubr.f32.gmra.mrb[10].mxu1 %v10441_v33  ;;  %6376 = vmatprep.mubr.f32.mxu0 %v8910_v3  ;;  %v10444_v33 = vld [vmem:[#allocation57_spill] sm:$0xff] }
 0x132   : > { %6696 = vmatprep.mubr.f32.mxu1 %v10442_v23  ;;  %7645 = vmatpush3.bf16.msra.mxu0 %v7642_v8  ;;  %v7654_v8 = vpack.c.bf16 %v3114_v30, %v3113_v9  ;;  %v10453_v9 = vld [vmem:[#allocation19_spill] sm:$0xff]  ;;  %v10454_v30 = vld [vmem:[#allocation20_spill] sm:$0xff] }
 0x133   : > { %7773 = vmatpush3.bf16.msra.mxu1 %v7770_v50  ;;  %7647 = vmatprep.subr.bf16.mxu0 %v7646_v26  ;;  %v7782_v50 = vpack.c.bf16 %v4243_v53, %v4242_v19  ;;  %v10455_v19 = vld [vmem:[#allocation21_spill] sm:$0xff]  ;;  %v10456_v53 = vld [vmem:[#allocation22_spill] sm:$0xff] }
 0x134   : > { %6377 = vmatmul.mubr.f32.gmra.mrb[12].mxu0 %v10375_v18  ;;  %7775 = vmatprep.subr.bf16.mxu1 %v7774_v34 }
 0x135   : > { %6697 = vmatmul.mubr.f32.gmra.mrb[12].mxu1 %v10443_v59  ;;  %6379 = vmatprep.mubr.f32.mxu0 %v10376_v10 }
 0x136   : > { %6699 = vmatprep.mubr.f32.mxu1 %v10444_v33  ;;  %7649 = vmatpush3.bf16.msra.mxu0 %v7646_v26  ;;  %v10447_v26 = vld [vmem:[#allocation13_spill] sm:$0xff] }
 0x137   : > { %7777 = vmatpush3.bf16.msra.mxu1 %v7774_v34  ;;  %7651 = vmatprep.subr.bf16.mxu0 %v7650_v44  ;;  %v10448_v34 = vld [vmem:[#allocation14_spill] sm:$0xff] }
 0x138   : > { %6380 = vmatmul.mubr.f32.gmra.mrb[14].mxu0 %v10382_v63  ;;  %7779 = vmatprep.subr.bf16.mxu1 %v7778_v51 }
 0x139   : > { %6700 = vmatmul.mubr.f32.gmra.mrb[14].mxu1 %v10445_v31  ;;  %6382 = vmatprep.mubr.f32.mxu0 %v10383_v41 }
 0x13a   : > { %6702 = vmatprep.mubr.f32.mxu1 %v10446_v62  ;;  %7653 = vmatpush3.bf16.msra.mxu0 %v7650_v44  ;;  %v10451_v44 = vld [vmem:[#allocation17_spill] sm:$0xff]  ;;  %v9466_v62 = vld [vmem:[%s8733_s30 + $0x30] sm:$0xff] }
 0x13b   : > { %7781 = vmatpush3.bf16.msra.mxu1 %v7778_v51  ;;  %7655 = vmatprep.subr.bf16.mxu0 %v7654_v8  ;;  %v10452_v51 = vld [vmem:[#allocation18_spill] sm:$0xff] }
 0x13c   : > { %6383 = vmatmul.mubr.f32.gmra.mrb[16].mxu0 %v10389_v13  ;;  %7783 = vmatprep.subr.bf16.mxu1 %v7782_v50 }
 0x13d   : > { %6703 = vmatmul.mubr.f32.gmra.mrb[16].mxu1 %v10447_v26  ;;  %6385 = vmatprep.mubr.f32.mxu0 %v10390_v56  ;;  %v4246_v26 = vld [vmem:[#allocation2 + $0x6a0] sm:$0xff] }
 0x13e   : > { %6705 = vmatprep.mubr.f32.mxu1 %v10448_v34  ;;  %v8462_v34 = vld [vmem:[%s8733_s30 + $0x20] sm:$0xff] }
 0x140   : > { %6386 = vmatmul.mubr.f32.gmra.mrb[18].mxu0 %v10396_v4 }
 0x141   : > { %6706 = vmatmul.mubr.f32.gmra.mrb[18].mxu1 %v10449_v32  ;;  %6388 = vmatprep.mubr.f32.mxu0 %v10397_v1  ;;  %v4245_v32 = vld [vmem:[#allocation2 + $0x698] sm:$0xff] }
 0x142   : > { %6708 = vmatprep.mubr.f32.mxu1 %v10450_v21  ;;  %v532_v21 = vrot.slane %v9369_v38, 2  ;;  %v8461_v38 = vld [vmem:[%s8733_s30 + $0x18] sm:$0xff] }
 0x144   : > { %6389 = vmatmul.mubr.f32.gmra.mrb[20].mxu0 %v10401_v54 }
 0x145   : > { %6709 = vmatmul.mubr.f32.gmra.mrb[20].mxu1 %v10451_v44  ;;  %6391 = vmatprep.mubr.f32.mxu0 %v10402_v7  ;;  %v529_v44 = vrot.slane %v9358_v11, 2 }
 0x146   : > { %6711 = vmatprep.mubr.f32.mxu1 %v10452_v51  ;;  %v530_v51 = vrot.slane %v9361_v15, 2 }
 0x148   : > { %6392 = vmatmul.mubr.f32.gmra.mrb[22].mxu0 %v9044_v55 }
 0x149   : > { %6712 = vmatmul.mubr.f32.gmra.mrb[22].mxu1 %v10453_v9  ;;  %6394 = vmatprep.mubr.f32.mxu0 %v9048_v17  ;;  %v10457_v9 = vld [vmem:[#allocation23_spill] sm:$0xff] }
 0x14a   : > { %6714 = vmatprep.mubr.f32.mxu1 %v10454_v30  ;;  %v10458_v30 = vld [vmem:[#allocation24_spill] sm:$0xff] }
 0x14c   : > { %6395 = vmatmul.mubr.f32.gmra.mrb[24].mxu0 %v10410_v25 }
 0x14d   : > { %6715 = vmatmul.mubr.f32.gmra.mrb[24].mxu1 %v10455_v19  ;;  %6397 = vmatprep.mubr.f32.mxu0 %v10424_v36  ;;  %v9450_v19 = vsel %vm448_vm1, %v529_v44, %v530_v51  ;;  %v4244_v44 = vld [vmem:[#allocation2 + $0x690] sm:$0xff] }
 0x14e   : > { %6717 = vmatprep.mubr.f32.mxu1 %v10456_v53  ;;  %10459 = vst [vmem:[#allocation27_spill] sm:$0xff] %v9450_v19  ;;  %v3116_v53 = vld [vmem:[#allocation2 + $0x498] sm:$0xff] }
 0x150   : > { %6398 = vmatmul.mubr.f32.gmra.mrb[26].mxu0 %v10426_v46 }
 0x151   : > { %6718 = vmatmul.mubr.f32.gmra.mrb[26].mxu1 %v10457_v9  ;;  %6400 = vmatprep.mubr.f32.mxu0 %v10428_v0  ;;  %v9457_v9 = vsel %vm448_vm1, %v530_v51, %v532_v21  ;;  %v3117_v21 = vld [vmem:[#allocation2 + $0x4a0] sm:$0xff]  ;;  %v3118_v51 = vld [vmem:[#allocation2 + $0x4a8] sm:$0xff] }
 0x152   : > { %6720 = vmatprep.mubr.f32.mxu1 %v10458_v30  ;;  %10460 = vst [vmem:[#allocation28_spill] sm:$0xff] %v9457_v9  ;;  %v3115_v30 = vld [vmem:[#allocation2 + $0x490] sm:$0xff] }
 0x154   : > { %6401 = vmatmul.mubr.f32.gmra.mrb[28].mxu0 %v10418_v48 }
 0x155   : > { %6721 = vmatmul.mubr.f32.gmra.mrb[28].mxu1 %v9300_v57  ;;  %6403 = vmatprep.mubr.f32.mxu0 %v9377_v39  ;;  %v7658_v57 = vpack.c.bf16 %v3116_v53, %v3115_v30  ;;  %v7662_v30 = vpack.c.bf16 %v3118_v51, %v3117_v21  ;;  %v9471_v53 = vld [vmem:[%s8733_s30 + $0x38] sm:$0xff]  ;;  %v9481_v51 = vld [vmem:[%s8733_s30 + $0x50] sm:$0xff] }
 0x156   : > { %6723 = vmatprep.mubr.f32.mxu1 %v9450_v19  ;;  %v7786_v19 = vpack.c.bf16 %v4245_v32, %v4244_v44  ;;  %10461 = vst [vmem:[#allocation30_spill] sm:$0xff] %v9471_v53  ;;  %v3120_v32 = vld [vmem:[#allocation2 + $0x4b8] sm:$0xff]  ;;  %10463 = vst [vmem:[#allocation32_spill] sm:$0xff] %v9481_v51 }
 0x157   : > { %v4249_v44 = vld [vmem:[#allocation2 + $0x6b8] sm:$0xff] }
 0x158   : > { %6404 = vmatmul.mubr.f32.gmra.mrb[30].mxu0 %v9384_v28 }
 0x159   : > { %6724 = vmatmul.mubr.f32.gmra.mrb[30].mxu1 %v9457_v9  ;;  %6758 = vmatprep.mubr.f32.mxu0 %v8461_v38  ;;  %v4247_v9 = vld [vmem:[#allocation2 + $0x6a8] sm:$0xff]  ;;  %v4248_v38 = vld [vmem:[#allocation2 + $0x6b0] sm:$0xff] }
 0x15a   : > { %7078 = vmatprep.mubr.f32.mxu1 %v8787_v20 }
 0x15c   : > { %6759 = vmatmul.mubr.f32.vlgmr.msra.gmra.mrb[32].mxu0 %v8462_v34  ;;  %v7790_v34 = vpack.c.bf16 %v4247_v9, %v4246_v26  ;;  %v7794_v26 = vpack.c.bf16 %v4249_v44, %v4248_v38  ;;  %v3121_v9 = vld [vmem:[#allocation2 + $0x4c0] sm:$0xff]  ;;  %v3123_v44 = vld [vmem:[#allocation2 + $0x4d0] sm:$0xff] }
 0x15d   : > { %7079 = vmatmul.mubr.f32.vlgmr.msra.gmra.mrb[32].mxu1 %v8795_v27  ;;  %7657 = vmatpush3.bf16.msra.mxu0 %v7654_v8  ;;  %v3119_v8 = vld [vmem:[#allocation2 + $0x4b0] sm:$0xff] }
 0x15e   : > { %7785 = vmatpush3.bf16.msra.mxu1 %v7782_v50  ;;  %6761 = vmatprep.mubr.f32.mxu0 %v9466_v62  ;;  %v9476_v50 = vld [vmem:[%s8733_s30 + $0x48] sm:$0xff]  ;;  %v7666_v21 = vpack.c.bf16 %v3120_v32, %v3119_v8 }
 0x15f   : > { %7081 = vmatprep.mubr.f32.mxu1 %v8800_v29  ;;  %7659 = vmatprep.subr.bf16.mxu0 %v7658_v57  ;;  %10462 = vst [vmem:[#allocation31_spill] sm:$0xff] %v9476_v50  ;;  %v9491_v32 = vld [vmem:[%s8733_s30 + $0x68] sm:$0xff] }
 0x160   : > { %6762 = vmatmul.mubr.f32.gmra.mrb[34].mxu0 %v9471_v53  ;;  %7787 = vmatprep.subr.bf16.mxu1 %v7786_v19  ;;  %v3122_v53 = vld [vmem:[#allocation2 + $0x4c8] sm:$0xff]  ;;  %10465 = vst [vmem:[#allocation39_spill] sm:$0xff] %v9491_v32 }
 0x161   : > { %7082 = vmatmul.mubr.f32.gmra.mrb[34].mxu1 %v8818_v42  ;;  %6764 = vmatprep.mubr.f32.mxu0 %v9476_v50  ;;  %v9486_v50 = vld [vmem:[%s8733_s30 + $0x60] sm:$0xff]  ;;  %v7670_v8 = vpack.c.bf16 %v3122_v53, %v3121_v9 }
 0x162   : > { %7084 = vmatprep.mubr.f32.mxu1 %v8822_v45  ;;  %7661 = vmatpush3.bf16.msra.mxu0 %v7658_v57  ;;  %10464 = vst [vmem:[#allocation37_spill] sm:$0xff] %v9486_v50  ;;  %v4250_v57 = vld [vmem:[#allocation2 + $0x6c0] sm:$0xff] }
 0x163   : > { %7789 = vmatpush3.bf16.msra.mxu1 %v7786_v19  ;;  %7663 = vmatprep.subr.bf16.mxu0 %v7662_v30  ;;  %v4251_v19 = vld [vmem:[#allocation2 + $0x6c8] sm:$0xff]  ;;  %v9501_v9 = vld [vmem:[%s8733_s30 + $0x80] sm:$0xff] }
 0x164   : > { %6765 = vmatmul.mubr.f32.gmra.mrb[36].mxu0 %v9481_v51  ;;  %7791 = vmatprep.subr.bf16.mxu1 %v7790_v34  ;;  %v7798_v38 = vpack.c.bf16 %v4251_v19, %v4250_v57  ;;  %v3124_v51 = vld [vmem:[#allocation2 + $0x4d8] sm:$0xff]  ;;  %10467 = vst [vmem:[#allocation8_spill] sm:$0xff] %v9501_v9  ;;  %v3125_v19 = vld [vmem:[#allocation2 + $0x4e0] sm:$0xff] }
 0x165   : > { %7085 = vmatmul.mubr.f32.gmra.mrb[36].mxu1 %v8840_v58  ;;  %6767 = vmatprep.mubr.f32.mxu0 %v9486_v50  ;;  %v9496_v50 = vld [vmem:[%s8733_s30 + $0x78] sm:$0xff]  ;;  %v7674_v53 = vpack.c.bf16 %v3124_v51, %v3123_v44 }
 0x166   : > { %7087 = vmatprep.mubr.f32.mxu1 %v8844_v60  ;;  %7665 = vmatpush3.bf16.msra.mxu0 %v7662_v30  ;;  %10466 = vst [vmem:[#allocation42_spill] sm:$0xff] %v9496_v50  ;;  %v4252_v30 = vld [vmem:[#allocation2 + $0x6d0] sm:$0xff]  ;;  %v9511_v44 = vld [vmem:[%s8733_s30 + $0x98] sm:$0xff] }
 0x167   : > { %7793 = vmatpush3.bf16.msra.mxu1 %v7790_v34  ;;  %7667 = vmatprep.subr.bf16.mxu0 %v7666_v21  ;;  %v4253_v34 = vld [vmem:[#allocation2 + $0x6d8] sm:$0xff]  ;;  %10469 = vst [vmem:[#allocation25_spill] sm:$0xff] %v9511_v44 }
 0x168   : > { %6768 = vmatmul.mubr.f32.gmra.mrb[38].mxu0 %v9491_v32  ;;  %7795 = vmatprep.subr.bf16.mxu1 %v7794_v26  ;;  %v7802_v57 = vpack.c.bf16 %v4253_v34, %v4252_v30  ;;  %v3126_v32 = vld [vmem:[#allocation2 + $0x4e8] sm:$0xff]  ;;  %v3127_v34 = vld [vmem:[#allocation2 + $0x4f0] sm:$0xff] }
 0x169   : > { %7088 = vmatmul.mubr.f32.gmra.mrb[38].mxu1 %v8862_v14  ;;  %6770 = vmatprep.mubr.f32.mxu0 %v9496_v50  ;;  %v9506_v50 = vld [vmem:[%s8733_s30 + $0x90] sm:$0xff]  ;;  %v7678_v51 = vpack.c.bf16 %v3126_v32, %v3125_v19 }
 0x16a   : > { %7090 = vmatprep.mubr.f32.mxu1 %v8866_v16  ;;  %7669 = vmatpush3.bf16.msra.mxu0 %v7666_v21  ;;  %10468 = vst [vmem:[#allocation9_spill] sm:$0xff] %v9506_v50  ;;  %v4254_v21 = vld [vmem:[#allocation2 + $0x6e0] sm:$0xff]  ;;  %v9521_v19 = vld [vmem:[%s8733_s30 + $0xb0] sm:$0xff] }
 0x16b   : > { %7797 = vmatpush3.bf16.msra.mxu1 %v7794_v26  ;;  %7671 = vmatprep.subr.bf16.mxu0 %v7670_v8  ;;  %v4255_v26 = vld [vmem:[#allocation2 + $0x6e8] sm:$0xff] }
 0x16c   : > { %6771 = vmatmul.mubr.f32.gmra.mrb[40].mxu0 %v9501_v9  ;;  %7799 = vmatprep.subr.bf16.mxu1 %v7798_v38  ;;  %v7806_v30 = vpack.c.bf16 %v4255_v26, %v4254_v21  ;;  %v3128_v9 = vld [vmem:[#allocation2 + $0x4f8] sm:$0xff]  ;;  %v3387_v26 = vld [vmem:[#allocation2 + $0x500] sm:$0xff] }
 0x16d   : > { %7091 = vmatmul.mubr.f32.gmra.mrb[40].mxu1 %v8884_v37  ;;  %6773 = vmatprep.mubr.f32.mxu0 %v9506_v50  ;;  %v9516_v50 = vld [vmem:[%s8733_s30 + $0xa8] sm:$0xff]  ;;  %v7682_v32 = vpack.c.bf16 %v3128_v9, %v3127_v34 }
 0x16e   : > { %7093 = vmatprep.mubr.f32.mxu1 %v8888_v40  ;;  %7673 = vmatpush3.bf16.msra.mxu0 %v7670_v8  ;;  %10470 = vst [vmem:[#allocation29_spill] sm:$0xff] %v9516_v50  ;;  %v4256_v8 = vld [vmem:[#allocation2 + $0x6f0] sm:$0xff]  ;;  %v9533_v34 = vld [vmem:[%s8733_s30 + $0xc8] sm:$0xff] }
 0x16f   : > { %7801 = vmatpush3.bf16.msra.mxu1 %v7798_v38  ;;  %7675 = vmatprep.subr.bf16.mxu0 %v7674_v53  ;;  %v4257_v38 = vld [vmem:[#allocation2 + $0x6f8] sm:$0xff] }
 0x170   : > { %6774 = vmatmul.mubr.f32.gmra.mrb[42].mxu0 %v9511_v44  ;;  %7803 = vmatprep.subr.bf16.mxu1 %v7802_v57  ;;  %v7810_v21 = vpack.c.bf16 %v4257_v38, %v4256_v8  ;;  %v3388_v44 = vld [vmem:[#allocation2 + $0x508] sm:$0xff]  ;;  %v9540_v38 = vld [vmem:[%s8733_s30 + $0xd8] sm:$0xff] }
 0x171   : > { %7094 = vmatmul.mubr.f32.gmra.mrb[42].mxu1 %v8906_v61  ;;  %6776 = vmatprep.mubr.f32.mxu0 %v9516_v50  ;;  %v9526_v50 = vld [vmem:[%s8733_s30 + $0xc0] sm:$0xff]  ;;  %v9530_v9 = vpack.c.bf16 %v3388_v44, %v3387_v26  ;;  %v9552_v44 = vld [vmem:[%s8733_s30 + $0xf0] sm:$0xff] }
 0x172   : > { %7096 = vmatprep.mubr.f32.mxu1 %v8910_v3  ;;  %7677 = vmatpush3.bf16.msra.mxu0 %v7674_v53  ;;  %v4516_v53 = vld [vmem:[#allocation2 + $0x700] sm:$0xff]  ;;  %10472 = vst [vmem:[#allocation38_spill] sm:$0xff] %v9552_v44 }
 0x173   : > { %7805 = vmatpush3.bf16.msra.mxu1 %v7802_v57  ;;  %7679 = vmatprep.subr.bf16.mxu0 %v7678_v51  ;;  %v4517_v57 = vld [vmem:[#allocation2 + $0x708] sm:$0xff]  ;;  %v9572_v26 = vld [vmem:[%s8733_s30 + $0x120] sm:$0xff] }
 0x174   : > { %6777 = vmatmul.mubr.f32.gmra.mrb[44].mxu0 %v9521_v19  ;;  %7807 = vmatprep.subr.bf16.mxu1 %v7806_v30  ;;  %v9536_v8 = vpack.c.bf16 %v4517_v57, %v4516_v53  ;;  %10476 = vst [vmem:[#allocation41_spill] sm:$0xff] %v9572_v26  ;;  %v9577_v53 = vld [vmem:[%s8733_s30 + $0x128] sm:$0xff]  ;;  %v9582_v57 = vld [vmem:[%s8733_s30 + $0x138] sm:$0xff] }
 0x175   : > { %7097 = vmatmul.mubr.f32.gmra.mrb[44].mxu1 %v10375_v18  ;;  %6779 = vmatprep.mubr.f32.mxu0 %v9526_v50  ;;  %10477 = vst [vmem:[#allocation36_spill] sm:$0xff] %v9577_v53  ;;  %10478 = vst [vmem:[#allocation43_spill] sm:$0xff] %v9582_v57 }
 0x176   : > { %7099 = vmatprep.mubr.f32.mxu1 %v10376_v10  ;;  %7681 = vmatpush3.bf16.msra.mxu0 %v7678_v51  ;;  %v9546_v51 = vld [vmem:[%s8733_s30 + $0xe0] sm:$0xff] }
 0x177   : > { %7809 = vmatpush3.bf16.msra.mxu1 %v7806_v30  ;;  %7683 = vmatprep.subr.bf16.mxu0 %v7682_v32  ;;  %10471 = vst [vmem:[#allocation33_spill] sm:$0xff] %v9546_v51  ;;  %v9557_v30 = vld [vmem:[%s8733_s30 + $0xf8] sm:$0xff] }
 0x178   : > { %6780 = vmatmul.mubr.f32.gmra.mrb[46].mxu0 %v9533_v34  ;;  %7811 = vmatprep.subr.bf16.mxu1 %v7810_v21  ;;  %10473 = vst [vmem:[#allocation34_spill] sm:$0xff] %v9557_v30 }
 0x179   : > { %7100 = vmatmul.mubr.f32.gmra.mrb[46].mxu1 %v10382_v63  ;;  %6782 = vmatprep.mubr.f32.mxu0 %v9540_v38 }
 0x17a   : > { %7102 = vmatprep.mubr.f32.mxu1 %v10383_v41  ;;  %7685 = vmatpush3.bf16.msra.mxu0 %v7682_v32  ;;  %v9562_v32 = vld [vmem:[%s8733_s30 + $0x108] sm:$0xff] }
 0x17b   : > { %7813 = vmatpush3.bf16.msra.mxu1 %v7810_v21  ;;  %7687 = vmatprep.subr.bf16.mxu0 %v9530_v9  ;;  %10474 = vst [vmem:[#allocation40_spill] sm:$0xff] %v9562_v32  ;;  %v9567_v21 = vld [vmem:[%s8733_s30 + $0x110] sm:$0xff] }
 0x17c   : > { %6783 = vmatmul.mubr.f32.gmra.mrb[48].mxu0 %v9546_v51  ;;  %7815 = vmatprep.subr.bf16.mxu1 %v9536_v8  ;;  %10475 = vst [vmem:[#allocation35_spill] sm:$0xff] %v9567_v21  ;;  %v4521_v51 = vld [vmem:[#allocation2 + $0x728] sm:$0xff] }
 0x17d   : > { %7103 = vmatmul.mubr.f32.gmra.mrb[48].mxu1 %v10389_v13  ;;  %6785 = vmatprep.mubr.f32.mxu0 %v9552_v44  ;;  %v3391_v44 = vld [vmem:[#allocation2 + $0x520] sm:$0xff] }
 0x17e   : > { %7105 = vmatprep.mubr.f32.mxu1 %v10390_v56 }
 0x180   : > { %6786 = vmatmul.mubr.f32.gmra.mrb[50].mxu0 %v9557_v30 }
 0x181   : > { %7106 = vmatmul.mubr.f32.gmra.mrb[50].mxu1 %v10396_v4  ;;  %6788 = vmatprep.mubr.f32.mxu0 %v9562_v32  ;;  %v4519_v32 = vld [vmem:[#allocation2 + $0x718] sm:$0xff] }
 0x182   : > { %7108 = vmatprep.mubr.f32.mxu1 %v10397_v1 }
 0x184   : > { %6789 = vmatmul.mubr.f32.gmra.mrb[52].mxu0 %v9567_v21  ;;  %v9587_v21 = vld [vmem:[%s8733_s30 + $0x140] sm:$0xff] }
 0x185   : > { %7109 = vmatmul.mubr.f32.gmra.mrb[52].mxu1 %v10401_v54  ;;  %6791 = vmatprep.mubr.f32.mxu0 %v9572_v26  ;;  %10479 = vst [vmem:[#allocation44_spill] sm:$0xff] %v9587_v21  ;;  %v9592_v26 = vld [vmem:[%s8733_s30 + $0x150] sm:$0xff] }
 0x186   : > { %7111 = vmatprep.mubr.f32.mxu1 %v10402_v7  ;;  %10480 = vst [vmem:[#allocation45_spill] sm:$0xff] %v9592_v26 }
 0x188   : > { %6792 = vmatmul.mubr.f32.gmra.mrb[54].mxu0 %v9577_v53  ;;  %v9597_v53 = vld [vmem:[%s8733_s30 + $0x158] sm:$0xff] }
 0x189   : > { %7112 = vmatmul.mubr.f32.gmra.mrb[54].mxu1 %v9044_v55  ;;  %6794 = vmatprep.mubr.f32.mxu0 %v9582_v57  ;;  %10481 = vst [vmem:[#allocation46_spill] sm:$0xff] %v9597_v53  ;;  %v9602_v57 = vld [vmem:[%s8733_s30 + $0x168] sm:$0xff] }
 0x18a   : > { %7114 = vmatprep.mubr.f32.mxu1 %v9048_v17  ;;  %10482 = vst [vmem:[#allocation47_spill] sm:$0xff] %v9602_v57 }
 0x18c   : > { %6795 = vmatmul.mubr.f32.gmra.mrb[56].mxu0 %v9587_v21  ;;  %v9607_v21 = vld [vmem:[%s8733_s30 + $0x170] sm:$0xff] }
 0x18d   : > { %7115 = vmatmul.mubr.f32.gmra.mrb[56].mxu1 %v10410_v25  ;;  %6797 = vmatprep.mubr.f32.mxu0 %v9592_v26  ;;  %10483 = vst [vmem:[#allocation48_spill] sm:$0xff] %v9607_v21  ;;  %v3390_v26 = vld [vmem:[#allocation2 + $0x518] sm:$0xff] }
 0x18e   : > { %7117 = vmatprep.mubr.f32.mxu1 %v10424_v36 }
 0x190   : > { %6798 = vmatmul.mubr.f32.gmra.mrb[58].mxu0 %v9597_v53  ;;  %v3389_v53 = vld [vmem:[#allocation2 + $0x510] sm:$0xff] }
 0x191   : > { %7118 = vmatmul.mubr.f32.gmra.mrb[58].mxu1 %v10426_v46  ;;  %6800 = vmatprep.mubr.f32.mxu0 %v9602_v57  ;;  %v4518_v57 = vld [vmem:[#allocation2 + $0x710] sm:$0xff]  ;;  %v7690_v30 = vpack.c.bf16 %v3390_v26, %v3389_v53  ;;  %v3395_v26 = vld [vmem:[#allocation2 + $0x540] sm:$0xff] }
 0x192   : > { %7120 = vmatprep.mubr.f32.mxu1 %v10428_v0  ;;  %v4524_v53 = vld [vmem:[#allocation2 + $0x740] sm:$0xff] }
 0x194   : > { %6801 = vmatmul.mubr.f32.gmra.mrb[60].mxu0 %v9607_v21  ;;  %v7818_v21 = vpack.c.bf16 %v4519_v32, %v4518_v57  ;;  %v3394_v32 = vld [vmem:[#allocation2 + $0x538] sm:$0xff]  ;;  %v4525_v57 = vld [vmem:[#allocation2 + $0x748] sm:$0xff] }
 0x195   : > { %7121 = vmatmul.mubr.f32.gmra.mrb[60].mxu1 %v10418_v48  ;;  %6803 = vmatprep.mubr.f32.mxu0 %v9358_v11  ;;  %v3392_v11 = vld [vmem:[#allocation2 + $0x528] sm:$0xff] }
 0x196   : > { %7123 = vmatprep.mubr.f32.mxu1 %v9377_v39 }
 0x198   : > { %6804 = vmatmul.mubr.f32.gmra.mrb[62].mxu0 %v9361_v15  ;;  %v4520_v15 = vld [vmem:[#allocation2 + $0x720] sm:$0xff] }
 0x199   : > { %7124 = vmatmul.mubr.f32.gmra.mrb[62].mxu1 %v9384_v28  ;;  %6838 = vmatprep.mubr.f32.mxu0 %v8787_v20  ;;  %v7694_v20 = vpack.c.bf16 %v3392_v11, %v3391_v44  ;;  %v3397_v11 = vld [vmem:[#allocation2 + $0x550] sm:$0xff] }
 0x19a   : > { %7158 = vmatprep.mubr.f32.mxu1 %v10430_v49  ;;  %v3393_v49 = vld [vmem:[#allocation2 + $0x530] sm:$0xff] }
 0x19c   : > { %6839 = vmatmul.mubr.f32.vlgmr.msra.gmra.mrb[32].mxu0 %v8795_v27  ;;  %v7822_v27 = vpack.c.bf16 %v4521_v51, %v4520_v15  ;;  %v3396_v51 = vld [vmem:[#allocation2 + $0x548] sm:$0xff]  ;;  %v3398_v15 = vld [vmem:[#allocation2 + $0x558] sm:$0xff] }
 0x19d   : > { %7159 = vmatmul.mubr.f32.vlgmr.msra.gmra.mrb[32].mxu1 %v10431_v5  ;;  %7689 = vmatpush3.bf16.msra.mxu0 %v9530_v9  ;;  %v4522_v5 = vld [vmem:[#allocation2 + $0x730] sm:$0xff]  ;;  %v4523_v9 = vld [vmem:[#allocation2 + $0x738] sm:$0xff] }
 0x19e   : > { %7817 = vmatpush3.bf16.msra.mxu1 %v9536_v8  ;;  %6841 = vmatprep.mubr.f32.mxu0 %v8800_v29  ;;  %v7698_v8 = vpack.c.bf16 %v3394_v32, %v3393_v49  ;;  %v7826_v44 = vpack.c.bf16 %v4523_v9, %v4522_v5  ;;  %v4526_v49 = vld [vmem:[#allocation2 + $0x750] sm:$0xff]  ;;  %v4527_v32 = vld [vmem:[#allocation2 + $0x758] sm:$0xff]  ;;  %v3399_v5 = vld [vmem:[#allocation2 + $0x560] sm:$0xff] }
 0x19f   : > { %7161 = vmatprep.mubr.f32.mxu1 %v10432_v6  ;;  %7691 = vmatprep.subr.bf16.mxu0 %v7690_v30  ;;  %v3400_v9 = vld [vmem:[#allocation2 + $0x568] sm:$0xff] }
 0x1a0   : > { %6842 = vmatmul.mubr.f32.gmra.mrb[34].mxu0 %v8818_v42  ;;  %7819 = vmatprep.subr.bf16.mxu1 %v7818_v21 }
 0x1a1   : > { %7162 = vmatmul.mubr.f32.gmra.mrb[34].mxu1 %v10433_v47  ;;  %6844 = vmatprep.mubr.f32.mxu0 %v8822_v45 }
 0x1a2   : > { %7164 = vmatprep.mubr.f32.mxu1 %v10434_v43  ;;  %7693 = vmatpush3.bf16.msra.mxu0 %v7690_v30  ;;  %v7702_v30 = vpack.c.bf16 %v3396_v51, %v3395_v26  ;;  %v4528_v26 = vld [vmem:[#allocation2 + $0x760] sm:$0xff]  ;;  %v4529_v51 = vld [vmem:[#allocation2 + $0x768] sm:$0xff] }
 0x1a3   : > { %7821 = vmatpush3.bf16.msra.mxu1 %v7818_v21  ;;  %7695 = vmatprep.subr.bf16.mxu0 %v7694_v20  ;;  %v7830_v21 = vpack.c.bf16 %v4525_v57, %v4524_v53  ;;  %v3401_v53 = vld [vmem:[#allocation2 + $0x570] sm:$0xff]  ;;  %v3402_v57 = vld [vmem:[#allocation2 + $0x578] sm:$0xff] }
 0x1a4   : > { %6845 = vmatmul.mubr.f32.gmra.mrb[36].mxu0 %v8840_v58  ;;  %7823 = vmatprep.subr.bf16.mxu1 %v7822_v27 }
 0x1a5   : > { %7165 = vmatmul.mubr.f32.gmra.mrb[36].mxu1 %v10435_v22  ;;  %6847 = vmatprep.mubr.f32.mxu0 %v8844_v60 }
 0x1a6   : > { %7167 = vmatprep.mubr.f32.mxu1 %v10436_v35  ;;  %7697 = vmatpush3.bf16.msra.mxu0 %v7694_v20  ;;  %v7706_v20 = vpack.c.bf16 %v3398_v15, %v3397_v11  ;;  %v10484_v11 = vld [vmem:[#allocation54_spill] sm:$0xff] }
 0x1a7   : > { %7825 = vmatpush3.bf16.msra.mxu1 %v7822_v27  ;;  %7699 = vmatprep.subr.bf16.mxu0 %v7698_v8  ;;  %v7834_v27 = vpack.c.bf16 %v4527_v32, %v4526_v49  ;;  %v4530_v15 = vld [vmem:[#allocation2 + $0x770] sm:$0xff]  ;;  %v4531_v49 = vld [vmem:[#allocation2 + $0x778] sm:$0xff]  ;;  %v3661_v32 = vld [vmem:[#allocation2 + $0x580] sm:$0xff] }
 0x1a8   : > { %6848 = vmatmul.mubr.f32.gmra.mrb[38].mxu0 %v8862_v14  ;;  %7827 = vmatprep.subr.bf16.mxu1 %v7826_v44 }
 0x1a9   : > { %7168 = vmatmul.mubr.f32.gmra.mrb[38].mxu1 %v10437_v52  ;;  %6850 = vmatprep.mubr.f32.mxu0 %v8866_v16 }
 0x1aa   : > { %7170 = vmatprep.mubr.f32.mxu1 %v10438_v2  ;;  %7701 = vmatpush3.bf16.msra.mxu0 %v7698_v8  ;;  %v7710_v8 = vpack.c.bf16 %v3400_v9, %v3399_v5  ;;  %v3662_v5 = vld [vmem:[#allocation2 + $0x588] sm:$0xff]  ;;  %v4790_v9 = vld [vmem:[#allocation2 + $0x780] sm:$0xff] }
 0x1ab   : > { %7829 = vmatpush3.bf16.msra.mxu1 %v7826_v44  ;;  %7703 = vmatprep.subr.bf16.mxu0 %v7702_v30  ;;  %v7838_v44 = vpack.c.bf16 %v4529_v51, %v4528_v26  ;;  %v4791_v26 = vld [vmem:[#allocation2 + $0x788] sm:$0xff]  ;;  %v10485_v51 = vld [vmem:[#allocation12_spill] sm:$0xff] }
 0x1ac   : > { %6851 = vmatmul.mubr.f32.gmra.mrb[40].mxu0 %v8884_v37  ;;  %7831 = vmatprep.subr.bf16.mxu1 %v7830_v21 }
 0x1ad   : > { %7171 = vmatmul.mubr.f32.gmra.mrb[40].mxu1 %v10439_v24  ;;  %6853 = vmatprep.mubr.f32.mxu0 %v8888_v40 }
 0x1ae   : > { %7173 = vmatprep.mubr.f32.mxu1 %v10440_v12  ;;  %7705 = vmatpush3.bf16.msra.mxu0 %v7702_v30  ;;  %v7714_v30 = vpack.c.bf16 %v3402_v57, %v3401_v53  ;;  %v10488_v53 = vld [vmem:[#allocation15_spill] sm:$0xff]  ;;  %v10489_v57 = vld [vmem:[#allocation16_spill] sm:$0xff] }
 0x1af   : > { %7833 = vmatpush3.bf16.msra.mxu1 %v7830_v21  ;;  %7707 = vmatprep.subr.bf16.mxu0 %v7706_v20  ;;  %v7842_v21 = vpack.c.bf16 %v4531_v49, %v4530_v15  ;;  %v10490_v15 = vld [vmem:[#allocation17_spill] sm:$0xff]  ;;  %v10491_v49 = vld [vmem:[#allocation18_spill] sm:$0xff] }
 0x1b0   : > { %6854 = vmatmul.mubr.f32.gmra.mrb[42].mxu0 %v8906_v61  ;;  %7835 = vmatprep.subr.bf16.mxu1 %v7834_v27 }
 0x1b1   : > { %7174 = vmatmul.mubr.f32.gmra.mrb[42].mxu1 %v10484_v11  ;;  %6856 = vmatprep.mubr.f32.mxu0 %v8910_v3 }
 0x1b2   : > { %7176 = vmatprep.mubr.f32.mxu1 %v10442_v23  ;;  %7709 = vmatpush3.bf16.msra.mxu0 %v7706_v20  ;;  %v7718_v20 = vpack.c.bf16 %v3662_v5, %v3661_v32  ;;  %v10494_v32 = vld [vmem:[#allocation21_spill] sm:$0xff]  ;;  %v10495_v5 = vld [vmem:[#allocation22_spill] sm:$0xff]  ;;  %v4794_v23 = vld [vmem:[#allocation2 + $0x7a0] sm:$0xff] }
 0x1b3   : > { %7837 = vmatpush3.bf16.msra.mxu1 %v7834_v27  ;;  %7711 = vmatprep.subr.bf16.mxu0 %v7710_v8  ;;  %v7846_v27 = vpack.c.bf16 %v4791_v26, %v4790_v9  ;;  %v10496_v9 = vld [vmem:[#allocation23_spill] sm:$0xff]  ;;  %v10497_v26 = vld [vmem:[#allocation24_spill] sm:$0xff] }
 0x1b4   : > { %6857 = vmatmul.mubr.f32.gmra.mrb[44].mxu0 %v10375_v18  ;;  %7839 = vmatprep.subr.bf16.mxu1 %v7838_v44 }
 0x1b5   : > { %7177 = vmatmul.mubr.f32.gmra.mrb[44].mxu1 %v10443_v59  ;;  %6859 = vmatprep.mubr.f32.mxu0 %v10376_v10  ;;  %v3666_v59 = vld [vmem:[#allocation2 + $0x5a8] sm:$0xff] }
 0x1b6   : > { %7179 = vmatprep.mubr.f32.mxu1 %v10444_v33  ;;  %7713 = vmatpush3.bf16.msra.mxu0 %v7710_v8  ;;  %v10486_v8 = vld [vmem:[#allocation13_spill] sm:$0xff]  ;;  %v10503_v33 = vld [vmem:[#allocation30_spill] sm:$0xff] }
 0x1b7   : > { %7841 = vmatpush3.bf16.msra.mxu1 %v7838_v44  ;;  %7715 = vmatprep.subr.bf16.mxu0 %v7714_v30  ;;  %v10487_v44 = vld [vmem:[#allocation14_spill] sm:$0xff] }
 0x1b8   : > { %6860 = vmatmul.mubr.f32.gmra.mrb[46].mxu0 %v10382_v63  ;;  %7843 = vmatprep.subr.bf16.mxu1 %v7842_v21 }
 0x1b9   : > { %7180 = vmatmul.mubr.f32.gmra.mrb[46].mxu1 %v10445_v31  ;;  %6862 = vmatprep.mubr.f32.mxu0 %v10383_v41  ;;  %v4793_v31 = vld [vmem:[#allocation2 + $0x798] sm:$0xff] }
 0x1ba   : > { %7182 = vmatprep.mubr.f32.mxu1 %v10485_v51  ;;  %7717 = vmatpush3.bf16.msra.mxu0 %v7714_v30  ;;  %v10492_v30 = vld [vmem:[#allocation19_spill] sm:$0xff]  ;;  %v4792_v51 = vld [vmem:[#allocation2 + $0x790] sm:$0xff] }
 0x1bb   : > { %7845 = vmatpush3.bf16.msra.mxu1 %v7842_v21  ;;  %7719 = vmatprep.subr.bf16.mxu0 %v7718_v20  ;;  %v10493_v21 = vld [vmem:[#allocation20_spill] sm:$0xff] }
 0x1bc   : > { %6863 = vmatmul.mubr.f32.gmra.mrb[48].mxu0 %v10389_v13  ;;  %7847 = vmatprep.subr.bf16.mxu1 %v7846_v27 }
 0x1bd   : > { %7183 = vmatmul.mubr.f32.gmra.mrb[48].mxu1 %v10486_v8  ;;  %6865 = vmatprep.mubr.f32.mxu0 %v10390_v56 }
 0x1be   : > { %7185 = vmatprep.mubr.f32.mxu1 %v10487_v44  ;;  %v3664_v44 = vld [vmem:[#allocation2 + $0x598] sm:$0xff] }
 0x1c0   : > { %6866 = vmatmul.mubr.f32.gmra.mrb[50].mxu0 %v10396_v4 }
 0x1c1   : > { %7186 = vmatmul.mubr.f32.gmra.mrb[50].mxu1 %v10488_v53  ;;  %6868 = vmatprep.mubr.f32.mxu0 %v10397_v1  ;;  %v3663_v53 = vld [vmem:[#allocation2 + $0x590] sm:$0xff] }
 0x1c2   : > { %7188 = vmatprep.mubr.f32.mxu1 %v10489_v57 }
 0x1c4   : > { %6869 = vmatmul.mubr.f32.gmra.mrb[52].mxu0 %v10401_v54 }
 0x1c5   : > { %7189 = vmatmul.mubr.f32.gmra.mrb[52].mxu1 %v10490_v15  ;;  %6871 = vmatprep.mubr.f32.mxu0 %v10402_v7  ;;  %v10499_v15 = vld [vmem:[#allocation27_spill] sm:$0xff] }
 0x1c6   : > { %7191 = vmatprep.mubr.f32.mxu1 %v10491_v49  ;;  %v9681_v49 = vld [vmem:[%s8733_s30 + $0x1a0] sm:$0xff] }
 0x1c8   : > { %6872 = vmatmul.mubr.f32.gmra.mrb[54].mxu0 %v9044_v55 }
 0x1c9   : > { %7192 = vmatmul.mubr.f32.gmra.mrb[54].mxu1 %v10492_v30  ;;  %6874 = vmatprep.mubr.f32.mxu0 %v9048_v17  ;;  %v9676_v30 = vld [vmem:[%s8733_s30 + $0x198] sm:$0xff] }
 0x1ca   : > { %7194 = vmatprep.mubr.f32.mxu1 %v10493_v21  ;;  %v534_v21 = vrot.slane %v9676_v30, 2 }
 0x1cc   : > { %6875 = vmatmul.mubr.f32.gmra.mrb[56].mxu0 %v10410_v25 }
 0x1cd   : > { %7195 = vmatmul.mubr.f32.gmra.mrb[56].mxu1 %v10494_v32  ;;  %6877 = vmatprep.mubr.f32.mxu0 %v10424_v36  ;;  %v10498_v32 = vld [vmem:[#allocation26_spill] sm:$0xff] }
 0x1ce   : > { %7197 = vmatprep.mubr.f32.mxu1 %v10495_v5  ;;  %v9686_v5 = vld [vmem:[%s8733_s30 + $0x1a8] sm:$0x3] }
 0x1d0   : > { %6878 = vmatmul.mubr.f32.gmra.mrb[58].mxu0 %v10426_v46 }
 0x1d1   : > { %7198 = vmatmul.mubr.f32.gmra.mrb[58].mxu1 %v10496_v9  ;;  %6880 = vmatprep.mubr.f32.mxu0 %v10428_v0  ;;  %v535_v9 = vrot.slane %v9681_v49, 2 }
 0x1d2   : > { %7200 = vmatprep.mubr.f32.mxu1 %v10497_v26  ;;  %v537_v26 = vrot.slane %v9686_v5, 2 }
 0x1d3   : > { %v9692_v57 = vsel %vm448_vm1, %v534_v21, %v535_v9  ;;  %v7850_v21 = vpack.c.bf16 %v4793_v31, %v4792_v51  ;;  %v3668_v31 = vld [vmem:[#allocation2 + $0x5b8] sm:$0xff]  ;;  %v10506_v51 = vld [vmem:[#allocation37_spill] sm:$0xff] }
 0x1d4   : > { %6881 = vmatmul.mubr.f32.gmra.mrb[60].mxu0 %v10418_v48  ;;  %10500 = vst [vmem:[#allocation49_spill] sm:$0xff] %v9692_v57  ;;  %v9696_v8 = vsel %vm448_vm1, %v535_v9, %v537_v26  ;;  %v3665_v57 = vld [vmem:[#allocation2 + $0x5a0] sm:$0xff]  ;;  %v4795_v9 = vld [vmem:[#allocation2 + $0x7a8] sm:$0xff]  ;;  %v10504_v26 = vld [vmem:[#allocation31_spill] sm:$0xff] }
 0x1d5   : > { %7201 = vmatmul.mubr.f32.gmra.mrb[60].mxu1 %v10498_v32  ;;  %6883 = vmatprep.mubr.f32.mxu0 %v9377_v39  ;;  %10501 = vst [vmem:[#allocation50_spill] sm:$0xff] %v9696_v8  ;;  %v10502_v32 = vld [vmem:[#allocation28_spill] sm:$0xff] }
 0x1d6   : > { %7203 = vmatprep.mubr.f32.mxu1 %v10499_v15  ;;  %v7722_v15 = vpack.c.bf16 %v3664_v44, %v3663_v53  ;;  %v10505_v8 = vld [vmem:[#allocation32_spill] sm:$0xff]  ;;  %v7854_v44 = vpack.c.bf16 %v4795_v9, %v4794_v23  ;;  %v4797_v53 = vld [vmem:[#allocation2 + $0x7b8] sm:$0xff]  ;;  %v3670_v23 = vld [vmem:[#allocation2 + $0x5c8] sm:$0xff] }
 0x1d7   : > { %v4798_v9 = vld [vmem:[#allocation2 + $0x7c0] sm:$0xff] }
 0x1d8   : > { %6884 = vmatmul.mubr.f32.gmra.mrb[62].mxu0 %v9384_v28 }
 0x1d9   : > { %7204 = vmatmul.mubr.f32.gmra.mrb[62].mxu1 %v10502_v32  ;;  %6918 = vmatprep.mubr.f32.mxu0 %v9466_v62  ;;  %v7726_v62 = vpack.c.bf16 %v3666_v59, %v3665_v57  ;;  %v10508_v57 = vld [vmem:[#allocation42_spill] sm:$0xff] }
 0x1da   : > { %7238 = vmatprep.mubr.f32.mxu1 %v8800_v29  ;;  %v3675_v32 = vld [vmem:[#allocation2 + $0x5f0] sm:$0xff] }
 0x1dc   : > { %6919 = vmatmul.mubr.f32.vlgmr.msra.gmra.mrb[32].mxu0 %v10503_v33  ;;  %v3667_v33 = vld [vmem:[#allocation2 + $0x5b0] sm:$0xff] }
 0x1dd   : > { %7239 = vmatmul.mubr.f32.vlgmr.msra.gmra.mrb[32].mxu1 %v8818_v42  ;;  %7721 = vmatpush3.bf16.msra.mxu0 %v7718_v20  ;;  %v4796_v20 = vld [vmem:[#allocation2 + $0x7b0] sm:$0xff] }
 0x1de   : > { %7849 = vmatpush3.bf16.msra.mxu1 %v7846_v27  ;;  %6921 = vmatprep.mubr.f32.mxu0 %v10504_v26  ;;  %v7730_v27 = vpack.c.bf16 %v3668_v31, %v3667_v33  ;;  %v10507_v26 = vld [vmem:[#allocation39_spill] sm:$0xff]  ;;  %v7858_v59 = vpack.c.bf16 %v4797_v53, %v4796_v20  ;;  %v3671_v31 = vld [vmem:[#allocation2 + $0x5d0] sm:$0xff]  ;;  %v10510_v53 = vld [vmem:[#allocation9_spill] sm:$0xff] }
 0x1df   : > { %7241 = vmatprep.mubr.f32.mxu1 %v8822_v45  ;;  %7723 = vmatprep.subr.bf16.mxu0 %v7722_v15  ;;  %v3672_v20 = vld [vmem:[#allocation2 + $0x5d8] sm:$0xff] }
 0x1e0   : > { %6922 = vmatmul.mubr.f32.gmra.mrb[34].mxu0 %v10505_v8  ;;  %7851 = vmatprep.subr.bf16.mxu1 %v7850_v21  ;;  %v3669_v8 = vld [vmem:[#allocation2 + $0x5c0] sm:$0xff] }
 0x1e1   : > { %7242 = vmatmul.mubr.f32.gmra.mrb[34].mxu1 %v8840_v58  ;;  %6924 = vmatprep.mubr.f32.mxu0 %v10506_v51  ;;  %v4799_v51 = vld [vmem:[#allocation2 + $0x7c8] sm:$0xff] }
 0x1e2   : > { %7244 = vmatprep.mubr.f32.mxu1 %v8844_v60  ;;  %7725 = vmatpush3.bf16.msra.mxu0 %v7722_v15  ;;  %v7734_v15 = vpack.c.bf16 %v3670_v23, %v3669_v8  ;;  %v7862_v33 = vpack.c.bf16 %v4799_v51, %v4798_v9  ;;  %v3673_v23 = vld [vmem:[#allocation2 + $0x5e0] sm:$0xff]  ;;  %v3674_v9 = vld [vmem:[#allocation2 + $0x5e8] sm:$0xff] }
 0x1e3   : > { %7853 = vmatpush3.bf16.msra.mxu1 %v7850_v21  ;;  %7727 = vmatprep.subr.bf16.mxu0 %v7726_v62  ;;  %v10509_v21 = vld [vmem:[#allocation8_spill] sm:$0xff] }
 0x1e4   : > { %6925 = vmatmul.mubr.f32.gmra.mrb[36].mxu0 %v10507_v26  ;;  %7855 = vmatprep.subr.bf16.mxu1 %v7854_v44  ;;  %v4800_v26 = vld [vmem:[#allocation2 + $0x7d0] sm:$0xff]  ;;  %v9727_v51 = vld [vmem:[%s10163_s2] ss:$0 sm:$0xff] }
 0x1e5   : > { %7245 = vmatmul.mubr.f32.gmra.mrb[36].mxu1 %v8862_v14  ;;  %6927 = vmatprep.mubr.f32.mxu0 %v10508_v57  ;;  %v4801_v57 = vld [vmem:[#allocation2 + $0x7d8] sm:$0xff] }
 0x1e6   : > { %7247 = vmatprep.mubr.f32.mxu1 %v8866_v16  ;;  %7729 = vmatpush3.bf16.msra.mxu0 %v7726_v62  ;;  %v7738_v62 = vpack.c.bf16 %v3672_v20, %v3671_v31  ;;  %v7866_v8 = vpack.c.bf16 %v4801_v57, %v4800_v26  ;;  %v7742_v20 = vpack.c.bf16 %v3674_v9, %v3673_v23  ;;  %v4805_v23 = vld [vmem:[#allocation2 + $0x7f8] sm:$0xff] }
 0x1e7   : > { %7857 = vmatpush3.bf16.msra.mxu1 %v7854_v44  ;;  %7731 = vmatprep.subr.bf16.mxu0 %v7730_v27  ;;  %v10511_v44 = vld [vmem:[#allocation25_spill] sm:$0xff] }
 0x1e8   : > { %6928 = vmatmul.mubr.f32.gmra.mrb[38].mxu0 %v10509_v21  ;;  %7859 = vmatprep.subr.bf16.mxu1 %v7858_v59  ;;  %v4803_v21 = vld [vmem:[#allocation2 + $0x7e8] sm:$0xff] }
 0x1e9   : > { %7248 = vmatmul.mubr.f32.gmra.mrb[38].mxu1 %v8884_v37  ;;  %6930 = vmatprep.mubr.f32.mxu0 %v10510_v53 }
 0x1ea   : > { %7250 = vmatprep.mubr.f32.mxu1 %v8888_v40  ;;  %7733 = vmatpush3.bf16.msra.mxu0 %v7730_v27  ;;  %v10512_v27 = vld [vmem:[#allocation29_spill] sm:$0xff] }
 0x1eb   : > { %7861 = vmatpush3.bf16.msra.mxu1 %v7858_v59  ;;  %7735 = vmatprep.subr.bf16.mxu0 %v7734_v15  ;;  %v4802_v59 = vld [vmem:[#allocation2 + $0x7e0] sm:$0xff] }
 0x1ec   : > { %6931 = vmatmul.mubr.f32.gmra.mrb[40].mxu0 %v10511_v44  ;;  %7863 = vmatprep.subr.bf16.mxu1 %v7862_v33  ;;  %v7870_v44 = vpack.c.bf16 %v4803_v21, %v4802_v59 }
 0x1ed   : > { %7251 = vmatmul.mubr.f32.gmra.mrb[40].mxu1 %v8906_v61  ;;  %6933 = vmatprep.mubr.f32.mxu0 %v10512_v27  ;;  %v3676_v27 = vld [vmem:[#allocation2 + $0x5f8] sm:$0xff] }
 0x1ee   : > { %7253 = vmatprep.mubr.f32.mxu1 %v8910_v3  ;;  %7737 = vmatpush3.bf16.msra.mxu0 %v7734_v15 }
 0x1ef   : > { %v6360_v31 = vpop.f32.mrb[0].mxu0  ;;  %7865 = vmatpush3.bf16.msra.mxu1 %v7862_v33  ;;  %7739 = vmatprep.subr.bf16.mxu0 %v7738_v62  ;;  %v4804_v33 = vld [vmem:[#allocation2 + $0x7f0] sm:$0xff] }
 0x1f0   : > { %v7878_v53 = vadd.f32 %v6360_v31, %v9727_v51  ;;  %v6680_v26 = vpop.f32.mrb[0].mxu1  ;;  %v1486_v57 = vpop.f32.mrb[1].mxu0  ;;  %6934 = vmatmul.mubr.f32.gmra.mrb[42].mxu0 %v9521_v19  ;;  %7867 = vmatprep.subr.bf16.mxu1 %v7866_v8 }
 0x1f1   : > { %v7910_v11 = vadd.f32 %v6680_v26, %v9727_v51  ;;  %v7879_v3 = vadd.f32 %v9727_v51, %v1486_v57  ;;  %v2614_v15 = vpop.f32.mrb[1].mxu1  ;;  %7254 = vmatmul.mubr.f32.gmra.mrb[42].mxu1 %v10375_v18  ;;  %6936 = vmatprep.mubr.f32.mxu0 %v9526_v50  ;;  %v7746_v50 = vpack.c.bf16 %v3676_v27, %v3675_v32 }
 0x1f2   : > { %1678 = vst [vmem:[%s9738_s8 + $0x8] sm:$0xff] %v7878_v53  ;;  %v7911_v19 = vadd.f32 %v9727_v51, %v2614_v15  ;;  %7256 = vmatprep.mubr.f32.mxu1 %v10376_v10  ;;  %7741 = vmatpush3.bf16.msra.mxu0 %v7738_v62  ;;  %v7874_v53 = vpack.c.bf16 %v4805_v23, %v4804_v33 }
 0x1f3   : > { %5217 = vst [vmem:[%s9738_s8 + $0x108] sm:$0xff] %v7910_v11  ;;  %1677 = vst [vmem:[%s9738_s8] sm:$0xff] %v7879_v3  ;;  %v6363_v9 = vpop.f32.mrb[2].mxu0  ;;  %7869 = vmatpush3.bf16.msra.mxu1 %v7866_v8  ;;  %7743 = vmatprep.subr.bf16.mxu0 %v7742_v20 }
 0x1f4   : > { %5216 = vst [vmem:[%s9738_s8 + $0x100] sm:$0xff] %v7911_v19  ;;  %v7880_v59 = vadd.f32 %v6363_v9, %v9727_v51  ;;  %v6683_v21 = vpop.f32.mrb[2].mxu1  ;;  %v1496_v31 = vpop.f32.mrb[3].mxu0  ;;  %6937 = vmatmul.mubr.f32.gmra.mrb[44].mxu0 %v9533_v34  ;;  %7871 = vmatprep.subr.bf16.mxu1 %v7870_v44 }
 0x1f5   : > { %v7912_v11 = vadd.f32 %v6683_v21, %v9727_v51  ;;  %v7881_v3 = vadd.f32 %v9727_v51, %v1496_v31  ;;  %v2624_v62 = vpop.f32.mrb[3].mxu1  ;;  %7257 = vmatmul.mubr.f32.gmra.mrb[44].mxu1 %v10382_v63  ;;  %6939 = vmatprep.mubr.f32.mxu0 %v9540_v38  ;;  %v10513_v38 = vld [vmem:[#allocation33_spill] sm:$0xff]  ;;  %v10515_v21 = vld [vmem:[#allocation34_spill] sm:$0xff] }
 0x1f6   : > { %1680 = vst [vmem:[%s9738_s8 + $0x18] sm:$0xff] %v7880_v59  ;;  %v7913_v32 = vadd.f32 %v9727_v51, %v2624_v62  ;;  %7259 = vmatprep.mubr.f32.mxu1 %v10383_v41  ;;  %7745 = vmatpush3.bf16.msra.mxu0 %v7742_v20 }
 0x1f7   : > { %5219 = vst [vmem:[%s9738_s8 + $0x118] sm:$0xff] %v7912_v11  ;;  %1679 = vst [vmem:[%s9738_s8 + $0x10] sm:$0xff] %v7881_v3  ;;  %v6366_v34 = vpop.f32.mrb[4].mxu0  ;;  %7873 = vmatpush3.bf16.msra.mxu1 %v7870_v44  ;;  %7747 = vmatprep.subr.bf16.mxu0 %v7746_v50  ;;  %v10514_v44 = vld [vmem:[#allocation38_spill] sm:$0xff] }
 0x1f8   : > { %5218 = vst [vmem:[%s9738_s8 + $0x110] sm:$0xff] %v7913_v32  ;;  %v7882_v8 = vadd.f32 %v6366_v34, %v9727_v51  ;;  %v6686_v26 = vpop.f32.mrb[4].mxu1  ;;  %v1506_v57 = vpop.f32.mrb[5].mxu0  ;;  %6940 = vmatmul.mubr.f32.gmra.mrb[46].mxu0 %v10513_v38  ;;  %7875 = vmatprep.subr.bf16.mxu1 %v7874_v53 }
 0x1f9   : > { %v7914_v27 = vadd.f32 %v6686_v26, %v9727_v51  ;;  %v7883_v20 = vadd.f32 %v9727_v51, %v1506_v57  ;;  %v2634_v15 = vpop.f32.mrb[5].mxu1  ;;  %7260 = vmatmul.mubr.f32.gmra.mrb[46].mxu1 %v10389_v13  ;;  %6942 = vmatprep.mubr.f32.mxu0 %v10514_v44  ;;  %v10517_v26 = vld [vmem:[#allocation35_spill] sm:$0xff] }
 0x1fa   : > { %1682 = vst [vmem:[%s9738_s8 + $0x28] sm:$0xff] %v7882_v8  ;;  %v7915_v33 = vadd.f32 %v9727_v51, %v2634_v15  ;;  %7262 = vmatprep.mubr.f32.mxu1 %v10390_v56  ;;  %7749 = vmatpush3.bf16.msra.mxu0 %v7746_v50  ;;  %v10516_v50 = vld [vmem:[#allocation40_spill] sm:$0xff] }
 0x1fb   : > { %5221 = vst [vmem:[%s9738_s8 + $0x128] sm:$0xff] %v7914_v27  ;;  %1681 = vst [vmem:[%s9738_s8 + $0x20] sm:$0xff] %v7883_v20  ;;  %v6369_v23 = vpop.f32.mrb[6].mxu0  ;;  %7877 = vmatpush3.bf16.msra.mxu1 %v7874_v53  ;;  %v10518_v20 = vld [vmem:[#allocation41_spill] sm:$0xff] }
 0x1fc   : > { %5220 = vst [vmem:[%s9738_s8 + $0x120] sm:$0xff] %v7915_v33  ;;  %v7884_v19 = vadd.f32 %v6369_v23, %v9727_v51  ;;  %v6689_v9 = vpop.f32.mrb[6].mxu1  ;;  %v1516_v59 = vpop.f32.mrb[7].mxu0  ;;  %6943 = vmatmul.mubr.f32.gmra.mrb[48].mxu0 %v10515_v21 }
 0x1fd   : > { %v7916_v31 = vadd.f32 %v6689_v9, %v9727_v51  ;;  %v7885_v11 = vadd.f32 %v9727_v51, %v1516_v59  ;;  %v2644_v3 = vpop.f32.mrb[7].mxu1  ;;  %7263 = vmatmul.mubr.f32.gmra.mrb[48].mxu1 %v10396_v4  ;;  %6945 = vmatprep.mubr.f32.mxu0 %v10516_v50  ;;  %v10519_v9 = vld [vmem:[#allocation36_spill] sm:$0xff] }
 0x1fe   : > { %1684 = vst [vmem:[%s9738_s8 + $0x38] sm:$0xff] %v7884_v19  ;;  %v7917_v53 = vadd.f32 %v9727_v51, %v2644_v3  ;;  %7265 = vmatprep.mubr.f32.mxu1 %v10397_v1 }
 0x1ff   : > { %5223 = vst [vmem:[%s9738_s8 + $0x138] sm:$0xff] %v7916_v31  ;;  %1683 = vst [vmem:[%s9738_s8 + $0x30] sm:$0xff] %v7885_v11  ;;  %v6372_v62 = vpop.f32.mrb[8].mxu0  ;;  %v10520_v11 = vld [vmem:[#allocation43_spill] sm:$0xff] }
 0x200   : > { %5222 = vst [vmem:[%s9738_s8 + $0x130] sm:$0xff] %v7917_v53  ;;  %v7886_v32 = vadd.f32 %v6372_v62, %v9727_v51  ;;  %v6692_v34 = vpop.f32.mrb[8].mxu1  ;;  %v1526_v8 = vpop.f32.mrb[9].mxu0  ;;  %6946 = vmatmul.mubr.f32.gmra.mrb[50].mxu0 %v10517_v26 }
 0x201   : > { %v7918_v57 = vadd.f32 %v6692_v34, %v9727_v51  ;;  %v7887_v38 = vadd.f32 %v9727_v51, %v1526_v8  ;;  %v2654_v27 = vpop.f32.mrb[9].mxu1  ;;  %7266 = vmatmul.mubr.f32.gmra.mrb[50].mxu1 %v10401_v54  ;;  %6948 = vmatprep.mubr.f32.mxu0 %v10518_v20  ;;  %v10521_v34 = vld [vmem:[#allocation44_spill] sm:$0xff] }
 0x202   : > { %1686 = vst [vmem:[%s9738_s8 + $0x48] sm:$0xff] %v7886_v32  ;;  %v7919_v15 = vadd.f32 %v9727_v51, %v2654_v27  ;;  %7268 = vmatprep.mubr.f32.mxu1 %v10402_v7 }
 0x203   : > { %5225 = vst [vmem:[%s9738_s8 + $0x148] sm:$0xff] %v7918_v57  ;;  %1685 = vst [vmem:[%s9738_s8 + $0x40] sm:$0xff] %v7887_v38  ;;  %v6375_v44 = vpop.f32.mrb[10].mxu0  ;;  %v10522_v38 = vld [vmem:[#allocation45_spill] sm:$0xff] }
 0x204   : > { %5224 = vst [vmem:[%s9738_s8 + $0x140] sm:$0xff] %v7919_v15  ;;  %v7888_v33 = vadd.f32 %v6375_v44, %v9727_v51  ;;  %v6695_v23 = vpop.f32.mrb[10].mxu1  ;;  %v1536_v19 = vpop.f32.mrb[11].mxu0  ;;  %6949 = vmatmul.mubr.f32.gmra.mrb[52].mxu0 %v10519_v9 }
 0x205   : > { %v7920_v59 = vadd.f32 %v6695_v23, %v9727_v51  ;;  %v7889_v21 = vadd.f32 %v9727_v51, %v1536_v19  ;;  %v2664_v31 = vpop.f32.mrb[11].mxu1  ;;  %7269 = vmatmul.mubr.f32.gmra.mrb[52].mxu1 %v9044_v55  ;;  %6951 = vmatprep.mubr.f32.mxu0 %v10520_v11  ;;  %v10523_v23 = vld [vmem:[#allocation46_spill] sm:$0xff] }
 0x206   : > { %1688 = vst [vmem:[%s9738_s8 + $0x58] sm:$0xff] %v7888_v33  ;;  %v7921_v3 = vadd.f32 %v9727_v51, %v2664_v31  ;;  %7271 = vmatprep.mubr.f32.mxu1 %v9048_v17 }
 0x207   : > { %5227 = vst [vmem:[%s9738_s8 + $0x158] sm:$0xff] %v7920_v59  ;;  %1687 = vst [vmem:[%s9738_s8 + $0x50] sm:$0xff] %v7889_v21  ;;  %v6378_v50 = vpop.f32.mrb[12].mxu0  ;;  %v10524_v21 = vld [vmem:[#allocation47_spill] sm:$0xff] }
 0x208   : > { %5226 = vst [vmem:[%s9738_s8 + $0x150] sm:$0xff] %v7921_v3  ;;  %v7890_v53 = vadd.f32 %v6378_v50, %v9727_v51  ;;  %v6698_v62 = vpop.f32.mrb[12].mxu1  ;;  %v1546_v32 = vpop.f32.mrb[13].mxu0  ;;  %6952 = vmatmul.mubr.f32.gmra.mrb[54].mxu0 %v10521_v34  ;;  %v407_v3 = vrot.slane %v9676_v30, 1  ;;  %v408_v50 = vrot.slane %v9681_v49, 1  ;;  %v10525_v34 = vld [vmem:[#allocation48_spill] sm:$0xff] }
 0x209   : > { %v7922_v8 = vadd.f32 %v6698_v62, %v9727_v51  ;;  %v7891_v26 = vadd.f32 %v9727_v51, %v1546_v32  ;;  %v2674_v57 = vpop.f32.mrb[13].mxu1  ;;  %7272 = vmatmul.mubr.f32.gmra.mrb[54].mxu1 %v10410_v25  ;;  %6954 = vmatprep.mubr.f32.mxu0 %v10522_v38  ;;  %v8491_v38 = vld [vmem:[%s8733_s30 + $0x180] sm:$0xff] }
 0x20a   : > { %1690 = vst [vmem:[%s9738_s8 + $0x68] sm:$0xff] %v7890_v53  ;;  %v7923_v27 = vadd.f32 %v9727_v51, %v2674_v57  ;;  %7274 = vmatprep.mubr.f32.mxu1 %v10424_v36 }
 0x20b   : > { %5229 = vst [vmem:[%s9738_s8 + $0x168] sm:$0xff] %v7922_v8  ;;  %1689 = vst [vmem:[%s9738_s8 + $0x60] sm:$0xff] %v7891_v26  ;;  %v6381_v20 = vpop.f32.mrb[14].mxu0 }
 0x20c   : > { %5228 = vst [vmem:[%s9738_s8 + $0x160] sm:$0xff] %v7923_v27  ;;  %v7892_v15 = vadd.f32 %v6381_v20, %v9727_v51  ;;  %v6701_v44 = vpop.f32.mrb[14].mxu1  ;;  %v1556_v33 = vpop.f32.mrb[15].mxu0  ;;  %6955 = vmatmul.mubr.f32.gmra.mrb[56].mxu0 %v10523_v23  ;;  %v410_v20 = vrot.slane %v9686_v5, 1 }
 0x20d   : > { %v7924_v19 = vadd.f32 %v6701_v44, %v9727_v51  ;;  %v7893_v9 = vadd.f32 %v9727_v51, %v1556_v33  ;;  %v2684_v59 = vpop.f32.mrb[15].mxu1  ;;  %7275 = vmatmul.mubr.f32.gmra.mrb[56].mxu1 %v10426_v46  ;;  %6957 = vmatprep.mubr.f32.mxu0 %v10524_v21  ;;  %v9845_v44 = vsel %vm321_vm0, %v407_v3, %v408_v50 }
 0x20e   : > { %1692 = vst [vmem:[%s9738_s8 + $0x78] sm:$0xff] %v7892_v15  ;;  %v7925_v31 = vadd.f32 %v9727_v51, %v2684_v59  ;;  %7277 = vmatprep.mubr.f32.mxu1 %v10428_v0 }
 0x20f   : > { %5231 = vst [vmem:[%s9738_s8 + $0x178] sm:$0xff] %v7924_v19  ;;  %1691 = vst [vmem:[%s9738_s8 + $0x70] sm:$0xff] %v7893_v9  ;;  %v6384_v11 = vpop.f32.mrb[16].mxu0  ;;  %v8492_v9 = vld [vmem:[%s8733_s30 + $0x188] sm:$0xff] }
 0x210   : > { %5230 = vst [vmem:[%s9738_s8 + $0x170] sm:$0xff] %v7925_v31  ;;  %v7894_v53 = vadd.f32 %v6384_v11, %v9727_v51  ;;  %v6704_v62 = vpop.f32.mrb[16].mxu1  ;;  %v1566_v32 = vpop.f32.mrb[17].mxu0  ;;  %6958 = vmatmul.mubr.f32.gmra.mrb[58].mxu0 %v10525_v34  ;;  %v9858_v11 = vsel %vm321_vm0, %v408_v50, %v410_v20 }
 0x211   : > { %v7926_v8 = vadd.f32 %v6704_v62, %v9727_v51  ;;  %v7895_v26 = vadd.f32 %v9727_v51, %v1566_v32  ;;  %v2694_v57 = vpop.f32.mrb[17].mxu1  ;;  %7278 = vmatmul.mubr.f32.gmra.mrb[58].mxu1 %v10418_v48  ;;  %6960 = vmatprep.mubr.f32.mxu0 %v8491_v38 }
 0x212   : > { %1694 = vst [vmem:[%s9738_s8 + $0x88] sm:$0xff] %v7894_v53  ;;  %v7927_v27 = vadd.f32 %v9727_v51, %v2694_v57  ;;  %7280 = vmatprep.mubr.f32.mxu1 %v9377_v39 }
 0x213   : > { %5233 = vst [vmem:[%s9738_s8 + $0x188] sm:$0xff] %v7926_v8  ;;  %1693 = vst [vmem:[%s9738_s8 + $0x80] sm:$0xff] %v7895_v26  ;;  %v6387_v15 = vpop.f32.mrb[18].mxu0 }
 0x214   : > { %5232 = vst [vmem:[%s9738_s8 + $0x180] sm:$0xff] %v7927_v27  ;;  %v7896_v33 = vadd.f32 %v6387_v15, %v9727_v51  ;;  %v6707_v23 = vpop.f32.mrb[18].mxu1  ;;  %v1576_v19 = vpop.f32.mrb[19].mxu0  ;;  %6961 = vmatmul.mubr.f32.gmra.mrb[60].mxu0 %v8492_v9 }
 0x215   : > { %v7928_v59 = vadd.f32 %v6707_v23, %v9727_v51  ;;  %v7897_v5 = vadd.f32 %v9727_v51, %v1576_v19  ;;  %v2704_v21 = vpop.f32.mrb[19].mxu1  ;;  %7281 = vmatmul.mubr.f32.gmra.mrb[60].mxu1 %v9384_v28  ;;  %6963 = vmatprep.mubr.f32.mxu0 %v9676_v30 }
 0x216   : > { %1696 = vst [vmem:[%s9738_s8 + $0x98] sm:$0xff] %v7896_v33  ;;  %v7929_v31 = vadd.f32 %v9727_v51, %v2704_v21  ;;  %7283 = vmatprep.mubr.f32.mxu1 %v9845_v44 }
 0x217   : > { %5235 = vst [vmem:[%s9738_s8 + $0x198] sm:$0xff] %v7928_v59  ;;  %1695 = vst [vmem:[%s9738_s8 + $0x90] sm:$0xff] %v7897_v5  ;;  %v6390_v3 = vpop.f32.mrb[20].mxu0 }
 0x218   : > { %5234 = vst [vmem:[%s9738_s8 + $0x190] sm:$0xff] %v7929_v31  ;;  %v7898_v53 = vadd.f32 %v6390_v3, %v9727_v51  ;;  %v6710_v62 = vpop.f32.mrb[20].mxu1  ;;  %v1586_v30 = vpop.f32.mrb[21].mxu0  ;;  %6964 = vmatmul.mubr.f32.gmra.mrb[62].mxu0 %v9681_v49 }
 0x219   : > { %v7930_v32 = vadd.f32 %v6710_v62, %v9727_v51  ;;  %v7899_v34 = vadd.f32 %v9727_v51, %v1586_v30  ;;  %v2714_v8 = vpop.f32.mrb[21].mxu1  ;;  %7284 = vmatmul.mubr.f32.gmra.mrb[62].mxu1 %v9858_v11  ;;  %6998 = vmatprep.mubr.f32.mxu0 %v8800_v29 }
 0x21a   : > { %1698 = vst [vmem:[%s9738_s8 + $0xa8] sm:$0xff] %v7898_v53  ;;  %v7931_v50 = vadd.f32 %v9727_v51, %v2714_v8  ;;  %7318 = vmatprep.mubr.f32.mxu1 %v10432_v6 }
 0x21b   : > { %5237 = vst [vmem:[%s9738_s8 + $0x1a8] sm:$0xff] %v7930_v32  ;;  %1697 = vst [vmem:[%s9738_s8 + $0xa0] sm:$0xff] %v7899_v34  ;;  %v6393_v49 = vpop.f32.mrb[22].mxu0 }
 0x21c   : > { %5236 = vst [vmem:[%s9738_s8 + $0x1a0] sm:$0xff] %v7931_v50  ;;  %v7900_v26 = vadd.f32 %v6393_v49, %v9727_v51  ;;  %v6713_v57 = vpop.f32.mrb[22].mxu1  ;;  %v1596_v38 = vpop.f32.mrb[23].mxu0  ;;  %6999 = vmatmul.mubr.f32.vlgmr.msra.gmra.mrb[32].mxu0 %v8818_v42  ;;  %v10526_v50 = vld [vmem:[#allocation54_spill] sm:$0xff] }
 0x21d   : > { %v7932_v29 = vadd.f32 %v6713_v57, %v9727_v51  ;;  %v7901_v27 = vadd.f32 %v9727_v51, %v1596_v38  ;;  %v2724_v20 = vpop.f32.mrb[23].mxu1  ;;  %7319 = vmatmul.mubr.f32.vlgmr.msra.gmra.mrb[32].mxu1 %v10433_v47  ;;  %7001 = vmatprep.mubr.f32.mxu0 %v8822_v45  ;;  %v10530_v57 = vld [vmem:[#allocation57_spill] sm:$0xff]  ;;  %v10531_v38 = vld [vmem:[#allocation11_spill] sm:$0xff] }
 0x21e   : > { %1700 = vst [vmem:[%s9738_s8 + $0xb8] sm:$0xff] %v7900_v26  ;;  %v7933_v6 = vadd.f32 %v9727_v51, %v2724_v20  ;;  %7321 = vmatprep.mubr.f32.mxu1 %v10434_v43  ;;  %v10528_v26 = vld [vmem:[#allocation55_spill] sm:$0xff] }
 0x21f   : > { %5239 = vst [vmem:[%s9738_s8 + $0x1b8] sm:$0xff] %v7932_v29  ;;  %1699 = vst [vmem:[%s9738_s8 + $0xb0] sm:$0xff] %v7901_v27  ;;  %v6396_v42 = vpop.f32.mrb[24].mxu0  ;;  %v10532_v29 = vld [vmem:[#allocation12_spill] sm:$0xff]  ;;  %v10533_v27 = vld [vmem:[#allocation13_spill] sm:$0xff] }
 0x220   : > { %5238 = vst [vmem:[%s9738_s8 + $0x1b0] sm:$0xff] %v7933_v6  ;;  %v7902_v15 = vadd.f32 %v6396_v42, %v9727_v51  ;;  %v6716_v33 = vpop.f32.mrb[24].mxu1  ;;  %v1606_v23 = vpop.f32.mrb[25].mxu0  ;;  %7002 = vmatmul.mubr.f32.gmra.mrb[34].mxu0 %v8840_v58 }
 0x221   : > { %v7934_v45 = vadd.f32 %v6716_v33, %v9727_v51  ;;  %v7903_v47 = vadd.f32 %v9727_v51, %v1606_v23  ;;  %v2734_v19 = vpop.f32.mrb[25].mxu1  ;;  %7322 = vmatmul.mubr.f32.gmra.mrb[34].mxu1 %v10435_v22  ;;  %7004 = vmatprep.mubr.f32.mxu0 %v8844_v60 }
 0x222   : > { %1702 = vst [vmem:[%s9738_s8 + $0xc8] sm:$0xff] %v7902_v15  ;;  %v7935_v43 = vadd.f32 %v9727_v51, %v2734_v19  ;;  %7324 = vmatprep.mubr.f32.mxu1 %v10436_v35 }
 0x223   : > { %5241 = vst [vmem:[%s9738_s8 + $0x1c8] sm:$0xff] %v7934_v45  ;;  %1701 = vst [vmem:[%s9738_s8 + $0xc0] sm:$0xff] %v7903_v47  ;;  %v6399_v58 = vpop.f32.mrb[26].mxu0 }
 0x224   : > { %5240 = vst [vmem:[%s9738_s8 + $0x1c0] sm:$0xff] %v7935_v43  ;;  %v7904_v9 = vadd.f32 %v6399_v58, %v9727_v51  ;;  %v6719_v59 = vpop.f32.mrb[26].mxu1  ;;  %v1616_v5 = vpop.f32.mrb[27].mxu0  ;;  %7005 = vmatmul.mubr.f32.gmra.mrb[36].mxu0 %v8862_v14 }
 0x225   : > { %v7936_v60 = vadd.f32 %v6719_v59, %v9727_v51  ;;  %v7905_v22 = vadd.f32 %v9727_v51, %v1616_v5  ;;  %v2744_v21 = vpop.f32.mrb[27].mxu1  ;;  %7325 = vmatmul.mubr.f32.gmra.mrb[36].mxu1 %v10437_v52  ;;  %7007 = vmatprep.mubr.f32.mxu0 %v8866_v16 }
 0x226   : > { %1704 = vst [vmem:[%s9738_s8 + $0xd8] sm:$0xff] %v7904_v9  ;;  %v7937_v35 = vadd.f32 %v9727_v51, %v2744_v21  ;;  %7327 = vmatprep.mubr.f32.mxu1 %v10438_v2 }
 0x227   : > { %5243 = vst [vmem:[%s9738_s8 + $0x1d8] sm:$0xff] %v7936_v60  ;;  %1703 = vst [vmem:[%s9738_s8 + $0xd0] sm:$0xff] %v7905_v22  ;;  %v6402_v14 = vpop.f32.mrb[28].mxu0 }
 0x228   : > { %5242 = vst [vmem:[%s9738_s8 + $0x1d0] sm:$0xff] %v7937_v35  ;;  %v7906_v31 = vadd.f32 %v6402_v14, %v9727_v51  ;;  %v6722_v3 = vpop.f32.mrb[28].mxu1  ;;  %v1626_v53 = vpop.f32.mrb[29].mxu0  ;;  %7008 = vmatmul.mubr.f32.gmra.mrb[38].mxu0 %v8884_v37 }
 0x229   : > { %v7938_v16 = vadd.f32 %v6722_v3, %v9727_v51  ;;  %v7907_v52 = vadd.f32 %v9727_v51, %v1626_v53  ;;  %v2754_v62 = vpop.f32.mrb[29].mxu1  ;;  %7328 = vmatmul.mubr.f32.gmra.mrb[38].mxu1 %v10439_v24  ;;  %7010 = vmatprep.mubr.f32.mxu0 %v8888_v40 }
 0x22a   : > { %1706 = vst [vmem:[%s9738_s8 + $0xe8] sm:$0xff] %v7906_v31  ;;  %v7939_v2 = vadd.f32 %v9727_v51, %v2754_v62  ;;  %7330 = vmatprep.mubr.f32.mxu1 %v10440_v12  ;;  %v10527_v12 = vld [vmem:[#allocation10_spill] sm:$0xff] }
 0x22b   : > { %5245 = vst [vmem:[%s9738_s8 + $0x1e8] sm:$0xff] %v7938_v16  ;;  %1705 = vst [vmem:[%s9738_s8 + $0xe0] sm:$0xff] %v7907_v52  ;;  %v6405_v37 = vpop.f32.mrb[30].mxu0 }
 0x22c   : > { %5244 = vst [vmem:[%s9738_s8 + $0x1e0] sm:$0xff] %v7939_v2  ;;  %v7908_v30 = vadd.f32 %v6405_v37, %v9727_v51  ;;  %v6725_v32 = vpop.f32.mrb[30].mxu1  ;;  %v1636_v34 = vpop.f32.mrb[31].mxu0  ;;  %7011 = vmatmul.mubr.f32.gmra.mrb[40].mxu0 %v8906_v61  ;;  %v10529_v61 = vld [vmem:[#allocation56_spill] sm:$0xff] }
 0x22d   : > { %v7940_v40 = vadd.f32 %v6725_v32, %v9727_v51  ;;  %v7909_v24 = vadd.f32 %v9727_v51, %v1636_v34  ;;  %v2764_v8 = vpop.f32.mrb[31].mxu1  ;;  %7331 = vmatmul.mubr.f32.gmra.mrb[40].mxu1 %v10526_v50  ;;  %7013 = vmatprep.mubr.f32.mxu0 %v10527_v12 }
 0x22e   : > { %1708 = vst [vmem:[%s9738_s8 + $0xf8] sm:$0xff] %v7908_v30  ;;  %v7941_v49 = vadd.f32 %v9727_v51, %v2764_v8  ;;  %7333 = vmatprep.mubr.f32.mxu1 %v10528_v26 }
 0x22f   : > { %5247 = vst [vmem:[%s9738_s8 + $0x1f8] sm:$0xff] %v7940_v40  ;;  %1707 = vst [vmem:[%s9738_s8 + $0xf0] sm:$0xff] %v7909_v24 }
 0x230   : > { %5246 = vst [vmem:[%s9738_s8 + $0x1f0] sm:$0xff] %v7941_v49  ;;  %7014 = vmatmul.mubr.f32.gmra.mrb[42].mxu0 %v10375_v18  ;;  %v10534_v18 = vld [vmem:[#allocation14_spill] sm:$0xff] }
 0x231   : > { %7334 = vmatmul.mubr.f32.gmra.mrb[42].mxu1 %v10529_v61  ;;  %7016 = vmatprep.mubr.f32.mxu0 %v10376_v10  ;;  %v10535_v10 = vld [vmem:[#allocation15_spill] sm:$0xff] }
 0x232   : > { %7336 = vmatprep.mubr.f32.mxu1 %v10530_v57 }
 0x234   : > { %7017 = vmatmul.mubr.f32.gmra.mrb[44].mxu0 %v10382_v63  ;;  %v10536_v63 = vld [vmem:[#allocation16_spill] sm:$0xff] }
 0x235   : > { %7337 = vmatmul.mubr.f32.gmra.mrb[44].mxu1 %v10531_v38  ;;  %7019 = vmatprep.mubr.f32.mxu0 %v10383_v41  ;;  %v10537_v41 = vld [vmem:[#allocation17_spill] sm:$0xff] }
 0x236   : > { %7339 = vmatprep.mubr.f32.mxu1 %v10532_v29 }
 0x238   : > { %7020 = vmatmul.mubr.f32.gmra.mrb[46].mxu0 %v10389_v13  ;;  %v10538_v13 = vld [vmem:[#allocation18_spill] sm:$0xff] }
 0x239   : > { %7340 = vmatmul.mubr.f32.gmra.mrb[46].mxu1 %v10533_v27  ;;  %7022 = vmatprep.mubr.f32.mxu0 %v10390_v56  ;;  %v10539_v56 = vld [vmem:[#allocation19_spill] sm:$0xff] }
 0x23a   : > { %7342 = vmatprep.mubr.f32.mxu1 %v10534_v18 }
 0x23c   : > { %7023 = vmatmul.mubr.f32.gmra.mrb[48].mxu0 %v10396_v4  ;;  %v10540_v4 = vld [vmem:[#allocation20_spill] sm:$0xff] }
 0x23d   : > { %7343 = vmatmul.mubr.f32.gmra.mrb[48].mxu1 %v10535_v10  ;;  %7025 = vmatprep.mubr.f32.mxu0 %v10397_v1  ;;  %v10541_v1 = vld [vmem:[#allocation21_spill] sm:$0xff] }
 0x23e   : > { %7345 = vmatprep.mubr.f32.mxu1 %v10536_v63 }
 0x240   : > { %7026 = vmatmul.mubr.f32.gmra.mrb[50].mxu0 %v10401_v54  ;;  %v10542_v54 = vld [vmem:[#allocation22_spill] sm:$0xff] }
 0x241   : > { %7346 = vmatmul.mubr.f32.gmra.mrb[50].mxu1 %v10537_v41  ;;  %7028 = vmatprep.mubr.f32.mxu0 %v10402_v7  ;;  %v10543_v7 = vld [vmem:[#allocation23_spill] sm:$0xff] }
 0x242   : > { %7348 = vmatprep.mubr.f32.mxu1 %v10538_v13 }
 0x244   : > { %7029 = vmatmul.mubr.f32.gmra.mrb[52].mxu0 %v9044_v55  ;;  %v10544_v55 = vld [vmem:[#allocation24_spill] sm:$0xff] }
 0x245   : > { %7349 = vmatmul.mubr.f32.gmra.mrb[52].mxu1 %v10539_v56  ;;  %7031 = vmatprep.mubr.f32.mxu0 %v9048_v17  ;;  %v10545_v17 = vld [vmem:[#allocation26_spill] sm:$0xff] }
 0x246   : > { %7351 = vmatprep.mubr.f32.mxu1 %v10540_v4 }
 0x248   : > { %7032 = vmatmul.mubr.f32.gmra.mrb[54].mxu0 %v10410_v25  ;;  %v10546_v25 = vld [vmem:[#allocation27_spill] sm:$0xff] }
 0x249   : > { %7352 = vmatmul.mubr.f32.gmra.mrb[54].mxu1 %v10541_v1  ;;  %7034 = vmatprep.mubr.f32.mxu0 %v10424_v36  ;;  %v10547_v36 = vld [vmem:[#allocation28_spill] sm:$0xff] }
 0x24a   : > { %7354 = vmatprep.mubr.f32.mxu1 %v10542_v54 }
 0x24c   : > { %7035 = vmatmul.mubr.f32.gmra.mrb[56].mxu0 %v10426_v46  ;;  %v10548_v46 = vld [vmem:[#allocation49_spill] sm:$0xff] }
 0x24d   : > { %7355 = vmatmul.mubr.f32.gmra.mrb[56].mxu1 %v10543_v7  ;;  %7037 = vmatprep.mubr.f32.mxu0 %v10428_v0 }
 0x24e   : > { %7357 = vmatprep.mubr.f32.mxu1 %v10544_v55 }
 0x250   : > { %7038 = vmatmul.mubr.f32.gmra.mrb[58].mxu0 %v10418_v48  ;;  %v10549_v48 = vld [vmem:[#allocation50_spill] sm:$0xff] }
 0x251   : > { %7358 = vmatmul.mubr.f32.gmra.mrb[58].mxu1 %v10545_v17  ;;  %7040 = vmatprep.mubr.f32.mxu0 %v9377_v39 }
 0x252   : > { %7360 = vmatprep.mubr.f32.mxu1 %v10546_v25 }
 0x254   : > { %7041 = vmatmul.mubr.f32.gmra.mrb[60].mxu0 %v9384_v28 }
 0x255   : > { %7361 = vmatmul.mubr.f32.gmra.mrb[60].mxu1 %v10547_v36  ;;  %7043 = vmatprep.mubr.f32.mxu0 %v9845_v44 }
 0x256   : > { %7363 = vmatprep.mubr.f32.mxu1 %v10548_v46 }
 0x258   : > { %7044 = vmatmul.mubr.f32.gmra.mrb[62].mxu0 %v9858_v11 }
 0x259   : > { %7364 = vmatmul.mubr.f32.gmra.mrb[62].mxu1 %v10549_v48 }
 0x2ef   : > { %v7000_v0 = vpop.f32.mrb[32].mxu0 }
 0x2f0   : > { %v7942_v39 = vadd.f32 %v7000_v0, %v9727_v51  ;;  %v7320_v20 = vpop.f32.mrb[32].mxu1  ;;  %v3743_v6 = vpop.f32.mrb[33].mxu0 }
 0x2f1   : > { %v7974_v28 = vadd.f32 %v7320_v20, %v9727_v51  ;;  %v7943_v42 = vadd.f32 %v9727_v51, %v3743_v6  ;;  %v4872_v15 = vpop.f32.mrb[33].mxu1 }
 0x2f2   : > { %5249 = vst [vmem:[%s9738_s8 + $0x208] sm:$0xff] %v7942_v39  ;;  %v7975_v44 = vadd.f32 %v9727_v51, %v4872_v15 }
 0x2f3   : > { %5281 = vst [vmem:[%s9738_s8 + $0x308] sm:$0xff] %v7974_v28  ;;  %5248 = vst [vmem:[%s9738_s8 + $0x200] sm:$0xff] %v7943_v42  ;;  %v7003_v11 = vpop.f32.mrb[34].mxu0 }
 0x2f4   : > { %5280 = vst [vmem:[%s9738_s8 + $0x300] sm:$0xff] %v7975_v44  ;;  %v7944_v33 = vadd.f32 %v7003_v11, %v9727_v51  ;;  %v7323_v23 = vpop.f32.mrb[34].mxu1  ;;  %v3753_v45 = vpop.f32.mrb[35].mxu0 }
 0x2f5   : > { %v7976_v47 = vadd.f32 %v7323_v23, %v9727_v51  ;;  %v7945_v19 = vadd.f32 %v9727_v51, %v3753_v45  ;;  %v4882_v43 = vpop.f32.mrb[35].mxu1 }
 0x2f6   : > { %5251 = vst [vmem:[%s9738_s8 + $0x218] sm:$0xff] %v7944_v33  ;;  %v7977_v58 = vadd.f32 %v9727_v51, %v4882_v43 }
 0x2f7   : > { %5283 = vst [vmem:[%s9738_s8 + $0x318] sm:$0xff] %v7976_v47  ;;  %5250 = vst [vmem:[%s9738_s8 + $0x210] sm:$0xff] %v7945_v19  ;;  %v7006_v9 = vpop.f32.mrb[36].mxu0 }
 0x2f8   : > { %5282 = vst [vmem:[%s9738_s8 + $0x310] sm:$0xff] %v7977_v58  ;;  %v7946_v59 = vadd.f32 %v7006_v9, %v9727_v51  ;;  %v7326_v5 = vpop.f32.mrb[36].mxu1  ;;  %v3763_v60 = vpop.f32.mrb[37].mxu0 }
 0x2f9   : > { %v7978_v22 = vadd.f32 %v7326_v5, %v9727_v51  ;;  %v7947_v21 = vadd.f32 %v9727_v51, %v3763_v60  ;;  %v4892_v35 = vpop.f32.mrb[37].mxu1 }
 0x2fa   : > { %5253 = vst [vmem:[%s9738_s8 + $0x228] sm:$0xff] %v7946_v59  ;;  %v7979_v14 = vadd.f32 %v9727_v51, %v4892_v35 }
 0x2fb   : > { %5285 = vst [vmem:[%s9738_s8 + $0x328] sm:$0xff] %v7978_v22  ;;  %5252 = vst [vmem:[%s9738_s8 + $0x220] sm:$0xff] %v7947_v21  ;;  %v7009_v31 = vpop.f32.mrb[38].mxu0 }
 0x2fc   : > { %5284 = vst [vmem:[%s9738_s8 + $0x320] sm:$0xff] %v7979_v14  ;;  %v7948_v3 = vadd.f32 %v7009_v31, %v9727_v51  ;;  %v7329_v53 = vpop.f32.mrb[38].mxu1  ;;  %v3773_v16 = vpop.f32.mrb[39].mxu0 }
 0x2fd   : > { %v7980_v52 = vadd.f32 %v7329_v53, %v9727_v51  ;;  %v7949_v62 = vadd.f32 %v9727_v51, %v3773_v16  ;;  %v4902_v2 = vpop.f32.mrb[39].mxu1 }
 0x2fe   : > { %5255 = vst [vmem:[%s9738_s8 + $0x238] sm:$0xff] %v7948_v3  ;;  %v7981_v37 = vadd.f32 %v9727_v51, %v4902_v2 }
 0x2ff   : > { %5287 = vst [vmem:[%s9738_s8 + $0x338] sm:$0xff] %v7980_v52  ;;  %5254 = vst [vmem:[%s9738_s8 + $0x230] sm:$0xff] %v7949_v62  ;;  %v7012_v30 = vpop.f32.mrb[40].mxu0 }
 0x300   : > { %5286 = vst [vmem:[%s9738_s8 + $0x330] sm:$0xff] %v7981_v37  ;;  %v7950_v32 = vadd.f32 %v7012_v30, %v9727_v51  ;;  %v7332_v34 = vpop.f32.mrb[40].mxu1  ;;  %v3783_v40 = vpop.f32.mrb[41].mxu0 }
 0x301   : > { %v7982_v24 = vadd.f32 %v7332_v34, %v9727_v51  ;;  %v7951_v8 = vadd.f32 %v9727_v51, %v3783_v40  ;;  %v4912_v50 = vpop.f32.mrb[41].mxu1 }
 0x302   : > { %5257 = vst [vmem:[%s9738_s8 + $0x248] sm:$0xff] %v7950_v32  ;;  %v7983_v12 = vadd.f32 %v9727_v51, %v4912_v50 }
 0x303   : > { %5289 = vst [vmem:[%s9738_s8 + $0x348] sm:$0xff] %v7982_v24  ;;  %5256 = vst [vmem:[%s9738_s8 + $0x240] sm:$0xff] %v7951_v8  ;;  %v7015_v49 = vpop.f32.mrb[42].mxu0 }
 0x304   : > { %5288 = vst [vmem:[%s9738_s8 + $0x340] sm:$0xff] %v7983_v12  ;;  %v7952_v26 = vadd.f32 %v7015_v49, %v9727_v51  ;;  %v7335_v61 = vpop.f32.mrb[42].mxu1  ;;  %v3793_v57 = vpop.f32.mrb[43].mxu0 }
 0x305   : > { %v7984_v38 = vadd.f32 %v7335_v61, %v9727_v51  ;;  %v7953_v29 = vadd.f32 %v9727_v51, %v3793_v57  ;;  %v4922_v27 = vpop.f32.mrb[43].mxu1 }
 0x306   : > { %5259 = vst [vmem:[%s9738_s8 + $0x258] sm:$0xff] %v7952_v26  ;;  %v7985_v18 = vadd.f32 %v9727_v51, %v4922_v27 }
 0x307   : > { %5291 = vst [vmem:[%s9738_s8 + $0x358] sm:$0xff] %v7984_v38  ;;  %5258 = vst [vmem:[%s9738_s8 + $0x250] sm:$0xff] %v7953_v29  ;;  %v7018_v10 = vpop.f32.mrb[44].mxu0 }
 0x308   : > { %5290 = vst [vmem:[%s9738_s8 + $0x350] sm:$0xff] %v7985_v18  ;;  %v7954_v63 = vadd.f32 %v7018_v10, %v9727_v51  ;;  %v7338_v41 = vpop.f32.mrb[44].mxu1  ;;  %v3803_v13 = vpop.f32.mrb[45].mxu0 }
 0x309   : > { %v7986_v56 = vadd.f32 %v7338_v41, %v9727_v51  ;;  %v7955_v4 = vadd.f32 %v9727_v51, %v3803_v13  ;;  %v4932_v1 = vpop.f32.mrb[45].mxu1 }
 0x30a   : > { %5261 = vst [vmem:[%s9738_s8 + $0x268] sm:$0xff] %v7954_v63  ;;  %v7987_v54 = vadd.f32 %v9727_v51, %v4932_v1 }
 0x30b   : > { %5293 = vst [vmem:[%s9738_s8 + $0x368] sm:$0xff] %v7986_v56  ;;  %5260 = vst [vmem:[%s9738_s8 + $0x260] sm:$0xff] %v7955_v4  ;;  %v7021_v7 = vpop.f32.mrb[46].mxu0 }
 0x30c   : > { %5292 = vst [vmem:[%s9738_s8 + $0x360] sm:$0xff] %v7987_v54  ;;  %v7956_v55 = vadd.f32 %v7021_v7, %v9727_v51  ;;  %v7341_v17 = vpop.f32.mrb[46].mxu1  ;;  %v3813_v25 = vpop.f32.mrb[47].mxu0 }
 0x30d   : > { %v7988_v36 = vadd.f32 %v7341_v17, %v9727_v51  ;;  %v7957_v46 = vadd.f32 %v9727_v51, %v3813_v25  ;;  %v4942_v48 = vpop.f32.mrb[47].mxu1  ;;  %v8493_v17 = vld [vmem:[%s10163_s2] ss:$0 sm:$0xff] }
 0x30e   : > { %5263 = vst [vmem:[%s9738_s8 + $0x278] sm:$0xff] %v7956_v55  ;;  %v7989_v0 = vadd.f32 %v9727_v51, %v4942_v48 }
 0x30f   : > { %5295 = vst [vmem:[%s9738_s8 + $0x378] sm:$0xff] %v7988_v36  ;;  %5262 = vst [vmem:[%s9738_s8 + $0x270] sm:$0xff] %v7957_v46  ;;  %v7024_v39 = vpop.f32.mrb[48].mxu0 }
 0x310   : > { %5294 = vst [vmem:[%s9738_s8 + $0x370] sm:$0xff] %v7989_v0  ;;  %v7958_v20 = vadd.f32 %v7024_v39, %v9727_v51  ;;  %v7344_v6 = vpop.f32.mrb[48].mxu1  ;;  %v3823_v28 = vpop.f32.mrb[49].mxu0 }
 0x311   : > { %v7990_v42 = vadd.f32 %v7344_v6, %v9727_v51  ;;  %v7959_v15 = vadd.f32 %v9727_v51, %v3823_v28  ;;  %v4952_v44 = vpop.f32.mrb[49].mxu1 }
 0x312   : > { %5265 = vst [vmem:[%s9738_s8 + $0x288] sm:$0xff] %v7958_v20  ;;  %v7991_v11 = vadd.f32 %v9727_v51, %v4952_v44 }
 0x313   : > { %5297 = vst [vmem:[%s9738_s8 + $0x388] sm:$0xff] %v7990_v42  ;;  %5264 = vst [vmem:[%s9738_s8 + $0x280] sm:$0xff] %v7959_v15  ;;  %v7027_v33 = vpop.f32.mrb[50].mxu0 }
 0x314   : > { %5296 = vst [vmem:[%s9738_s8 + $0x380] sm:$0xff] %v7991_v11  ;;  %v7960_v23 = vadd.f32 %v7027_v33, %v9727_v51  ;;  %v7347_v45 = vpop.f32.mrb[50].mxu1  ;;  %v3833_v47 = vpop.f32.mrb[51].mxu0 }
 0x315   : > { %v7992_v19 = vadd.f32 %v7347_v45, %v9727_v51  ;;  %v7961_v43 = vadd.f32 %v9727_v51, %v3833_v47  ;;  %v4962_v58 = vpop.f32.mrb[51].mxu1 }
 0x316   : > { %5267 = vst [vmem:[%s9738_s8 + $0x298] sm:$0xff] %v7960_v23  ;;  %v7993_v9 = vadd.f32 %v9727_v51, %v4962_v58 }
 0x317   : > { %5299 = vst [vmem:[%s9738_s8 + $0x398] sm:$0xff] %v7992_v19  ;;  %5266 = vst [vmem:[%s9738_s8 + $0x290] sm:$0xff] %v7961_v43  ;;  %v7030_v59 = vpop.f32.mrb[52].mxu0 }
 0x318   : > { %5298 = vst [vmem:[%s9738_s8 + $0x390] sm:$0xff] %v7993_v9  ;;  %v7962_v5 = vadd.f32 %v7030_v59, %v9727_v51  ;;  %v7350_v60 = vpop.f32.mrb[52].mxu1  ;;  %v3843_v22 = vpop.f32.mrb[53].mxu0 }
 0x319   : > { %v7994_v21 = vadd.f32 %v7350_v60, %v9727_v51  ;;  %v7963_v35 = vadd.f32 %v9727_v51, %v3843_v22  ;;  %v4972_v14 = vpop.f32.mrb[53].mxu1 }
 0x31a   : > { %5269 = vst [vmem:[%s9738_s8 + $0x2a8] sm:$0xff] %v7962_v5  ;;  %v7995_v31 = vadd.f32 %v9727_v51, %v4972_v14 }
 0x31b   : > { %5301 = vst [vmem:[%s9738_s8 + $0x3a8] sm:$0xff] %v7994_v21  ;;  %5268 = vst [vmem:[%s9738_s8 + $0x2a0] sm:$0xff] %v7963_v35  ;;  %v7033_v3 = vpop.f32.mrb[54].mxu0 }
 0x31c   : > { %5300 = vst [vmem:[%s9738_s8 + $0x3a0] sm:$0xff] %v7995_v31  ;;  %v7964_v53 = vadd.f32 %v7033_v3, %v9727_v51  ;;  %v7353_v16 = vpop.f32.mrb[54].mxu1  ;;  %v3853_v52 = vpop.f32.mrb[55].mxu0 }
 0x31d   : > { %v7996_v62 = vadd.f32 %v7353_v16, %v9727_v51  ;;  %v7965_v2 = vadd.f32 %v9727_v51, %v3853_v52  ;;  %v4982_v37 = vpop.f32.mrb[55].mxu1 }
 0x31e   : > { %5271 = vst [vmem:[%s9738_s8 + $0x2b8] sm:$0xff] %v7964_v53  ;;  %v7997_v30 = vadd.f32 %v9727_v51, %v4982_v37 }
 0x31f   : > { %5303 = vst [vmem:[%s9738_s8 + $0x3b8] sm:$0xff] %v7996_v62  ;;  %5270 = vst [vmem:[%s9738_s8 + $0x2b0] sm:$0xff] %v7965_v2  ;;  %v7036_v32 = vpop.f32.mrb[56].mxu0 }
 0x320   : > { %5302 = vst [vmem:[%s9738_s8 + $0x3b0] sm:$0xff] %v7997_v30  ;;  %v7966_v34 = vadd.f32 %v7036_v32, %v9727_v51  ;;  %v7356_v40 = vpop.f32.mrb[56].mxu1  ;;  %v3863_v24 = vpop.f32.mrb[57].mxu0 }
 0x321   : > { %v7998_v8 = vadd.f32 %v7356_v40, %v9727_v51  ;;  %v7967_v50 = vadd.f32 %v9727_v51, %v3863_v24  ;;  %v4992_v12 = vpop.f32.mrb[57].mxu1 }
 0x322   : > { %5273 = vst [vmem:[%s9738_s8 + $0x2c8] sm:$0xff] %v7966_v34  ;;  %v7999_v49 = vadd.f32 %v9727_v51, %v4992_v12 }
 0x323   : > { %5305 = vst [vmem:[%s9738_s8 + $0x3c8] sm:$0xff] %v7998_v8  ;;  %5272 = vst [vmem:[%s9738_s8 + $0x2c0] sm:$0xff] %v7967_v50  ;;  %v7039_v26 = vpop.f32.mrb[58].mxu0 }
 0x324   : > { %5304 = vst [vmem:[%s9738_s8 + $0x3c0] sm:$0xff] %v7999_v49  ;;  %v7968_v61 = vadd.f32 %v7039_v26, %v9727_v51  ;;  %v7359_v57 = vpop.f32.mrb[58].mxu1  ;;  %v3873_v38 = vpop.f32.mrb[59].mxu0 }
 0x325   : > { %v8000_v29 = vadd.f32 %v7359_v57, %v9727_v51  ;;  %v7969_v27 = vadd.f32 %v9727_v51, %v3873_v38  ;;  %v5002_v18 = vpop.f32.mrb[59].mxu1 }
 0x326   : > { %5275 = vst [vmem:[%s9738_s8 + $0x2d8] sm:$0xff] %v7968_v61  ;;  %v8001_v10 = vadd.f32 %v9727_v51, %v5002_v18 }
 0x327   : > { %5307 = vst [vmem:[%s9738_s8 + $0x3d8] sm:$0xff] %v8000_v29  ;;  %5274 = vst [vmem:[%s9738_s8 + $0x2d0] sm:$0xff] %v7969_v27  ;;  %v7042_v63 = vpop.f32.mrb[60].mxu0 }
 0x328   : > { %5306 = vst [vmem:[%s9738_s8 + $0x3d0] sm:$0xff] %v8001_v10  ;;  %v7970_v41 = vadd.f32 %v7042_v63, %v9727_v51  ;;  %v7362_v13 = vpop.f32.mrb[60].mxu1  ;;  %v3883_v56 = vpop.f32.mrb[61].mxu0 }
 0x329   : > { %v8002_v4 = vadd.f32 %v7362_v13, %v9727_v51  ;;  %v7971_v1 = vadd.f32 %v9727_v51, %v3883_v56  ;;  %v5012_v54 = vpop.f32.mrb[61].mxu1 }
 0x32a   : > { %5277 = vst [vmem:[%s9738_s8 + $0x2e8] sm:$0xff] %v7970_v41  ;;  %v8003_v7 = vadd.f32 %v9727_v51, %v5012_v54 }
 0x32b   : > { %5309 = vst [vmem:[%s9738_s8 + $0x3e8] sm:$0xff] %v8002_v4  ;;  %5276 = vst [vmem:[%s9738_s8 + $0x2e0] sm:$0xff] %v7971_v1  ;;  %v7045_v55 = vpop.f32.mrb[62].mxu0 }
 0x32c   : > { %5308 = vst [vmem:[%s9738_s8 + $0x3e0] sm:$0xff] %v8003_v7  ;;  %v7972_v25 = vadd.f32 %v8493_v17, %v7045_v55  ;;  %v7365_v36 = vpop.f32.mrb[62].mxu1  ;;  %v3893_v46 = vpop.f32.mrb[63].mxu0 }
 0x32d   : > { %v8004_v51 = vadd.f32 %v8493_v17, %v7365_v36  ;;  %v7973_v48 = vadd.f32 %v8493_v17, %v3893_v46  ;;  %v5022_v0 = vpop.f32.mrb[63].mxu1 }
 0x32e   : > { %5279 = vst [vmem:[%s9738_s8 + $0x2f8] sm:$0xff] %v7972_v25  ;;  %v8005_v39 = vadd.f32 %v8493_v17, %v5022_v0 }
 0x32f   : > { %5311 = vst [vmem:[%s9738_s8 + $0x3f8] sm:$0xff] %v8004_v51  ;;  %5278 = vst [vmem:[%s9738_s8 + $0x2f0] sm:$0xff] %v7973_v48 }
 0x330   : > { %5310 = vst [vmem:[%s9738_s8 + $0x3f0] sm:$0xff] %v8005_v39 }
 0x331   : > { %8535 = shalt.err (!%p8532_p6)
}
 0x332   : > { %s8536_s30 = scalar_lea.hbm %s10105_s21, 16384  ;;  %s8540_s6 = scalar_lea.hbm %s10164_s3, 32768 }
 0x333   : > { %p8537_p7 = scmp.ne.s32.totalorder %s10105_s21, %s8536_s30  ;;  %p8541_p0 = scmp.lt.u32.totalorder %s10105_s21, %s10164_s3 }
 0x334   : > { %p8542_p2 = scmp.lt.u32.totalorder %s8540_s6, %s8536_s30  ;;  %p8544_p8 = scmp.lt.u32.totalorder %s8536_s30, %s10105_s21 }
 0x335   : > { %p8538_p9 = pnand %p8537_p7, %p10550_p10 }
 0x336   : > { %p8543_p4 = por %p8542_p2, %p8541_p0 }
 0x337   : > { %p8539_p12 = pneg %p8538_p9 }
 0x338   : > { %p8545_p11 = por %p8544_p8, %p8543_p4 }
 0x33a   : > { %p8546_p13 = pnand %p8545_p11, %p8539_p12 }
 0x33c   : > { %8549 = shalt.err (!%p8546_p13)
}
 0x33d   : > { %s8610_s9 = smov 128   ;;  %s8611_s11 = smov 8  }
 0x33e   : > { %8395 = dma.vmem_to_hbm [thread:$0]  (%p10550_p10), %s10107_s10, 16384, %s10105_s21, %s10115_s23, %s8610_s9, %s8610_s9, %s8611_s11  }
 0x33f PF: > { %p8407_p1 = scmp.ge.s32.totalorder %s8604_s17, 2  ;;  %s5127_s18 = sand.u32 1, %s8584_s12  }
 0x340   : > { %p10551_p3 = scmp.ne.s32.totalorder %s10319_s24, 0  ;;  %s5128_s15 = scalar_lea.sflag [#allocation4], %s5127_s18 }
 0x342   : > { %p8402_p5 = pnand %p8407_p1, %p10551_p3 }
 0x344   : > { %8579 = dma.done.wait (!%p8402_p5), %s5128_s15, 16384  }
 0x345   : > { %8581 = vsyncadd (!%p8402_p5), %s5128_s15, 4294950912  ;;  %s17_s17 = sadd.s32 1, %s8604_s17   ;;  %s10552_s12 = smov %s8588_s13 }
 0x346   : > { %p14_p6 = scmp.ge.s32.totalorder %s17_s17, 4   ;;  %s10553_s13 = smov %s8592_s14 }
 0x347   : > { %s10554_s14 = smov %s8685_s25  ;;  %s10555_s15 = smov %s8600_s16 }
 0x348   : > { %s10556_s16 = smov %s10558_s20  ;;  %16 = sbr.rel (!%p14_p6) target bundleno = 5 (0x5), region = 90 }
 0x34f   :  { %5133 = vsyncpa [#allocation3], 1 }
 0x350   :  { %5135 = vsyncpa [#allocation3 + $0x1], 1 }
 0x351   :  { %5136 = vsyncpa [#allocation4], 1 }
 0x352   :  { %5138 = vsyncpa [#allocation4 + $0x1], 1 }

// kernel: tpu_custom_call.1
= control target key start
LH: loop header
LB: loop body
LE: loop exit
PB: predicated region body
PF: predicated region fallthrough
CT: control target
= control target key end

     0   :  { %8 = vsyncpa [#allocation3], 0  ;;  %s10161_s0 = inlined_call_operand.vmem [shape: f32[2,1,18,18,128], index: 0, kind: input, shape index: {}]   ;;  %s10162_s1 = inlined_call_operand.hbm [shape: f32[2,2,4,128,128], index: 1, kind: input, shape index: {}]   ;;  %s10163_s2 = inlined_call_operand.vmem [shape: f32[1,128], index: 2, kind: input, shape index: {}]   ;;  %s10164_s3 = inlined_call_operand.hbm [shape: f32[2,2,2,256,128], index: 3, kind: output, shape index: {}]  }
   0x1   :  { %9 = vsyncpa [#allocation4], 0 }
   0x2   :  { %11 = vsyncpa [#allocation4 + $0x1], 0  ;;  %s8632_s12 = smov 0   ;;  %s8634_s13 = smov 0  }
   0x3   :  { %s8636_s14 = smov 0   ;;  %s8638_s15 = smov 0  }
   0x4   :  { %s8640_s16 = smov 0   ;;  %s8642_s17 = smov 0  }
   0x5 LB: > { %s5206_s18 = sadd.s32 4294967295, %s8604_s17   ;;  %s5207_s19 = sadd.s32 4294967294, %s8604_s17   ;;  %s8604_s17 = sphi %s8642_s17, %s17_s17   ;;  %s8600_s16 = sphi %s8640_s16, %s10556_s16   ;;  %s8596_s15 = sphi %s8638_s15, %s10555_s15   ;;  %s8592_s14 = sphi %s8636_s14, %s10554_s14   ;;  %s8588_s13 = sphi %s8634_s13, %s10553_s13   ;;  %s8584_s12 = sphi %s8632_s12, %s10552_s12  }
   0x6   : > { %s29_s20 = sadd.s32 1, %s8600_s16  ;;  %s108_s21 = sadd.s32 1, %s8592_s14 }
   0x7   : > { %p31_p0 = scmp.ge.s32.totalorder %s29_s20, 2  ;;  %p118_p1 = scmp.ne.s32.totalorder %s8592_s14, %s8588_s13 }
   0x8   : > { %p119_p2 = scmp.eq.s32.totalorder %s5206_s18, 1  ;;  %p124_p3 = scmp.ne.s32.totalorder %s8588_s13, %s8584_s12 }
   0x9   : > { %s10558_s20 = smov (%p31_p0, %s29_s20), 0  ;;  %p125_p5 = scmp.eq.s32.totalorder %s5207_s19, 1 }
   0xa   : > { %p8672_p4 = por %p119_p2, %p118_p1  ;;  %s103_s23 = ssub.s32 %s8600_s16, %s10558_s20 }
   0xb   : > { %p5208_p6 = scmp.ge.s32.totalorder %s8604_s17, 1  ;;  %p106_p7 = scmp.eq.s32.totalorder %s103_s23, 0 }
   0xc   : > { %s10318_s22 = scalar_select %p8672_p4, 1, 0 }
   0xd   : > { %p8679_p8 = por %p125_p5, %p124_p3  ;;  %p132_p9 = scmp.lt.s32.totalorder %s8604_s17, 3 }
   0xe   : > { %s8685_s25 = scalar_select %p106_p7, %s8592_s14, %s108_s21  }
   0xf   : > { %s10319_s24 = scalar_select %p8679_p8, 1, 0 }
  0x10   : > { %p8687_p10 = pnand %p5208_p6, %p132_p9  ;;  %p8691_p11 = scmp.eq.s32.totalorder %s5206_s18, 0 }
  0x11   : > { %s8606_s28 = smov [#allocation2]   ;;  %s8494_s6 = scalar_lea.hbm %s10162_s1, 32768 }
  0x12   : > { %s10320_s26 = scalar_select %p8687_p10, 1, 0 }
  0x13   : > { %s10321_s27 = scalar_select %p8691_p11, 1, 0 }
  0x14   : > { %p8397_p12 = pneg %p8687_p10  ;;  %s144_s29 = sshll.u32 %s8606_s28, 4  ;;  %s145_s29 = int_to_ptr.vmem [resolvable:$true] %s144_s29 }
  0x15   : > { %p8495_p0 = scmp.ne.s32.totalorder %s10162_s1, %s8494_s6  ;;  %p8501_p5 = scmp.lt.u32.totalorder %s8494_s6, %s10162_s1 }
  0x16   : > { %p8699_p13 = pnand %p8691_p11, %p8397_p12 }
  0x18   : > { %p8496_p1 = pneg %p8699_p13 }
  0x1a   : > { %p8497_p2 = pnand %p8496_p1, %p8495_p0 }
  0x1c   : > { %p8498_p3 = pneg %p8497_p2 }
  0x1e   : > { %p8503_p6 = pnand %p8501_p5, %p8498_p3 }
  0x20   : > { %8506 = shalt.err (!%p8503_p6)
}
  0x21   : > { %s8507_s11 = scalar_lea.vmem %s145_s29, 32768  ;;  %p8515_p8 = scmp.lt.s32.totalorder %s145_s29, %s145_s29 }
  0x22   : > { %p8508_p7 = scmp.ne.s32.totalorder %s145_s29, %s8507_s11  ;;  %p8516_p4 = scmp.lt.s32.totalorder %s8507_s11, %s8507_s11 }
  0x24   : > { %p8510_p9 = pnand %p8508_p7, %p8496_p1  ;;  %p8517_p11 = por %p8516_p4, %p8515_p8 }
  0x26   : > { %p8511_p12 = pneg %p8510_p9 }
  0x28   : > { %p8518_p10 = pnand %p8517_p11, %p8511_p12 }
  0x2a   : > { %8521 = shalt.err (!%p8518_p10)
}
  0x2b   : > { %s8607_s18 = smov 128   ;;  %s8608_s19 = smov 8  }
  0x2c   : > { %8400 = dma.hbm_to_vmem [thread:$0]  (!%p8699_p13), %s10162_s1, 32768, %s145_s29, [#allocation3], %s8607_s18, %s8607_s18, %s8608_s19  }
  0x2d   : > { %p10323_p0 = scmp.ne.s32.totalorder %s10320_s26, 0 }
  0x2f   : > { %175 = sbr.rel (%p10323_p0) target bundleno = 831 (0x33f), region = 32 }
  0x36   : > { %p10324_p2 = scmp.ne.s32.totalorder %s10321_s27, 0 }
  0x38   : > { %8575 = dma.done.wait (%p10324_p2), [#allocation3], 32768  }
  0x39   : > { %8577 = vsyncadd (%p10324_p2), [#allocation3], 4294934528  ;;  %p203_p4 = scmp.lt.s32.totalorder %s8596_s15, 1  ;;  %v582_v0 = vld [vmem:[#allocation2] sm:$0xff]  ;;  %v583_v1 = vld [vmem:[#allocation2 + $0x8] sm:$0xff]  ;;  %vm321_vm0 = vcmask 1046528  }
  0x3a   : > { %v1710_v2 = vld [vmem:[#allocation2 + $0x200] sm:$0xff]  ;;  %v7366_v3 = vpack.c.bf16 %v583_v1, %v582_v0  ;;  %v1711_v4 = vld [vmem:[#allocation2 + $0x208] sm:$0xff]  ;;  %v584_v5 = vld [vmem:[#allocation2 + $0x10] sm:$0xff]  ;;  %vm448_vm1 = vcmask 1045504   ;;  %s200_s4 = sand.u32 1, %s8588_s13   ;;  %s5317_s9 = sshll.u32 %s8596_s15, 14 }
  0x3b   : > { %s8727_s28 = scalar_select %p203_p4, %s8596_s15, 1  ;;  %v585_v6 = vld [vmem:[#allocation2 + $0x18] sm:$0xff]  ;;  %v7494_v7 = vpack.c.bf16 %v1711_v4, %v1710_v2  ;;  %v1712_v9 = vld [vmem:[#allocation2 + $0x210] sm:$0xff]  ;;  %v586_v11 = vld [vmem:[#allocation2 + $0x20] sm:$0xff] }
  0x3c   : > { %v7370_v8 = vpack.c.bf16 %v585_v6, %v584_v5  ;;  %v1713_v10 = vld [vmem:[#allocation2 + $0x218] sm:$0xff]  ;;  %7367 = vmatprep.subr.bf16.mxu0 %v7366_v3  ;;  %v587_v13 = vld [vmem:[#allocation2 + $0x28] sm:$0xff]  ;;  %v1714_v14 = vld [vmem:[#allocation2 + $0x220] sm:$0xff]  ;;  %s9721_s5 = sshll.u32 %s200_s4, 10  ;;  %s10105_s21 = scalar_lea.hbm %s10164_s3, %s5317_s9 }
  0x3d   : > { %v7498_v12 = vpack.c.bf16 %v1713_v10, %v1712_v9  ;;  %v1715_v15 = vld [vmem:[#allocation2 + $0x228] sm:$0xff]  ;;  %s8390_s26 = smul.u32 432, %s8727_s28  ;;  %7495 = vmatprep.subr.bf16.mxu1 %v7494_v7  ;;  %7369 = vmatpush3.bf16.msra.mxu0 %v7366_v3  ;;  %v7374_v16 = vpack.c.bf16 %v587_v13, %v586_v11  ;;  %v588_v18 = vld [vmem:[#allocation2 + $0x30] sm:$0xff]  ;;  %v589_v19 = vld [vmem:[#allocation2 + $0x38] sm:$0xff]  ;;  %s9738_s8 = scalar_lea.vmem [#allocation5], %s9721_s5 }
  0x3e   : > { %7497 = vmatpush3.bf16.msra.mxu1 %v7494_v7  ;;  %7371 = vmatprep.subr.bf16.mxu0 %v7370_v8  ;;  %v7502_v17 = vpack.c.bf16 %v1715_v15, %v1714_v14  ;;  %v1716_v20 = vld [vmem:[#allocation2 + $0x230] sm:$0xff]  ;;  %v1717_v21 = vld [vmem:[#allocation2 + $0x238] sm:$0xff]  ;;  %v7378_v22 = vpack.c.bf16 %v589_v19, %v588_v18  ;;  %v590_v24 = vld [vmem:[#allocation2 + $0x40] sm:$0xff]  ;;  %s5112_s10 = sshll.u32 %s9738_s8, 4  ;;  %s10115_s23 = scalar_lea.sflag [#allocation4], %s200_s4  ;;  %s10107_s10 = int_to_ptr.vmem [resolvable:$true] %s5112_s10 }
  0x3f   : > { %7499 = vmatprep.subr.bf16.mxu1 %v7498_v12  ;;  %s8733_s30 = scalar_lea.vmem %s10161_s0, %s8390_s26  ;;  %v7506_v23 = vpack.c.bf16 %v1717_v21, %v1716_v20  ;;  %v591_v25 = vld [vmem:[#allocation2 + $0x48] sm:$0xff]  ;;  %v1718_v27 = vld [vmem:[#allocation2 + $0x240] sm:$0xff]  ;;  %v592_v36 = vld [vmem:[#allocation2 + $0x50] sm:$0xff]  ;;  %s8522_s28 = scalar_lea.vmem %s10107_s10, 16384 }
  0x40   : > { %v213_v26 = vld [vmem:[%s8733_s30] sm:$0xff]  ;;  %v1719_v28 = vld [vmem:[#allocation2 + $0x248] sm:$0xff]  ;;  %v7382_v34 = vpack.c.bf16 %v591_v25, %v590_v24  ;;  %v593_v37 = vld [vmem:[#allocation2 + $0x58] sm:$0xff]  ;;  %p8523_p8 = scmp.ne.s32.totalorder %s10107_s10, %s8522_s28  ;;  %p10550_p10 = scmp.ne.s32.totalorder %s10318_s22, 0 }
  0x41   : > { %7373 = vmatpush3.bf16.msra.mxu0 %v7370_v8  ;;  %v322_v29 = vrot.slane %v213_v26, 1  ;;  %v449_v30 = vrot.slane %v213_v26, 2  ;;  %6118 = vmatprep.mubr.f32.mxu0 %v213_v26  ;;  %v8737_v31 = vld [vmem:[%s8733_s30 + $0x8] sm:$0xff]  ;;  %v7510_v35 = vpack.c.bf16 %v1719_v28, %v1718_v27  ;;  %v215_v39 = vld [vmem:[%s8733_s30 + $0x10] sm:$0x3]  ;;  %v1721_v41 = vld [vmem:[#allocation2 + $0x258] sm:$0xff]  ;;  %v7386_v44 = vpack.c.bf16 %v593_v37, %v592_v36 }
  0x42   : > { %7501 = vmatpush3.bf16.msra.mxu1 %v7498_v12  ;;  %7375 = vmatprep.subr.bf16.mxu0 %v7374_v16  ;;  %v323_v32 = vrot.slane %v8737_v31, 1  ;;  %v450_v33 = vrot.slane %v8737_v31, 2  ;;  %v1720_v40 = vld [vmem:[#allocation2 + $0x250] sm:$0xff]  ;;  %v452_v42 = vrot.slane %v215_v39, 2  ;;  %v594_v46 = vld [vmem:[#allocation2 + $0x60] sm:$0xff]  ;;  %v595_v47 = vld [vmem:[#allocation2 + $0x68] sm:$0xff]  ;;  %p8524_p11 = pnand %p8523_p8, %p10550_p10 }
  0x43   : > { %7503 = vmatprep.subr.bf16.mxu1 %v7502_v17  ;;  %v7514_v45 = vpack.c.bf16 %v1721_v41, %v1720_v40  ;;  %v1722_v48 = vld [vmem:[#allocation2 + $0x260] sm:$0xff]  ;;  %v1723_v49 = vld [vmem:[#allocation2 + $0x268] sm:$0xff]  ;;  %v7390_v51 = vpack.c.bf16 %v595_v47, %v594_v46  ;;  %v596_v53 = vld [vmem:[#allocation2 + $0x70] sm:$0xff]  ;;  %v325_v2 = vrot.slane %v215_v39, 1  ;;  %s8609_s26 = smov [#allocation5]  }
  0x44   : > { %v8744_v38 = vsel %vm321_vm0, %v322_v29, %v323_v32  ;;  %v8749_v43 = vsel %vm448_vm1, %v449_v30, %v450_v33  ;;  %v8752_v50 = vsel %vm448_vm1, %v450_v33, %v452_v42  ;;  %v7518_v52 = vpack.c.bf16 %v1723_v49, %v1722_v48  ;;  %v597_v54 = vld [vmem:[#allocation2 + $0x78] sm:$0xff]  ;;  %v1724_v55 = vld [vmem:[#allocation2 + $0x270] sm:$0xff]  ;;  %v856_v59 = vld [vmem:[#allocation2 + $0x80] sm:$0xff]  ;;  %p8525_p13 = pneg %p8524_p11  ;;  %s8526_s27 = sshll.u32 %s8609_s26, 4  ;;  %s8527_s27 = int_to_ptr.vmem [resolvable:$false] %s8526_s27 }
  0x45   : > { %7377 = vmatpush3.bf16.msra.mxu0 %v7374_v16  ;;  %6438 = vmatprep.mubr.f32.mxu1 %v8744_v38  ;;  %v1725_v56 = vld [vmem:[#allocation2 + $0x278] sm:$0xff]  ;;  %v7394_v57 = vpack.c.bf16 %v597_v54, %v596_v53  ;;  %v857_v60 = vld [vmem:[#allocation2 + $0x88] sm:$0xff]  ;;  %v1984_v61 = vld [vmem:[#allocation2 + $0x280] sm:$0xff]  ;;  %v8774_v13 = vsel %vm321_vm0, %v323_v32, %v325_v2  ;;  %s8528_s29 = scalar_lea.vmem %s8527_s27, 32768  ;;  %p8529_p1 = scmp.lt.s32.totalorder %s10107_s10, %s8527_s27 }
  0x46   : > { %7505 = vmatpush3.bf16.msra.mxu1 %v7502_v17  ;;  %7379 = vmatprep.subr.bf16.mxu0 %v7378_v22  ;;  %v7522_v58 = vpack.c.bf16 %v1725_v56, %v1724_v55  ;;  %v1985_v62 = vld [vmem:[#allocation2 + $0x288] sm:$0xff]  ;;  %v8755_v63 = vld [vmem:[%s8733_s30 + $0x18] sm:$0xff]  ;;  %v8758_v0 = vld [vmem:[%s8733_s30 + $0x20] sm:$0xff]  ;;  %v7398_v1 = vpack.c.bf16 %v857_v60, %v856_v59  ;;  %p8530_p3 = scmp.lt.s32.totalorder %s8528_s29, %s8522_s28 }
  0x47   : > { %7507 = vmatprep.subr.bf16.mxu1 %v7506_v23  ;;  %10325 = vst [vmem:[#allocation8_spill] sm:$0xff] %v8755_v63  ;;  %10326 = vst [vmem:[#allocation9_spill] sm:$0xff] %v8758_v0  ;;  %v7526_v3 = vpack.c.bf16 %v1985_v62, %v1984_v61  ;;  %v8761_v4 = vld [vmem:[%s8733_s30 + $0x28] sm:$0x3]  ;;  %v8764_v5 = vld [vmem:[%s8733_s30 + $0x30] sm:$0xff]  ;;  %v327_v6 = vrot.slane %v8755_v63, 1 }
  0x48   : > { %v328_v7 = vrot.slane %v8758_v0, 1  ;;  %v8769_v8 = vld [vmem:[%s8733_s30 + $0x38] sm:$0xff]  ;;  %v858_v9 = vld [vmem:[#allocation2 + $0x90] sm:$0xff]  ;;  %v330_v14 = vrot.slane %v8761_v4, 1  ;;  %v332_v15 = vrot.slane %v8764_v5, 1  ;;  %v8783_v19 = vld [vmem:[%s8733_s30 + $0x48] sm:$0xff]  ;;  %p8531_p5 = por %p8530_p3, %p8529_p1 }
  0x49   : > { %7381 = vmatpush3.bf16.msra.mxu0 %v7378_v22  ;;  %v859_v10 = vld [vmem:[#allocation2 + $0x98] sm:$0xff]  ;;  %v1986_v11 = vld [vmem:[#allocation2 + $0x290] sm:$0xff]  ;;  %v333_v16 = vrot.slane %v8769_v8, 1  ;;  %v8780_v18 = vld [vmem:[%s8733_s30 + $0x40] sm:$0x3]  ;;  %v337_v30 = vrot.slane %v8783_v19, 1 }
  0x4a   : > { %7509 = vmatpush3.bf16.msra.mxu1 %v7506_v23  ;;  %7383 = vmatprep.subr.bf16.mxu0 %v7382_v34  ;;  %v1987_v12 = vld [vmem:[#allocation2 + $0x298] sm:$0xff]  ;;  %v7402_v17 = vpack.c.bf16 %v859_v10, %v858_v9  ;;  %v8787_v20 = vsel %vm321_vm0, %v327_v6, %v328_v7  ;;  %v8790_v22 = vld [vmem:[%s8733_s30 + $0x50] sm:$0xff]  ;;  %v860_v23 = vld [vmem:[#allocation2 + $0xa0] sm:$0xff]  ;;  %v8795_v27 = vsel %vm321_vm0, %v328_v7, %v330_v14  ;;  %v335_v28 = vrot.slane %v8780_v18, 1  ;;  %p8532_p6 = pnand %p8531_p5, %p8525_p13 }
  0x4b   : > { %7511 = vmatprep.subr.bf16.mxu1 %v7510_v35  ;;  %v7530_v21 = vpack.c.bf16 %v1987_v12, %v1986_v11  ;;  %v861_v24 = vld [vmem:[#allocation2 + $0xa8] sm:$0xff]  ;;  %v1988_v25 = vld [vmem:[#allocation2 + $0x2a0] sm:$0xff]  ;;  %v8800_v29 = vsel %vm321_vm0, %v332_v15, %v333_v16  ;;  %v8805_v32 = vld [vmem:[%s8733_s30 + $0x58] sm:$0x3] }
  0x4c   : > { %v1989_v26 = vld [vmem:[#allocation2 + $0x2a8] sm:$0xff]  ;;  %v8808_v33 = vld [vmem:[%s8733_s30 + $0x60] sm:$0xff]  ;;  %v862_v37 = vld [vmem:[#allocation2 + $0xb0] sm:$0xff]  ;;  %v8818_v42 = vsel %vm321_vm0, %v333_v16, %v335_v28 }
  0x4d   : > { %7385 = vmatpush3.bf16.msra.mxu0 %v7382_v34  ;;  %v7406_v34 = vpack.c.bf16 %v861_v24, %v860_v23  ;;  %v7534_v36 = vpack.c.bf16 %v1989_v26, %v1988_v25  ;;  %v863_v39 = vld [vmem:[#allocation2 + $0xb8] sm:$0xff]  ;;  %v1990_v40 = vld [vmem:[#allocation2 + $0x2b0] sm:$0xff]  ;;  %v342_v46 = vrot.slane %v8808_v33, 1  ;;  %v864_v54 = vld [vmem:[#allocation2 + $0xc0] sm:$0xff] }
  0x4e   : > { %7513 = vmatpush3.bf16.msra.mxu1 %v7510_v35  ;;  %7387 = vmatprep.subr.bf16.mxu0 %v7386_v44  ;;  %v8812_v35 = vld [vmem:[%s8733_s30 + $0x68] sm:$0xff]  ;;  %v1991_v41 = vld [vmem:[#allocation2 + $0x2b8] sm:$0xff]  ;;  %v8827_v48 = vld [vmem:[%s8733_s30 + $0x70] sm:$0x3] }
  0x4f   : > { %7515 = vmatprep.subr.bf16.mxu1 %v7514_v45  ;;  %v343_v47 = vrot.slane %v8812_v35, 1  ;;  %v8830_v49 = vld [vmem:[%s8733_s30 + $0x78] sm:$0xff]  ;;  %v7538_v53 = vpack.c.bf16 %v1991_v41, %v1990_v40  ;;  %v865_v55 = vld [vmem:[#allocation2 + $0xc8] sm:$0xff]  ;;  %v1992_v56 = vld [vmem:[#allocation2 + $0x2c0] sm:$0xff]  ;;  %v345_v59 = vrot.slane %v8827_v48, 1 }
  0x50   : > { %v347_v61 = vrot.slane %v8830_v49, 1  ;;  %v8852_v2 = vld [vmem:[%s8733_s30 + $0x90] sm:$0xff]  ;;  %v8856_v6 = vld [vmem:[%s8733_s30 + $0x98] sm:$0xff]  ;;  %v8871_v23 = vld [vmem:[%s8733_s30 + $0xa0] sm:$0x3] }
  0x51   : > { %7389 = vmatpush3.bf16.msra.mxu0 %v7386_v44  ;;  %v340_v44 = vrot.slane %v8805_v32, 1  ;;  %v8844_v60 = vsel %vm321_vm0, %v342_v46, %v343_v47  ;;  %v866_v9 = vld [vmem:[#allocation2 + $0xd0] sm:$0xff]  ;;  %v867_v10 = vld [vmem:[#allocation2 + $0xd8] sm:$0xff]  ;;  %v8862_v14 = vsel %vm321_vm0, %v343_v47, %v345_v59  ;;  %v8874_v24 = vld [vmem:[%s8733_s30 + $0xa8] sm:$0xff] }
  0x52   : > { %7517 = vmatpush3.bf16.msra.mxu1 %v7514_v45  ;;  %7391 = vmatprep.subr.bf16.mxu0 %v7390_v51  ;;  %v1994_v11 = vld [vmem:[#allocation2 + $0x2d0] sm:$0xff]  ;;  %v1995_v12 = vld [vmem:[#allocation2 + $0x2d8] sm:$0xff]  ;;  %v7418_v25 = vpack.c.bf16 %v867_v10, %v866_v9  ;;  %v357_v41 = vrot.slane %v8874_v24, 1  ;;  %v8896_v47 = vld [vmem:[%s8733_s30 + $0xc0] sm:$0xff] }
  0x53   : > { %7519 = vmatprep.subr.bf16.mxu1 %v7518_v52  ;;  %v8878_v26 = vld [vmem:[%s8733_s30 + $0xb0] sm:$0xff]  ;;  %v7546_v28 = vpack.c.bf16 %v1995_v12, %v1994_v11  ;;  %v8893_v46 = vld [vmem:[%s8733_s30 + $0xb8] sm:$0x3] }
  0x54   : > { %v1999_v59 = vld [vmem:[#allocation2 + $0x2f8] sm:$0xff]  ;;  %v8915_v10 = vld [vmem:[%s8733_s30 + $0xd0] sm:$0x3] }
  0x55   : > { %7393 = vmatpush3.bf16.msra.mxu0 %v7390_v51  ;;  %v7410_v51 = vpack.c.bf16 %v863_v39, %v862_v37  ;;  %v355_v39 = vrot.slane %v8871_v23, 1  ;;  %v8918_v11 = vld [vmem:[%s8733_s30 + $0xd8] sm:$0xff] }
  0x56   : > { %7521 = vmatpush3.bf16.msra.mxu1 %v7518_v52  ;;  %7395 = vmatprep.subr.bf16.mxu0 %v7394_v57  ;;  %v8834_v52 = vld [vmem:[%s8733_s30 + $0x80] sm:$0xff] }
  0x57   : > { %7523 = vmatprep.subr.bf16.mxu1 %v7522_v58  ;;  %v348_v62 = vrot.slane %v8834_v52, 1 }
  0x59   : > { %7397 = vmatpush3.bf16.msra.mxu0 %v7394_v57  ;;  %v1993_v57 = vld [vmem:[#allocation2 + $0x2c8] sm:$0xff]  ;;  %v8866_v16 = vsel %vm321_vm0, %v347_v61, %v348_v62 }
  0x5a   : > { %7525 = vmatpush3.bf16.msra.mxu1 %v7522_v58  ;;  %7399 = vmatprep.subr.bf16.mxu0 %v7398_v1  ;;  %v7542_v7 = vpack.c.bf16 %v1993_v57, %v1992_v56  ;;  %v871_v56 = vld [vmem:[#allocation2 + $0xf8] sm:$0xff]  ;;  %v1998_v57 = vld [vmem:[#allocation2 + $0x2f0] sm:$0xff] }
  0x5b   : > { %7527 = vmatprep.subr.bf16.mxu1 %v7526_v3 }
  0x5c   : > { %6119 = vmatmul.mubr.f32.vlgmr.msra.gmra.mrb[0].mxu0 %v8737_v31  ;;  %v338_v31 = vrot.slane %v8790_v22, 1 }
  0x5d   : > { %6439 = vmatmul.mubr.f32.vlgmr.msra.gmra.mrb[0].mxu1 %v8774_v13  ;;  %7401 = vmatpush3.bf16.msra.mxu0 %v7398_v1  ;;  %v8849_v1 = vld [vmem:[%s8733_s30 + $0x88] sm:$0x3] }
  0x5e   : > { %7529 = vmatpush3.bf16.msra.mxu1 %v7526_v3  ;;  %6121 = vmatprep.mubr.f32.mxu0 %v8755_v63  ;;  %v8822_v45 = vsel %vm321_vm0, %v337_v30, %v338_v31  ;;  %v8840_v58 = vsel %vm321_vm0, %v338_v31, %v340_v44  ;;  %v7414_v3 = vpack.c.bf16 %v865_v55, %v864_v54  ;;  %v350_v15 = vrot.slane %v8849_v1, 1  ;;  %v868_v30 = vld [vmem:[#allocation2 + $0xe0] sm:$0xff]  ;;  %v869_v31 = vld [vmem:[#allocation2 + $0xe8] sm:$0xff]  ;;  %v870_v55 = vld [vmem:[#allocation2 + $0xf0] sm:$0xff] }
  0x5f   : > { %6441 = vmatprep.mubr.f32.mxu1 %v8787_v20  ;;  %7403 = vmatprep.subr.bf16.mxu0 %v7402_v17  ;;  %v358_v44 = vrot.slane %v8878_v26, 1  ;;  %v7426_v12 = vpack.c.bf16 %v871_v56, %v870_v55  ;;  %v8937_v55 = vld [vmem:[%s8733_s30 + $0xe8] sm:$0x3] }
  0x60   : > { %6122 = vmatmul.mubr.f32.gmra.mrb[2].mxu0 %v8758_v0  ;;  %7531 = vmatprep.subr.bf16.mxu1 %v7530_v21  ;;  %v8884_v37 = vsel %vm321_vm0, %v348_v62, %v350_v15  ;;  %v360_v62 = vrot.slane %v8893_v46, 1  ;;  %v8922_v15 = vld [vmem:[%s8733_s30 + $0xe0] sm:$0xff]  ;;  %10330 = vst [vmem:[#allocation13_spill] sm:$0xff] %v8937_v55 }
  0x61   : > { %6442 = vmatmul.mubr.f32.gmra.mrb[2].mxu1 %v8795_v27  ;;  %6124 = vmatprep.mubr.f32.mxu0 %v8764_v5 }
  0x62   : > { %6444 = vmatprep.mubr.f32.mxu1 %v8800_v29  ;;  %7405 = vmatpush3.bf16.msra.mxu0 %v7402_v17  ;;  %v352_v17 = vrot.slane %v8852_v2, 1 }
  0x63   : > { %7533 = vmatpush3.bf16.msra.mxu1 %v7530_v21  ;;  %7407 = vmatprep.subr.bf16.mxu0 %v7406_v34  ;;  %v353_v21 = vrot.slane %v8856_v6, 1 }
  0x64   : > { %6125 = vmatmul.mubr.f32.gmra.mrb[4].mxu0 %v8769_v8  ;;  %7535 = vmatprep.subr.bf16.mxu1 %v7534_v36 }
  0x65   : > { %6445 = vmatmul.mubr.f32.gmra.mrb[4].mxu1 %v8818_v42  ;;  %6127 = vmatprep.mubr.f32.mxu0 %v8783_v19  ;;  %v8888_v40 = vsel %vm321_vm0, %v352_v17, %v353_v21  ;;  %v8906_v61 = vsel %vm321_vm0, %v353_v21, %v355_v39  ;;  %v7554_v17 = vpack.c.bf16 %v1999_v59, %v1998_v57  ;;  %v1130_v21 = vld [vmem:[#allocation2 + $0x100] sm:$0xff]  ;;  %v367_v39 = vrot.slane %v8918_v11, 1  ;;  %v8946_v57 = vld [vmem:[%s8733_s30 + $0xf8] sm:$0xff] }
  0x66   : > { %6447 = vmatprep.mubr.f32.mxu1 %v8822_v45  ;;  %7409 = vmatpush3.bf16.msra.mxu0 %v7406_v34  ;;  %v1996_v34 = vld [vmem:[#allocation2 + $0x2e0] sm:$0xff]  ;;  %10332 = vst [vmem:[#allocation15_spill] sm:$0xff] %v8946_v57  ;;  %v370_v59 = vrot.slane %v8937_v55, 1 }
  0x67   : > { %7537 = vmatpush3.bf16.msra.mxu1 %v7534_v36  ;;  %7411 = vmatprep.subr.bf16.mxu0 %v7410_v51  ;;  %v1997_v36 = vld [vmem:[#allocation2 + $0x2e8] sm:$0xff] }
  0x68   : > { %6128 = vmatmul.mubr.f32.gmra.mrb[6].mxu0 %v8790_v22  ;;  %7539 = vmatprep.subr.bf16.mxu1 %v7538_v53  ;;  %v7550_v54 = vpack.c.bf16 %v1997_v36, %v1996_v34  ;;  %v365_v34 = vrot.slane %v8915_v10, 1 }
  0x69   : > { %6448 = vmatmul.mubr.f32.gmra.mrb[6].mxu1 %v8840_v58  ;;  %6130 = vmatprep.mubr.f32.mxu0 %v8808_v33 }
  0x6a   : > { %6450 = vmatprep.mubr.f32.mxu1 %v8844_v60  ;;  %7413 = vmatpush3.bf16.msra.mxu0 %v7410_v51  ;;  %v7422_v51 = vpack.c.bf16 %v869_v31, %v868_v30  ;;  %v2258_v30 = vld [vmem:[#allocation2 + $0x300] sm:$0xff]  ;;  %v2259_v31 = vld [vmem:[#allocation2 + $0x308] sm:$0xff] }
  0x6b   : > { %7541 = vmatpush3.bf16.msra.mxu1 %v7538_v53  ;;  %7415 = vmatprep.subr.bf16.mxu0 %v7414_v3  ;;  %v8900_v53 = vld [vmem:[%s8733_s30 + $0xc8] sm:$0xff] }
  0x6c   : > { %6131 = vmatmul.mubr.f32.gmra.mrb[8].mxu0 %v8812_v35  ;;  %7543 = vmatprep.subr.bf16.mxu1 %v7542_v7  ;;  %v363_v9 = vrot.slane %v8900_v53, 1 }
  0x6d   : > { %6451 = vmatmul.mubr.f32.gmra.mrb[8].mxu1 %v8862_v14  ;;  %6133 = vmatprep.mubr.f32.mxu0 %v8830_v49 }
  0x6e   : > { %6453 = vmatprep.mubr.f32.mxu1 %v8866_v16  ;;  %7417 = vmatpush3.bf16.msra.mxu0 %v7414_v3  ;;  %v8910_v3 = vsel %vm321_vm0, %v357_v41, %v358_v44  ;;  %v368_v41 = vrot.slane %v8922_v15, 1 }
  0x6f   : > { %7545 = vmatpush3.bf16.msra.mxu1 %v7542_v7  ;;  %7419 = vmatprep.subr.bf16.mxu0 %v7418_v25  ;;  %10327 = vst [vmem:[#allocation10_spill] sm:$0xff] %v8910_v3  ;;  %v362_v7 = vrot.slane %v8896_v47, 1 }
  0x70   : > { %6134 = vmatmul.mubr.f32.gmra.mrb[10].mxu0 %v8834_v52  ;;  %7547 = vmatprep.subr.bf16.mxu1 %v7546_v28 }
  0x71   : > { %6454 = vmatmul.mubr.f32.gmra.mrb[10].mxu1 %v8884_v37  ;;  %6136 = vmatprep.mubr.f32.mxu0 %v8852_v2  ;;  %v8932_v36 = vsel %vm321_vm0, %v362_v7, %v363_v9 }
  0x72   : > { %6456 = vmatprep.mubr.f32.mxu1 %v8888_v40  ;;  %7421 = vmatpush3.bf16.msra.mxu0 %v7418_v25  ;;  %v1131_v25 = vld [vmem:[#allocation2 + $0x108] sm:$0xff]  ;;  %10329 = vst [vmem:[#allocation12_spill] sm:$0xff] %v8932_v36 }
  0x73   : > { %7549 = vmatpush3.bf16.msra.mxu1 %v7546_v28  ;;  %7423 = vmatprep.subr.bf16.mxu0 %v7422_v51  ;;  %v8928_v28 = vsel %vm321_vm0, %v358_v44, %v360_v62  ;;  %v8939_v56 = vpack.c.bf16 %v1131_v25, %v1130_v21  ;;  %v8943_v44 = vld [vmem:[%s8733_s30 + $0xf0] sm:$0xff]  ;;  %v8958_v62 = vsel %vm321_vm0, %v367_v39, %v368_v41  ;;  %v373_v21 = vrot.slane %v8946_v57, 1  ;;  %v8963_v25 = vld [vmem:[%s8733_s30 + $0x100] sm:$0x3] }
  0x74   : > { %6137 = vmatmul.mubr.f32.gmra.mrb[12].mxu0 %v8856_v6  ;;  %7551 = vmatprep.subr.bf16.mxu1 %v7550_v54  ;;  %10328 = vst [vmem:[#allocation11_spill] sm:$0xff] %v8928_v28  ;;  %10331 = vst [vmem:[#allocation14_spill] sm:$0xff] %v8943_v44  ;;  %v372_v7 = vrot.slane %v8943_v44, 1 }
  0x75   : > { %6457 = vmatmul.mubr.f32.gmra.mrb[12].mxu1 %v8906_v61  ;;  %6139 = vmatprep.mubr.f32.mxu0 %v8874_v24  ;;  %10334 = vst [vmem:[#allocation17_spill] sm:$0xff] %v8958_v62  ;;  %10335 = vst [vmem:[#allocation18_spill] sm:$0xff] %v8963_v25 }
  0x76   : > { %6459 = vmatprep.mubr.f32.mxu1 %v8910_v3  ;;  %7425 = vmatpush3.bf16.msra.mxu0 %v7422_v51  ;;  %v8948_v51 = vpack.c.bf16 %v2259_v31, %v2258_v30  ;;  %v375_v30 = vrot.slane %v8963_v25, 1  ;;  %v8982_v31 = vsel %vm321_vm0, %v372_v7, %v373_v21 }
  0x77   : > { %7553 = vmatpush3.bf16.msra.mxu1 %v7550_v54  ;;  %7427 = vmatprep.subr.bf16.mxu0 %v7426_v12  ;;  %v8954_v54 = vsel %vm321_vm0, %v363_v9, %v365_v34  ;;  %v8968_v9 = vld [vmem:[%s8733_s30 + $0x108] sm:$0xff]  ;;  %10339 = vst [vmem:[#allocation22_spill] sm:$0xff] %v8982_v31 }
  0x78   : > { %6140 = vmatmul.mubr.f32.gmra.mrb[14].mxu0 %v8878_v26  ;;  %7555 = vmatprep.subr.bf16.mxu1 %v7554_v17  ;;  %10333 = vst [vmem:[#allocation16_spill] sm:$0xff] %v8954_v54  ;;  %10336 = vst [vmem:[#allocation19_spill] sm:$0xff] %v8968_v9  ;;  %v377_v34 = vrot.slane %v8968_v9, 1 }
  0x79   : > { %6460 = vmatmul.mubr.f32.gmra.mrb[14].mxu1 %v8928_v28  ;;  %6142 = vmatprep.mubr.f32.mxu0 %v8896_v47  ;;  %v9053_v28 = vld [vmem:[%s8733_s30 + $0x160] sm:$0x3] }
  0x7a   : > { %6462 = vmatprep.mubr.f32.mxu1 %v8932_v36  ;;  %7429 = vmatpush3.bf16.msra.mxu0 %v7426_v12  ;;  %v8971_v12 = vld [vmem:[%s8733_s30 + $0x110] sm:$0xff] }
  0x7b   : > { %7557 = vmatpush3.bf16.msra.mxu1 %v7554_v17  ;;  %7431 = vmatprep.subr.bf16.mxu0 %v8939_v56  ;;  %10337 = vst [vmem:[#allocation20_spill] sm:$0xff] %v8971_v12  ;;  %v8978_v17 = vsel %vm321_vm0, %v368_v41, %v370_v59  ;;  %v378_v39 = vrot.slane %v8971_v12, 1  ;;  %v8994_v41 = vld [vmem:[%s8733_s30 + $0x128] sm:$0xff]  ;;  %v9000_v59 = vsel %vm321_vm0, %v373_v21, %v375_v30  ;;  %v9016_v21 = vld [vmem:[%s8733_s30 + $0x140] sm:$0xff] }
  0x7c   : > { %6143 = vmatmul.mubr.f32.gmra.mrb[16].mxu0 %v8900_v53  ;;  %7559 = vmatprep.subr.bf16.mxu1 %v8948_v51  ;;  %10338 = vst [vmem:[#allocation21_spill] sm:$0xff] %v8978_v17  ;;  %10342 = vst [vmem:[#allocation25_spill] sm:$0xff] %v8994_v41  ;;  %v383_v36 = vrot.slane %v8994_v41, 1 }
  0x7d   : > { %6463 = vmatmul.mubr.f32.gmra.mrb[16].mxu1 %v8954_v54  ;;  %6145 = vmatprep.mubr.f32.mxu0 %v8918_v11  ;;  %v8987_v54 = vld [vmem:[%s8733_s30 + $0x118] sm:$0x3]  ;;  %10343 = vst [vmem:[#allocation26_spill] sm:$0xff] %v9000_v59  ;;  %v9004_v25 = vsel %vm321_vm0, %v377_v34, %v378_v39  ;;  %10346 = vst [vmem:[#allocation29_spill] sm:$0xff] %v9016_v21 }
  0x7e   : > { %6465 = vmatprep.mubr.f32.mxu1 %v8958_v62  ;;  %10340 = vst [vmem:[#allocation23_spill] sm:$0xff] %v8987_v54  ;;  %v8991_v62 = vld [vmem:[%s8733_s30 + $0x120] sm:$0xff]  ;;  %v380_v7 = vrot.slane %v8987_v54, 1  ;;  %10344 = vst [vmem:[#allocation27_spill] sm:$0xff] %v9004_v25 }
  0x7f   : > { %10341 = vst [vmem:[#allocation24_spill] sm:$0xff] %v8991_v62  ;;  %v382_v55 = vrot.slane %v8991_v62, 1 }
  0x80   : > { %6146 = vmatmul.mubr.f32.gmra.mrb[18].mxu0 %v8922_v15  ;;  %v9022_v30 = vsel %vm321_vm0, %v378_v39, %v380_v7  ;;  %v9038_v39 = vld [vmem:[%s8733_s30 + $0x158] sm:$0xff] }
  0x81   : > { %6466 = vmatmul.mubr.f32.gmra.mrb[18].mxu1 %v8978_v17  ;;  %6148 = vmatprep.mubr.f32.mxu0 %v8943_v44  ;;  %v9009_v17 = vld [vmem:[%s8733_s30 + $0x130] sm:$0x3]  ;;  %10347 = vst [vmem:[#allocation30_spill] sm:$0xff] %v9022_v30  ;;  %v9026_v54 = vsel %vm321_vm0, %v382_v55, %v383_v36  ;;  %v388_v44 = vrot.slane %v9016_v21, 1  ;;  %10351 = vst [vmem:[#allocation34_spill] sm:$0xff] %v9038_v39 }
  0x82   : > { %6468 = vmatprep.mubr.f32.mxu1 %v8982_v31  ;;  %10345 = vst [vmem:[#allocation28_spill] sm:$0xff] %v9009_v17  ;;  %v9013_v31 = vld [vmem:[%s8733_s30 + $0x138] sm:$0xff]  ;;  %v385_v34 = vrot.slane %v9009_v17, 1  ;;  %10348 = vst [vmem:[#allocation31_spill] sm:$0xff] %v9026_v54 }
  0x84   : > { %6149 = vmatmul.mubr.f32.gmra.mrb[20].mxu0 %v8946_v57  ;;  %v387_v57 = vrot.slane %v9013_v31, 1  ;;  %v9044_v55 = vsel %vm321_vm0, %v383_v36, %v385_v34 }
  0x85   : > { %6469 = vmatmul.mubr.f32.gmra.mrb[20].mxu1 %v9000_v59  ;;  %6151 = vmatprep.mubr.f32.mxu0 %v8968_v9  ;;  %v9031_v59 = vld [vmem:[%s8733_s30 + $0x148] sm:$0x3]  ;;  %v393_v9 = vrot.slane %v9038_v39, 1 }
  0x86   : > { %6471 = vmatprep.mubr.f32.mxu1 %v9004_v25  ;;  %10349 = vst [vmem:[#allocation32_spill] sm:$0xff] %v9031_v59  ;;  %v9035_v25 = vld [vmem:[%s8733_s30 + $0x150] sm:$0xff]  ;;  %v390_v7 = vrot.slane %v9031_v59, 1  ;;  %v9048_v17 = vsel %vm321_vm0, %v387_v57, %v388_v44  ;;  %v395_v57 = vrot.slane %v9053_v28, 1 }
  0x87   : > { %10350 = vst [vmem:[#allocation33_spill] sm:$0xff] %v9035_v25 }
  0x88   : > { %6152 = vmatmul.mubr.f32.gmra.mrb[22].mxu0 %v8971_v12  ;;  %v392_v12 = vrot.slane %v9035_v25, 1  ;;  %v9066_v36 = vsel %vm321_vm0, %v388_v44, %v390_v7  ;;  %v9082_v44 = vsel %vm321_vm0, %v393_v9, %v395_v57  ;;  %v455_v57 = vrot.slane %v8758_v0, 2 }
  0x89   : > { %6472 = vmatmul.mubr.f32.gmra.mrb[22].mxu1 %v9022_v30  ;;  %6154 = vmatprep.mubr.f32.mxu0 %v8991_v62  ;;  %v9057_v30 = vld [vmem:[%s8733_s30 + $0x168] sm:$0xff]  ;;  %10354 = vst [vmem:[#allocation37_spill] sm:$0xff] %v9066_v36  ;;  %v9075_v62 = vld [vmem:[%s8733_s30 + $0x178] sm:$0x3]  ;;  %10357 = vst [vmem:[#allocation40_spill] sm:$0xff] %v9082_v44 }
  0x8a   : > { %6474 = vmatprep.mubr.f32.mxu1 %v9026_v54  ;;  %10352 = vst [vmem:[#allocation35_spill] sm:$0xff] %v9057_v30  ;;  %v9060_v54 = vld [vmem:[%s8733_s30 + $0x170] sm:$0xff]  ;;  %v9070_v34 = vsel %vm321_vm0, %v392_v12, %v393_v9  ;;  %v397_v59 = vrot.slane %v9057_v30, 1  ;;  %10356 = vst [vmem:[#allocation39_spill] sm:$0xff] %v9075_v62  ;;  %v400_v12 = vrot.slane %v9075_v62, 1  ;;  %v454_v9 = vrot.slane %v8755_v63, 2 }
  0x8b   : > { %10353 = vst [vmem:[#allocation36_spill] sm:$0xff] %v9060_v54  ;;  %10355 = vst [vmem:[#allocation38_spill] sm:$0xff] %v9070_v34  ;;  %v1132_v62 = vld [vmem:[#allocation2 + $0x110] sm:$0xff] }
  0x8c   : > { %6155 = vmatmul.mubr.f32.gmra.mrb[24].mxu0 %v8994_v41  ;;  %v398_v41 = vrot.slane %v9060_v54, 1  ;;  %v9106_v0 = vsel %vm448_vm1, %v454_v9, %v455_v57  ;;  %v2265_v9 = vld [vmem:[#allocation2 + $0x338] sm:$0xff] }
  0x8d   : > { %6475 = vmatmul.mubr.f32.gmra.mrb[24].mxu1 %v9044_v55  ;;  %6157 = vmatprep.mubr.f32.mxu0 %v9013_v31  ;;  %10360 = vst [vmem:[#allocation43_spill] sm:$0xff] %v9106_v0 }
  0x8e   : > { %6477 = vmatprep.mubr.f32.mxu1 %v9048_v17  ;;  %v9086_v7 = vsel %vm321_vm0, %v397_v59, %v398_v41  ;;  %v1133_v59 = vld [vmem:[#allocation2 + $0x118] sm:$0xff] }
  0x8f   : > { %10358 = vst [vmem:[#allocation41_spill] sm:$0xff] %v9086_v7 }
  0x90   : > { %6158 = vmatmul.mubr.f32.gmra.mrb[26].mxu0 %v9016_v21 }
  0x91   : > { %6478 = vmatmul.mubr.f32.gmra.mrb[26].mxu1 %v9066_v36  ;;  %6160 = vmatprep.mubr.f32.mxu0 %v9035_v25  ;;  %v9093_v36 = vsel %vm321_vm0, %v398_v41, %v400_v12  ;;  %v459_v41 = vrot.slane %v8764_v5, 2  ;;  %v460_v12 = vrot.slane %v8769_v8, 2 }
  0x92   : > { %6480 = vmatprep.mubr.f32.mxu1 %v9070_v34  ;;  %10359 = vst [vmem:[#allocation42_spill] sm:$0xff] %v9093_v36  ;;  %v2261_v34 = vld [vmem:[#allocation2 + $0x318] sm:$0xff] }
  0x94   : > { %6161 = vmatmul.mubr.f32.gmra.mrb[28].mxu0 %v9038_v39 }
  0x95   : > { %6481 = vmatmul.mubr.f32.gmra.mrb[28].mxu1 %v9082_v44  ;;  %6163 = vmatprep.mubr.f32.mxu0 %v9057_v30  ;;  %v2260_v44 = vld [vmem:[#allocation2 + $0x310] sm:$0xff]  ;;  %v1135_v30 = vld [vmem:[#allocation2 + $0x128] sm:$0xff] }
  0x96   : > { %6483 = vmatprep.mubr.f32.mxu1 %v9086_v7  ;;  %v457_v7 = vrot.slane %v8761_v4, 2  ;;  %v7562_v63 = vpack.c.bf16 %v2261_v34, %v2260_v44  ;;  %v1136_v44 = vld [vmem:[#allocation2 + $0x130] sm:$0xff] }
  0x98   : > { %6164 = vmatmul.mubr.f32.gmra.mrb[30].mxu0 %v9060_v54  ;;  %v7434_v54 = vpack.c.bf16 %v1133_v59, %v1132_v62  ;;  %v9113_v4 = vsel %vm448_vm1, %v455_v57, %v457_v7  ;;  %v9118_v62 = vsel %vm448_vm1, %v459_v41, %v460_v12  ;;  %v1137_v7 = vld [vmem:[#allocation2 + $0x138] sm:$0xff]  ;;  %v469_v59 = vrot.slane %v8808_v33, 2 }
  0x99   : > { %6484 = vmatmul.mubr.f32.gmra.mrb[30].mxu1 %v9093_v36  ;;  %6198 = vmatprep.mubr.f32.mxu0 %v8744_v38  ;;  %v1134_v36 = vld [vmem:[#allocation2 + $0x120] sm:$0xff]  ;;  %10361 = vst [vmem:[#allocation44_spill] sm:$0xff] %v9113_v4  ;;  %10362 = vst [vmem:[#allocation45_spill] sm:$0xff] %v9118_v62  ;;  %v470_v41 = vrot.slane %v8812_v35, 2 }
  0x9a   : > { %6518 = vmatprep.mubr.f32.mxu1 %v8749_v43  ;;  %v2262_v38 = vld [vmem:[#allocation2 + $0x320] sm:$0xff]  ;;  %v2263_v43 = vld [vmem:[#allocation2 + $0x328] sm:$0xff]  ;;  %v7438_v34 = vpack.c.bf16 %v1135_v30, %v1134_v36  ;;  %v467_v30 = vrot.slane %v8805_v32, 2 }
  0x9b   : > { %v2267_v32 = vld [vmem:[#allocation2 + $0x348] sm:$0xff] }
  0x9c   : > { %6199 = vmatmul.mubr.f32.vlgmr.msra.gmra.mrb[0].mxu0 %v8774_v13  ;;  %v462_v13 = vrot.slane %v8780_v18, 2  ;;  %v2264_v18 = vld [vmem:[#allocation2 + $0x330] sm:$0xff] }
  0x9d   : > { %6519 = vmatmul.mubr.f32.vlgmr.msra.gmra.mrb[0].mxu1 %v8752_v50  ;;  %7433 = vmatpush3.bf16.msra.mxu0 %v8939_v56  ;;  %v464_v50 = vrot.slane %v8783_v19, 2  ;;  %v465_v56 = vrot.slane %v8790_v22, 2 }
  0x9e   : > { %7561 = vmatpush3.bf16.msra.mxu1 %v8948_v51  ;;  %6201 = vmatprep.mubr.f32.mxu0 %v8787_v20  ;;  %v7566_v51 = vpack.c.bf16 %v2263_v43, %v2262_v38  ;;  %v9127_v57 = vsel %vm448_vm1, %v460_v12, %v462_v13  ;;  %v7442_v38 = vpack.c.bf16 %v1137_v7, %v1136_v44  ;;  %v1139_v12 = vld [vmem:[#allocation2 + $0x148] sm:$0xff]  ;;  %v472_v13 = vrot.slane %v8827_v48, 2  ;;  %v2268_v48 = vld [vmem:[#allocation2 + $0x350] sm:$0xff] }
  0x9f   : > { %6521 = vmatprep.mubr.f32.mxu1 %v9106_v0  ;;  %7435 = vmatprep.subr.bf16.mxu0 %v7434_v54  ;;  %10363 = vst [vmem:[#allocation46_spill] sm:$0xff] %v9127_v57  ;;  %v9131_v36 = vsel %vm448_vm1, %v464_v50, %v465_v56  ;;  %v7570_v43 = vpack.c.bf16 %v2265_v9, %v2264_v18  ;;  %v474_v44 = vrot.slane %v8830_v49, 2  ;;  %v475_v7 = vrot.slane %v8834_v52, 2 }
  0xa0   : > { %6202 = vmatmul.mubr.f32.gmra.mrb[2].mxu0 %v8795_v27  ;;  %7563 = vmatprep.subr.bf16.mxu1 %v7562_v63  ;;  %10364 = vst [vmem:[#allocation47_spill] sm:$0xff] %v9131_v36  ;;  %v9144_v50 = vsel %vm448_vm1, %v469_v59, %v470_v41  ;;  %v479_v59 = vrot.slane %v8852_v2, 2  ;;  %v515_v0 = vrot.slane %v9016_v21, 2  ;;  %v520_v21 = vrot.slane %v9038_v39, 2 }
  0xa1   : > { %6522 = vmatmul.mubr.f32.gmra.mrb[2].mxu1 %v9113_v4  ;;  %6204 = vmatprep.mubr.f32.mxu0 %v8800_v29  ;;  %10366 = vst [vmem:[#allocation49_spill] sm:$0xff] %v9144_v50  ;;  %v10396_v4 = vld [vmem:[#allocation26_spill] sm:$0xff] }
  0xa2   : > { %6524 = vmatprep.mubr.f32.mxu1 %v9118_v62  ;;  %7437 = vmatpush3.bf16.msra.mxu0 %v7434_v54  ;;  %v1138_v62 = vld [vmem:[#allocation2 + $0x140] sm:$0xff]  ;;  %v9140_v54 = vsel %vm448_vm1, %v465_v56, %v467_v30  ;;  %v1141_v56 = vld [vmem:[#allocation2 + $0x158] sm:$0xff]  ;;  %v477_v30 = vrot.slane %v8849_v1, 2 }
  0xa3   : > { %7565 = vmatpush3.bf16.msra.mxu1 %v7562_v63  ;;  %7439 = vmatprep.subr.bf16.mxu0 %v7438_v34  ;;  %v2266_v63 = vld [vmem:[#allocation2 + $0x340] sm:$0xff]  ;;  %10365 = vst [vmem:[#allocation48_spill] sm:$0xff] %v9140_v54  ;;  %v7446_v18 = vpack.c.bf16 %v1139_v12, %v1138_v62  ;;  %v9157_v62 = vsel %vm448_vm1, %v474_v44, %v475_v7  ;;  %v480_v12 = vrot.slane %v8856_v6, 2  ;;  %v484_v44 = vrot.slane %v8874_v24, 2 }
  0xa4   : > { %6205 = vmatmul.mubr.f32.gmra.mrb[4].mxu0 %v8818_v42  ;;  %7567 = vmatprep.subr.bf16.mxu1 %v7566_v51  ;;  %v7574_v9 = vpack.c.bf16 %v2267_v32, %v2266_v63  ;;  %10368 = vst [vmem:[#allocation51_spill] sm:$0xff] %v9157_v62  ;;  %v2270_v1 = vld [vmem:[#allocation2 + $0x360] sm:$0xff] }
  0xa5   : > { %6525 = vmatmul.mubr.f32.gmra.mrb[4].mxu1 %v9127_v57  ;;  %6207 = vmatprep.mubr.f32.mxu0 %v8822_v45 }
  0xa6   : > { %6527 = vmatprep.mubr.f32.mxu1 %v9131_v36  ;;  %7441 = vmatpush3.bf16.msra.mxu0 %v7438_v34  ;;  %v1140_v36 = vld [vmem:[#allocation2 + $0x150] sm:$0xff]  ;;  %v2269_v34 = vld [vmem:[#allocation2 + $0x358] sm:$0xff] }
  0xa7   : > { %7569 = vmatpush3.bf16.msra.mxu1 %v7566_v51  ;;  %7443 = vmatprep.subr.bf16.mxu0 %v7442_v38  ;;  %v9153_v51 = vsel %vm448_vm1, %v470_v41, %v472_v13  ;;  %v7450_v63 = vpack.c.bf16 %v1141_v56, %v1140_v36  ;;  %v7578_v32 = vpack.c.bf16 %v2269_v34, %v2268_v48  ;;  %v1143_v41 = vld [vmem:[#allocation2 + $0x168] sm:$0xff]  ;;  %v485_v56 = vrot.slane %v8878_v26, 2 }
  0xa8   : > { %6208 = vmatmul.mubr.f32.gmra.mrb[6].mxu0 %v8840_v58  ;;  %7571 = vmatprep.subr.bf16.mxu1 %v7570_v43  ;;  %10367 = vst [vmem:[#allocation50_spill] sm:$0xff] %v9153_v51  ;;  %v9166_v13 = vsel %vm448_vm1, %v475_v7, %v477_v30  ;;  %v9170_v36 = vsel %vm448_vm1, %v479_v59, %v480_v12  ;;  %v1145_v7 = vld [vmem:[#allocation2 + $0x178] sm:$0xff]  ;;  %v489_v59 = vrot.slane %v8896_v47, 2 }
  0xa9   : > { %6528 = vmatmul.mubr.f32.gmra.mrb[6].mxu1 %v9140_v54  ;;  %6210 = vmatprep.mubr.f32.mxu0 %v8844_v60  ;;  %10369 = vst [vmem:[#allocation52_spill] sm:$0xff] %v9166_v13  ;;  %10370 = vst [vmem:[#allocation53_spill] sm:$0xff] %v9170_v36  ;;  %v10395_v54 = vld [vmem:[#allocation25_spill] sm:$0xff] }
  0xaa   : > { %6530 = vmatprep.mubr.f32.mxu1 %v9144_v50  ;;  %7445 = vmatpush3.bf16.msra.mxu0 %v7442_v38  ;;  %v1142_v50 = vld [vmem:[#allocation2 + $0x160] sm:$0xff]  ;;  %v2271_v38 = vld [vmem:[#allocation2 + $0x368] sm:$0xff]  ;;  %v510_v57 = vrot.slane %v10395_v54, 2  ;;  %v10401_v54 = vld [vmem:[#allocation30_spill] sm:$0xff] }
  0xab   : > { %7573 = vmatpush3.bf16.msra.mxu1 %v7570_v43  ;;  %7447 = vmatprep.subr.bf16.mxu0 %v7446_v18  ;;  %v482_v43 = vrot.slane %v8871_v23, 2  ;;  %v7454_v48 = vpack.c.bf16 %v1143_v41, %v1142_v50  ;;  %v7582_v34 = vpack.c.bf16 %v2271_v38, %v2270_v1  ;;  %v2272_v23 = vld [vmem:[#allocation2 + $0x370] sm:$0xff]  ;;  %v9183_v50 = vsel %vm448_vm1, %v484_v44, %v485_v56 }
  0xac   : > { %6211 = vmatmul.mubr.f32.gmra.mrb[8].mxu0 %v8862_v14  ;;  %7575 = vmatprep.subr.bf16.mxu1 %v7574_v9  ;;  %10372 = vst [vmem:[#allocation55_spill] sm:$0xff] %v9183_v50  ;;  %v490_v41 = vrot.slane %v8900_v53, 2  ;;  %v494_v44 = vrot.slane %v8918_v11, 2 }
  0xad   : > { %6531 = vmatmul.mubr.f32.gmra.mrb[8].mxu1 %v9153_v51  ;;  %6213 = vmatprep.mubr.f32.mxu0 %v8866_v16  ;;  %v9179_v30 = vsel %vm448_vm1, %v480_v12, %v482_v43  ;;  %v1405_v12 = vld [vmem:[#allocation2 + $0x188] sm:$0xff] }
  0xae   : > { %6533 = vmatprep.mubr.f32.mxu1 %v9157_v62  ;;  %7449 = vmatpush3.bf16.msra.mxu0 %v7446_v18  ;;  %v1144_v62 = vld [vmem:[#allocation2 + $0x170] sm:$0xff]  ;;  %v2273_v18 = vld [vmem:[#allocation2 + $0x378] sm:$0xff]  ;;  %10371 = vst [vmem:[#allocation54_spill] sm:$0xff] %v9179_v30 }
  0xaf   : > { %7577 = vmatpush3.bf16.msra.mxu1 %v7574_v9  ;;  %7451 = vmatprep.subr.bf16.mxu0 %v7450_v63  ;;  %v487_v9 = vrot.slane %v8893_v46, 2  ;;  %v7458_v1 = vpack.c.bf16 %v1145_v7, %v1144_v62  ;;  %v7586_v38 = vpack.c.bf16 %v2273_v18, %v2272_v23  ;;  %v2532_v46 = vld [vmem:[#allocation2 + $0x380] sm:$0xff]  ;;  %v9196_v62 = vsel %vm448_vm1, %v489_v59, %v490_v41  ;;  %v10375_v18 = vld [vmem:[#allocation11_spill] sm:$0xff] }
  0xb0   : > { %6214 = vmatmul.mubr.f32.gmra.mrb[10].mxu0 %v8884_v37  ;;  %7579 = vmatprep.subr.bf16.mxu1 %v7578_v32  ;;  %10374 = vst [vmem:[#allocation57_spill] sm:$0xff] %v9196_v62  ;;  %v495_v7 = vrot.slane %v8922_v15, 2 }
  0xb1   : > { %6534 = vmatmul.mubr.f32.gmra.mrb[10].mxu1 %v9166_v13  ;;  %6216 = vmatprep.mubr.f32.mxu0 %v8888_v40  ;;  %v9192_v43 = vsel %vm448_vm1, %v485_v56, %v487_v9  ;;  %v10389_v13 = vld [vmem:[#allocation21_spill] sm:$0xff] }
  0xb2   : > { %6536 = vmatprep.mubr.f32.mxu1 %v9170_v36  ;;  %7453 = vmatpush3.bf16.msra.mxu0 %v7450_v63  ;;  %v1404_v36 = vld [vmem:[#allocation2 + $0x180] sm:$0xff]  ;;  %v2533_v63 = vld [vmem:[#allocation2 + $0x388] sm:$0xff]  ;;  %10373 = vst [vmem:[#allocation56_spill] sm:$0xff] %v9192_v43 }
  0xb3   : > { %7581 = vmatpush3.bf16.msra.mxu1 %v7578_v32  ;;  %7455 = vmatprep.subr.bf16.mxu0 %v7454_v48  ;;  %v492_v32 = vrot.slane %v8915_v10, 2  ;;  %v9200_v23 = vpack.c.bf16 %v1405_v12, %v1404_v36  ;;  %v10376_v10 = vld [vmem:[#allocation12_spill] sm:$0xff]  ;;  %v9213_v36 = vsel %vm448_vm1, %v494_v44, %v495_v7  ;;  %v10381_v12 = vld [vmem:[#allocation15_spill] sm:$0xff] }
  0xb4   : > { %6217 = vmatmul.mubr.f32.gmra.mrb[12].mxu0 %v8906_v61  ;;  %7583 = vmatprep.subr.bf16.mxu1 %v7582_v34  ;;  %10379 = vst [vmem:[#allocation12_spill] sm:$0xff] %v9213_v36 }
  0xb5   : > { %6537 = vmatmul.mubr.f32.gmra.mrb[12].mxu1 %v9179_v30  ;;  %6219 = vmatprep.mubr.f32.mxu0 %v8910_v3  ;;  %v9209_v56 = vsel %vm448_vm1, %v490_v41, %v492_v32  ;;  %v10383_v41 = vld [vmem:[#allocation17_spill] sm:$0xff]  ;;  %v10385_v32 = vld [vmem:[#allocation18_spill] sm:$0xff] }
  0xb6   : > { %6539 = vmatprep.mubr.f32.mxu1 %v9183_v50  ;;  %7457 = vmatpush3.bf16.msra.mxu0 %v7454_v48  ;;  %v9203_v50 = vpack.c.bf16 %v2533_v63, %v2532_v46  ;;  %10377 = vst [vmem:[#allocation11_spill] sm:$0xff] %v9209_v56  ;;  %v10378_v48 = vld [vmem:[#allocation13_spill] sm:$0xff]  ;;  %v500_v46 = vrot.slane %v10381_v12, 2  ;;  %v10382_v63 = vld [vmem:[#allocation16_spill] sm:$0xff]  ;;  %v502_v44 = vrot.slane %v10385_v32, 2 }
  0xb7   : > { %7585 = vmatpush3.bf16.msra.mxu1 %v7582_v34  ;;  %7459 = vmatprep.subr.bf16.mxu0 %v7458_v1  ;;  %v497_v9 = vrot.slane %v10378_v48, 2  ;;  %v10380_v34 = vld [vmem:[#allocation14_spill] sm:$0xff] }
  0xb8   : > { %6220 = vmatmul.mubr.f32.gmra.mrb[14].mxu0 %v10375_v18  ;;  %7587 = vmatprep.subr.bf16.mxu1 %v7586_v38  ;;  %v499_v59 = vrot.slane %v10380_v34, 2 }
  0xb9   : > { %6540 = vmatmul.mubr.f32.gmra.mrb[14].mxu1 %v9192_v43  ;;  %6222 = vmatprep.mubr.f32.mxu0 %v10376_v10  ;;  %v10388_v43 = vld [vmem:[#allocation20_spill] sm:$0xff] }
  0xba   : > { %6542 = vmatprep.mubr.f32.mxu1 %v9196_v62  ;;  %7461 = vmatpush3.bf16.msra.mxu0 %v7458_v1  ;;  %v9224_v1 = vsel %vm448_vm1, %v495_v7, %v497_v9  ;;  %v9228_v48 = vsel %vm448_vm1, %v499_v59, %v500_v46  ;;  %v505_v30 = vrot.slane %v10388_v43, 2  ;;  %v9237_v7 = vsel %vm448_vm1, %v500_v46, %v502_v44  ;;  %v10392_v9 = vld [vmem:[#allocation23_spill] sm:$0xff]  ;;  %v10399_v44 = vld [vmem:[#allocation28_spill] sm:$0xff] }
  0xbb   : > { %7589 = vmatpush3.bf16.msra.mxu1 %v7586_v38  ;;  %7463 = vmatprep.subr.bf16.mxu0 %v9200_v23  ;;  %10384 = vst [vmem:[#allocation13_spill] sm:$0xff] %v9224_v1  ;;  %10386 = vst [vmem:[#allocation14_spill] sm:$0xff] %v9228_v48  ;;  %v10387_v38 = vld [vmem:[#allocation19_spill] sm:$0xff]  ;;  %v507_v32 = vrot.slane %v10392_v9, 2  ;;  %v512_v9 = vrot.slane %v10399_v44, 2 }
  0xbc   : > { %6223 = vmatmul.mubr.f32.gmra.mrb[16].mxu0 %v10382_v63  ;;  %7591 = vmatprep.subr.bf16.mxu1 %v9203_v50  ;;  %v504_v62 = vrot.slane %v10387_v38, 2  ;;  %10391 = vst [vmem:[#allocation15_spill] sm:$0xff] %v9237_v7 }
  0xbd   : > { %6543 = vmatmul.mubr.f32.gmra.mrb[16].mxu1 %v9209_v56  ;;  %6225 = vmatprep.mubr.f32.mxu0 %v10383_v41  ;;  %v10390_v56 = vld [vmem:[#allocation22_spill] sm:$0xff]  ;;  %v9250_v46 = vsel %vm448_vm1, %v505_v30, %v507_v32  ;;  %v10404_v32 = vld [vmem:[#allocation32_spill] sm:$0xff] }
  0xbe   : > { %6545 = vmatprep.mubr.f32.mxu1 %v9213_v36  ;;  %v9241_v59 = vsel %vm448_vm1, %v504_v62, %v505_v30  ;;  %v10394_v36 = vld [vmem:[#allocation24_spill] sm:$0xff]  ;;  %10398 = vst [vmem:[#allocation17_spill] sm:$0xff] %v9250_v46  ;;  %v9263_v30 = vsel %vm448_vm1, %v510_v57, %v512_v9  ;;  %v517_v44 = vrot.slane %v10404_v32, 2  ;;  %v522_v9 = vrot.slane %v9053_v28, 2  ;;  %v10408_v32 = vld [vmem:[#allocation35_spill] sm:$0xff] }
  0xbf   : > { %10393 = vst [vmem:[#allocation16_spill] sm:$0xff] %v9241_v59  ;;  %v509_v51 = vrot.slane %v10394_v36, 2  ;;  %10403 = vst [vmem:[#allocation19_spill] sm:$0xff] %v9263_v30 }
  0xc0   : > { %6226 = vmatmul.mubr.f32.gmra.mrb[18].mxu0 %v10389_v13 }
  0xc1   : > { %6546 = vmatmul.mubr.f32.gmra.mrb[18].mxu1 %v9224_v1  ;;  %6228 = vmatprep.mubr.f32.mxu0 %v10390_v56  ;;  %v10397_v1 = vld [vmem:[#allocation27_spill] sm:$0xff]  ;;  %v9254_v62 = vsel %vm448_vm1, %v509_v51, %v510_v57  ;;  %v9276_v57 = vsel %vm448_vm1, %v515_v0, %v517_v44 }
  0xc2   : > { %6548 = vmatprep.mubr.f32.mxu1 %v9228_v48  ;;  %10400 = vst [vmem:[#allocation18_spill] sm:$0xff] %v9254_v62  ;;  %v514_v48 = vrot.slane %v9013_v31, 2  ;;  %10406 = vst [vmem:[#allocation21_spill] sm:$0xff] %v9276_v57  ;;  %v10413_v44 = vld [vmem:[#allocation39_spill] sm:$0xff] }
  0xc3   : > { %v527_v28 = vrot.slane %v10413_v44, 2  ;;  %v10419_v44 = vld [vmem:[#allocation8_spill] sm:$0xff] }
  0xc4   : > { %6229 = vmatmul.mubr.f32.gmra.mrb[20].mxu0 %v10396_v4  ;;  %v9267_v51 = vsel %vm448_vm1, %v514_v48, %v515_v0  ;;  %v9289_v0 = vsel %vm448_vm1, %v520_v21, %v522_v9  ;;  %v1407_v9 = vld [vmem:[#allocation2 + $0x198] sm:$0xff] }
  0xc5   : > { %6549 = vmatmul.mubr.f32.gmra.mrb[20].mxu1 %v9237_v7  ;;  %6231 = vmatprep.mubr.f32.mxu0 %v10397_v1  ;;  %v10402_v7 = vld [vmem:[#allocation31_spill] sm:$0xff]  ;;  %10405 = vst [vmem:[#allocation20_spill] sm:$0xff] %v9267_v51  ;;  %10412 = vst [vmem:[#allocation23_spill] sm:$0xff] %v9289_v0 }
  0xc6   : > { %6551 = vmatprep.mubr.f32.mxu1 %v9241_v59  ;;  %v519_v59 = vrot.slane %v9035_v25, 2  ;;  %v10410_v25 = vld [vmem:[#allocation37_spill] sm:$0xff] }
  0xc8   : > { %6232 = vmatmul.mubr.f32.gmra.mrb[22].mxu0 %v10401_v54  ;;  %v9280_v48 = vsel %vm448_vm1, %v519_v59, %v520_v21  ;;  %v1406_v21 = vld [vmem:[#allocation2 + $0x190] sm:$0xff] }
  0xc9   : > { %6552 = vmatmul.mubr.f32.gmra.mrb[22].mxu1 %v9250_v46  ;;  %6234 = vmatprep.mubr.f32.mxu0 %v10402_v7  ;;  %10407 = vst [vmem:[#allocation22_spill] sm:$0xff] %v9280_v48  ;;  %v10409_v46 = vld [vmem:[#allocation36_spill] sm:$0xff] }
  0xca   : > { %6554 = vmatprep.mubr.f32.mxu1 %v9254_v62  ;;  %v524_v62 = vrot.slane %v10408_v32, 2  ;;  %v525_v39 = vrot.slane %v10409_v46, 2  ;;  %v10416_v46 = vld [vmem:[#allocation41_spill] sm:$0xff]  ;;  %v2535_v32 = vld [vmem:[#allocation2 + $0x398] sm:$0xff] }
  0xcc   : > { %6235 = vmatmul.mubr.f32.gmra.mrb[24].mxu0 %v9044_v55  ;;  %v9293_v59 = vsel %vm448_vm1, %v524_v62, %v525_v39  ;;  %v2534_v62 = vld [vmem:[#allocation2 + $0x390] sm:$0xff] }
  0xcd   : > { %6555 = vmatmul.mubr.f32.gmra.mrb[24].mxu1 %v9263_v30  ;;  %6237 = vmatprep.mubr.f32.mxu0 %v9048_v17  ;;  %v10411_v30 = vld [vmem:[#allocation38_spill] sm:$0xff]  ;;  %10414 = vst [vmem:[#allocation24_spill] sm:$0xff] %v9293_v59 }
  0xce   : > { %6557 = vmatprep.mubr.f32.mxu1 %v9267_v51  ;;  %v10415_v51 = vld [vmem:[#allocation40_spill] sm:$0xff] }
  0xd0   : > { %6238 = vmatmul.mubr.f32.gmra.mrb[26].mxu0 %v10410_v25 }
  0xd1   : > { %6558 = vmatmul.mubr.f32.gmra.mrb[26].mxu1 %v9276_v57  ;;  %6240 = vmatprep.mubr.f32.mxu0 %v10411_v30  ;;  %v9300_v57 = vsel %vm448_vm1, %v525_v39, %v527_v28  ;;  %v1409_v30 = vld [vmem:[#allocation2 + $0x1a8] sm:$0xff]  ;;  %v2536_v39 = vld [vmem:[#allocation2 + $0x3a0] sm:$0xff] }
  0xd2   : > { %6560 = vmatprep.mubr.f32.mxu1 %v9280_v48  ;;  %10417 = vst [vmem:[#allocation26_spill] sm:$0xff] %v9300_v57  ;;  %v10418_v48 = vld [vmem:[#allocation42_spill] sm:$0xff]  ;;  %v2537_v28 = vld [vmem:[#allocation2 + $0x3a8] sm:$0xff] }
  0xd4   : > { %6241 = vmatmul.mubr.f32.gmra.mrb[28].mxu0 %v10415_v51  ;;  %v10420_v51 = vld [vmem:[#allocation9_spill] sm:$0xff] }
  0xd5   : > { %6561 = vmatmul.mubr.f32.gmra.mrb[28].mxu1 %v9289_v0  ;;  %6243 = vmatprep.mubr.f32.mxu0 %v10416_v46  ;;  %v7466_v0 = vpack.c.bf16 %v1407_v9, %v1406_v21  ;;  %v7594_v46 = vpack.c.bf16 %v2535_v32, %v2534_v62  ;;  %v1410_v32 = vld [vmem:[#allocation2 + $0x1b0] sm:$0xff]  ;;  %v1411_v21 = vld [vmem:[#allocation2 + $0x1b8] sm:$0xff] }
  0xd6   : > { %6563 = vmatprep.mubr.f32.mxu1 %v9293_v59  ;;  %v1408_v59 = vld [vmem:[#allocation2 + $0x1a0] sm:$0xff]  ;;  %v2539_v9 = vld [vmem:[#allocation2 + $0x3b8] sm:$0xff] }
  0xd7   : > { %v1415_v62 = vld [vmem:[#allocation2 + $0x1d8] sm:$0xff] }
  0xd8   : > { %6244 = vmatmul.mubr.f32.gmra.mrb[30].mxu0 %v10418_v48 }
  0xd9   : > { %6564 = vmatmul.mubr.f32.gmra.mrb[30].mxu1 %v9300_v57  ;;  %6278 = vmatprep.mubr.f32.mxu0 %v10419_v44  ;;  %v7470_v44 = vpack.c.bf16 %v1409_v30, %v1408_v59  ;;  %v1413_v30 = vld [vmem:[#allocation2 + $0x1c8] sm:$0xff]  ;;  %v2540_v59 = vld [vmem:[#allocation2 + $0x3c0] sm:$0xff] }
  0xda   : > { %6598 = vmatprep.mubr.f32.mxu1 %v8787_v20 }
  0xdc   : > { %6279 = vmatmul.mubr.f32.vlgmr.msra.gmra.mrb[0].mxu0 %v10420_v51  ;;  %v7598_v51 = vpack.c.bf16 %v2537_v28, %v2536_v39  ;;  %v2542_v39 = vld [vmem:[#allocation2 + $0x3d0] sm:$0xff] }
  0xdd   : > { %6599 = vmatmul.mubr.f32.vlgmr.msra.gmra.mrb[0].mxu1 %v8795_v27  ;;  %7465 = vmatpush3.bf16.msra.mxu0 %v9200_v23  ;;  %v2538_v23 = vld [vmem:[#allocation2 + $0x3b0] sm:$0xff] }
  0xde   : > { %7593 = vmatpush3.bf16.msra.mxu1 %v9203_v50  ;;  %6281 = vmatprep.mubr.f32.mxu0 %v8764_v5  ;;  %v7474_v5 = vpack.c.bf16 %v1411_v21, %v1410_v32  ;;  %v1412_v50 = vld [vmem:[#allocation2 + $0x1c0] sm:$0xff] }
  0xdf   : > { %6601 = vmatprep.mubr.f32.mxu1 %v8800_v29  ;;  %7467 = vmatprep.subr.bf16.mxu0 %v7466_v0  ;;  %v2544_v32 = vld [vmem:[#allocation2 + $0x3e0] sm:$0xff] }
  0xe0   : > { %6282 = vmatmul.mubr.f32.gmra.mrb[2].mxu0 %v8769_v8  ;;  %7595 = vmatprep.subr.bf16.mxu1 %v7594_v46  ;;  %v7602_v8 = vpack.c.bf16 %v2539_v9, %v2538_v23  ;;  %v1418_v23 = vld [vmem:[#allocation2 + $0x1f0] sm:$0xff]  ;;  %v1419_v9 = vld [vmem:[#allocation2 + $0x1f8] sm:$0xff] }
  0xe1   : > { %6602 = vmatmul.mubr.f32.gmra.mrb[2].mxu1 %v8818_v42  ;;  %6284 = vmatprep.mubr.f32.mxu0 %v8783_v19  ;;  %v2541_v19 = vld [vmem:[#allocation2 + $0x3c8] sm:$0xff] }
  0xe2   : > { %6604 = vmatprep.mubr.f32.mxu1 %v8822_v45  ;;  %7469 = vmatpush3.bf16.msra.mxu0 %v7466_v0  ;;  %v1414_v0 = vld [vmem:[#allocation2 + $0x1d0] sm:$0xff] }
  0xe3   : > { %7597 = vmatpush3.bf16.msra.mxu1 %v7594_v46  ;;  %7471 = vmatprep.subr.bf16.mxu0 %v7470_v44  ;;  %v7478_v46 = vpack.c.bf16 %v1413_v30, %v1412_v50  ;;  %v7482_v28 = vpack.c.bf16 %v1415_v62, %v1414_v0  ;;  %v2839_v50 = vld [vmem:[#allocation2 + $0x400] sm:$0xff]  ;;  %v2840_v30 = vld [vmem:[#allocation2 + $0x408] sm:$0xff] }
  0xe4   : > { %6285 = vmatmul.mubr.f32.gmra.mrb[4].mxu0 %v8790_v22  ;;  %7599 = vmatprep.subr.bf16.mxu1 %v7598_v51  ;;  %v7606_v22 = vpack.c.bf16 %v2541_v19, %v2540_v59  ;;  %v3968_v59 = vld [vmem:[#allocation2 + $0x600] sm:$0xff]  ;;  %v7622_v19 = vpack.c.bf16 %v2840_v30, %v2839_v50  ;;  %v10428_v0 = vld [vmem:[#allocation41_spill] sm:$0xff] }
  0xe5   : > { %6605 = vmatmul.mubr.f32.gmra.mrb[4].mxu1 %v8840_v58  ;;  %6287 = vmatprep.mubr.f32.mxu0 %v8808_v33  ;;  %v2543_v33 = vld [vmem:[#allocation2 + $0x3d8] sm:$0xff] }
  0xe6   : > { %6607 = vmatprep.mubr.f32.mxu1 %v8844_v60  ;;  %7473 = vmatpush3.bf16.msra.mxu0 %v7470_v44  ;;  %v1416_v44 = vld [vmem:[#allocation2 + $0x1e0] sm:$0xff] }
  0xe7   : > { %7601 = vmatpush3.bf16.msra.mxu1 %v7598_v51  ;;  %7475 = vmatprep.subr.bf16.mxu0 %v7474_v5  ;;  %v1417_v51 = vld [vmem:[#allocation2 + $0x1e8] sm:$0xff] }
  0xe8   : > { %6288 = vmatmul.mubr.f32.gmra.mrb[6].mxu0 %v8812_v35  ;;  %7603 = vmatprep.subr.bf16.mxu1 %v7602_v8  ;;  %v7610_v35 = vpack.c.bf16 %v2543_v33, %v2542_v39  ;;  %v7486_v21 = vpack.c.bf16 %v1417_v51, %v1416_v44  ;;  %v10429_v33 = vld [vmem:[#allocation36_spill] sm:$0xff]  ;;  %v2842_v44 = vld [vmem:[#allocation2 + $0x418] sm:$0xff]  ;;  %v3970_v51 = vld [vmem:[#allocation2 + $0x610] sm:$0xff] }
  0xe9   : > { %6608 = vmatmul.mubr.f32.gmra.mrb[6].mxu1 %v8862_v14  ;;  %6290 = vmatprep.mubr.f32.mxu0 %v8830_v49  ;;  %v2545_v49 = vld [vmem:[#allocation2 + $0x3e8] sm:$0xff] }
  0xea   : > { %6610 = vmatprep.mubr.f32.mxu1 %v8866_v16  ;;  %7477 = vmatpush3.bf16.msra.mxu0 %v7474_v5  ;;  %v2546_v5 = vld [vmem:[#allocation2 + $0x3f0] sm:$0xff] }
  0xeb   : > { %7605 = vmatpush3.bf16.msra.mxu1 %v7602_v8  ;;  %7479 = vmatprep.subr.bf16.mxu0 %v7478_v46  ;;  %v7490_v8 = vpack.c.bf16 %v1419_v9, %v1418_v23  ;;  %v2843_v23 = vld [vmem:[#allocation2 + $0x420] sm:$0xff]  ;;  %v2844_v9 = vld [vmem:[#allocation2 + $0x428] sm:$0xff] }
  0xec   : > { %6291 = vmatmul.mubr.f32.gmra.mrb[8].mxu0 %v8834_v52  ;;  %7607 = vmatprep.subr.bf16.mxu1 %v7606_v22  ;;  %v7614_v52 = vpack.c.bf16 %v2545_v49, %v2544_v32  ;;  %v3971_v32 = vld [vmem:[#allocation2 + $0x618] sm:$0xff]  ;;  %v7630_v50 = vpack.c.bf16 %v2844_v9, %v2843_v23  ;;  %v3978_v23 = vld [vmem:[#allocation2 + $0x650] sm:$0xff] }
  0xed   : > { %6611 = vmatmul.mubr.f32.gmra.mrb[8].mxu1 %v8884_v37  ;;  %6293 = vmatprep.mubr.f32.mxu0 %v8852_v2  ;;  %v2547_v2 = vld [vmem:[#allocation2 + $0x3f8] sm:$0xff] }
  0xee   : > { %6613 = vmatprep.mubr.f32.mxu1 %v8888_v40  ;;  %7481 = vmatpush3.bf16.msra.mxu0 %v7478_v46  ;;  %v10426_v46 = vld [vmem:[#allocation40_spill] sm:$0xff]  ;;  %v10430_v49 = vld [vmem:[#allocation43_spill] sm:$0xff] }
  0xef   : > { %7609 = vmatpush3.bf16.msra.mxu1 %v7606_v22  ;;  %7483 = vmatprep.subr.bf16.mxu0 %v7482_v28  ;;  %v10427_v22 = vld [vmem:[#allocation35_spill] sm:$0xff] }
  0xf0   : > { %6294 = vmatmul.mubr.f32.gmra.mrb[10].mxu0 %v8856_v6  ;;  %7611 = vmatprep.subr.bf16.mxu1 %v7610_v35  ;;  %v7618_v6 = vpack.c.bf16 %v2547_v2, %v2546_v5  ;;  %v10431_v5 = vld [vmem:[#allocation44_spill] sm:$0xff]  ;;  %v3979_v9 = vld [vmem:[#allocation2 + $0x658] sm:$0xff] }
  0xf1   : > { %6614 = vmatmul.mubr.f32.gmra.mrb[10].mxu1 %v8906_v61  ;;  %6296 = vmatprep.mubr.f32.mxu0 %v8874_v24  ;;  %v3969_v24 = vld [vmem:[#allocation2 + $0x608] sm:$0xff]  ;;  %v3972_v2 = vld [vmem:[#allocation2 + $0x620] sm:$0xff] }
  0xf2   : > { %6616 = vmatprep.mubr.f32.mxu1 %v8910_v3  ;;  %7485 = vmatpush3.bf16.msra.mxu0 %v7482_v28 }
  0xf3   : > { %7613 = vmatpush3.bf16.msra.mxu1 %v7610_v35  ;;  %7487 = vmatprep.subr.bf16.mxu0 %v7486_v21  ;;  %v2841_v35 = vld [vmem:[#allocation2 + $0x410] sm:$0xff] }
  0xf4   : > { %6297 = vmatmul.mubr.f32.gmra.mrb[12].mxu0 %v8878_v26  ;;  %7615 = vmatprep.subr.bf16.mxu1 %v7614_v52  ;;  %v7750_v26 = vpack.c.bf16 %v3969_v24, %v3968_v59  ;;  %v2845_v59 = vld [vmem:[#allocation2 + $0x430] sm:$0xff]  ;;  %v2846_v24 = vld [vmem:[#allocation2 + $0x438] sm:$0xff] }
  0xf5   : > { %6617 = vmatmul.mubr.f32.gmra.mrb[12].mxu1 %v10375_v18  ;;  %6299 = vmatprep.mubr.f32.mxu0 %v8896_v47  ;;  %v10421_v47 = vld [vmem:[#allocation25_spill] sm:$0xff] }
  0xf6   : > { %6619 = vmatprep.mubr.f32.mxu1 %v10376_v10  ;;  %7489 = vmatpush3.bf16.msra.mxu0 %v7486_v21  ;;  %v7626_v21 = vpack.c.bf16 %v2842_v44, %v2841_v35  ;;  %v10436_v35 = vld [vmem:[#allocation49_spill] sm:$0xff] }
  0xf7   : > { %7617 = vmatpush3.bf16.msra.mxu1 %v7614_v52  ;;  %7491 = vmatprep.subr.bf16.mxu0 %v7490_v8  ;;  %v7754_v52 = vpack.c.bf16 %v3971_v32, %v3970_v51  ;;  %v2849_v32 = vld [vmem:[#allocation2 + $0x450] sm:$0xff] }
  0xf8   : > { %6300 = vmatmul.mubr.f32.gmra.mrb[14].mxu0 %v8900_v53  ;;  %7619 = vmatprep.subr.bf16.mxu1 %v7618_v6  ;;  %v10422_v53 = vld [vmem:[#allocation29_spill] sm:$0xff] }
  0xf9   : > { %6620 = vmatmul.mubr.f32.gmra.mrb[14].mxu1 %v10382_v63  ;;  %6302 = vmatprep.mubr.f32.mxu0 %v8918_v11  ;;  %v9358_v11 = vld [vmem:[%s8733_s30 + $0x180] sm:$0xff] }
  0xfa   : > { %6622 = vmatprep.mubr.f32.mxu1 %v10383_v41  ;;  %7493 = vmatpush3.bf16.msra.mxu0 %v7490_v8  ;;  %v3973_v8 = vld [vmem:[#allocation2 + $0x628] sm:$0xff] }
  0xfb   : > { %7621 = vmatpush3.bf16.msra.mxu1 %v7618_v6  ;;  %7623 = vmatprep.subr.bf16.mxu0 %v7622_v19  ;;  %v10432_v6 = vld [vmem:[#allocation45_spill] sm:$0xff]  ;;  %v7758_v30 = vpack.c.bf16 %v3973_v8, %v3972_v2  ;;  %v10438_v2 = vld [vmem:[#allocation51_spill] sm:$0xff] }
  0xfc   : > { %6303 = vmatmul.mubr.f32.gmra.mrb[16].mxu0 %v8922_v15  ;;  %7751 = vmatprep.subr.bf16.mxu1 %v7750_v26  ;;  %v9361_v15 = vld [vmem:[%s8733_s30 + $0x188] sm:$0xff] }
  0xfd   : > { %6623 = vmatmul.mubr.f32.gmra.mrb[16].mxu1 %v10389_v13  ;;  %6305 = vmatprep.mubr.f32.mxu0 %v10380_v34  ;;  %v402_v34 = vrot.slane %v9358_v11, 1 }
  0xfe   : > { %6625 = vmatprep.mubr.f32.mxu1 %v10390_v56 }
 0x100   : > { %6306 = vmatmul.mubr.f32.gmra.mrb[18].mxu0 %v10381_v12  ;;  %v403_v12 = vrot.slane %v9361_v15, 1 }
 0x101   : > { %6626 = vmatmul.mubr.f32.gmra.mrb[18].mxu1 %v10396_v4  ;;  %6308 = vmatprep.mubr.f32.mxu0 %v10387_v38  ;;  %v9369_v38 = vld [vmem:[%s8733_s30 + $0x190] sm:$0x3] }
 0x102   : > { %6628 = vmatprep.mubr.f32.mxu1 %v10397_v1  ;;  %v405_v62 = vrot.slane %v9369_v38, 1  ;;  %v9377_v39 = vsel %vm321_vm0, %v402_v34, %v403_v12 }
 0x104   : > { %6309 = vmatmul.mubr.f32.gmra.mrb[20].mxu0 %v10388_v43  ;;  %v10423_v43 = vld [vmem:[#allocation33_spill] sm:$0xff]  ;;  %v9384_v28 = vsel %vm321_vm0, %v403_v12, %v405_v62  ;;  %v2847_v12 = vld [vmem:[#allocation2 + $0x440] sm:$0xff] }
 0x105   : > { %6629 = vmatmul.mubr.f32.gmra.mrb[20].mxu1 %v10401_v54  ;;  %6311 = vmatprep.mubr.f32.mxu0 %v10394_v36  ;;  %v10424_v36 = vld [vmem:[#allocation38_spill] sm:$0xff]  ;;  %v3976_v62 = vld [vmem:[#allocation2 + $0x640] sm:$0xff] }
 0x106   : > { %6631 = vmatprep.mubr.f32.mxu1 %v10402_v7 }
 0x108   : > { %6312 = vmatmul.mubr.f32.gmra.mrb[22].mxu0 %v10421_v47  ;;  %v10433_v47 = vld [vmem:[#allocation46_spill] sm:$0xff] }
 0x109   : > { %6632 = vmatmul.mubr.f32.gmra.mrb[22].mxu1 %v9044_v55  ;;  %6314 = vmatprep.mubr.f32.mxu0 %v9013_v31  ;;  %v10425_v31 = vld [vmem:[#allocation34_spill] sm:$0xff] }
 0x10a   : > { %6634 = vmatprep.mubr.f32.mxu1 %v9048_v17 }
 0x10c   : > { %6315 = vmatmul.mubr.f32.gmra.mrb[24].mxu0 %v10422_v53  ;;  %v3975_v53 = vld [vmem:[#allocation2 + $0x638] sm:$0xff] }
 0x10d   : > { %6635 = vmatmul.mubr.f32.gmra.mrb[24].mxu1 %v10410_v25  ;;  %6317 = vmatprep.mubr.f32.mxu0 %v10423_v43  ;;  %v10434_v43 = vld [vmem:[#allocation47_spill] sm:$0xff] }
 0x10e   : > { %6637 = vmatprep.mubr.f32.mxu1 %v10424_v36 }
 0x110   : > { %6318 = vmatmul.mubr.f32.gmra.mrb[26].mxu0 %v10425_v31  ;;  %v2848_v31 = vld [vmem:[#allocation2 + $0x448] sm:$0xff] }
 0x111   : > { %6638 = vmatmul.mubr.f32.gmra.mrb[26].mxu1 %v10426_v46  ;;  %6320 = vmatprep.mubr.f32.mxu0 %v10427_v22  ;;  %v10435_v22 = vld [vmem:[#allocation48_spill] sm:$0xff]  ;;  %v7638_v44 = vpack.c.bf16 %v2848_v31, %v2847_v12  ;;  %v10440_v12 = vld [vmem:[#allocation53_spill] sm:$0xff]  ;;  %v2853_v31 = vld [vmem:[#allocation2 + $0x470] sm:$0xff] }
 0x112   : > { %6640 = vmatprep.mubr.f32.mxu1 %v10428_v0 }
 0x114   : > { %6321 = vmatmul.mubr.f32.gmra.mrb[28].mxu0 %v10429_v33  ;;  %v3977_v33 = vld [vmem:[#allocation2 + $0x648] sm:$0xff] }
 0x115   : > { %6641 = vmatmul.mubr.f32.gmra.mrb[28].mxu1 %v10418_v48  ;;  %6323 = vmatprep.mubr.f32.mxu0 %v9358_v11  ;;  %v7766_v51 = vpack.c.bf16 %v3977_v33, %v3976_v62  ;;  %v2854_v62 = vld [vmem:[#allocation2 + $0x478] sm:$0xff]  ;;  %v10441_v33 = vld [vmem:[#allocation54_spill] sm:$0xff] }
 0x116   : > { %6643 = vmatprep.mubr.f32.mxu1 %v9377_v39 }
 0x118   : > { %6324 = vmatmul.mubr.f32.gmra.mrb[30].mxu0 %v9361_v15 }
 0x119   : > { %6644 = vmatmul.mubr.f32.gmra.mrb[30].mxu1 %v9384_v28  ;;  %6358 = vmatprep.mubr.f32.mxu0 %v8787_v20 }
 0x11a   : > { %6678 = vmatprep.mubr.f32.mxu1 %v10430_v49 }
 0x11c   : > { %6359 = vmatmul.mubr.f32.vlgmr.msra.gmra.mrb[0].mxu0 %v8795_v27 }
 0x11d   : > { %6679 = vmatmul.mubr.f32.vlgmr.msra.gmra.mrb[0].mxu1 %v10431_v5  ;;  %7625 = vmatpush3.bf16.msra.mxu0 %v7622_v19  ;;  %v3974_v19 = vld [vmem:[#allocation2 + $0x630] sm:$0xff] }
 0x11e   : > { %7753 = vmatpush3.bf16.msra.mxu1 %v7750_v26  ;;  %6361 = vmatprep.mubr.f32.mxu0 %v8800_v29  ;;  %v7634_v26 = vpack.c.bf16 %v2846_v24, %v2845_v59  ;;  %v7762_v34 = vpack.c.bf16 %v3975_v53, %v3974_v19  ;;  %v2852_v59 = vld [vmem:[#allocation2 + $0x468] sm:$0xff]  ;;  %v10439_v24 = vld [vmem:[#allocation52_spill] sm:$0xff] }
 0x11f   : > { %6681 = vmatprep.mubr.f32.mxu1 %v10432_v6  ;;  %7627 = vmatprep.subr.bf16.mxu0 %v7626_v21  ;;  %v3980_v19 = vld [vmem:[#allocation2 + $0x660] sm:$0xff]  ;;  %v3981_v53 = vld [vmem:[#allocation2 + $0x668] sm:$0xff] }
 0x120   : > { %6362 = vmatmul.mubr.f32.gmra.mrb[2].mxu0 %v8818_v42  ;;  %7755 = vmatprep.subr.bf16.mxu1 %v7754_v52 }
 0x121   : > { %6682 = vmatmul.mubr.f32.gmra.mrb[2].mxu1 %v10433_v47  ;;  %6364 = vmatprep.mubr.f32.mxu0 %v8822_v45 }
 0x122   : > { %6684 = vmatprep.mubr.f32.mxu1 %v10434_v43  ;;  %7629 = vmatpush3.bf16.msra.mxu0 %v7626_v21  ;;  %v2850_v21 = vld [vmem:[#allocation2 + $0x458] sm:$0xff] }
 0x123   : > { %7757 = vmatpush3.bf16.msra.mxu1 %v7754_v52  ;;  %7631 = vmatprep.subr.bf16.mxu0 %v7630_v50  ;;  %v10437_v52 = vld [vmem:[#allocation50_spill] sm:$0xff]  ;;  %v7642_v8 = vpack.c.bf16 %v2850_v21, %v2849_v32  ;;  %v3983_v21 = vld [vmem:[#allocation2 + $0x678] sm:$0xff] }
 0x124   : > { %6365 = vmatmul.mubr.f32.gmra.mrb[4].mxu0 %v8840_v58  ;;  %7759 = vmatprep.subr.bf16.mxu1 %v7758_v30  ;;  %v3982_v32 = vld [vmem:[#allocation2 + $0x670] sm:$0xff] }
 0x125   : > { %6685 = vmatmul.mubr.f32.gmra.mrb[4].mxu1 %v10435_v22  ;;  %6367 = vmatprep.mubr.f32.mxu0 %v8844_v60 }
 0x126   : > { %6687 = vmatprep.mubr.f32.mxu1 %v10436_v35  ;;  %7633 = vmatpush3.bf16.msra.mxu0 %v7630_v50  ;;  %v7770_v50 = vpack.c.bf16 %v3979_v9, %v3978_v23  ;;  %v10442_v23 = vld [vmem:[#allocation55_spill] sm:$0xff]  ;;  %v3113_v9 = vld [vmem:[#allocation2 + $0x480] sm:$0xff] }
 0x127   : > { %7761 = vmatpush3.bf16.msra.mxu1 %v7758_v30  ;;  %7635 = vmatprep.subr.bf16.mxu0 %v7634_v26  ;;  %v2851_v30 = vld [vmem:[#allocation2 + $0x460] sm:$0xff] }
 0x128   : > { %6368 = vmatmul.mubr.f32.gmra.mrb[6].mxu0 %v8862_v14  ;;  %7763 = vmatprep.subr.bf16.mxu1 %v7762_v34 }
 0x129   : > { %6688 = vmatmul.mubr.f32.gmra.mrb[6].mxu1 %v10437_v52  ;;  %6370 = vmatprep.mubr.f32.mxu0 %v8866_v16 }
 0x12a   : > { %6690 = vmatprep.mubr.f32.mxu1 %v10438_v2  ;;  %7637 = vmatpush3.bf16.msra.mxu0 %v7634_v26  ;;  %v7646_v26 = vpack.c.bf16 %v2852_v59, %v2851_v30  ;;  %v3114_v30 = vld [vmem:[#allocation2 + $0x488] sm:$0xff]  ;;  %v10443_v59 = vld [vmem:[#allocation56_spill] sm:$0xff] }
 0x12b   : > { %7765 = vmatpush3.bf16.msra.mxu1 %v7762_v34  ;;  %7639 = vmatprep.subr.bf16.mxu0 %v7638_v44  ;;  %v7774_v34 = vpack.c.bf16 %v3981_v53, %v3980_v19  ;;  %v4242_v19 = vld [vmem:[#allocation2 + $0x680] sm:$0xff]  ;;  %v4243_v53 = vld [vmem:[#allocation2 + $0x688] sm:$0xff] }
 0x12c   : > { %6371 = vmatmul.mubr.f32.gmra.mrb[8].mxu0 %v8884_v37  ;;  %7767 = vmatprep.subr.bf16.mxu1 %v7766_v51 }
 0x12d   : > { %6691 = vmatmul.mubr.f32.gmra.mrb[8].mxu1 %v10439_v24  ;;  %6373 = vmatprep.mubr.f32.mxu0 %v8888_v40 }
 0x12e   : > { %6693 = vmatprep.mubr.f32.mxu1 %v10440_v12  ;;  %7641 = vmatpush3.bf16.msra.mxu0 %v7638_v44  ;;  %v7650_v44 = vpack.c.bf16 %v2854_v62, %v2853_v31  ;;  %v10445_v31 = vld [vmem:[#allocation11_spill] sm:$0xff]  ;;  %v10446_v62 = vld [vmem:[#allocation12_spill] sm:$0xff] }
 0x12f   : > { %7769 = vmatpush3.bf16.msra.mxu1 %v7766_v51  ;;  %7643 = vmatprep.subr.bf16.mxu0 %v7642_v8  ;;  %v7778_v51 = vpack.c.bf16 %v3983_v21, %v3982_v32  ;;  %v10449_v32 = vld [vmem:[#allocation15_spill] sm:$0xff]  ;;  %v10450_v21 = vld [vmem:[#allocation16_spill] sm:$0xff] }
 0x130   : > { %6374 = vmatmul.mubr.f32.gmra.mrb[10].mxu0 %v8906_v61  ;;  %7771 = vmatprep.subr.bf16.mxu1 %v7770_v50 }
 0x131   : > { %6694 = vmatmul.mubr.f32.gmra.mrb[10].mxu1 %v10441_v33  ;;  %6376 = vmatprep.mubr.f32.mxu0 %v8910_v3  ;;  %v10444_v33 = vld [vmem:[#allocation57_spill] sm:$0xff] }
 0x132   : > { %6696 = vmatprep.mubr.f32.mxu1 %v10442_v23  ;;  %7645 = vmatpush3.bf16.msra.mxu0 %v7642_v8  ;;  %v7654_v8 = vpack.c.bf16 %v3114_v30, %v3113_v9  ;;  %v10453_v9 = vld [vmem:[#allocation19_spill] sm:$0xff]  ;;  %v10454_v30 = vld [vmem:[#allocation20_spill] sm:$0xff] }
 0x133   : > { %7773 = vmatpush3.bf16.msra.mxu1 %v7770_v50  ;;  %7647 = vmatprep.subr.bf16.mxu0 %v7646_v26  ;;  %v7782_v50 = vpack.c.bf16 %v4243_v53, %v4242_v19  ;;  %v10455_v19 = vld [vmem:[#allocation21_spill] sm:$0xff]  ;;  %v10456_v53 = vld [vmem:[#allocation22_spill] sm:$0xff] }
 0x134   : > { %6377 = vmatmul.mubr.f32.gmra.mrb[12].mxu0 %v10375_v18  ;;  %7775 = vmatprep.subr.bf16.mxu1 %v7774_v34 }
 0x135   : > { %6697 = vmatmul.mubr.f32.gmra.mrb[12].mxu1 %v10443_v59  ;;  %6379 = vmatprep.mubr.f32.mxu0 %v10376_v10 }
 0x136   : > { %6699 = vmatprep.mubr.f32.mxu1 %v10444_v33  ;;  %7649 = vmatpush3.bf16.msra.mxu0 %v7646_v26  ;;  %v10447_v26 = vld [vmem:[#allocation13_spill] sm:$0xff] }
 0x137   : > { %7777 = vmatpush3.bf16.msra.mxu1 %v7774_v34  ;;  %7651 = vmatprep.subr.bf16.mxu0 %v7650_v44  ;;  %v10448_v34 = vld [vmem:[#allocation14_spill] sm:$0xff] }
 0x138   : > { %6380 = vmatmul.mubr.f32.gmra.mrb[14].mxu0 %v10382_v63  ;;  %7779 = vmatprep.subr.bf16.mxu1 %v7778_v51 }
 0x139   : > { %6700 = vmatmul.mubr.f32.gmra.mrb[14].mxu1 %v10445_v31  ;;  %6382 = vmatprep.mubr.f32.mxu0 %v10383_v41 }
 0x13a   : > { %6702 = vmatprep.mubr.f32.mxu1 %v10446_v62  ;;  %7653 = vmatpush3.bf16.msra.mxu0 %v7650_v44  ;;  %v10451_v44 = vld [vmem:[#allocation17_spill] sm:$0xff]  ;;  %v9466_v62 = vld [vmem:[%s8733_s30 + $0x30] sm:$0xff] }
 0x13b   : > { %7781 = vmatpush3.bf16.msra.mxu1 %v7778_v51  ;;  %7655 = vmatprep.subr.bf16.mxu0 %v7654_v8  ;;  %v10452_v51 = vld [vmem:[#allocation18_spill] sm:$0xff] }
 0x13c   : > { %6383 = vmatmul.mubr.f32.gmra.mrb[16].mxu0 %v10389_v13  ;;  %7783 = vmatprep.subr.bf16.mxu1 %v7782_v50 }
 0x13d   : > { %6703 = vmatmul.mubr.f32.gmra.mrb[16].mxu1 %v10447_v26  ;;  %6385 = vmatprep.mubr.f32.mxu0 %v10390_v56  ;;  %v4246_v26 = vld [vmem:[#allocation2 + $0x6a0] sm:$0xff] }
 0x13e   : > { %6705 = vmatprep.mubr.f32.mxu1 %v10448_v34  ;;  %v8462_v34 = vld [vmem:[%s8733_s30 + $0x20] sm:$0xff] }
 0x140   : > { %6386 = vmatmul.mubr.f32.gmra.mrb[18].mxu0 %v10396_v4 }
 0x141   : > { %6706 = vmatmul.mubr.f32.gmra.mrb[18].mxu1 %v10449_v32  ;;  %6388 = vmatprep.mubr.f32.mxu0 %v10397_v1  ;;  %v4245_v32 = vld [vmem:[#allocation2 + $0x698] sm:$0xff] }
 0x142   : > { %6708 = vmatprep.mubr.f32.mxu1 %v10450_v21  ;;  %v532_v21 = vrot.slane %v9369_v38, 2  ;;  %v8461_v38 = vld [vmem:[%s8733_s30 + $0x18] sm:$0xff] }
 0x144   : > { %6389 = vmatmul.mubr.f32.gmra.mrb[20].mxu0 %v10401_v54 }
 0x145   : > { %6709 = vmatmul.mubr.f32.gmra.mrb[20].mxu1 %v10451_v44  ;;  %6391 = vmatprep.mubr.f32.mxu0 %v10402_v7  ;;  %v529_v44 = vrot.slane %v9358_v11, 2 }
 0x146   : > { %6711 = vmatprep.mubr.f32.mxu1 %v10452_v51  ;;  %v530_v51 = vrot.slane %v9361_v15, 2 }
 0x148   : > { %6392 = vmatmul.mubr.f32.gmra.mrb[22].mxu0 %v9044_v55 }
 0x149   : > { %6712 = vmatmul.mubr.f32.gmra.mrb[22].mxu1 %v10453_v9  ;;  %6394 = vmatprep.mubr.f32.mxu0 %v9048_v17  ;;  %v10457_v9 = vld [vmem:[#allocation23_spill] sm:$0xff] }
 0x14a   : > { %6714 = vmatprep.mubr.f32.mxu1 %v10454_v30  ;;  %v10458_v30 = vld [vmem:[#allocation24_spill] sm:$0xff] }
 0x14c   : > { %6395 = vmatmul.mubr.f32.gmra.mrb[24].mxu0 %v10410_v25 }
 0x14d   : > { %6715 = vmatmul.mubr.f32.gmra.mrb[24].mxu1 %v10455_v19  ;;  %6397 = vmatprep.mubr.f32.mxu0 %v10424_v36  ;;  %v9450_v19 = vsel %vm448_vm1, %v529_v44, %v530_v51  ;;  %v4244_v44 = vld [vmem:[#allocation2 + $0x690] sm:$0xff] }
 0x14e   : > { %6717 = vmatprep.mubr.f32.mxu1 %v10456_v53  ;;  %10459 = vst [vmem:[#allocation27_spill] sm:$0xff] %v9450_v19  ;;  %v3116_v53 = vld [vmem:[#allocation2 + $0x498] sm:$0xff] }
 0x150   : > { %6398 = vmatmul.mubr.f32.gmra.mrb[26].mxu0 %v10426_v46 }
 0x151   : > { %6718 = vmatmul.mubr.f32.gmra.mrb[26].mxu1 %v10457_v9  ;;  %6400 = vmatprep.mubr.f32.mxu0 %v10428_v0  ;;  %v9457_v9 = vsel %vm448_vm1, %v530_v51, %v532_v21  ;;  %v3117_v21 = vld [vmem:[#allocation2 + $0x4a0] sm:$0xff]  ;;  %v3118_v51 = vld [vmem:[#allocation2 + $0x4a8] sm:$0xff] }
 0x152   : > { %6720 = vmatprep.mubr.f32.mxu1 %v10458_v30  ;;  %10460 = vst [vmem:[#allocation28_spill] sm:$0xff] %v9457_v9  ;;  %v3115_v30 = vld [vmem:[#allocation2 + $0x490] sm:$0xff] }
 0x154   : > { %6401 = vmatmul.mubr.f32.gmra.mrb[28].mxu0 %v10418_v48 }
 0x155   : > { %6721 = vmatmul.mubr.f32.gmra.mrb[28].mxu1 %v9300_v57  ;;  %6403 = vmatprep.mubr.f32.mxu0 %v9377_v39  ;;  %v7658_v57 = vpack.c.bf16 %v3116_v53, %v3115_v30  ;;  %v7662_v30 = vpack.c.bf16 %v3118_v51, %v3117_v21  ;;  %v9471_v53 = vld [vmem:[%s8733_s30 + $0x38] sm:$0xff]  ;;  %v9481_v51 = vld [vmem:[%s8733_s30 + $0x50] sm:$0xff] }
 0x156   : > { %6723 = vmatprep.mubr.f32.mxu1 %v9450_v19  ;;  %v7786_v19 = vpack.c.bf16 %v4245_v32, %v4244_v44  ;;  %10461 = vst [vmem:[#allocation30_spill] sm:$0xff] %v9471_v53  ;;  %v3120_v32 = vld [vmem:[#allocation2 + $0x4b8] sm:$0xff]  ;;  %10463 = vst [vmem:[#allocation32_spill] sm:$0xff] %v9481_v51 }
 0x157   : > { %v4249_v44 = vld [vmem:[#allocation2 + $0x6b8] sm:$0xff] }
 0x158   : > { %6404 = vmatmul.mubr.f32.gmra.mrb[30].mxu0 %v9384_v28 }
 0x159   : > { %6724 = vmatmul.mubr.f32.gmra.mrb[30].mxu1 %v9457_v9  ;;  %6758 = vmatprep.mubr.f32.mxu0 %v8461_v38  ;;  %v4247_v9 = vld [vmem:[#allocation2 + $0x6a8] sm:$0xff]  ;;  %v4248_v38 = vld [vmem:[#allocation2 + $0x6b0] sm:$0xff] }
 0x15a   : > { %7078 = vmatprep.mubr.f32.mxu1 %v8787_v20 }
 0x15c   : > { %6759 = vmatmul.mubr.f32.vlgmr.msra.gmra.mrb[32].mxu0 %v8462_v34  ;;  %v7790_v34 = vpack.c.bf16 %v4247_v9, %v4246_v26  ;;  %v7794_v26 = vpack.c.bf16 %v4249_v44, %v4248_v38  ;;  %v3121_v9 = vld [vmem:[#allocation2 + $0x4c0] sm:$0xff]  ;;  %v3123_v44 = vld [vmem:[#allocation2 + $0x4d0] sm:$0xff] }
 0x15d   : > { %7079 = vmatmul.mubr.f32.vlgmr.msra.gmra.mrb[32].mxu1 %v8795_v27  ;;  %7657 = vmatpush3.bf16.msra.mxu0 %v7654_v8  ;;  %v3119_v8 = vld [vmem:[#allocation2 + $0x4b0] sm:$0xff] }
 0x15e   : > { %7785 = vmatpush3.bf16.msra.mxu1 %v7782_v50  ;;  %6761 = vmatprep.mubr.f32.mxu0 %v9466_v62  ;;  %v9476_v50 = vld [vmem:[%s8733_s30 + $0x48] sm:$0xff]  ;;  %v7666_v21 = vpack.c.bf16 %v3120_v32, %v3119_v8 }
 0x15f   : > { %7081 = vmatprep.mubr.f32.mxu1 %v8800_v29  ;;  %7659 = vmatprep.subr.bf16.mxu0 %v7658_v57  ;;  %10462 = vst [vmem:[#allocation31_spill] sm:$0xff] %v9476_v50  ;;  %v9491_v32 = vld [vmem:[%s8733_s30 + $0x68] sm:$0xff] }
 0x160   : > { %6762 = vmatmul.mubr.f32.gmra.mrb[34].mxu0 %v9471_v53  ;;  %7787 = vmatprep.subr.bf16.mxu1 %v7786_v19  ;;  %v3122_v53 = vld [vmem:[#allocation2 + $0x4c8] sm:$0xff]  ;;  %10465 = vst [vmem:[#allocation39_spill] sm:$0xff] %v9491_v32 }
 0x161   : > { %7082 = vmatmul.mubr.f32.gmra.mrb[34].mxu1 %v8818_v42  ;;  %6764 = vmatprep.mubr.f32.mxu0 %v9476_v50  ;;  %v9486_v50 = vld [vmem:[%s8733_s30 + $0x60] sm:$0xff]  ;;  %v7670_v8 = vpack.c.bf16 %v3122_v53, %v3121_v9 }
 0x162   : > { %7084 = vmatprep.mubr.f32.mxu1 %v8822_v45  ;;  %7661 = vmatpush3.bf16.msra.mxu0 %v7658_v57  ;;  %10464 = vst [vmem:[#allocation37_spill] sm:$0xff] %v9486_v50  ;;  %v4250_v57 = vld [vmem:[#allocation2 + $0x6c0] sm:$0xff] }
 0x163   : > { %7789 = vmatpush3.bf16.msra.mxu1 %v7786_v19  ;;  %7663 = vmatprep.subr.bf16.mxu0 %v7662_v30  ;;  %v4251_v19 = vld [vmem:[#allocation2 + $0x6c8] sm:$0xff]  ;;  %v9501_v9 = vld [vmem:[%s8733_s30 + $0x80] sm:$0xff] }
 0x164   : > { %6765 = vmatmul.mubr.f32.gmra.mrb[36].mxu0 %v9481_v51  ;;  %7791 = vmatprep.subr.bf16.mxu1 %v7790_v34  ;;  %v7798_v38 = vpack.c.bf16 %v4251_v19, %v4250_v57  ;;  %v3124_v51 = vld [vmem:[#allocation2 + $0x4d8] sm:$0xff]  ;;  %10467 = vst [vmem:[#allocation8_spill] sm:$0xff] %v9501_v9  ;;  %v3125_v19 = vld [vmem:[#allocation2 + $0x4e0] sm:$0xff] }
 0x165   : > { %7085 = vmatmul.mubr.f32.gmra.mrb[36].mxu1 %v8840_v58  ;;  %6767 = vmatprep.mubr.f32.mxu0 %v9486_v50  ;;  %v9496_v50 = vld [vmem:[%s8733_s30 + $0x78] sm:$0xff]  ;;  %v7674_v53 = vpack.c.bf16 %v3124_v51, %v3123_v44 }
 0x166   : > { %7087 = vmatprep.mubr.f32.mxu1 %v8844_v60  ;;  %7665 = vmatpush3.bf16.msra.mxu0 %v7662_v30  ;;  %10466 = vst [vmem:[#allocation42_spill] sm:$0xff] %v9496_v50  ;;  %v4252_v30 = vld [vmem:[#allocation2 + $0x6d0] sm:$0xff]  ;;  %v9511_v44 = vld [vmem:[%s8733_s30 + $0x98] sm:$0xff] }
 0x167   : > { %7793 = vmatpush3.bf16.msra.mxu1 %v7790_v34  ;;  %7667 = vmatprep.subr.bf16.mxu0 %v7666_v21  ;;  %v4253_v34 = vld [vmem:[#allocation2 + $0x6d8] sm:$0xff]  ;;  %10469 = vst [vmem:[#allocation25_spill] sm:$0xff] %v9511_v44 }
 0x168   : > { %6768 = vmatmul.mubr.f32.gmra.mrb[38].mxu0 %v9491_v32  ;;  %7795 = vmatprep.subr.bf16.mxu1 %v7794_v26  ;;  %v7802_v57 = vpack.c.bf16 %v4253_v34, %v4252_v30  ;;  %v3126_v32 = vld [vmem:[#allocation2 + $0x4e8] sm:$0xff]  ;;  %v3127_v34 = vld [vmem:[#allocation2 + $0x4f0] sm:$0xff] }
 0x169   : > { %7088 = vmatmul.mubr.f32.gmra.mrb[38].mxu1 %v8862_v14  ;;  %6770 = vmatprep.mubr.f32.mxu0 %v9496_v50  ;;  %v9506_v50 = vld [vmem:[%s8733_s30 + $0x90] sm:$0xff]  ;;  %v7678_v51 = vpack.c.bf16 %v3126_v32, %v3125_v19 }
 0x16a   : > { %7090 = vmatprep.mubr.f32.mxu1 %v8866_v16  ;;  %7669 = vmatpush3.bf16.msra.mxu0 %v7666_v21  ;;  %10468 = vst [vmem:[#allocation9_spill] sm:$0xff] %v9506_v50  ;;  %v4254_v21 = vld [vmem:[#allocation2 + $0x6e0] sm:$0xff]  ;;  %v9521_v19 = vld [vmem:[%s8733_s30 + $0xb0] sm:$0xff] }
 0x16b   : > { %7797 = vmatpush3.bf16.msra.mxu1 %v7794_v26  ;;  %7671 = vmatprep.subr.bf16.mxu0 %v7670_v8  ;;  %v4255_v26 = vld [vmem:[#allocation2 + $0x6e8] sm:$0xff] }
 0x16c   : > { %6771 = vmatmul.mubr.f32.gmra.mrb[40].mxu0 %v9501_v9  ;;  %7799 = vmatprep.subr.bf16.mxu1 %v7798_v38  ;;  %v7806_v30 = vpack.c.bf16 %v4255_v26, %v4254_v21  ;;  %v3128_v9 = vld [vmem:[#allocation2 + $0x4f8] sm:$0xff]  ;;  %v3387_v26 = vld [vmem:[#allocation2 + $0x500] sm:$0xff] }
 0x16d   : > { %7091 = vmatmul.mubr.f32.gmra.mrb[40].mxu1 %v8884_v37  ;;  %6773 = vmatprep.mubr.f32.mxu0 %v9506_v50  ;;  %v9516_v50 = vld [vmem:[%s8733_s30 + $0xa8] sm:$0xff]  ;;  %v7682_v32 = vpack.c.bf16 %v3128_v9, %v3127_v34 }
 0x16e   : > { %7093 = vmatprep.mubr.f32.mxu1 %v8888_v40  ;;  %7673 = vmatpush3.bf16.msra.mxu0 %v7670_v8  ;;  %10470 = vst [vmem:[#allocation29_spill] sm:$0xff] %v9516_v50  ;;  %v4256_v8 = vld [vmem:[#allocation2 + $0x6f0] sm:$0xff]  ;;  %v9533_v34 = vld [vmem:[%s8733_s30 + $0xc8] sm:$0xff] }
 0x16f   : > { %7801 = vmatpush3.bf16.msra.mxu1 %v7798_v38  ;;  %7675 = vmatprep.subr.bf16.mxu0 %v7674_v53  ;;  %v4257_v38 = vld [vmem:[#allocation2 + $0x6f8] sm:$0xff] }
 0x170   : > { %6774 = vmatmul.mubr.f32.gmra.mrb[42].mxu0 %v9511_v44  ;;  %7803 = vmatprep.subr.bf16.mxu1 %v7802_v57  ;;  %v7810_v21 = vpack.c.bf16 %v4257_v38, %v4256_v8  ;;  %v3388_v44 = vld [vmem:[#allocation2 + $0x508] sm:$0xff]  ;;  %v9540_v38 = vld [vmem:[%s8733_s30 + $0xd8] sm:$0xff] }
 0x171   : > { %7094 = vmatmul.mubr.f32.gmra.mrb[42].mxu1 %v8906_v61  ;;  %6776 = vmatprep.mubr.f32.mxu0 %v9516_v50  ;;  %v9526_v50 = vld [vmem:[%s8733_s30 + $0xc0] sm:$0xff]  ;;  %v9530_v9 = vpack.c.bf16 %v3388_v44, %v3387_v26  ;;  %v9552_v44 = vld [vmem:[%s8733_s30 + $0xf0] sm:$0xff] }
 0x172   : > { %7096 = vmatprep.mubr.f32.mxu1 %v8910_v3  ;;  %7677 = vmatpush3.bf16.msra.mxu0 %v7674_v53  ;;  %v4516_v53 = vld [vmem:[#allocation2 + $0x700] sm:$0xff]  ;;  %10472 = vst [vmem:[#allocation38_spill] sm:$0xff] %v9552_v44 }
 0x173   : > { %7805 = vmatpush3.bf16.msra.mxu1 %v7802_v57  ;;  %7679 = vmatprep.subr.bf16.mxu0 %v7678_v51  ;;  %v4517_v57 = vld [vmem:[#allocation2 + $0x708] sm:$0xff]  ;;  %v9572_v26 = vld [vmem:[%s8733_s30 + $0x120] sm:$0xff] }
 0x174   : > { %6777 = vmatmul.mubr.f32.gmra.mrb[44].mxu0 %v9521_v19  ;;  %7807 = vmatprep.subr.bf16.mxu1 %v7806_v30  ;;  %v9536_v8 = vpack.c.bf16 %v4517_v57, %v4516_v53  ;;  %10476 = vst [vmem:[#allocation41_spill] sm:$0xff] %v9572_v26  ;;  %v9577_v53 = vld [vmem:[%s8733_s30 + $0x128] sm:$0xff]  ;;  %v9582_v57 = vld [vmem:[%s8733_s30 + $0x138] sm:$0xff] }
 0x175   : > { %7097 = vmatmul.mubr.f32.gmra.mrb[44].mxu1 %v10375_v18  ;;  %6779 = vmatprep.mubr.f32.mxu0 %v9526_v50  ;;  %10477 = vst [vmem:[#allocation36_spill] sm:$0xff] %v9577_v53  ;;  %10478 = vst [vmem:[#allocation43_spill] sm:$0xff] %v9582_v57 }
 0x176   : > { %7099 = vmatprep.mubr.f32.mxu1 %v10376_v10  ;;  %7681 = vmatpush3.bf16.msra.mxu0 %v7678_v51  ;;  %v9546_v51 = vld [vmem:[%s8733_s30 + $0xe0] sm:$0xff] }
 0x177   : > { %7809 = vmatpush3.bf16.msra.mxu1 %v7806_v30  ;;  %7683 = vmatprep.subr.bf16.mxu0 %v7682_v32  ;;  %10471 = vst [vmem:[#allocation33_spill] sm:$0xff] %v9546_v51  ;;  %v9557_v30 = vld [vmem:[%s8733_s30 + $0xf8] sm:$0xff] }
 0x178   : > { %6780 = vmatmul.mubr.f32.gmra.mrb[46].mxu0 %v9533_v34  ;;  %7811 = vmatprep.subr.bf16.mxu1 %v7810_v21  ;;  %10473 = vst [vmem:[#allocation34_spill] sm:$0xff] %v9557_v30 }
 0x179   : > { %7100 = vmatmul.mubr.f32.gmra.mrb[46].mxu1 %v10382_v63  ;;  %6782 = vmatprep.mubr.f32.mxu0 %v9540_v38 }
 0x17a   : > { %7102 = vmatprep.mubr.f32.mxu1 %v10383_v41  ;;  %7685 = vmatpush3.bf16.msra.mxu0 %v7682_v32  ;;  %v9562_v32 = vld [vmem:[%s8733_s30 + $0x108] sm:$0xff] }
 0x17b   : > { %7813 = vmatpush3.bf16.msra.mxu1 %v7810_v21  ;;  %7687 = vmatprep.subr.bf16.mxu0 %v9530_v9  ;;  %10474 = vst [vmem:[#allocation40_spill] sm:$0xff] %v9562_v32  ;;  %v9567_v21 = vld [vmem:[%s8733_s30 + $0x110] sm:$0xff] }
 0x17c   : > { %6783 = vmatmul.mubr.f32.gmra.mrb[48].mxu0 %v9546_v51  ;;  %7815 = vmatprep.subr.bf16.mxu1 %v9536_v8  ;;  %10475 = vst [vmem:[#allocation35_spill] sm:$0xff] %v9567_v21  ;;  %v4521_v51 = vld [vmem:[#allocation2 + $0x728] sm:$0xff] }
 0x17d   : > { %7103 = vmatmul.mubr.f32.gmra.mrb[48].mxu1 %v10389_v13  ;;  %6785 = vmatprep.mubr.f32.mxu0 %v9552_v44  ;;  %v3391_v44 = vld [vmem:[#allocation2 + $0x520] sm:$0xff] }
 0x17e   : > { %7105 = vmatprep.mubr.f32.mxu1 %v10390_v56 }
 0x180   : > { %6786 = vmatmul.mubr.f32.gmra.mrb[50].mxu0 %v9557_v30 }
 0x181   : > { %7106 = vmatmul.mubr.f32.gmra.mrb[50].mxu1 %v10396_v4  ;;  %6788 = vmatprep.mubr.f32.mxu0 %v9562_v32  ;;  %v4519_v32 = vld [vmem:[#allocation2 + $0x718] sm:$0xff] }
 0x182   : > { %7108 = vmatprep.mubr.f32.mxu1 %v10397_v1 }
 0x184   : > { %6789 = vmatmul.mubr.f32.gmra.mrb[52].mxu0 %v9567_v21  ;;  %v9587_v21 = vld [vmem:[%s8733_s30 + $0x140] sm:$0xff] }
 0x185   : > { %7109 = vmatmul.mubr.f32.gmra.mrb[52].mxu1 %v10401_v54  ;;  %6791 = vmatprep.mubr.f32.mxu0 %v9572_v26  ;;  %10479 = vst [vmem:[#allocation44_spill] sm:$0xff] %v9587_v21  ;;  %v9592_v26 = vld [vmem:[%s8733_s30 + $0x150] sm:$0xff] }
 0x186   : > { %7111 = vmatprep.mubr.f32.mxu1 %v10402_v7  ;;  %10480 = vst [vmem:[#allocation45_spill] sm:$0xff] %v9592_v26 }
 0x188   : > { %6792 = vmatmul.mubr.f32.gmra.mrb[54].mxu0 %v9577_v53  ;;  %v9597_v53 = vld [vmem:[%s8733_s30 + $0x158] sm:$0xff] }
 0x189   : > { %7112 = vmatmul.mubr.f32.gmra.mrb[54].mxu1 %v9044_v55  ;;  %6794 = vmatprep.mubr.f32.mxu0 %v9582_v57  ;;  %10481 = vst [vmem:[#allocation46_spill] sm:$0xff] %v9597_v53  ;;  %v9602_v57 = vld [vmem:[%s8733_s30 + $0x168] sm:$0xff] }
 0x18a   : > { %7114 = vmatprep.mubr.f32.mxu1 %v9048_v17  ;;  %10482 = vst [vmem:[#allocation47_spill] sm:$0xff] %v9602_v57 }
 0x18c   : > { %6795 = vmatmul.mubr.f32.gmra.mrb[56].mxu0 %v9587_v21  ;;  %v9607_v21 = vld [vmem:[%s8733_s30 + $0x170] sm:$0xff] }
 0x18d   : > { %7115 = vmatmul.mubr.f32.gmra.mrb[56].mxu1 %v10410_v25  ;;  %6797 = vmatprep.mubr.f32.mxu0 %v9592_v26  ;;  %10483 = vst [vmem:[#allocation48_spill] sm:$0xff] %v9607_v21  ;;  %v3390_v26 = vld [vmem:[#allocation2 + $0x518] sm:$0xff] }
 0x18e   : > { %7117 = vmatprep.mubr.f32.mxu1 %v10424_v36 }
 0x190   : > { %6798 = vmatmul.mubr.f32.gmra.mrb[58].mxu0 %v9597_v53  ;;  %v3389_v53 = vld [vmem:[#allocation2 + $0x510] sm:$0xff] }
 0x191   : > { %7118 = vmatmul.mubr.f32.gmra.mrb[58].mxu1 %v10426_v46  ;;  %6800 = vmatprep.mubr.f32.mxu0 %v9602_v57  ;;  %v4518_v57 = vld [vmem:[#allocation2 + $0x710] sm:$0xff]  ;;  %v7690_v30 = vpack.c.bf16 %v3390_v26, %v3389_v53  ;;  %v3395_v26 = vld [vmem:[#allocation2 + $0x540] sm:$0xff] }
 0x192   : > { %7120 = vmatprep.mubr.f32.mxu1 %v10428_v0  ;;  %v4524_v53 = vld [vmem:[#allocation2 + $0x740] sm:$0xff] }
 0x194   : > { %6801 = vmatmul.mubr.f32.gmra.mrb[60].mxu0 %v9607_v21  ;;  %v7818_v21 = vpack.c.bf16 %v4519_v32, %v4518_v57  ;;  %v3394_v32 = vld [vmem:[#allocation2 + $0x538] sm:$0xff]  ;;  %v4525_v57 = vld [vmem:[#allocation2 + $0x748] sm:$0xff] }
 0x195   : > { %7121 = vmatmul.mubr.f32.gmra.mrb[60].mxu1 %v10418_v48  ;;  %6803 = vmatprep.mubr.f32.mxu0 %v9358_v11  ;;  %v3392_v11 = vld [vmem:[#allocation2 + $0x528] sm:$0xff] }
 0x196   : > { %7123 = vmatprep.mubr.f32.mxu1 %v9377_v39 }
 0x198   : > { %6804 = vmatmul.mubr.f32.gmra.mrb[62].mxu0 %v9361_v15  ;;  %v4520_v15 = vld [vmem:[#allocation2 + $0x720] sm:$0xff] }
 0x199   : > { %7124 = vmatmul.mubr.f32.gmra.mrb[62].mxu1 %v9384_v28  ;;  %6838 = vmatprep.mubr.f32.mxu0 %v8787_v20  ;;  %v7694_v20 = vpack.c.bf16 %v3392_v11, %v3391_v44  ;;  %v3397_v11 = vld [vmem:[#allocation2 + $0x550] sm:$0xff] }
 0x19a   : > { %7158 = vmatprep.mubr.f32.mxu1 %v10430_v49  ;;  %v3393_v49 = vld [vmem:[#allocation2 + $0x530] sm:$0xff] }
 0x19c   : > { %6839 = vmatmul.mubr.f32.vlgmr.msra.gmra.mrb[32].mxu0 %v8795_v27  ;;  %v7822_v27 = vpack.c.bf16 %v4521_v51, %v4520_v15  ;;  %v3396_v51 = vld [vmem:[#allocation2 + $0x548] sm:$0xff]  ;;  %v3398_v15 = vld [vmem:[#allocation2 + $0x558] sm:$0xff] }
 0x19d   : > { %7159 = vmatmul.mubr.f32.vlgmr.msra.gmra.mrb[32].mxu1 %v10431_v5  ;;  %7689 = vmatpush3.bf16.msra.mxu0 %v9530_v9  ;;  %v4522_v5 = vld [vmem:[#allocation2 + $0x730] sm:$0xff]  ;;  %v4523_v9 = vld [vmem:[#allocation2 + $0x738] sm:$0xff] }
 0x19e   : > { %7817 = vmatpush3.bf16.msra.mxu1 %v9536_v8  ;;  %6841 = vmatprep.mubr.f32.mxu0 %v8800_v29  ;;  %v7698_v8 = vpack.c.bf16 %v3394_v32, %v3393_v49  ;;  %v7826_v44 = vpack.c.bf16 %v4523_v9, %v4522_v5  ;;  %v4526_v49 = vld [vmem:[#allocation2 + $0x750] sm:$0xff]  ;;  %v4527_v32 = vld [vmem:[#allocation2 + $0x758] sm:$0xff]  ;;  %v3399_v5 = vld [vmem:[#allocation2 + $0x560] sm:$0xff] }
 0x19f   : > { %7161 = vmatprep.mubr.f32.mxu1 %v10432_v6  ;;  %7691 = vmatprep.subr.bf16.mxu0 %v7690_v30  ;;  %v3400_v9 = vld [vmem:[#allocation2 + $0x568] sm:$0xff] }
 0x1a0   : > { %6842 = vmatmul.mubr.f32.gmra.mrb[34].mxu0 %v8818_v42  ;;  %7819 = vmatprep.subr.bf16.mxu1 %v7818_v21 }
 0x1a1   : > { %7162 = vmatmul.mubr.f32.gmra.mrb[34].mxu1 %v10433_v47  ;;  %6844 = vmatprep.mubr.f32.mxu0 %v8822_v45 }
 0x1a2   : > { %7164 = vmatprep.mubr.f32.mxu1 %v10434_v43  ;;  %7693 = vmatpush3.bf16.msra.mxu0 %v7690_v30  ;;  %v7702_v30 = vpack.c.bf16 %v3396_v51, %v3395_v26  ;;  %v4528_v26 = vld [vmem:[#allocation2 + $0x760] sm:$0xff]  ;;  %v4529_v51 = vld [vmem:[#allocation2 + $0x768] sm:$0xff] }
 0x1a3   : > { %7821 = vmatpush3.bf16.msra.mxu1 %v7818_v21  ;;  %7695 = vmatprep.subr.bf16.mxu0 %v7694_v20  ;;  %v7830_v21 = vpack.c.bf16 %v4525_v57, %v4524_v53  ;;  %v3401_v53 = vld [vmem:[#allocation2 + $0x570] sm:$0xff]  ;;  %v3402_v57 = vld [vmem:[#allocation2 + $0x578] sm:$0xff] }
 0x1a4   : > { %6845 = vmatmul.mubr.f32.gmra.mrb[36].mxu0 %v8840_v58  ;;  %7823 = vmatprep.subr.bf16.mxu1 %v7822_v27 }
 0x1a5   : > { %7165 = vmatmul.mubr.f32.gmra.mrb[36].mxu1 %v10435_v22  ;;  %6847 = vmatprep.mubr.f32.mxu0 %v8844_v60 }
 0x1a6   : > { %7167 = vmatprep.mubr.f32.mxu1 %v10436_v35  ;;  %7697 = vmatpush3.bf16.msra.mxu0 %v7694_v20  ;;  %v7706_v20 = vpack.c.bf16 %v3398_v15, %v3397_v11  ;;  %v10484_v11 = vld [vmem:[#allocation54_spill] sm:$0xff] }
 0x1a7   : > { %7825 = vmatpush3.bf16.msra.mxu1 %v7822_v27  ;;  %7699 = vmatprep.subr.bf16.mxu0 %v7698_v8  ;;  %v7834_v27 = vpack.c.bf16 %v4527_v32, %v4526_v49  ;;  %v4530_v15 = vld [vmem:[#allocation2 + $0x770] sm:$0xff]  ;;  %v4531_v49 = vld [vmem:[#allocation2 + $0x778] sm:$0xff]  ;;  %v3661_v32 = vld [vmem:[#allocation2 + $0x580] sm:$0xff] }
 0x1a8   : > { %6848 = vmatmul.mubr.f32.gmra.mrb[38].mxu0 %v8862_v14  ;;  %7827 = vmatprep.subr.bf16.mxu1 %v7826_v44 }
 0x1a9   : > { %7168 = vmatmul.mubr.f32.gmra.mrb[38].mxu1 %v10437_v52  ;;  %6850 = vmatprep.mubr.f32.mxu0 %v8866_v16 }
 0x1aa   : > { %7170 = vmatprep.mubr.f32.mxu1 %v10438_v2  ;;  %7701 = vmatpush3.bf16.msra.mxu0 %v7698_v8  ;;  %v7710_v8 = vpack.c.bf16 %v3400_v9, %v3399_v5  ;;  %v3662_v5 = vld [vmem:[#allocation2 + $0x588] sm:$0xff]  ;;  %v4790_v9 = vld [vmem:[#allocation2 + $0x780] sm:$0xff] }
 0x1ab   : > { %7829 = vmatpush3.bf16.msra.mxu1 %v7826_v44  ;;  %7703 = vmatprep.subr.bf16.mxu0 %v7702_v30  ;;  %v7838_v44 = vpack.c.bf16 %v4529_v51, %v4528_v26  ;;  %v4791_v26 = vld [vmem:[#allocation2 + $0x788] sm:$0xff]  ;;  %v10485_v51 = vld [vmem:[#allocation12_spill] sm:$0xff] }
 0x1ac   : > { %6851 = vmatmul.mubr.f32.gmra.mrb[40].mxu0 %v8884_v37  ;;  %7831 = vmatprep.subr.bf16.mxu1 %v7830_v21 }
 0x1ad   : > { %7171 = vmatmul.mubr.f32.gmra.mrb[40].mxu1 %v10439_v24  ;;  %6853 = vmatprep.mubr.f32.mxu0 %v8888_v40 }
 0x1ae   : > { %7173 = vmatprep.mubr.f32.mxu1 %v10440_v12  ;;  %7705 = vmatpush3.bf16.msra.mxu0 %v7702_v30  ;;  %v7714_v30 = vpack.c.bf16 %v3402_v57, %v3401_v53  ;;  %v10488_v53 = vld [vmem:[#allocation15_spill] sm:$0xff]  ;;  %v10489_v57 = vld [vmem:[#allocation16_spill] sm:$0xff] }
 0x1af   : > { %7833 = vmatpush3.bf16.msra.mxu1 %v7830_v21  ;;  %7707 = vmatprep.subr.bf16.mxu0 %v7706_v20  ;;  %v7842_v21 = vpack.c.bf16 %v4531_v49, %v4530_v15  ;;  %v10490_v15 = vld [vmem:[#allocation17_spill] sm:$0xff]  ;;  %v10491_v49 = vld [vmem:[#allocation18_spill] sm:$0xff] }
 0x1b0   : > { %6854 = vmatmul.mubr.f32.gmra.mrb[42].mxu0 %v8906_v61  ;;  %7835 = vmatprep.subr.bf16.mxu1 %v7834_v27 }
 0x1b1   : > { %7174 = vmatmul.mubr.f32.gmra.mrb[42].mxu1 %v10484_v11  ;;  %6856 = vmatprep.mubr.f32.mxu0 %v8910_v3 }
 0x1b2   : > { %7176 = vmatprep.mubr.f32.mxu1 %v10442_v23  ;;  %7709 = vmatpush3.bf16.msra.mxu0 %v7706_v20  ;;  %v7718_v20 = vpack.c.bf16 %v3662_v5, %v3661_v32  ;;  %v10494_v32 = vld [vmem:[#allocation21_spill] sm:$0xff]  ;;  %v10495_v5 = vld [vmem:[#allocation22_spill] sm:$0xff]  ;;  %v4794_v23 = vld [vmem:[#allocation2 + $0x7a0] sm:$0xff] }
 0x1b3   : > { %7837 = vmatpush3.bf16.msra.mxu1 %v7834_v27  ;;  %7711 = vmatprep.subr.bf16.mxu0 %v7710_v8  ;;  %v7846_v27 = vpack.c.bf16 %v4791_v26, %v4790_v9  ;;  %v10496_v9 = vld [vmem:[#allocation23_spill] sm:$0xff]  ;;  %v10497_v26 = vld [vmem:[#allocation24_spill] sm:$0xff] }
 0x1b4   : > { %6857 = vmatmul.mubr.f32.gmra.mrb[44].mxu0 %v10375_v18  ;;  %7839 = vmatprep.subr.bf16.mxu1 %v7838_v44 }
 0x1b5   : > { %7177 = vmatmul.mubr.f32.gmra.mrb[44].mxu1 %v10443_v59  ;;  %6859 = vmatprep.mubr.f32.mxu0 %v10376_v10  ;;  %v3666_v59 = vld [vmem:[#allocation2 + $0x5a8] sm:$0xff] }
 0x1b6   : > { %7179 = vmatprep.mubr.f32.mxu1 %v10444_v33  ;;  %7713 = vmatpush3.bf16.msra.mxu0 %v7710_v8  ;;  %v10486_v8 = vld [vmem:[#allocation13_spill] sm:$0xff]  ;;  %v10503_v33 = vld [vmem:[#allocation30_spill] sm:$0xff] }
 0x1b7   : > { %7841 = vmatpush3.bf16.msra.mxu1 %v7838_v44  ;;  %7715 = vmatprep.subr.bf16.mxu0 %v7714_v30  ;;  %v10487_v44 = vld [vmem:[#allocation14_spill] sm:$0xff] }
 0x1b8   : > { %6860 = vmatmul.mubr.f32.gmra.mrb[46].mxu0 %v10382_v63  ;;  %7843 = vmatprep.subr.bf16.mxu1 %v7842_v21 }
 0x1b9   : > { %7180 = vmatmul.mubr.f32.gmra.mrb[46].mxu1 %v10445_v31  ;;  %6862 = vmatprep.mubr.f32.mxu0 %v10383_v41  ;;  %v4793_v31 = vld [vmem:[#allocation2 + $0x798] sm:$0xff] }
 0x1ba   : > { %7182 = vmatprep.mubr.f32.mxu1 %v10485_v51  ;;  %7717 = vmatpush3.bf16.msra.mxu0 %v7714_v30  ;;  %v10492_v30 = vld [vmem:[#allocation19_spill] sm:$0xff]  ;;  %v4792_v51 = vld [vmem:[#allocation2 + $0x790] sm:$0xff] }
 0x1bb   : > { %7845 = vmatpush3.bf16.msra.mxu1 %v7842_v21  ;;  %7719 = vmatprep.subr.bf16.mxu0 %v7718_v20  ;;  %v10493_v21 = vld [vmem:[#allocation20_spill] sm:$0xff] }
 0x1bc   : > { %6863 = vmatmul.mubr.f32.gmra.mrb[48].mxu0 %v10389_v13  ;;  %7847 = vmatprep.subr.bf16.mxu1 %v7846_v27 }
 0x1bd   : > { %7183 = vmatmul.mubr.f32.gmra.mrb[48].mxu1 %v10486_v8  ;;  %6865 = vmatprep.mubr.f32.mxu0 %v10390_v56 }
 0x1be   : > { %7185 = vmatprep.mubr.f32.mxu1 %v10487_v44  ;;  %v3664_v44 = vld [vmem:[#allocation2 + $0x598] sm:$0xff] }
 0x1c0   : > { %6866 = vmatmul.mubr.f32.gmra.mrb[50].mxu0 %v10396_v4 }
 0x1c1   : > { %7186 = vmatmul.mubr.f32.gmra.mrb[50].mxu1 %v10488_v53  ;;  %6868 = vmatprep.mubr.f32.mxu0 %v10397_v1  ;;  %v3663_v53 = vld [vmem:[#allocation2 + $0x590] sm:$0xff] }
 0x1c2   : > { %7188 = vmatprep.mubr.f32.mxu1 %v10489_v57 }
 0x1c4   : > { %6869 = vmatmul.mubr.f32.gmra.mrb[52].mxu0 %v10401_v54 }
 0x1c5   : > { %7189 = vmatmul.mubr.f32.gmra.mrb[52].mxu1 %v10490_v15  ;;  %6871 = vmatprep.mubr.f32.mxu0 %v10402_v7  ;;  %v10499_v15 = vld [vmem:[#allocation27_spill] sm:$0xff] }
 0x1c6   : > { %7191 = vmatprep.mubr.f32.mxu1 %v10491_v49  ;;  %v9681_v49 = vld [vmem:[%s8733_s30 + $0x1a0] sm:$0xff] }
 0x1c8   : > { %6872 = vmatmul.mubr.f32.gmra.mrb[54].mxu0 %v9044_v55 }
 0x1c9   : > { %7192 = vmatmul.mubr.f32.gmra.mrb[54].mxu1 %v10492_v30  ;;  %6874 = vmatprep.mubr.f32.mxu0 %v9048_v17  ;;  %v9676_v30 = vld [vmem:[%s8733_s30 + $0x198] sm:$0xff] }
 0x1ca   : > { %7194 = vmatprep.mubr.f32.mxu1 %v10493_v21  ;;  %v534_v21 = vrot.slane %v9676_v30, 2 }
 0x1cc   : > { %6875 = vmatmul.mubr.f32.gmra.mrb[56].mxu0 %v10410_v25 }
 0x1cd   : > { %7195 = vmatmul.mubr.f32.gmra.mrb[56].mxu1 %v10494_v32  ;;  %6877 = vmatprep.mubr.f32.mxu0 %v10424_v36  ;;  %v10498_v32 = vld [vmem:[#allocation26_spill] sm:$0xff] }
 0x1ce   : > { %7197 = vmatprep.mubr.f32.mxu1 %v10495_v5  ;;  %v9686_v5 = vld [vmem:[%s8733_s30 + $0x1a8] sm:$0x3] }
 0x1d0   : > { %6878 = vmatmul.mubr.f32.gmra.mrb[58].mxu0 %v10426_v46 }
 0x1d1   : > { %7198 = vmatmul.mubr.f32.gmra.mrb[58].mxu1 %v10496_v9  ;;  %6880 = vmatprep.mubr.f32.mxu0 %v10428_v0  ;;  %v535_v9 = vrot.slane %v9681_v49, 2 }
 0x1d2   : > { %7200 = vmatprep.mubr.f32.mxu1 %v10497_v26  ;;  %v537_v26 = vrot.slane %v9686_v5, 2 }
 0x1d3   : > { %v9692_v57 = vsel %vm448_vm1, %v534_v21, %v535_v9  ;;  %v7850_v21 = vpack.c.bf16 %v4793_v31, %v4792_v51  ;;  %v3668_v31 = vld [vmem:[#allocation2 + $0x5b8] sm:$0xff]  ;;  %v10506_v51 = vld [vmem:[#allocation37_spill] sm:$0xff] }
 0x1d4   : > { %6881 = vmatmul.mubr.f32.gmra.mrb[60].mxu0 %v10418_v48  ;;  %10500 = vst [vmem:[#allocation49_spill] sm:$0xff] %v9692_v57  ;;  %v9696_v8 = vsel %vm448_vm1, %v535_v9, %v537_v26  ;;  %v3665_v57 = vld [vmem:[#allocation2 + $0x5a0] sm:$0xff]  ;;  %v4795_v9 = vld [vmem:[#allocation2 + $0x7a8] sm:$0xff]  ;;  %v10504_v26 = vld [vmem:[#allocation31_spill] sm:$0xff] }
 0x1d5   : > { %7201 = vmatmul.mubr.f32.gmra.mrb[60].mxu1 %v10498_v32  ;;  %6883 = vmatprep.mubr.f32.mxu0 %v9377_v39  ;;  %10501 = vst [vmem:[#allocation50_spill] sm:$0xff] %v9696_v8  ;;  %v10502_v32 = vld [vmem:[#allocation28_spill] sm:$0xff] }
 0x1d6   : > { %7203 = vmatprep.mubr.f32.mxu1 %v10499_v15  ;;  %v7722_v15 = vpack.c.bf16 %v3664_v44, %v3663_v53  ;;  %v10505_v8 = vld [vmem:[#allocation32_spill] sm:$0xff]  ;;  %v7854_v44 = vpack.c.bf16 %v4795_v9, %v4794_v23  ;;  %v4797_v53 = vld [vmem:[#allocation2 + $0x7b8] sm:$0xff]  ;;  %v3670_v23 = vld [vmem:[#allocation2 + $0x5c8] sm:$0xff] }
 0x1d7   : > { %v4798_v9 = vld [vmem:[#allocation2 + $0x7c0] sm:$0xff] }
 0x1d8   : > { %6884 = vmatmul.mubr.f32.gmra.mrb[62].mxu0 %v9384_v28 }
 0x1d9   : > { %7204 = vmatmul.mubr.f32.gmra.mrb[62].mxu1 %v10502_v32  ;;  %6918 = vmatprep.mubr.f32.mxu0 %v9466_v62  ;;  %v7726_v62 = vpack.c.bf16 %v3666_v59, %v3665_v57  ;;  %v10508_v57 = vld [vmem:[#allocation42_spill] sm:$0xff] }
 0x1da   : > { %7238 = vmatprep.mubr.f32.mxu1 %v8800_v29  ;;  %v3675_v32 = vld [vmem:[#allocation2 + $0x5f0] sm:$0xff] }
 0x1dc   : > { %6919 = vmatmul.mubr.f32.vlgmr.msra.gmra.mrb[32].mxu0 %v10503_v33  ;;  %v3667_v33 = vld [vmem:[#allocation2 + $0x5b0] sm:$0xff] }
 0x1dd   : > { %7239 = vmatmul.mubr.f32.vlgmr.msra.gmra.mrb[32].mxu1 %v8818_v42  ;;  %7721 = vmatpush3.bf16.msra.mxu0 %v7718_v20  ;;  %v4796_v20 = vld [vmem:[#allocation2 + $0x7b0] sm:$0xff] }
 0x1de   : > { %7849 = vmatpush3.bf16.msra.mxu1 %v7846_v27  ;;  %6921 = vmatprep.mubr.f32.mxu0 %v10504_v26  ;;  %v7730_v27 = vpack.c.bf16 %v3668_v31, %v3667_v33  ;;  %v10507_v26 = vld [vmem:[#allocation39_spill] sm:$0xff]  ;;  %v7858_v59 = vpack.c.bf16 %v4797_v53, %v4796_v20  ;;  %v3671_v31 = vld [vmem:[#allocation2 + $0x5d0] sm:$0xff]  ;;  %v10510_v53 = vld [vmem:[#allocation9_spill] sm:$0xff] }
 0x1df   : > { %7241 = vmatprep.mubr.f32.mxu1 %v8822_v45  ;;  %7723 = vmatprep.subr.bf16.mxu0 %v7722_v15  ;;  %v3672_v20 = vld [vmem:[#allocation2 + $0x5d8] sm:$0xff] }
 0x1e0   : > { %6922 = vmatmul.mubr.f32.gmra.mrb[34].mxu0 %v10505_v8  ;;  %7851 = vmatprep.subr.bf16.mxu1 %v7850_v21  ;;  %v3669_v8 = vld [vmem:[#allocation2 + $0x5c0] sm:$0xff] }
 0x1e1   : > { %7242 = vmatmul.mubr.f32.gmra.mrb[34].mxu1 %v8840_v58  ;;  %6924 = vmatprep.mubr.f32.mxu0 %v10506_v51  ;;  %v4799_v51 = vld [vmem:[#allocation2 + $0x7c8] sm:$0xff] }
 0x1e2   : > { %7244 = vmatprep.mubr.f32.mxu1 %v8844_v60  ;;  %7725 = vmatpush3.bf16.msra.mxu0 %v7722_v15  ;;  %v7734_v15 = vpack.c.bf16 %v3670_v23, %v3669_v8  ;;  %v7862_v33 = vpack.c.bf16 %v4799_v51, %v4798_v9  ;;  %v3673_v23 = vld [vmem:[#allocation2 + $0x5e0] sm:$0xff]  ;;  %v3674_v9 = vld [vmem:[#allocation2 + $0x5e8] sm:$0xff] }
 0x1e3   : > { %7853 = vmatpush3.bf16.msra.mxu1 %v7850_v21  ;;  %7727 = vmatprep.subr.bf16.mxu0 %v7726_v62  ;;  %v10509_v21 = vld [vmem:[#allocation8_spill] sm:$0xff] }
 0x1e4   : > { %6925 = vmatmul.mubr.f32.gmra.mrb[36].mxu0 %v10507_v26  ;;  %7855 = vmatprep.subr.bf16.mxu1 %v7854_v44  ;;  %v4800_v26 = vld [vmem:[#allocation2 + $0x7d0] sm:$0xff]  ;;  %v9727_v51 = vld [vmem:[%s10163_s2] ss:$0 sm:$0xff] }
 0x1e5   : > { %7245 = vmatmul.mubr.f32.gmra.mrb[36].mxu1 %v8862_v14  ;;  %6927 = vmatprep.mubr.f32.mxu0 %v10508_v57  ;;  %v4801_v57 = vld [vmem:[#allocation2 + $0x7d8] sm:$0xff] }
 0x1e6   : > { %7247 = vmatprep.mubr.f32.mxu1 %v8866_v16  ;;  %7729 = vmatpush3.bf16.msra.mxu0 %v7726_v62  ;;  %v7738_v62 = vpack.c.bf16 %v3672_v20, %v3671_v31  ;;  %v7866_v8 = vpack.c.bf16 %v4801_v57, %v4800_v26  ;;  %v7742_v20 = vpack.c.bf16 %v3674_v9, %v3673_v23  ;;  %v4805_v23 = vld [vmem:[#allocation2 + $0x7f8] sm:$0xff] }
 0x1e7   : > { %7857 = vmatpush3.bf16.msra.mxu1 %v7854_v44  ;;  %7731 = vmatprep.subr.bf16.mxu0 %v7730_v27  ;;  %v10511_v44 = vld [vmem:[#allocation25_spill] sm:$0xff] }
 0x1e8   : > { %6928 = vmatmul.mubr.f32.gmra.mrb[38].mxu0 %v10509_v21  ;;  %7859 = vmatprep.subr.bf16.mxu1 %v7858_v59  ;;  %v4803_v21 = vld [vmem:[#allocation2 + $0x7e8] sm:$0xff] }
 0x1e9   : > { %7248 = vmatmul.mubr.f32.gmra.mrb[38].mxu1 %v8884_v37  ;;  %6930 = vmatprep.mubr.f32.mxu0 %v10510_v53 }
 0x1ea   : > { %7250 = vmatprep.mubr.f32.mxu1 %v8888_v40  ;;  %7733 = vmatpush3.bf16.msra.mxu0 %v7730_v27  ;;  %v10512_v27 = vld [vmem:[#allocation29_spill] sm:$0xff] }
 0x1eb   : > { %7861 = vmatpush3.bf16.msra.mxu1 %v7858_v59  ;;  %7735 = vmatprep.subr.bf16.mxu0 %v7734_v15  ;;  %v4802_v59 = vld [vmem:[#allocation2 + $0x7e0] sm:$0xff] }
 0x1ec   : > { %6931 = vmatmul.mubr.f32.gmra.mrb[40].mxu0 %v10511_v44  ;;  %7863 = vmatprep.subr.bf16.mxu1 %v7862_v33  ;;  %v7870_v44 = vpack.c.bf16 %v4803_v21, %v4802_v59 }
 0x1ed   : > { %7251 = vmatmul.mubr.f32.gmra.mrb[40].mxu1 %v8906_v61  ;;  %6933 = vmatprep.mubr.f32.mxu0 %v10512_v27  ;;  %v3676_v27 = vld [vmem:[#allocation2 + $0x5f8] sm:$0xff] }
 0x1ee   : > { %7253 = vmatprep.mubr.f32.mxu1 %v8910_v3  ;;  %7737 = vmatpush3.bf16.msra.mxu0 %v7734_v15 }
 0x1ef   : > { %v6360_v31 = vpop.f32.mrb[0].mxu0  ;;  %7865 = vmatpush3.bf16.msra.mxu1 %v7862_v33  ;;  %7739 = vmatprep.subr.bf16.mxu0 %v7738_v62  ;;  %v4804_v33 = vld [vmem:[#allocation2 + $0x7f0] sm:$0xff] }
 0x1f0   : > { %v7878_v53 = vadd.f32 %v6360_v31, %v9727_v51  ;;  %v6680_v26 = vpop.f32.mrb[0].mxu1  ;;  %v1486_v57 = vpop.f32.mrb[1].mxu0  ;;  %6934 = vmatmul.mubr.f32.gmra.mrb[42].mxu0 %v9521_v19  ;;  %7867 = vmatprep.subr.bf16.mxu1 %v7866_v8 }
 0x1f1   : > { %v7910_v11 = vadd.f32 %v6680_v26, %v9727_v51  ;;  %v7879_v3 = vadd.f32 %v9727_v51, %v1486_v57  ;;  %v2614_v15 = vpop.f32.mrb[1].mxu1  ;;  %7254 = vmatmul.mubr.f32.gmra.mrb[42].mxu1 %v10375_v18  ;;  %6936 = vmatprep.mubr.f32.mxu0 %v9526_v50  ;;  %v7746_v50 = vpack.c.bf16 %v3676_v27, %v3675_v32 }
 0x1f2   : > { %1678 = vst [vmem:[%s9738_s8 + $0x8] sm:$0xff] %v7878_v53  ;;  %v7911_v19 = vadd.f32 %v9727_v51, %v2614_v15  ;;  %7256 = vmatprep.mubr.f32.mxu1 %v10376_v10  ;;  %7741 = vmatpush3.bf16.msra.mxu0 %v7738_v62  ;;  %v7874_v53 = vpack.c.bf16 %v4805_v23, %v4804_v33 }
 0x1f3   : > { %5217 = vst [vmem:[%s9738_s8 + $0x108] sm:$0xff] %v7910_v11  ;;  %1677 = vst [vmem:[%s9738_s8] sm:$0xff] %v7879_v3  ;;  %v6363_v9 = vpop.f32.mrb[2].mxu0  ;;  %7869 = vmatpush3.bf16.msra.mxu1 %v7866_v8  ;;  %7743 = vmatprep.subr.bf16.mxu0 %v7742_v20 }
 0x1f4   : > { %5216 = vst [vmem:[%s9738_s8 + $0x100] sm:$0xff] %v7911_v19  ;;  %v7880_v59 = vadd.f32 %v6363_v9, %v9727_v51  ;;  %v6683_v21 = vpop.f32.mrb[2].mxu1  ;;  %v1496_v31 = vpop.f32.mrb[3].mxu0  ;;  %6937 = vmatmul.mubr.f32.gmra.mrb[44].mxu0 %v9533_v34  ;;  %7871 = vmatprep.subr.bf16.mxu1 %v7870_v44 }
 0x1f5   : > { %v7912_v11 = vadd.f32 %v6683_v21, %v9727_v51  ;;  %v7881_v3 = vadd.f32 %v9727_v51, %v1496_v31  ;;  %v2624_v62 = vpop.f32.mrb[3].mxu1  ;;  %7257 = vmatmul.mubr.f32.gmra.mrb[44].mxu1 %v10382_v63  ;;  %6939 = vmatprep.mubr.f32.mxu0 %v9540_v38  ;;  %v10513_v38 = vld [vmem:[#allocation33_spill] sm:$0xff]  ;;  %v10515_v21 = vld [vmem:[#allocation34_spill] sm:$0xff] }
 0x1f6   : > { %1680 = vst [vmem:[%s9738_s8 + $0x18] sm:$0xff] %v7880_v59  ;;  %v7913_v32 = vadd.f32 %v9727_v51, %v2624_v62  ;;  %7259 = vmatprep.mubr.f32.mxu1 %v10383_v41  ;;  %7745 = vmatpush3.bf16.msra.mxu0 %v7742_v20 }
 0x1f7   : > { %5219 = vst [vmem:[%s9738_s8 + $0x118] sm:$0xff] %v7912_v11  ;;  %1679 = vst [vmem:[%s9738_s8 + $0x10] sm:$0xff] %v7881_v3  ;;  %v6366_v34 = vpop.f32.mrb[4].mxu0  ;;  %7873 = vmatpush3.bf16.msra.mxu1 %v7870_v44  ;;  %7747 = vmatprep.subr.bf16.mxu0 %v7746_v50  ;;  %v10514_v44 = vld [vmem:[#allocation38_spill] sm:$0xff] }
 0x1f8   : > { %5218 = vst [vmem:[%s9738_s8 + $0x110] sm:$0xff] %v7913_v32  ;;  %v7882_v8 = vadd.f32 %v6366_v34, %v9727_v51  ;;  %v6686_v26 = vpop.f32.mrb[4].mxu1  ;;  %v1506_v57 = vpop.f32.mrb[5].mxu0  ;;  %6940 = vmatmul.mubr.f32.gmra.mrb[46].mxu0 %v10513_v38  ;;  %7875 = vmatprep.subr.bf16.mxu1 %v7874_v53 }
 0x1f9   : > { %v7914_v27 = vadd.f32 %v6686_v26, %v9727_v51  ;;  %v7883_v20 = vadd.f32 %v9727_v51, %v1506_v57  ;;  %v2634_v15 = vpop.f32.mrb[5].mxu1  ;;  %7260 = vmatmul.mubr.f32.gmra.mrb[46].mxu1 %v10389_v13  ;;  %6942 = vmatprep.mubr.f32.mxu0 %v10514_v44  ;;  %v10517_v26 = vld [vmem:[#allocation35_spill] sm:$0xff] }
 0x1fa   : > { %1682 = vst [vmem:[%s9738_s8 + $0x28] sm:$0xff] %v7882_v8  ;;  %v7915_v33 = vadd.f32 %v9727_v51, %v2634_v15  ;;  %7262 = vmatprep.mubr.f32.mxu1 %v10390_v56  ;;  %7749 = vmatpush3.bf16.msra.mxu0 %v7746_v50  ;;  %v10516_v50 = vld [vmem:[#allocation40_spill] sm:$0xff] }
 0x1fb   : > { %5221 = vst [vmem:[%s9738_s8 + $0x128] sm:$0xff] %v7914_v27  ;;  %1681 = vst [vmem:[%s9738_s8 + $0x20] sm:$0xff] %v7883_v20  ;;  %v6369_v23 = vpop.f32.mrb[6].mxu0  ;;  %7877 = vmatpush3.bf16.msra.mxu1 %v7874_v53  ;;  %v10518_v20 = vld [vmem:[#allocation41_spill] sm:$0xff] }
 0x1fc   : > { %5220 = vst [vmem:[%s9738_s8 + $0x120] sm:$0xff] %v7915_v33  ;;  %v7884_v19 = vadd.f32 %v6369_v23, %v9727_v51  ;;  %v6689_v9 = vpop.f32.mrb[6].mxu1  ;;  %v1516_v59 = vpop.f32.mrb[7].mxu0  ;;  %6943 = vmatmul.mubr.f32.gmra.mrb[48].mxu0 %v10515_v21 }
 0x1fd   : > { %v7916_v31 = vadd.f32 %v6689_v9, %v9727_v51  ;;  %v7885_v11 = vadd.f32 %v9727_v51, %v1516_v59  ;;  %v2644_v3 = vpop.f32.mrb[7].mxu1  ;;  %7263 = vmatmul.mubr.f32.gmra.mrb[48].mxu1 %v10396_v4  ;;  %6945 = vmatprep.mubr.f32.mxu0 %v10516_v50  ;;  %v10519_v9 = vld [vmem:[#allocation36_spill] sm:$0xff] }
 0x1fe   : > { %1684 = vst [vmem:[%s9738_s8 + $0x38] sm:$0xff] %v7884_v19  ;;  %v7917_v53 = vadd.f32 %v9727_v51, %v2644_v3  ;;  %7265 = vmatprep.mubr.f32.mxu1 %v10397_v1 }
 0x1ff   : > { %5223 = vst [vmem:[%s9738_s8 + $0x138] sm:$0xff] %v7916_v31  ;;  %1683 = vst [vmem:[%s9738_s8 + $0x30] sm:$0xff] %v7885_v11  ;;  %v6372_v62 = vpop.f32.mrb[8].mxu0  ;;  %v10520_v11 = vld [vmem:[#allocation43_spill] sm:$0xff] }
 0x200   : > { %5222 = vst [vmem:[%s9738_s8 + $0x130] sm:$0xff] %v7917_v53  ;;  %v7886_v32 = vadd.f32 %v6372_v62, %v9727_v51  ;;  %v6692_v34 = vpop.f32.mrb[8].mxu1  ;;  %v1526_v8 = vpop.f32.mrb[9].mxu0  ;;  %6946 = vmatmul.mubr.f32.gmra.mrb[50].mxu0 %v10517_v26 }
 0x201   : > { %v7918_v57 = vadd.f32 %v6692_v34, %v9727_v51  ;;  %v7887_v38 = vadd.f32 %v9727_v51, %v1526_v8  ;;  %v2654_v27 = vpop.f32.mrb[9].mxu1  ;;  %7266 = vmatmul.mubr.f32.gmra.mrb[50].mxu1 %v10401_v54  ;;  %6948 = vmatprep.mubr.f32.mxu0 %v10518_v20  ;;  %v10521_v34 = vld [vmem:[#allocation44_spill] sm:$0xff] }
 0x202   : > { %1686 = vst [vmem:[%s9738_s8 + $0x48] sm:$0xff] %v7886_v32  ;;  %v7919_v15 = vadd.f32 %v9727_v51, %v2654_v27  ;;  %7268 = vmatprep.mubr.f32.mxu1 %v10402_v7 }
 0x203   : > { %5225 = vst [vmem:[%s9738_s8 + $0x148] sm:$0xff] %v7918_v57  ;;  %1685 = vst [vmem:[%s9738_s8 + $0x40] sm:$0xff] %v7887_v38  ;;  %v6375_v44 = vpop.f32.mrb[10].mxu0  ;;  %v10522_v38 = vld [vmem:[#allocation45_spill] sm:$0xff] }
 0x204   : > { %5224 = vst [vmem:[%s9738_s8 + $0x140] sm:$0xff] %v7919_v15  ;;  %v7888_v33 = vadd.f32 %v6375_v44, %v9727_v51  ;;  %v6695_v23 = vpop.f32.mrb[10].mxu1  ;;  %v1536_v19 = vpop.f32.mrb[11].mxu0  ;;  %6949 = vmatmul.mubr.f32.gmra.mrb[52].mxu0 %v10519_v9 }
 0x205   : > { %v7920_v59 = vadd.f32 %v6695_v23, %v9727_v51  ;;  %v7889_v21 = vadd.f32 %v9727_v51, %v1536_v19  ;;  %v2664_v31 = vpop.f32.mrb[11].mxu1  ;;  %7269 = vmatmul.mubr.f32.gmra.mrb[52].mxu1 %v9044_v55  ;;  %6951 = vmatprep.mubr.f32.mxu0 %v10520_v11  ;;  %v10523_v23 = vld [vmem:[#allocation46_spill] sm:$0xff] }
 0x206   : > { %1688 = vst [vmem:[%s9738_s8 + $0x58] sm:$0xff] %v7888_v33  ;;  %v7921_v3 = vadd.f32 %v9727_v51, %v2664_v31  ;;  %7271 = vmatprep.mubr.f32.mxu1 %v9048_v17 }
 0x207   : > { %5227 = vst [vmem:[%s9738_s8 + $0x158] sm:$0xff] %v7920_v59  ;;  %1687 = vst [vmem:[%s9738_s8 + $0x50] sm:$0xff] %v7889_v21  ;;  %v6378_v50 = vpop.f32.mrb[12].mxu0  ;;  %v10524_v21 = vld [vmem:[#allocation47_spill] sm:$0xff] }
 0x208   : > { %5226 = vst [vmem:[%s9738_s8 + $0x150] sm:$0xff] %v7921_v3  ;;  %v7890_v53 = vadd.f32 %v6378_v50, %v9727_v51  ;;  %v6698_v62 = vpop.f32.mrb[12].mxu1  ;;  %v1546_v32 = vpop.f32.mrb[13].mxu0  ;;  %6952 = vmatmul.mubr.f32.gmra.mrb[54].mxu0 %v10521_v34  ;;  %v407_v3 = vrot.slane %v9676_v30, 1  ;;  %v408_v50 = vrot.slane %v9681_v49, 1  ;;  %v10525_v34 = vld [vmem:[#allocation48_spill] sm:$0xff] }
 0x209   : > { %v7922_v8 = vadd.f32 %v6698_v62, %v9727_v51  ;;  %v7891_v26 = vadd.f32 %v9727_v51, %v1546_v32  ;;  %v2674_v57 = vpop.f32.mrb[13].mxu1  ;;  %7272 = vmatmul.mubr.f32.gmra.mrb[54].mxu1 %v10410_v25  ;;  %6954 = vmatprep.mubr.f32.mxu0 %v10522_v38  ;;  %v8491_v38 = vld [vmem:[%s8733_s30 + $0x180] sm:$0xff] }
 0x20a   : > { %1690 = vst [vmem:[%s9738_s8 + $0x68] sm:$0xff] %v7890_v53  ;;  %v7923_v27 = vadd.f32 %v9727_v51, %v2674_v57  ;;  %7274 = vmatprep.mubr.f32.mxu1 %v10424_v36 }
 0x20b   : > { %5229 = vst [vmem:[%s9738_s8 + $0x168] sm:$0xff] %v7922_v8  ;;  %1689 = vst [vmem:[%s9738_s8 + $0x60] sm:$0xff] %v7891_v26  ;;  %v6381_v20 = vpop.f32.mrb[14].mxu0 }
 0x20c   : > { %5228 = vst [vmem:[%s9738_s8 + $0x160] sm:$0xff] %v7923_v27  ;;  %v7892_v15 = vadd.f32 %v6381_v20, %v9727_v51  ;;  %v6701_v44 = vpop.f32.mrb[14].mxu1  ;;  %v1556_v33 = vpop.f32.mrb[15].mxu0  ;;  %6955 = vmatmul.mubr.f32.gmra.mrb[56].mxu0 %v10523_v23  ;;  %v410_v20 = vrot.slane %v9686_v5, 1 }
 0x20d   : > { %v7924_v19 = vadd.f32 %v6701_v44, %v9727_v51  ;;  %v7893_v9 = vadd.f32 %v9727_v51, %v1556_v33  ;;  %v2684_v59 = vpop.f32.mrb[15].mxu1  ;;  %7275 = vmatmul.mubr.f32.gmra.mrb[56].mxu1 %v10426_v46  ;;  %6957 = vmatprep.mubr.f32.mxu0 %v10524_v21  ;;  %v9845_v44 = vsel %vm321_vm0, %v407_v3, %v408_v50 }
 0x20e   : > { %1692 = vst [vmem:[%s9738_s8 + $0x78] sm:$0xff] %v7892_v15  ;;  %v7925_v31 = vadd.f32 %v9727_v51, %v2684_v59  ;;  %7277 = vmatprep.mubr.f32.mxu1 %v10428_v0 }
 0x20f   : > { %5231 = vst [vmem:[%s9738_s8 + $0x178] sm:$0xff] %v7924_v19  ;;  %1691 = vst [vmem:[%s9738_s8 + $0x70] sm:$0xff] %v7893_v9  ;;  %v6384_v11 = vpop.f32.mrb[16].mxu0  ;;  %v8492_v9 = vld [vmem:[%s8733_s30 + $0x188] sm:$0xff] }
 0x210   : > { %5230 = vst [vmem:[%s9738_s8 + $0x170] sm:$0xff] %v7925_v31  ;;  %v7894_v53 = vadd.f32 %v6384_v11, %v9727_v51  ;;  %v6704_v62 = vpop.f32.mrb[16].mxu1  ;;  %v1566_v32 = vpop.f32.mrb[17].mxu0  ;;  %6958 = vmatmul.mubr.f32.gmra.mrb[58].mxu0 %v10525_v34  ;;  %v9858_v11 = vsel %vm321_vm0, %v408_v50, %v410_v20 }
 0x211   : > { %v7926_v8 = vadd.f32 %v6704_v62, %v9727_v51  ;;  %v7895_v26 = vadd.f32 %v9727_v51, %v1566_v32  ;;  %v2694_v57 = vpop.f32.mrb[17].mxu1  ;;  %7278 = vmatmul.mubr.f32.gmra.mrb[58].mxu1 %v10418_v48  ;;  %6960 = vmatprep.mubr.f32.mxu0 %v8491_v38 }
 0x212   : > { %1694 = vst [vmem:[%s9738_s8 + $0x88] sm:$0xff] %v7894_v53  ;;  %v7927_v27 = vadd.f32 %v9727_v51, %v2694_v57  ;;  %7280 = vmatprep.mubr.f32.mxu1 %v9377_v39 }
 0x213   : > { %5233 = vst [vmem:[%s9738_s8 + $0x188] sm:$0xff] %v7926_v8  ;;  %1693 = vst [vmem:[%s9738_s8 + $0x80] sm:$0xff] %v7895_v26  ;;  %v6387_v15 = vpop.f32.mrb[18].mxu0 }
 0x214   : > { %5232 = vst [vmem:[%s9738_s8 + $0x180] sm:$0xff] %v7927_v27  ;;  %v7896_v33 = vadd.f32 %v6387_v15, %v9727_v51  ;;  %v6707_v23 = vpop.f32.mrb[18].mxu1  ;;  %v1576_v19 = vpop.f32.mrb[19].mxu0  ;;  %6961 = vmatmul.mubr.f32.gmra.mrb[60].mxu0 %v8492_v9 }
 0x215   : > { %v7928_v59 = vadd.f32 %v6707_v23, %v9727_v51  ;;  %v7897_v5 = vadd.f32 %v9727_v51, %v1576_v19  ;;  %v2704_v21 = vpop.f32.mrb[19].mxu1  ;;  %7281 = vmatmul.mubr.f32.gmra.mrb[60].mxu1 %v9384_v28  ;;  %6963 = vmatprep.mubr.f32.mxu0 %v9676_v30 }
 0x216   : > { %1696 = vst [vmem:[%s9738_s8 + $0x98] sm:$0xff] %v7896_v33  ;;  %v7929_v31 = vadd.f32 %v9727_v51, %v2704_v21  ;;  %7283 = vmatprep.mubr.f32.mxu1 %v9845_v44 }
 0x217   : > { %5235 = vst [vmem:[%s9738_s8 + $0x198] sm:$0xff] %v7928_v59  ;;  %1695 = vst [vmem:[%s9738_s8 + $0x90] sm:$0xff] %v7897_v5  ;;  %v6390_v3 = vpop.f32.mrb[20].mxu0 }
 0x218   : > { %5234 = vst [vmem:[%s9738_s8 + $0x190] sm:$0xff] %v7929_v31  ;;  %v7898_v53 = vadd.f32 %v6390_v3, %v9727_v51  ;;  %v6710_v62 = vpop.f32.mrb[20].mxu1  ;;  %v1586_v30 = vpop.f32.mrb[21].mxu0  ;;  %6964 = vmatmul.mubr.f32.gmra.mrb[62].mxu0 %v9681_v49 }
 0x219   : > { %v7930_v32 = vadd.f32 %v6710_v62, %v9727_v51  ;;  %v7899_v34 = vadd.f32 %v9727_v51, %v1586_v30  ;;  %v2714_v8 = vpop.f32.mrb[21].mxu1  ;;  %7284 = vmatmul.mubr.f32.gmra.mrb[62].mxu1 %v9858_v11  ;;  %6998 = vmatprep.mubr.f32.mxu0 %v8800_v29 }
 0x21a   : > { %1698 = vst [vmem:[%s9738_s8 + $0xa8] sm:$0xff] %v7898_v53  ;;  %v7931_v50 = vadd.f32 %v9727_v51, %v2714_v8  ;;  %7318 = vmatprep.mubr.f32.mxu1 %v10432_v6 }
 0x21b   : > { %5237 = vst [vmem:[%s9738_s8 + $0x1a8] sm:$0xff] %v7930_v32  ;;  %1697 = vst [vmem:[%s9738_s8 + $0xa0] sm:$0xff] %v7899_v34  ;;  %v6393_v49 = vpop.f32.mrb[22].mxu0 }
 0x21c   : > { %5236 = vst [vmem:[%s9738_s8 + $0x1a0] sm:$0xff] %v7931_v50  ;;  %v7900_v26 = vadd.f32 %v6393_v49, %v9727_v51  ;;  %v6713_v57 = vpop.f32.mrb[22].mxu1  ;;  %v1596_v38 = vpop.f32.mrb[23].mxu0  ;;  %6999 = vmatmul.mubr.f32.vlgmr.msra.gmra.mrb[32].mxu0 %v8818_v42  ;;  %v10526_v50 = vld [vmem:[#allocation54_spill] sm:$0xff] }
 0x21d   : > { %v7932_v29 = vadd.f32 %v6713_v57, %v9727_v51  ;;  %v7901_v27 = vadd.f32 %v9727_v51, %v1596_v38  ;;  %v2724_v20 = vpop.f32.mrb[23].mxu1  ;;  %7319 = vmatmul.mubr.f32.vlgmr.msra.gmra.mrb[32].mxu1 %v10433_v47  ;;  %7001 = vmatprep.mubr.f32.mxu0 %v8822_v45  ;;  %v10530_v57 = vld [vmem:[#allocation57_spill] sm:$0xff]  ;;  %v10531_v38 = vld [vmem:[#allocation11_spill] sm:$0xff] }
 0x21e   : > { %1700 = vst [vmem:[%s9738_s8 + $0xb8] sm:$0xff] %v7900_v26  ;;  %v7933_v6 = vadd.f32 %v9727_v51, %v2724_v20  ;;  %7321 = vmatprep.mubr.f32.mxu1 %v10434_v43  ;;  %v10528_v26 = vld [vmem:[#allocation55_spill] sm:$0xff] }
 0x21f   : > { %5239 = vst [vmem:[%s9738_s8 + $0x1b8] sm:$0xff] %v7932_v29  ;;  %1699 = vst [vmem:[%s9738_s8 + $0xb0] sm:$0xff] %v7901_v27  ;;  %v6396_v42 = vpop.f32.mrb[24].mxu0  ;;  %v10532_v29 = vld [vmem:[#allocation12_spill] sm:$0xff]  ;;  %v10533_v27 = vld [vmem:[#allocation13_spill] sm:$0xff] }
 0x220   : > { %5238 = vst [vmem:[%s9738_s8 + $0x1b0] sm:$0xff] %v7933_v6  ;;  %v7902_v15 = vadd.f32 %v6396_v42, %v9727_v51  ;;  %v6716_v33 = vpop.f32.mrb[24].mxu1  ;;  %v1606_v23 = vpop.f32.mrb[25].mxu0  ;;  %7002 = vmatmul.mubr.f32.gmra.mrb[34].mxu0 %v8840_v58 }
 0x221   : > { %v7934_v45 = vadd.f32 %v6716_v33, %v9727_v51  ;;  %v7903_v47 = vadd.f32 %v9727_v51, %v1606_v23  ;;  %v2734_v19 = vpop.f32.mrb[25].mxu1  ;;  %7322 = vmatmul.mubr.f32.gmra.mrb[34].mxu1 %v10435_v22  ;;  %7004 = vmatprep.mubr.f32.mxu0 %v8844_v60 }
 0x222   : > { %1702 = vst [vmem:[%s9738_s8 + $0xc8] sm:$0xff] %v7902_v15  ;;  %v7935_v43 = vadd.f32 %v9727_v51, %v2734_v19  ;;  %7324 = vmatprep.mubr.f32.mxu1 %v10436_v35 }
 0x223   : > { %5241 = vst [vmem:[%s9738_s8 + $0x1c8] sm:$0xff] %v7934_v45  ;;  %1701 = vst [vmem:[%s9738_s8 + $0xc0] sm:$0xff] %v7903_v47  ;;  %v6399_v58 = vpop.f32.mrb[26].mxu0 }
 0x224   : > { %5240 = vst [vmem:[%s9738_s8 + $0x1c0] sm:$0xff] %v7935_v43  ;;  %v7904_v9 = vadd.f32 %v6399_v58, %v9727_v51  ;;  %v6719_v59 = vpop.f32.mrb[26].mxu1  ;;  %v1616_v5 = vpop.f32.mrb[27].mxu0  ;;  %7005 = vmatmul.mubr.f32.gmra.mrb[36].mxu0 %v8862_v14 }
 0x225   : > { %v7936_v60 = vadd.f32 %v6719_v59, %v9727_v51  ;;  %v7905_v22 = vadd.f32 %v9727_v51, %v1616_v5  ;;  %v2744_v21 = vpop.f32.mrb[27].mxu1  ;;  %7325 = vmatmul.mubr.f32.gmra.mrb[36].mxu1 %v10437_v52  ;;  %7007 = vmatprep.mubr.f32.mxu0 %v8866_v16 }
 0x226   : > { %1704 = vst [vmem:[%s9738_s8 + $0xd8] sm:$0xff] %v7904_v9  ;;  %v7937_v35 = vadd.f32 %v9727_v51, %v2744_v21  ;;  %7327 = vmatprep.mubr.f32.mxu1 %v10438_v2 }
 0x227   : > { %5243 = vst [vmem:[%s9738_s8 + $0x1d8] sm:$0xff] %v7936_v60  ;;  %1703 = vst [vmem:[%s9738_s8 + $0xd0] sm:$0xff] %v7905_v22  ;;  %v6402_v14 = vpop.f32.mrb[28].mxu0 }
 0x228   : > { %5242 = vst [vmem:[%s9738_s8 + $0x1d0] sm:$0xff] %v7937_v35  ;;  %v7906_v31 = vadd.f32 %v6402_v14, %v9727_v51  ;;  %v6722_v3 = vpop.f32.mrb[28].mxu1  ;;  %v1626_v53 = vpop.f32.mrb[29].mxu0  ;;  %7008 = vmatmul.mubr.f32.gmra.mrb[38].mxu0 %v8884_v37 }
 0x229   : > { %v7938_v16 = vadd.f32 %v6722_v3, %v9727_v51  ;;  %v7907_v52 = vadd.f32 %v9727_v51, %v1626_v53  ;;  %v2754_v62 = vpop.f32.mrb[29].mxu1  ;;  %7328 = vmatmul.mubr.f32.gmra.mrb[38].mxu1 %v10439_v24  ;;  %7010 = vmatprep.mubr.f32.mxu0 %v8888_v40 }
 0x22a   : > { %1706 = vst [vmem:[%s9738_s8 + $0xe8] sm:$0xff] %v7906_v31  ;;  %v7939_v2 = vadd.f32 %v9727_v51, %v2754_v62  ;;  %7330 = vmatprep.mubr.f32.mxu1 %v10440_v12  ;;  %v10527_v12 = vld [vmem:[#allocation10_spill] sm:$0xff] }
 0x22b   : > { %5245 = vst [vmem:[%s9738_s8 + $0x1e8] sm:$0xff] %v7938_v16  ;;  %1705 = vst [vmem:[%s9738_s8 + $0xe0] sm:$0xff] %v7907_v52  ;;  %v6405_v37 = vpop.f32.mrb[30].mxu0 }
 0x22c   : > { %5244 = vst [vmem:[%s9738_s8 + $0x1e0] sm:$0xff] %v7939_v2  ;;  %v7908_v30 = vadd.f32 %v6405_v37, %v9727_v51  ;;  %v6725_v32 = vpop.f32.mrb[30].mxu1  ;;  %v1636_v34 = vpop.f32.mrb[31].mxu0  ;;  %7011 = vmatmul.mubr.f32.gmra.mrb[40].mxu0 %v8906_v61  ;;  %v10529_v61 = vld [vmem:[#allocation56_spill] sm:$0xff] }
 0x22d   : > { %v7940_v40 = vadd.f32 %v6725_v32, %v9727_v51  ;;  %v7909_v24 = vadd.f32 %v9727_v51, %v1636_v34  ;;  %v2764_v8 = vpop.f32.mrb[31].mxu1  ;;  %7331 = vmatmul.mubr.f32.gmra.mrb[40].mxu1 %v10526_v50  ;;  %7013 = vmatprep.mubr.f32.mxu0 %v10527_v12 }
 0x22e   : > { %1708 = vst [vmem:[%s9738_s8 + $0xf8] sm:$0xff] %v7908_v30  ;;  %v7941_v49 = vadd.f32 %v9727_v51, %v2764_v8  ;;  %7333 = vmatprep.mubr.f32.mxu1 %v10528_v26 }
 0x22f   : > { %5247 = vst [vmem:[%s9738_s8 + $0x1f8] sm:$0xff] %v7940_v40  ;;  %1707 = vst [vmem:[%s9738_s8 + $0xf0] sm:$0xff] %v7909_v24 }
 0x230   : > { %5246 = vst [vmem:[%s9738_s8 + $0x1f0] sm:$0xff] %v7941_v49  ;;  %7014 = vmatmul.mubr.f32.gmra.mrb[42].mxu0 %v10375_v18  ;;  %v10534_v18 = vld [vmem:[#allocation14_spill] sm:$0xff] }
 0x231   : > { %7334 = vmatmul.mubr.f32.gmra.mrb[42].mxu1 %v10529_v61  ;;  %7016 = vmatprep.mubr.f32.mxu0 %v10376_v10  ;;  %v10535_v10 = vld [vmem:[#allocation15_spill] sm:$0xff] }
 0x232   : > { %7336 = vmatprep.mubr.f32.mxu1 %v10530_v57 }
 0x234   : > { %7017 = vmatmul.mubr.f32.gmra.mrb[44].mxu0 %v10382_v63  ;;  %v10536_v63 = vld [vmem:[#allocation16_spill] sm:$0xff] }
 0x235   : > { %7337 = vmatmul.mubr.f32.gmra.mrb[44].mxu1 %v10531_v38  ;;  %7019 = vmatprep.mubr.f32.mxu0 %v10383_v41  ;;  %v10537_v41 = vld [vmem:[#allocation17_spill] sm:$0xff] }
 0x236   : > { %7339 = vmatprep.mubr.f32.mxu1 %v10532_v29 }
 0x238   : > { %7020 = vmatmul.mubr.f32.gmra.mrb[46].mxu0 %v10389_v13  ;;  %v10538_v13 = vld [vmem:[#allocation18_spill] sm:$0xff] }
 0x239   : > { %7340 = vmatmul.mubr.f32.gmra.mrb[46].mxu1 %v10533_v27  ;;  %7022 = vmatprep.mubr.f32.mxu0 %v10390_v56  ;;  %v10539_v56 = vld [vmem:[#allocation19_spill] sm:$0xff] }
 0x23a   : > { %7342 = vmatprep.mubr.f32.mxu1 %v10534_v18 }
 0x23c   : > { %7023 = vmatmul.mubr.f32.gmra.mrb[48].mxu0 %v10396_v4  ;;  %v10540_v4 = vld [vmem:[#allocation20_spill] sm:$0xff] }
 0x23d   : > { %7343 = vmatmul.mubr.f32.gmra.mrb[48].mxu1 %v10535_v10  ;;  %7025 = vmatprep.mubr.f32.mxu0 %v10397_v1  ;;  %v10541_v1 = vld [vmem:[#allocation21_spill] sm:$0xff] }
 0x23e   : > { %7345 = vmatprep.mubr.f32.mxu1 %v10536_v63 }
 0x240   : > { %7026 = vmatmul.mubr.f32.gmra.mrb[50].mxu0 %v10401_v54  ;;  %v10542_v54 = vld [vmem:[#allocation22_spill] sm:$0xff] }
 0x241   : > { %7346 = vmatmul.mubr.f32.gmra.mrb[50].mxu1 %v10537_v41  ;;  %7028 = vmatprep.mubr.f32.mxu0 %v10402_v7  ;;  %v10543_v7 = vld [vmem:[#allocation23_spill] sm:$0xff] }
 0x242   : > { %7348 = vmatprep.mubr.f32.mxu1 %v10538_v13 }
 0x244   : > { %7029 = vmatmul.mubr.f32.gmra.mrb[52].mxu0 %v9044_v55  ;;  %v10544_v55 = vld [vmem:[#allocation24_spill] sm:$0xff] }
 0x245   : > { %7349 = vmatmul.mubr.f32.gmra.mrb[52].mxu1 %v10539_v56  ;;  %7031 = vmatprep.mubr.f32.mxu0 %v9048_v17  ;;  %v10545_v17 = vld [vmem:[#allocation26_spill] sm:$0xff] }
 0x246   : > { %7351 = vmatprep.mubr.f32.mxu1 %v10540_v4 }
 0x248   : > { %7032 = vmatmul.mubr.f32.gmra.mrb[54].mxu0 %v10410_v25  ;;  %v10546_v25 = vld [vmem:[#allocation27_spill] sm:$0xff] }
 0x249   : > { %7352 = vmatmul.mubr.f32.gmra.mrb[54].mxu1 %v10541_v1  ;;  %7034 = vmatprep.mubr.f32.mxu0 %v10424_v36  ;;  %v10547_v36 = vld [vmem:[#allocation28_spill] sm:$0xff] }
 0x24a   : > { %7354 = vmatprep.mubr.f32.mxu1 %v10542_v54 }
 0x24c   : > { %7035 = vmatmul.mubr.f32.gmra.mrb[56].mxu0 %v10426_v46  ;;  %v10548_v46 = vld [vmem:[#allocation49_spill] sm:$0xff] }
 0x24d   : > { %7355 = vmatmul.mubr.f32.gmra.mrb[56].mxu1 %v10543_v7  ;;  %7037 = vmatprep.mubr.f32.mxu0 %v10428_v0 }
 0x24e   : > { %7357 = vmatprep.mubr.f32.mxu1 %v10544_v55 }
 0x250   : > { %7038 = vmatmul.mubr.f32.gmra.mrb[58].mxu0 %v10418_v48  ;;  %v10549_v48 = vld [vmem:[#allocation50_spill] sm:$0xff] }
 0x251   : > { %7358 = vmatmul.mubr.f32.gmra.mrb[58].mxu1 %v10545_v17  ;;  %7040 = vmatprep.mubr.f32.mxu0 %v9377_v39 }
 0x252   : > { %7360 = vmatprep.mubr.f32.mxu1 %v10546_v25 }
 0x254   : > { %7041 = vmatmul.mubr.f32.gmra.mrb[60].mxu0 %v9384_v28 }
 0x255   : > { %7361 = vmatmul.mubr.f32.gmra.mrb[60].mxu1 %v10547_v36  ;;  %7043 = vmatprep.mubr.f32.mxu0 %v9845_v44 }
 0x256   : > { %7363 = vmatprep.mubr.f32.mxu1 %v10548_v46 }
 0x258   : > { %7044 = vmatmul.mubr.f32.gmra.mrb[62].mxu0 %v9858_v11 }
 0x259   : > { %7364 = vmatmul.mubr.f32.gmra.mrb[62].mxu1 %v10549_v48 }
 0x2ef   : > { %v7000_v0 = vpop.f32.mrb[32].mxu0 }
 0x2f0   : > { %v7942_v39 = vadd.f32 %v7000_v0, %v9727_v51  ;;  %v7320_v20 = vpop.f32.mrb[32].mxu1  ;;  %v3743_v6 = vpop.f32.mrb[33].mxu0 }
 0x2f1   : > { %v7974_v28 = vadd.f32 %v7320_v20, %v9727_v51  ;;  %v7943_v42 = vadd.f32 %v9727_v51, %v3743_v6  ;;  %v4872_v15 = vpop.f32.mrb[33].mxu1 }
 0x2f2   : > { %5249 = vst [vmem:[%s9738_s8 + $0x208] sm:$0xff] %v7942_v39  ;;  %v7975_v44 = vadd.f32 %v9727_v51, %v4872_v15 }
 0x2f3   : > { %5281 = vst [vmem:[%s9738_s8 + $0x308] sm:$0xff] %v7974_v28  ;;  %5248 = vst [vmem:[%s9738_s8 + $0x200] sm:$0xff] %v7943_v42  ;;  %v7003_v11 = vpop.f32.mrb[34].mxu0 }
 0x2f4   : > { %5280 = vst [vmem:[%s9738_s8 + $0x300] sm:$0xff] %v7975_v44  ;;  %v7944_v33 = vadd.f32 %v7003_v11, %v9727_v51  ;;  %v7323_v23 = vpop.f32.mrb[34].mxu1  ;;  %v3753_v45 = vpop.f32.mrb[35].mxu0 }
 0x2f5   : > { %v7976_v47 = vadd.f32 %v7323_v23, %v9727_v51  ;;  %v7945_v19 = vadd.f32 %v9727_v51, %v3753_v45  ;;  %v4882_v43 = vpop.f32.mrb[35].mxu1 }
 0x2f6   : > { %5251 = vst [vmem:[%s9738_s8 + $0x218] sm:$0xff] %v7944_v33  ;;  %v7977_v58 = vadd.f32 %v9727_v51, %v4882_v43 }
 0x2f7   : > { %5283 = vst [vmem:[%s9738_s8 + $0x318] sm:$0xff] %v7976_v47  ;;  %5250 = vst [vmem:[%s9738_s8 + $0x210] sm:$0xff] %v7945_v19  ;;  %v7006_v9 = vpop.f32.mrb[36].mxu0 }
 0x2f8   : > { %5282 = vst [vmem:[%s9738_s8 + $0x310] sm:$0xff] %v7977_v58  ;;  %v7946_v59 = vadd.f32 %v7006_v9, %v9727_v51  ;;  %v7326_v5 = vpop.f32.mrb[36].mxu1  ;;  %v3763_v60 = vpop.f32.mrb[37].mxu0 }
 0x2f9   : > { %v7978_v22 = vadd.f32 %v7326_v5, %v9727_v51  ;;  %v7947_v21 = vadd.f32 %v9727_v51, %v3763_v60  ;;  %v4892_v35 = vpop.f32.mrb[37].mxu1 }
 0x2fa   : > { %5253 = vst [vmem:[%s9738_s8 + $0x228] sm:$0xff] %v7946_v59  ;;  %v7979_v14 = vadd.f32 %v9727_v51, %v4892_v35 }
 0x2fb   : > { %5285 = vst [vmem:[%s9738_s8 + $0x328] sm:$0xff] %v7978_v22  ;;  %5252 = vst [vmem:[%s9738_s8 + $0x220] sm:$0xff] %v7947_v21  ;;  %v7009_v31 = vpop.f32.mrb[38].mxu0 }
 0x2fc   : > { %5284 = vst [vmem:[%s9738_s8 + $0x320] sm:$0xff] %v7979_v14  ;;  %v7948_v3 = vadd.f32 %v7009_v31, %v9727_v51  ;;  %v7329_v53 = vpop.f32.mrb[38].mxu1  ;;  %v3773_v16 = vpop.f32.mrb[39].mxu0 }
 0x2fd   : > { %v7980_v52 = vadd.f32 %v7329_v53, %v9727_v51  ;;  %v7949_v62 = vadd.f32 %v9727_v51, %v3773_v16  ;;  %v4902_v2 = vpop.f32.mrb[39].mxu1 }
 0x2fe   : > { %5255 = vst [vmem:[%s9738_s8 + $0x238] sm:$0xff] %v7948_v3  ;;  %v7981_v37 = vadd.f32 %v9727_v51, %v4902_v2 }
 0x2ff   : > { %5287 = vst [vmem:[%s9738_s8 + $0x338] sm:$0xff] %v7980_v52  ;;  %5254 = vst [vmem:[%s9738_s8 + $0x230] sm:$0xff] %v7949_v62  ;;  %v7012_v30 = vpop.f32.mrb[40].mxu0 }
 0x300   : > { %5286 = vst [vmem:[%s9738_s8 + $0x330] sm:$0xff] %v7981_v37  ;;  %v7950_v32 = vadd.f32 %v7012_v30, %v9727_v51  ;;  %v7332_v34 = vpop.f32.mrb[40].mxu1  ;;  %v3783_v40 = vpop.f32.mrb[41].mxu0 }
 0x301   : > { %v7982_v24 = vadd.f32 %v7332_v34, %v9727_v51  ;;  %v7951_v8 = vadd.f32 %v9727_v51, %v3783_v40  ;;  %v4912_v50 = vpop.f32.mrb[41].mxu1 }
 0x302   : > { %5257 = vst [vmem:[%s9738_s8 + $0x248] sm:$0xff] %v7950_v32  ;;  %v7983_v12 = vadd.f32 %v9727_v51, %v4912_v50 }
 0x303   : > { %5289 = vst [vmem:[%s9738_s8 + $0x348] sm:$0xff] %v7982_v24  ;;  %5256 = vst [vmem:[%s9738_s8 + $0x240] sm:$0xff] %v7951_v8  ;;  %v7015_v49 = vpop.f32.mrb[42].mxu0 }
 0x304   : > { %5288 = vst [vmem:[%s9738_s8 + $0x340] sm:$0xff] %v7983_v12  ;;  %v7952_v26 = vadd.f32 %v7015_v49, %v9727_v51  ;;  %v7335_v61 = vpop.f32.mrb[42].mxu1  ;;  %v3793_v57 = vpop.f32.mrb[43].mxu0 }
 0x305   : > { %v7984_v38 = vadd.f32 %v7335_v61, %v9727_v51  ;;  %v7953_v29 = vadd.f32 %v9727_v51, %v3793_v57  ;;  %v4922_v27 = vpop.f32.mrb[43].mxu1 }
 0x306   : > { %5259 = vst [vmem:[%s9738_s8 + $0x258] sm:$0xff] %v7952_v26  ;;  %v7985_v18 = vadd.f32 %v9727_v51, %v4922_v27 }
 0x307   : > { %5291 = vst [vmem:[%s9738_s8 + $0x358] sm:$0xff] %v7984_v38  ;;  %5258 = vst [vmem:[%s9738_s8 + $0x250] sm:$0xff] %v7953_v29  ;;  %v7018_v10 = vpop.f32.mrb[44].mxu0 }
 0x308   : > { %5290 = vst [vmem:[%s9738_s8 + $0x350] sm:$0xff] %v7985_v18  ;;  %v7954_v63 = vadd.f32 %v7018_v10, %v9727_v51  ;;  %v7338_v41 = vpop.f32.mrb[44].mxu1  ;;  %v3803_v13 = vpop.f32.mrb[45].mxu0 }
 0x309   : > { %v7986_v56 = vadd.f32 %v7338_v41, %v9727_v51  ;;  %v7955_v4 = vadd.f32 %v9727_v51, %v3803_v13  ;;  %v4932_v1 = vpop.f32.mrb[45].mxu1 }
 0x30a   : > { %5261 = vst [vmem:[%s9738_s8 + $0x268] sm:$0xff] %v7954_v63  ;;  %v7987_v54 = vadd.f32 %v9727_v51, %v4932_v1 }
 0x30b   : > { %5293 = vst [vmem:[%s9738_s8 + $0x368] sm:$0xff] %v7986_v56  ;;  %5260 = vst [vmem:[%s9738_s8 + $0x260] sm:$0xff] %v7955_v4  ;;  %v7021_v7 = vpop.f32.mrb[46].mxu0 }
 0x30c   : > { %5292 = vst [vmem:[%s9738_s8 + $0x360] sm:$0xff] %v7987_v54  ;;  %v7956_v55 = vadd.f32 %v7021_v7, %v9727_v51  ;;  %v7341_v17 = vpop.f32.mrb[46].mxu1  ;;  %v3813_v25 = vpop.f32.mrb[47].mxu0 }
 0x30d   : > { %v7988_v36 = vadd.f32 %v7341_v17, %v9727_v51  ;;  %v7957_v46 = vadd.f32 %v9727_v51, %v3813_v25  ;;  %v4942_v48 = vpop.f32.mrb[47].mxu1  ;;  %v8493_v17 = vld [vmem:[%s10163_s2] ss:$0 sm:$0xff] }
 0x30e   : > { %5263 = vst [vmem:[%s9738_s8 + $0x278] sm:$0xff] %v7956_v55  ;;  %v7989_v0 = vadd.f32 %v9727_v51, %v4942_v48 }
 0x30f   : > { %5295 = vst [vmem:[%s9738_s8 + $0x378] sm:$0xff] %v7988_v36  ;;  %5262 = vst [vmem:[%s9738_s8 + $0x270] sm:$0xff] %v7957_v46  ;;  %v7024_v39 = vpop.f32.mrb[48].mxu0 }
 0x310   : > { %5294 = vst [vmem:[%s9738_s8 + $0x370] sm:$0xff] %v7989_v0  ;;  %v7958_v20 = vadd.f32 %v7024_v39, %v9727_v51  ;;  %v7344_v6 = vpop.f32.mrb[48].mxu1  ;;  %v3823_v28 = vpop.f32.mrb[49].mxu0 }
 0x311   : > { %v7990_v42 = vadd.f32 %v7344_v6, %v9727_v51  ;;  %v7959_v15 = vadd.f32 %v9727_v51, %v3823_v28  ;;  %v4952_v44 = vpop.f32.mrb[49].mxu1 }
 0x312   : > { %5265 = vst [vmem:[%s9738_s8 + $0x288] sm:$0xff] %v7958_v20  ;;  %v7991_v11 = vadd.f32 %v9727_v51, %v4952_v44 }
 0x313   : > { %5297 = vst [vmem:[%s9738_s8 + $0x388] sm:$0xff] %v7990_v42  ;;  %5264 = vst [vmem:[%s9738_s8 + $0x280] sm:$0xff] %v7959_v15  ;;  %v7027_v33 = vpop.f32.mrb[50].mxu0 }
 0x314   : > { %5296 = vst [vmem:[%s9738_s8 + $0x380] sm:$0xff] %v7991_v11  ;;  %v7960_v23 = vadd.f32 %v7027_v33, %v9727_v51  ;;  %v7347_v45 = vpop.f32.mrb[50].mxu1  ;;  %v3833_v47 = vpop.f32.mrb[51].mxu0 }
 0x315   : > { %v7992_v19 = vadd.f32 %v7347_v45, %v9727_v51  ;;  %v7961_v43 = vadd.f32 %v9727_v51, %v3833_v47  ;;  %v4962_v58 = vpop.f32.mrb[51].mxu1 }
 0x316   : > { %5267 = vst [vmem:[%s9738_s8 + $0x298] sm:$0xff] %v7960_v23  ;;  %v7993_v9 = vadd.f32 %v9727_v51, %v4962_v58 }
 0x317   : > { %5299 = vst [vmem:[%s9738_s8 + $0x398] sm:$0xff] %v7992_v19  ;;  %5266 = vst [vmem:[%s9738_s8 + $0x290] sm:$0xff] %v7961_v43  ;;  %v7030_v59 = vpop.f32.mrb[52].mxu0 }
 0x318   : > { %5298 = vst [vmem:[%s9738_s8 + $0x390] sm:$0xff] %v7993_v9  ;;  %v7962_v5 = vadd.f32 %v7030_v59, %v9727_v51  ;;  %v7350_v60 = vpop.f32.mrb[52].mxu1  ;;  %v3843_v22 = vpop.f32.mrb[53].mxu0 }
 0x319   : > { %v7994_v21 = vadd.f32 %v7350_v60, %v9727_v51  ;;  %v7963_v35 = vadd.f32 %v9727_v51, %v3843_v22  ;;  %v4972_v14 = vpop.f32.mrb[53].mxu1 }
 0x31a   : > { %5269 = vst [vmem:[%s9738_s8 + $0x2a8] sm:$0xff] %v7962_v5  ;;  %v7995_v31 = vadd.f32 %v9727_v51, %v4972_v14 }
 0x31b   : > { %5301 = vst [vmem:[%s9738_s8 + $0x3a8] sm:$0xff] %v7994_v21  ;;  %5268 = vst [vmem:[%s9738_s8 + $0x2a0] sm:$0xff] %v7963_v35  ;;  %v7033_v3 = vpop.f32.mrb[54].mxu0 }
 0x31c   : > { %5300 = vst [vmem:[%s9738_s8 + $0x3a0] sm:$0xff] %v7995_v31  ;;  %v7964_v53 = vadd.f32 %v7033_v3, %v9727_v51  ;;  %v7353_v16 = vpop.f32.mrb[54].mxu1  ;;  %v3853_v52 = vpop.f32.mrb[55].mxu0 }
 0x31d   : > { %v7996_v62 = vadd.f32 %v7353_v16, %v9727_v51  ;;  %v7965_v2 = vadd.f32 %v9727_v51, %v3853_v52  ;;  %v4982_v37 = vpop.f32.mrb[55].mxu1 }
 0x31e   : > { %5271 = vst [vmem:[%s9738_s8 + $0x2b8] sm:$0xff] %v7964_v53  ;;  %v7997_v30 = vadd.f32 %v9727_v51, %v4982_v37 }
 0x31f   : > { %5303 = vst [vmem:[%s9738_s8 + $0x3b8] sm:$0xff] %v7996_v62  ;;  %5270 = vst [vmem:[%s9738_s8 + $0x2b0] sm:$0xff] %v7965_v2  ;;  %v7036_v32 = vpop.f32.mrb[56].mxu0 }
 0x320   : > { %5302 = vst [vmem:[%s9738_s8 + $0x3b0] sm:$0xff] %v7997_v30  ;;  %v7966_v34 = vadd.f32 %v7036_v32, %v9727_v51  ;;  %v7356_v40 = vpop.f32.mrb[56].mxu1  ;;  %v3863_v24 = vpop.f32.mrb[57].mxu0 }
 0x321   : > { %v7998_v8 = vadd.f32 %v7356_v40, %v9727_v51  ;;  %v7967_v50 = vadd.f32 %v9727_v51, %v3863_v24  ;;  %v4992_v12 = vpop.f32.mrb[57].mxu1 }
 0x322   : > { %5273 = vst [vmem:[%s9738_s8 + $0x2c8] sm:$0xff] %v7966_v34  ;;  %v7999_v49 = vadd.f32 %v9727_v51, %v4992_v12 }
 0x323   : > { %5305 = vst [vmem:[%s9738_s8 + $0x3c8] sm:$0xff] %v7998_v8  ;;  %5272 = vst [vmem:[%s9738_s8 + $0x2c0] sm:$0xff] %v7967_v50  ;;  %v7039_v26 = vpop.f32.mrb[58].mxu0 }
 0x324   : > { %5304 = vst [vmem:[%s9738_s8 + $0x3c0] sm:$0xff] %v7999_v49  ;;  %v7968_v61 = vadd.f32 %v7039_v26, %v9727_v51  ;;  %v7359_v57 = vpop.f32.mrb[58].mxu1  ;;  %v3873_v38 = vpop.f32.mrb[59].mxu0 }
 0x325   : > { %v8000_v29 = vadd.f32 %v7359_v57, %v9727_v51  ;;  %v7969_v27 = vadd.f32 %v9727_v51, %v3873_v38  ;;  %v5002_v18 = vpop.f32.mrb[59].mxu1 }
 0x326   : > { %5275 = vst [vmem:[%s9738_s8 + $0x2d8] sm:$0xff] %v7968_v61  ;;  %v8001_v10 = vadd.f32 %v9727_v51, %v5002_v18 }
 0x327   : > { %5307 = vst [vmem:[%s9738_s8 + $0x3d8] sm:$0xff] %v8000_v29  ;;  %5274 = vst [vmem:[%s9738_s8 + $0x2d0] sm:$0xff] %v7969_v27  ;;  %v7042_v63 = vpop.f32.mrb[60].mxu0 }
 0x328   : > { %5306 = vst [vmem:[%s9738_s8 + $0x3d0] sm:$0xff] %v8001_v10  ;;  %v7970_v41 = vadd.f32 %v7042_v63, %v9727_v51  ;;  %v7362_v13 = vpop.f32.mrb[60].mxu1  ;;  %v3883_v56 = vpop.f32.mrb[61].mxu0 }
 0x329   : > { %v8002_v4 = vadd.f32 %v7362_v13, %v9727_v51  ;;  %v7971_v1 = vadd.f32 %v9727_v51, %v3883_v56  ;;  %v5012_v54 = vpop.f32.mrb[61].mxu1 }
 0x32a   : > { %5277 = vst [vmem:[%s9738_s8 + $0x2e8] sm:$0xff] %v7970_v41  ;;  %v8003_v7 = vadd.f32 %v9727_v51, %v5012_v54 }
 0x32b   : > { %5309 = vst [vmem:[%s9738_s8 + $0x3e8] sm:$0xff] %v8002_v4  ;;  %5276 = vst [vmem:[%s9738_s8 + $0x2e0] sm:$0xff] %v7971_v1  ;;  %v7045_v55 = vpop.f32.mrb[62].mxu0 }
 0x32c   : > { %5308 = vst [vmem:[%s9738_s8 + $0x3e0] sm:$0xff] %v8003_v7  ;;  %v7972_v25 = vadd.f32 %v8493_v17, %v7045_v55  ;;  %v7365_v36 = vpop.f32.mrb[62].mxu1  ;;  %v3893_v46 = vpop.f32.mrb[63].mxu0 }
 0x32d   : > { %v8004_v51 = vadd.f32 %v8493_v17, %v7365_v36  ;;  %v7973_v48 = vadd.f32 %v8493_v17, %v3893_v46  ;;  %v5022_v0 = vpop.f32.mrb[63].mxu1 }
 0x32e   : > { %5279 = vst [vmem:[%s9738_s8 + $0x2f8] sm:$0xff] %v7972_v25  ;;  %v8005_v39 = vadd.f32 %v8493_v17, %v5022_v0 }
 0x32f   : > { %5311 = vst [vmem:[%s9738_s8 + $0x3f8] sm:$0xff] %v8004_v51  ;;  %5278 = vst [vmem:[%s9738_s8 + $0x2f0] sm:$0xff] %v7973_v48 }
 0x330   : > { %5310 = vst [vmem:[%s9738_s8 + $0x3f0] sm:$0xff] %v8005_v39 }
 0x331   : > { %8535 = shalt.err (!%p8532_p6)
}
 0x332   : > { %s8536_s30 = scalar_lea.hbm %s10105_s21, 16384  ;;  %s8540_s6 = scalar_lea.hbm %s10164_s3, 32768 }
 0x333   : > { %p8537_p7 = scmp.ne.s32.totalorder %s10105_s21, %s8536_s30  ;;  %p8541_p0 = scmp.lt.u32.totalorder %s10105_s21, %s10164_s3 }
 0x334   : > { %p8542_p2 = scmp.lt.u32.totalorder %s8540_s6, %s8536_s30  ;;  %p8544_p8 = scmp.lt.u32.totalorder %s8536_s30, %s10105_s21 }
 0x335   : > { %p8538_p9 = pnand %p8537_p7, %p10550_p10 }
 0x336   : > { %p8543_p4 = por %p8542_p2, %p8541_p0 }
 0x337   : > { %p8539_p12 = pneg %p8538_p9 }
 0x338   : > { %p8545_p11 = por %p8544_p8, %p8543_p4 }
 0x33a   : > { %p8546_p13 = pnand %p8545_p11, %p8539_p12 }
 0x33c   : > { %8549 = shalt.err (!%p8546_p13)
}
 0x33d   : > { %s8610_s9 = smov 128   ;;  %s8611_s11 = smov 8  }
 0x33e   : > { %8395 = dma.vmem_to_hbm [thread:$0]  (%p10550_p10), %s10107_s10, 16384, %s10105_s21, %s10115_s23, %s8610_s9, %s8610_s9, %s8611_s11  }
 0x33f PF: > { %p8407_p1 = scmp.ge.s32.totalorder %s8604_s17, 2  ;;  %s5127_s18 = sand.u32 1, %s8584_s12  }
 0x340   : > { %p10551_p3 = scmp.ne.s32.totalorder %s10319_s24, 0  ;;  %s5128_s15 = scalar_lea.sflag [#allocation4], %s5127_s18 }
 0x342   : > { %p8402_p5 = pnand %p8407_p1, %p10551_p3 }
 0x344   : > { %8579 = dma.done.wait (!%p8402_p5), %s5128_s15, 16384  }
 0x345   : > { %8581 = vsyncadd (!%p8402_p5), %s5128_s15, 4294950912  ;;  %s17_s17 = sadd.s32 1, %s8604_s17   ;;  %s10552_s12 = smov %s8588_s13 }
 0x346   : > { %p14_p6 = scmp.ge.s32.totalorder %s17_s17, 4   ;;  %s10553_s13 = smov %s8592_s14 }
 0x347   : > { %s10554_s14 = smov %s8685_s25  ;;  %s10555_s15 = smov %s8600_s16 }
 0x348   : > { %s10556_s16 = smov %s10558_s20  ;;  %16 = sbr.rel (!%p14_p6) target bundleno = 5 (0x5), region = 90 }
 0x34f   :  { %5133 = vsyncpa [#allocation3], 1 }
 0x350   :  { %5135 = vsyncpa [#allocation3 + $0x1], 1 }
 0x351   :  { %5136 = vsyncpa [#allocation4], 1 }
 0x352   :  { %5138 = vsyncpa [#allocation4 + $0x1], 1 }

</bundles_post_ra>
